<compile_context>
chip_gen: v6e
topology: v6e:2x2x1
jax: 0.10.0
libtpu: 0.0.40
codegen_flags: <defaults>
</compile_context>

<pallas_src>
import math

import jax
import jax.numpy as jnp
from jax.experimental import pallas as pl
from jax.experimental.pallas import tpu as pltpu


def _round_up(x: int, m: int) -> int:
    return ((x + m - 1) // m) * m


def _pick_batch_tile(B, L, S, n_meta, code_itemsize, requested):
    # Keep the double-buffered working set well under the default scoped VMEM
    # (32 MiB) so the same tiling also fits v7x (64 MiB physical VMEM).
    budget_bytes = 20 * 1024 * 1024
    per_row = (2 * 2 * L * S * code_itemsize      # two code inputs, double-buffered
               + 2 * (2 * n_meta + 2) * 4         # packed nu/pi side operand
               + 2 * 4)                           # lane-dense f32 output
    max_tb = max(128, (budget_bytes // max(per_row, 1)) // 128 * 128)
    tb = min(int(requested), max_tb, _round_up(B, 128))
    return max(128, (tb // 128) * 128)


def _two_body_kernel(c1_ref, c2_ref, side_ref, w_ref, u_ref, out_ref):
    """One batch tile.

    c1_ref, c2_ref : (tb, L, S)    codes
    side_ref       : (tb, 2J+2)    packed [nu1 | nu2 | pi1 | pi2]
    w_ref          : (S, S)        symbol interaction matrix
    u_ref          : (J, J)        metadata coupling matrix
    out_ref        : (1, 1, tb)    lane-dense per-row potential
    """
    tb, L, S = c1_ref.shape
    J = u_ref.shape[0]

    c1 = c1_ref[...].astype(jnp.float32)
    c2 = c2_ref[...].astype(jnp.float32)
    w = w_ref[...].astype(jnp.float32)

    # --- code-code bilinear term: sum_{l,s,t} c1[b,l,s] W[s,t] c2[b,l,t] ---
    if S <= 32:
        # Tiny contraction: unrolled VPU broadcast-MAC over the symbol axis
        # (an S-wide MXU contraction would pad to 128/256 -> <3% utilization).
        c1w = c1[:, :, 0:1] * w[0, :]
        for s in range(1, S):
            c1w = c1w + c1[:, :, s:s + 1] * w[s, :]
    else:
        # Large-S variants: use the MXU.
        c1w = jnp.einsum('bls,st->blt', c1, w,
                         preferred_element_type=jnp.float32)
    prod = c1w * c2
    # lane reduce (XLU) first, then over L
    two_body = jnp.sum(jnp.sum(prod, axis=-1), axis=-1)          # (tb,)

    # --- metadata bilinear term: sum_{j,k} nu1[b,j] U[j,k] nu2[b,k] ---
    side = side_ref[...].astype(jnp.float32)                     # (tb, 2J+2)
    nu1 = side[:, 0:J]
    nu2 = side[:, J:2 * J]
    pi1 = side[:, 2 * J]
    pi2 = side[:, 2 * J + 1]
    u = u_ref[...].astype(jnp.float32)
    if J <= 32:
        nu1u = nu1[:, 0:1] * u[0, :]
        for j in range(1, J):
            nu1u = nu1u + nu1[:, j:j + 1] * u[j, :]
    else:
        nu1u = jnp.dot(nu1, u, preferred_element_type=jnp.float32)
    meta = jnp.sum(nu1u * nu2, axis=-1)                          # (tb,)

    out = pi1 * pi2 * two_body + meta                            # (tb,)
    out_ref[...] = out[None, None, :]                            # (1, 1, tb)


class TwoBodyMRFPotential:
    """Bilinear two-body MRF potential with a Pallas TPU forward pass."""

    def __init__(self, n_symbols: int, n_meta: int, *, seed: int = 0):
        self.n_symbols = n_symbols
        self.n_meta = n_meta
        # Deterministic synthetic parameters (symmetric interaction matrices).
        kw, ku = jax.random.split(jax.random.PRNGKey(seed))
        w = jax.random.normal(kw, (n_symbols, n_symbols), dtype=jnp.float32)
        u = jax.random.normal(ku, (n_meta, n_meta), dtype=jnp.float32)
        self.w_ss = 0.5 * (w + w.T)
        self.u_jj = 0.5 * (u + u.T)

    def __call__(self, c_1_bls, nu_1_bj, pi_1_b, c_2_bls, nu_2_bj, pi_2_b,
                 *, batch_tile: int = 512):
        S, J = self.n_symbols, self.n_meta
        batch_shape = c_1_bls.shape[:-2]
        L = c_1_bls.shape[-2]
        assert c_1_bls.shape[-1] == S
        B = math.prod(batch_shape) if batch_shape else 1

        c1 = c_1_bls.reshape(B, L, S)
        c2 = c_2_bls.reshape(B, L, S)
        nu1 = (jnp.zeros((B, J), jnp.float32) if nu_1_bj is None
               else nu_1_bj.reshape(B, J).astype(jnp.float32))
        nu2 = (jnp.zeros((B, J), jnp.float32) if nu_2_bj is None
               else nu_2_bj.reshape(B, J).astype(jnp.float32))
        pi1 = pi_1_b.reshape(B, 1).astype(jnp.float32)
        pi2 = pi_2_b.reshape(B, 1).astype(jnp.float32)
        # Pack all narrow per-row operands into one array: one DMA stream per
        # grid step instead of four masked ones.
        side = jnp.concatenate([nu1, nu2, pi1, pi2], axis=-1)    # (B, 2J+2)

        tb = _pick_batch_tile(B, L, S, J, c1.dtype.itemsize, batch_tile)
        b_pad = _round_up(B, tb)
        if b_pad != B:
            pad = b_pad - B
            c1 = jnp.pad(c1, ((0, pad), (0, 0), (0, 0)))
            c2 = jnp.pad(c2, ((0, pad), (0, 0), (0, 0)))
            side = jnp.pad(side, ((0, pad), (0, 0)))
        n_tiles = b_pad // tb

        out = pl.pallas_call(
            _two_body_kernel,
            out_shape=jax.ShapeDtypeStruct((n_tiles, 1, tb), jnp.float32),
            grid=(n_tiles,),
            in_specs=[
                pl.BlockSpec((tb, L, S), lambda i: (i, 0, 0)),
                pl.BlockSpec((tb, L, S), lambda i: (i, 0, 0)),
                pl.BlockSpec((tb, 2 * J + 2), lambda i: (i, 0)),
                pl.BlockSpec((S, S), lambda i: (0, 0)),
                pl.BlockSpec((J, J), lambda i: (0, 0)),
            ],
            out_specs=pl.BlockSpec((1, 1, tb), lambda i: (i, 0, 0)),
            compiler_params=pltpu.CompilerParams(
                dimension_semantics=("parallel",)),   # shards across TCs on v7x
        )(c1, c2, side, self.w_ss, self.u_jj)

        out = out.reshape(b_pad)[:B]
        return out.reshape(batch_shape)

    # pure-JAX reference for verification
    def reference(self, c_1_bls, nu_1_bj, pi_1_b, c_2_bls, nu_2_bj, pi_2_b):
        two = jnp.einsum('...ls,st,...lt->...',
                         c_1_bls.astype(jnp.float32), self.w_ss,
                         c_2_bls.astype(jnp.float32))
        meta = jnp.einsum('...j,jk,...k->...',
                          nu_1_bj.astype(jnp.float32), self.u_jj,
                          nu_2_bj.astype(jnp.float32))
        return (pi_1_b.astype(jnp.float32) * pi_2_b.astype(jnp.float32) * two
                + meta)


if __name__ == "__main__":
    B, L, S, J = 16, 8, 4, 4  # batch, code_length, n_symbols, n_meta

    key = jax.random.PRNGKey(0)
    k1, k2, k3, k4, k5, k6 = jax.random.split(key, 6)
    # codes: soft one-hot over symbols (softmax along symbol axis)
    c_1_bls = jax.nn.softmax(jax.random.normal(k1, (B, L, S)), axis=-1)
    c_2_bls = jax.nn.softmax(jax.random.normal(k2, (B, L, S)), axis=-1)
    nu_1_bj = jax.random.normal(k3, (B, J))
    nu_2_bj = jax.random.normal(k4, (B, J))
    pi_1_b = jax.nn.sigmoid(jax.random.normal(k5, (B,)))
    pi_2_b = jax.nn.sigmoid(jax.random.normal(k6, (B,)))

    module = TwoBodyMRFPotential(n_symbols=S, n_meta=J, seed=0)

    out = module(c_1_bls, nu_1_bj, pi_1_b, c_2_bls, nu_2_bj, pi_2_b)
    out = jax.block_until_ready(out)

    ref = module.reference(c_1_bls, nu_1_bj, pi_1_b, c_2_bls, nu_2_bj, pi_2_b)
    assert out.shape == (B,)
    assert jnp.allclose(out, ref, atol=1e-4, rtol=1e-4)

    print("KERNEL_OK")
</pallas_src>

<mosaic_0001>
module attributes {stable_mosaic.version = 11 : i64} {
  func.func @_two_body_kernel(%arg0: i32, %arg1: memref<128x8x4xf32, #tpu.memory_space<vmem>>, %arg2: memref<128x8x4xf32, #tpu.memory_space<vmem>>, %arg3: memref<128x10xf32, #tpu.memory_space<vmem>>, %arg4: memref<4x4xf32, #tpu.memory_space<vmem>>, %arg5: memref<4x4xf32, #tpu.memory_space<vmem>>, %arg6: memref<1x1x128xf32, #tpu.memory_space<vmem>>) attributes {dimension_semantics = [#tpu.dimension_semantics<parallel>], iteration_bounds = array<i64: 1>, scalar_prefetch = 0 : i64, scratch_operands = 0 : i64, tpu.core_type = #tpu.core_type<tc>, window_params = [{transform_indices = @transform_0, window_bounds = array<i64: 128, 8, 4>}, {transform_indices = @transform_1, window_bounds = array<i64: 128, 8, 4>}, {transform_indices = @transform_2, window_bounds = array<i64: 128, 10>}, {pipeline_mode = #tpu.pipeline_mode<synchronous>, transform_indices = @transform_3, window_bounds = array<i64: 4, 4>}, {pipeline_mode = #tpu.pipeline_mode<synchronous>, transform_indices = @transform_4, window_bounds = array<i64: 4, 4>}, {transform_indices = @transform_5, window_bounds = array<i64: 1, 1, 128>}]} {
    %c0 = arith.constant 0 : index
    %c0_0 = arith.constant 0 : index
    %c0_1 = arith.constant 0 : index
    %0 = vector.load %arg1[%c0, %c0_0, %c0_1] : memref<128x8x4xf32, #tpu.memory_space<vmem>>, vector<128x8x4xf32>
    %c0_2 = arith.constant 0 : index
    %c0_3 = arith.constant 0 : index
    %c0_4 = arith.constant 0 : index
    %1 = vector.load %arg2[%c0_2, %c0_3, %c0_4] : memref<128x8x4xf32, #tpu.memory_space<vmem>>, vector<128x8x4xf32>
    %c0_5 = arith.constant 0 : index
    %c0_6 = arith.constant 0 : index
    %2 = vector.load %arg4[%c0_5, %c0_6] : memref<4x4xf32, #tpu.memory_space<vmem>>, vector<4x4xf32>
    %3 = vector.extract_strided_slice %0 {offsets = [0, 0, 0], sizes = [128, 8, 1], strides = [1, 1, 1]} : vector<128x8x4xf32> to vector<128x8x1xf32>
    %4 = vector.extract_strided_slice %2 {offsets = [0, 0], sizes = [1, 4], strides = [1, 1]} : vector<4x4xf32> to vector<1x4xf32>
    %5 = vector.shape_cast %4 : vector<1x4xf32> to vector<4xf32>
    %6 = vector.shape_cast %5 : vector<4xf32> to vector<1x1x4xf32>
    %7 = vector.broadcast %3 : vector<128x8x1xf32> to vector<128x8x4xf32>
    %8 = vector.broadcast %6 : vector<1x1x4xf32> to vector<128x8x4xf32>
    %9 = arith.mulf %7, %8 : vector<128x8x4xf32>
    %10 = vector.extract_strided_slice %0 {offsets = [0, 0, 1], sizes = [128, 8, 1], strides = [1, 1, 1]} : vector<128x8x4xf32> to vector<128x8x1xf32>
    %11 = vector.extract_strided_slice %2 {offsets = [1, 0], sizes = [1, 4], strides = [1, 1]} : vector<4x4xf32> to vector<1x4xf32>
    %12 = vector.shape_cast %11 : vector<1x4xf32> to vector<4xf32>
    %13 = vector.shape_cast %12 : vector<4xf32> to vector<1x1x4xf32>
    %14 = vector.broadcast %10 : vector<128x8x1xf32> to vector<128x8x4xf32>
    %15 = vector.broadcast %13 : vector<1x1x4xf32> to vector<128x8x4xf32>
    %16 = arith.mulf %14, %15 : vector<128x8x4xf32>
    %17 = arith.addf %9, %16 : vector<128x8x4xf32>
    %18 = vector.extract_strided_slice %0 {offsets = [0, 0, 2], sizes = [128, 8, 1], strides = [1, 1, 1]} : vector<128x8x4xf32> to vector<128x8x1xf32>
    %19 = vector.extract_strided_slice %2 {offsets = [2, 0], sizes = [1, 4], strides = [1, 1]} : vector<4x4xf32> to vector<1x4xf32>
    %20 = vector.shape_cast %19 : vector<1x4xf32> to vector<4xf32>
    %21 = vector.shape_cast %20 : vector<4xf32> to vector<1x1x4xf32>
    %22 = vector.broadcast %18 : vector<128x8x1xf32> to vector<128x8x4xf32>
    %23 = vector.broadcast %21 : vector<1x1x4xf32> to vector<128x8x4xf32>
    %24 = arith.mulf %22, %23 : vector<128x8x4xf32>
    %25 = arith.addf %17, %24 : vector<128x8x4xf32>
    %26 = vector.extract_strided_slice %0 {offsets = [0, 0, 3], sizes = [128, 8, 1], strides = [1, 1, 1]} : vector<128x8x4xf32> to vector<128x8x1xf32>
    %27 = vector.extract_strided_slice %2 {offsets = [3, 0], sizes = [1, 4], strides = [1, 1]} : vector<4x4xf32> to vector<1x4xf32>
    %28 = vector.shape_cast %27 : vector<1x4xf32> to vector<4xf32>
    %29 = vector.shape_cast %28 : vector<4xf32> to vector<1x1x4xf32>
    %30 = vector.broadcast %26 : vector<128x8x1xf32> to vector<128x8x4xf32>
    %31 = vector.broadcast %29 : vector<1x1x4xf32> to vector<128x8x4xf32>
    %32 = arith.mulf %30, %31 : vector<128x8x4xf32>
    %33 = arith.addf %25, %32 : vector<128x8x4xf32>
    %34 = arith.mulf %33, %1 : vector<128x8x4xf32>
    %cst = arith.constant dense<0.000000e+00> : vector<128x8xf32>
    %35 = vector.multi_reduction <add>, %34, %cst [2] : vector<128x8x4xf32> to vector<128x8xf32>
    %cst_7 = arith.constant dense<0.000000e+00> : vector<128xf32>
    %36 = vector.multi_reduction <add>, %35, %cst_7 [1] : vector<128x8xf32> to vector<128xf32>
    %c0_8 = arith.constant 0 : index
    %c0_9 = arith.constant 0 : index
    %37 = vector.load %arg3[%c0_8, %c0_9] : memref<128x10xf32, #tpu.memory_space<vmem>>, vector<128x10xf32>
    %38 = vector.extract_strided_slice %37 {offsets = [0, 0], sizes = [128, 4], strides = [1, 1]} : vector<128x10xf32> to vector<128x4xf32>
    %39 = vector.extract_strided_slice %37 {offsets = [0, 4], sizes = [128, 4], strides = [1, 1]} : vector<128x10xf32> to vector<128x4xf32>
    %40 = vector.extract_strided_slice %37 {offsets = [0, 8], sizes = [128, 1], strides = [1, 1]} : vector<128x10xf32> to vector<128x1xf32>
    %41 = vector.shape_cast %40 : vector<128x1xf32> to vector<128xf32>
    %42 = vector.extract_strided_slice %37 {offsets = [0, 9], sizes = [128, 1], strides = [1, 1]} : vector<128x10xf32> to vector<128x1xf32>
    %43 = vector.shape_cast %42 : vector<128x1xf32> to vector<128xf32>
    %c0_10 = arith.constant 0 : index
    %c0_11 = arith.constant 0 : index
    %44 = vector.load %arg5[%c0_10, %c0_11] : memref<4x4xf32, #tpu.memory_space<vmem>>, vector<4x4xf32>
    %45 = vector.extract_strided_slice %38 {offsets = [0, 0], sizes = [128, 1], strides = [1, 1]} : vector<128x4xf32> to vector<128x1xf32>
    %46 = vector.extract_strided_slice %44 {offsets = [0, 0], sizes = [1, 4], strides = [1, 1]} : vector<4x4xf32> to vector<1x4xf32>
    %47 = vector.shape_cast %46 : vector<1x4xf32> to vector<4xf32>
    %48 = vector.shape_cast %47 : vector<4xf32> to vector<1x4xf32>
    %49 = vector.broadcast %45 : vector<128x1xf32> to vector<128x4xf32>
    %50 = vector.broadcast %48 : vector<1x4xf32> to vector<128x4xf32>
    %51 = arith.mulf %49, %50 : vector<128x4xf32>
    %52 = vector.extract_strided_slice %38 {offsets = [0, 1], sizes = [128, 1], strides = [1, 1]} : vector<128x4xf32> to vector<128x1xf32>
    %53 = vector.extract_strided_slice %44 {offsets = [1, 0], sizes = [1, 4], strides = [1, 1]} : vector<4x4xf32> to vector<1x4xf32>
    %54 = vector.shape_cast %53 : vector<1x4xf32> to vector<4xf32>
    %55 = vector.shape_cast %54 : vector<4xf32> to vector<1x4xf32>
    %56 = vector.broadcast %52 : vector<128x1xf32> to vector<128x4xf32>
    %57 = vector.broadcast %55 : vector<1x4xf32> to vector<128x4xf32>
    %58 = arith.mulf %56, %57 : vector<128x4xf32>
    %59 = arith.addf %51, %58 : vector<128x4xf32>
    %60 = vector.extract_strided_slice %38 {offsets = [0, 2], sizes = [128, 1], strides = [1, 1]} : vector<128x4xf32> to vector<128x1xf32>
    %61 = vector.extract_strided_slice %44 {offsets = [2, 0], sizes = [1, 4], strides = [1, 1]} : vector<4x4xf32> to vector<1x4xf32>
    %62 = vector.shape_cast %61 : vector<1x4xf32> to vector<4xf32>
    %63 = vector.shape_cast %62 : vector<4xf32> to vector<1x4xf32>
    %64 = vector.broadcast %60 : vector<128x1xf32> to vector<128x4xf32>
    %65 = vector.broadcast %63 : vector<1x4xf32> to vector<128x4xf32>
    %66 = arith.mulf %64, %65 : vector<128x4xf32>
    %67 = arith.addf %59, %66 : vector<128x4xf32>
    %68 = vector.extract_strided_slice %38 {offsets = [0, 3], sizes = [128, 1], strides = [1, 1]} : vector<128x4xf32> to vector<128x1xf32>
    %69 = vector.extract_strided_slice %44 {offsets = [3, 0], sizes = [1, 4], strides = [1, 1]} : vector<4x4xf32> to vector<1x4xf32>
    %70 = vector.shape_cast %69 : vector<1x4xf32> to vector<4xf32>
    %71 = vector.shape_cast %70 : vector<4xf32> to vector<1x4xf32>
    %72 = vector.broadcast %68 : vector<128x1xf32> to vector<128x4xf32>
    %73 = vector.broadcast %71 : vector<1x4xf32> to vector<128x4xf32>
    %74 = arith.mulf %72, %73 : vector<128x4xf32>
    %75 = arith.addf %67, %74 : vector<128x4xf32>
    %76 = arith.mulf %75, %39 : vector<128x4xf32>
    %cst_12 = arith.constant dense<0.000000e+00> : vector<128xf32>
    %77 = vector.multi_reduction <add>, %76, %cst_12 [1] : vector<128x4xf32> to vector<128xf32>
    %78 = arith.mulf %41, %43 : vector<128xf32>
    %79 = arith.mulf %78, %36 : vector<128xf32>
    %80 = arith.addf %79, %77 : vector<128xf32>
    %81 = vector.shape_cast %80 : vector<128xf32> to vector<1x1x128xf32>
    %c0_13 = arith.constant 0 : index
    %c0_14 = arith.constant 0 : index
    %c0_15 = arith.constant 0 : index
    %82 = vector.load %arg6[%c0_13, %c0_14, %c0_15] : memref<1x1x128xf32, #tpu.memory_space<vmem>>, vector<1x1x128xf32>
    tpu.vector_store %arg6[%c0_13, %c0_14, %c0_15], %81 {strides = array<i32>} : memref<1x1x128xf32, #tpu.memory_space<vmem>>, vector<1x1x128xf32>,
    return
  }
  func.func @transform_0(%arg0: i32) -> (i32, i32, i32) {
    %c0_i32 = arith.constant 0 : i32
    %c0_i32_0 = arith.constant 0 : i32
    %c0_i32_1 = arith.constant 0 : i32
    return %arg0, %c0_i32, %c0_i32_0 : i32, i32, i32
  }
  func.func @transform_1(%arg0: i32) -> (i32, i32, i32) {
    %c0_i32 = arith.constant 0 : i32
    %c0_i32_0 = arith.constant 0 : i32
    %c0_i32_1 = arith.constant 0 : i32
    return %arg0, %c0_i32, %c0_i32_0 : i32, i32, i32
  }
  func.func @transform_2(%arg0: i32) -> (i32, i32) {
    %c0_i32 = arith.constant 0 : i32
    %c0_i32_0 = arith.constant 0 : i32
    return %arg0, %c0_i32 : i32, i32
  }
  func.func @transform_3(%arg0: i32) -> (i32, i32) {
    %c0_i32 = arith.constant 0 : i32
    %c0_i32_0 = arith.constant 0 : i32
    %c0_i32_1 = arith.constant 0 : i32
    return %c0_i32, %c0_i32_0 : i32, i32
  }
  func.func @transform_4(%arg0: i32) -> (i32, i32) {
    %c0_i32 = arith.constant 0 : i32
    %c0_i32_0 = arith.constant 0 : i32
    %c0_i32_1 = arith.constant 0 : i32
    return %c0_i32, %c0_i32_0 : i32, i32
  }
  func.func @transform_5(%arg0: i32) -> (i32, i32, i32) {
    %c0_i32 = arith.constant 0 : i32
    %c0_i32_0 = arith.constant 0 : i32
    %c0_i32_1 = arith.constant 0 : i32
    return %arg0, %c0_i32, %c0_i32_0 : i32, i32, i32
  }
}

</mosaic_0001>

<bundles_post_ra>
// kernel: tpu_custom_call.1
= control target key start
LH: loop header
LB: loop body
LE: loop exit
PB: predicated region body
PF: predicated region fallthrough
CT: control target
= control target key end

     0   :  { %v10522_v2 = vmov 1   ;;  %v10520_v3 = vmov 0   ;;  %s10514_s0 = inlined_call_operand.vmem [shape: f32[128,8,4], index: 0, kind: input, shape index: {}]   ;;  %s10515_s1 = inlined_call_operand.vmem [shape: f32[128,8,4], index: 1, kind: input, shape index: {}]   ;;  %s10516_s2 = inlined_call_operand.vmem [shape: f32[128,10], index: 2, kind: input, shape index: {}]   ;;  %s10517_s3 = inlined_call_operand.vmem [shape: f32[4,4], index: 3, kind: input, shape index: {}]   ;;  %s10518_s4 = inlined_call_operand.vmem [shape: f32[4,4], index: 4, kind: input, shape index: {}]   ;;  %s10519_s5 = inlined_call_operand.hbm [shape: f32[1,1,128], index: 5, kind: output, shape index: {}]  }
   0x1   :  { %v5735_v0 = vld [vmem:[%s10514_s0 + $0x10] sm:$0xff]  ;;  %v21_v1 = vld [vmem:[%s10514_s0] sm:$0xff]  ;;  %5528 = vset.pattern.permute.xlu0 %v10522_v2  ;;  %5527 = vset.pattern.permute.xlu1 %v10520_v3  ;;  %v24_v4 = vld [vmem:[%s10514_s0 + $0x18] sm:$0xff] }
   0x2   :  { %290 = vperm.xlu1 %5527, %v5735_v0   ;;  %1051 = vperm.xlu0 %5528, %v21_v1   ;;  %v26_v5 = vld [vmem:[%s10514_s0 + $0x28] sm:$0xff]  ;;  %v28_v6 = vld [vmem:[%s10514_s0 + $0x38] sm:$0xff] }
   0x6   :  { %295 = vperm.xlu1 %5527, %v24_v4   ;;  %1063 = vperm.xlu0 %5528, %v24_v4  }
   0xa   :  { %305 = vperm.xlu1 %5527, %v26_v5   ;;  %1071 = vperm.xlu0 %5528, %v26_v5  }
   0xb   :  { %10 = vsyncpa [#allocation3], 0  ;;  %v30_v7 = vld [vmem:[%s10514_s0 + $0x48] sm:$0xff]  ;;  %v32_v8 = vld [vmem:[%s10514_s0 + $0x58] sm:$0xff]  ;;  %vm3494_vm0 = vcmask 31744   ;;  %vm4521_vm1 = vcmask 1041409  }
   0xc   :  { %v34_v9 = vld [vmem:[%s10514_s0 + $0x68] sm:$0xff]  ;;  %v36_v10 = vld [vmem:[%s10514_s0 + $0x78] sm:$0xff]  ;;  %vm4523_vm2 = vcmask 1042434   ;;  %vm4525_vm3 = vcmask 1043459   ;;  %vm4527_vm4 = vcmask 1044484   ;;  %vm4529_vm5 = vcmask 1045509  }
   0xd   :  { %v38_v11 = vld [vmem:[%s10514_s0 + $0x88] sm:$0xff]  ;;  %v40_v12 = vld [vmem:[%s10514_s0 + $0x98] sm:$0xff]  ;;  %vm4531_vm6 = vcmask 1046534   ;;  %vm4533_vm7 = vcmask 1047559   ;;  %vm4656_vm8 = vcmask 64512   ;;  %vm5403_vm9 = vcmask 130112  }
   0xe   :  { %315 = vperm.xlu1 %5527, %v28_v6   ;;  %1079 = vperm.xlu0 %5528, %v28_v6   ;;  %v42_v13 = vld [vmem:[%s10514_s0 + $0xa8] sm:$0xff]  ;;  %v44_v14 = vld [vmem:[%s10514_s0 + $0xb8] sm:$0xff]  ;;  %vm5410_vm10 = vcmask 195712   ;;  %vm5417_vm11 = vcmask 261312   ;;  %vm5424_vm12 = vcmask 326912   ;;  %vm5431_vm13 = vcmask 392512  }
   0xf   :  { %v46_v15 = vld [vmem:[%s10514_s0 + $0xc8] sm:$0xff]  ;;  %v48_v16 = vld [vmem:[%s10514_s0 + $0xd8] sm:$0xff]  ;;  %vm5438_vm14 = vcmask 458112   ;;  %vm5445_vm15 = vcmask 523712   ;;  %s5701_s22 = smov [#allocation2]  }
  0x10   :  { %v50_v17 = vld [vmem:[%s10514_s0 + $0xe8] sm:$0xff]  ;;  %v52_v18 = vld [vmem:[%s10514_s0 + $0xf8] sm:$0xff]  ;;  %s5511_s23 = sshll.u32 %s5701_s22, 4  ;;  %s5512_s23 = int_to_ptr.vmem [resolvable:$true] %s5511_s23 }
  0x11   :  { %v54_v19 = vld [vmem:[%s10514_s0 + $0x108] sm:$0xff]  ;;  %v56_v20 = vld [vmem:[%s10514_s0 + $0x118] sm:$0xff]  ;;  %s5672_s24 = scalar_lea.vmem %s5512_s23, 16  ;;  %s5676_s25 = scalar_lea.vmem %s5512_s23, 32 }
  0x12   :  { %325 = vperm.xlu1 %5527, %v30_v7   ;;  %1087 = vperm.xlu0 %5528, %v30_v7   ;;  %v58_v21 = vld [vmem:[%s10514_s0 + $0x128] sm:$0xff]  ;;  %v60_v22 = vld [vmem:[%s10514_s0 + $0x138] sm:$0xff]  ;;  %p5673_p0 = scmp.ne.s32.totalorder %s5512_s23, %s5672_s24  ;;  %p5677_p1 = scmp.lt.s32.totalorder %s5512_s23, %s5512_s23 }
  0x13   :  { %v62_v23 = vld [vmem:[%s10514_s0 + $0x148] sm:$0xff]  ;;  %v64_v24 = vld [vmem:[%s10514_s0 + $0x158] sm:$0xff]  ;;  %p5678_p2 = scmp.lt.s32.totalorder %s5676_s25, %s5672_s24 }
  0x14   :  { %v66_v25 = vld [vmem:[%s10514_s0 + $0x168] sm:$0xff]  ;;  %v68_v26 = vld [vmem:[%s10514_s0 + $0x178] sm:$0xff] }
  0x15   :  { %v70_v27 = vld [vmem:[%s10514_s0 + $0x188] sm:$0xff]  ;;  %v72_v28 = vld [vmem:[%s10514_s0 + $0x198] sm:$0xff]  ;;  %p5679_p3 = por %p5678_p2, %p5677_p1 }
  0x16   :  { %335 = vperm.xlu1 %5527, %v32_v8   ;;  %1095 = vperm.xlu0 %5528, %v32_v8   ;;  %v74_v29 = vld [vmem:[%s10514_s0 + $0x1a8] sm:$0xff]  ;;  %v76_v30 = vld [vmem:[%s10514_s0 + $0x1b8] sm:$0xff] }
  0x17   :  { %v78_v31 = vld [vmem:[%s10514_s0 + $0x1c8] sm:$0xff]  ;;  %v80_v32 = vld [vmem:[%s10514_s0 + $0x1d8] sm:$0xff]  ;;  %p5680_p4 = pnand %p5679_p3, %p5673_p0 }
  0x18   :  { %v82_v33 = vld [vmem:[%s10514_s0 + $0x1e8] sm:$0xff]  ;;  %v84_v34 = vld [vmem:[%s10514_s0 + $0x1f8] sm:$0xff] }
  0x19   :  { %v86_v37 = vld [vmem:[%s10514_s0 + $0x208] sm:$0xff]  ;;  %v88_v40 = vld [vmem:[%s10514_s0 + $0x218] sm:$0xff] }
  0x1a   :  { %345 = vperm.xlu1 %5527, %v34_v9   ;;  %1103 = vperm.xlu0 %5528, %v34_v9   ;;  %v90_v43 = vld [vmem:[%s10514_s0 + $0x228] sm:$0xff]  ;;  %v92_v46 = vld [vmem:[%s10514_s0 + $0x238] sm:$0xff] }
  0x1b   :  { %v94_v49 = vld [vmem:[%s10514_s0 + $0x248] sm:$0xff]  ;;  %v96_v52 = vld [vmem:[%s10514_s0 + $0x258] sm:$0xff] }
  0x1c   :  { %v98_v55 = vld [vmem:[%s10514_s0 + $0x268] sm:$0xff]  ;;  %v100_v58 = vld [vmem:[%s10514_s0 + $0x278] sm:$0xff] }
  0x1d   :  { %v102_v61 = vld [vmem:[%s10514_s0 + $0x288] sm:$0xff]  ;;  %v104_v1 = vld [vmem:[%s10514_s0 + $0x298] sm:$0xff] }
  0x1e   :  { %355 = vperm.xlu1 %5527, %v36_v10   ;;  %1111 = vperm.xlu0 %5528, %v36_v10   ;;  %v106_v6 = vld [vmem:[%s10514_s0 + $0x2a8] sm:$0xff]  ;;  %v108_v9 = vld [vmem:[%s10514_s0 + $0x2b8] sm:$0xff] }
  0x22   :  { %365 = vperm.xlu1 %5527, %v38_v11   ;;  %1119 = vperm.xlu0 %5528, %v38_v11  }
  0x26   :  { %375 = vperm.xlu1 %5527, %v40_v12   ;;  %1127 = vperm.xlu0 %5528, %v40_v12   ;;  %v110_v12 = vld [vmem:[%s10514_s0 + $0x2c8] sm:$0xff] }
  0x2a   :  { %385 = vperm.xlu1 %5527, %v42_v13   ;;  %1135 = vperm.xlu0 %5528, %v42_v13  }
  0x2e   :  { %395 = vperm.xlu1 %5527, %v44_v14   ;;  %1143 = vperm.xlu0 %5528, %v44_v14  }
  0x32   :  { %405 = vperm.xlu1 %5527, %v46_v15   ;;  %1151 = vperm.xlu0 %5528, %v46_v15   ;;  %v112_v15 = vld [vmem:[%s10514_s0 + $0x2d8] sm:$0xff] }
  0x36   :  { %415 = vperm.xlu1 %5527, %v48_v16   ;;  %1159 = vperm.xlu0 %5528, %v48_v16  }
  0x3a   :  { %425 = vperm.xlu1 %5527, %v50_v17   ;;  %1167 = vperm.xlu0 %5528, %v50_v17  }
  0x3e   :  { %435 = vperm.xlu1 %5527, %v52_v18   ;;  %1175 = vperm.xlu0 %5528, %v52_v18   ;;  %v114_v18 = vld [vmem:[%s10514_s0 + $0x2e8] sm:$0xff] }
  0x42   :  { %445 = vperm.xlu1 %5527, %v54_v19   ;;  %1183 = vperm.xlu0 %5528, %v54_v19  }
  0x46   :  { %455 = vperm.xlu1 %5527, %v56_v20   ;;  %1191 = vperm.xlu0 %5528, %v56_v20  }
  0x4a   :  { %465 = vperm.xlu1 %5527, %v58_v21   ;;  %1199 = vperm.xlu0 %5528, %v58_v21   ;;  %v116_v21 = vld [vmem:[%s10514_s0 + $0x2f8] sm:$0xff] }
  0x4e   :  { %475 = vperm.xlu1 %5527, %v60_v22   ;;  %1207 = vperm.xlu0 %5528, %v60_v22  }
  0x52   :  { %485 = vperm.xlu1 %5527, %v62_v23   ;;  %1215 = vperm.xlu0 %5528, %v62_v23  }
  0x56   :  { %495 = vperm.xlu1 %5527, %v64_v24   ;;  %1223 = vperm.xlu0 %5528, %v64_v24   ;;  %v118_v24 = vld [vmem:[%s10514_s0 + $0x308] sm:$0xff] }
  0x5a   :  { %505 = vperm.xlu1 %5527, %v66_v25   ;;  %1231 = vperm.xlu0 %5528, %v66_v25  }
  0x5e   :  { %515 = vperm.xlu1 %5527, %v68_v26   ;;  %1239 = vperm.xlu0 %5528, %v68_v26  }
  0x62   :  { %525 = vperm.xlu1 %5527, %v70_v27   ;;  %1247 = vperm.xlu0 %5528, %v70_v27   ;;  %v120_v27 = vld [vmem:[%s10514_s0 + $0x318] sm:$0xff] }
  0x66   :  { %535 = vperm.xlu1 %5527, %v72_v28   ;;  %1255 = vperm.xlu0 %5528, %v72_v28  }
  0x6a   :  { %545 = vperm.xlu1 %5527, %v74_v29   ;;  %1263 = vperm.xlu0 %5528, %v74_v29  }
  0x6e   :  { %555 = vperm.xlu1 %5527, %v76_v30   ;;  %1271 = vperm.xlu0 %5528, %v76_v30   ;;  %v122_v30 = vld [vmem:[%s10514_s0 + $0x328] sm:$0xff] }
  0x72   :  { %565 = vperm.xlu1 %5527, %v78_v31   ;;  %1279 = vperm.xlu0 %5528, %v78_v31  }
  0x76   :  { %575 = vperm.xlu1 %5527, %v80_v32   ;;  %1287 = vperm.xlu0 %5528, %v80_v32  }
  0x7a   :  { %585 = vperm.xlu1 %5527, %v82_v33   ;;  %1295 = vperm.xlu0 %5528, %v82_v33   ;;  %v124_v33 = vld [vmem:[%s10514_s0 + $0x338] sm:$0xff] }
  0x7d   :  { %v5836_v35 = vpop.permute.xlu1 %290  ;;  %v5838_v36 = vpop.permute.xlu0 %1051 }
  0x7e   :  { %595 = vperm.xlu1 %5527, %v84_v34   ;;  %1303 = vperm.xlu0 %5528, %v84_v34  }
  0x81   :  { %v5843_v38 = vpop.permute.xlu1 %295  ;;  %v5845_v39 = vpop.permute.xlu0 %1063 }
  0x82   :  { %605 = vperm.xlu1 %5527, %v86_v37   ;;  %1311 = vperm.xlu0 %5528, %v86_v37  }
  0x85   :  { %v5850_v41 = vpop.permute.xlu1 %305  ;;  %v5852_v42 = vpop.permute.xlu0 %1071 }
  0x86   :  { %615 = vperm.xlu1 %5527, %v88_v40   ;;  %1319 = vperm.xlu0 %5528, %v88_v40   ;;  %v126_v40 = vld [vmem:[%s10514_s0 + $0x348] sm:$0xff] }
  0x89   :  { %v5857_v44 = vpop.permute.xlu1 %315  ;;  %v5859_v45 = vpop.permute.xlu0 %1079 }
  0x8a   :  { %625 = vperm.xlu1 %5527, %v90_v43   ;;  %1327 = vperm.xlu0 %5528, %v90_v43  }
  0x8d   :  { %v5864_v47 = vpop.permute.xlu1 %325  ;;  %v5866_v48 = vpop.permute.xlu0 %1087 }
  0x8e   :  { %635 = vperm.xlu1 %5527, %v92_v46   ;;  %1335 = vperm.xlu0 %5528, %v92_v46  }
  0x91   :  { %v5871_v50 = vpop.permute.xlu1 %335  ;;  %v5873_v51 = vpop.permute.xlu0 %1095 }
  0x92   :  { %645 = vperm.xlu1 %5527, %v94_v49   ;;  %1343 = vperm.xlu0 %5528, %v94_v49   ;;  %v128_v49 = vld [vmem:[%s10514_s0 + $0x358] sm:$0xff] }
  0x95   :  { %v5878_v53 = vpop.permute.xlu1 %345  ;;  %v5880_v54 = vpop.permute.xlu0 %1103 }
  0x96   :  { %655 = vperm.xlu1 %5527, %v96_v52   ;;  %1351 = vperm.xlu0 %5528, %v96_v52  }
  0x99   :  { %v5885_v56 = vpop.permute.xlu1 %355  ;;  %v5887_v57 = vpop.permute.xlu0 %1111 }
  0x9a   :  { %665 = vperm.xlu1 %5527, %v98_v55   ;;  %1359 = vperm.xlu0 %5528, %v98_v55  }
  0x9d   :  { %v5892_v59 = vpop.permute.xlu1 %365  ;;  %v5894_v60 = vpop.permute.xlu0 %1119 }
  0x9e   :  { %675 = vperm.xlu1 %5527, %v100_v58   ;;  %1367 = vperm.xlu0 %5528, %v100_v58   ;;  %v130_v58 = vld [vmem:[%s10514_s0 + $0x368] sm:$0xff] }
  0xa1   :  { %v5899_v62 = vpop.permute.xlu1 %375  ;;  %v5901_v63 = vpop.permute.xlu0 %1127 }
  0xa2   :  { %685 = vperm.xlu1 %5527, %v102_v61   ;;  %1375 = vperm.xlu0 %5528, %v102_v61  }
  0xa5   :  { %v5906_v4 = vpop.permute.xlu1 %385  ;;  %v5908_v5 = vpop.permute.xlu0 %1135 }
  0xa6   :  { %695 = vperm.xlu1 %5527, %v104_v1   ;;  %1383 = vperm.xlu0 %5528, %v104_v1  }
  0xa9   :  { %v5913_v7 = vpop.permute.xlu1 %395  ;;  %v5915_v8 = vpop.permute.xlu0 %1143 }
  0xaa   :  { %705 = vperm.xlu1 %5527, %v106_v6   ;;  %1391 = vperm.xlu0 %5528, %v106_v6   ;;  %v132_v6 = vld [vmem:[%s10514_s0 + $0x378] sm:$0xff] }
  0xad   :  { %v5920_v10 = vpop.permute.xlu1 %405  ;;  %v5922_v11 = vpop.permute.xlu0 %1151 }
  0xae   :  { %715 = vperm.xlu1 %5527, %v108_v9   ;;  %1399 = vperm.xlu0 %5528, %v108_v9  }
  0xb1   :  { %v5927_v13 = vpop.permute.xlu1 %415  ;;  %v5929_v14 = vpop.permute.xlu0 %1159 }
  0xb2   :  { %725 = vperm.xlu1 %5527, %v110_v12   ;;  %1407 = vperm.xlu0 %5528, %v110_v12  }
  0xb5   :  { %v5934_v16 = vpop.permute.xlu1 %425  ;;  %v5936_v17 = vpop.permute.xlu0 %1167 }
  0xb6   :  { %735 = vperm.xlu1 %5527, %v112_v15   ;;  %1415 = vperm.xlu0 %5528, %v112_v15   ;;  %v134_v15 = vld [vmem:[%s10514_s0 + $0x388] sm:$0xff] }
  0xb9   :  { %v5941_v19 = vpop.permute.xlu1 %435  ;;  %v5943_v20 = vpop.permute.xlu0 %1175 }
  0xba   :  { %745 = vperm.xlu1 %5527, %v114_v18   ;;  %1423 = vperm.xlu0 %5528, %v114_v18  }
  0xbd   :  { %v5948_v22 = vpop.permute.xlu1 %445  ;;  %v5950_v23 = vpop.permute.xlu0 %1183 }
  0xbe   :  { %755 = vperm.xlu1 %5527, %v116_v21   ;;  %1431 = vperm.xlu0 %5528, %v116_v21  }
  0xc1   :  { %v5955_v25 = vpop.permute.xlu1 %455  ;;  %v5957_v26 = vpop.permute.xlu0 %1191 }
  0xc2   :  { %765 = vperm.xlu1 %5527, %v118_v24   ;;  %1439 = vperm.xlu0 %5528, %v118_v24   ;;  %v136_v24 = vld [vmem:[%s10514_s0 + $0x398] sm:$0xff] }
  0xc5   :  { %v5962_v28 = vpop.permute.xlu1 %465  ;;  %v5964_v29 = vpop.permute.xlu0 %1199 }
  0xc6   :  { %775 = vperm.xlu1 %5527, %v120_v27   ;;  %1447 = vperm.xlu0 %5528, %v120_v27  }
  0xc9   :  { %v5969_v31 = vpop.permute.xlu1 %475  ;;  %v5971_v32 = vpop.permute.xlu0 %1207 }
  0xca   :  { %785 = vperm.xlu1 %5527, %v122_v30   ;;  %1455 = vperm.xlu0 %5528, %v122_v30  }
  0xcd   :  { %v5976_v34 = vpop.permute.xlu1 %485  ;;  %v5978_v37 = vpop.permute.xlu0 %1215 }
  0xce   :  { %795 = vperm.xlu1 %5527, %v124_v33   ;;  %1463 = vperm.xlu0 %5528, %v124_v33   ;;  %v138_v33 = vld [vmem:[%s10514_s0 + $0x3a8] sm:$0xff] }
  0xd1   :  { %v5983_v43 = vpop.permute.xlu1 %495  ;;  %v5985_v46 = vpop.permute.xlu0 %1223 }
  0xd2   :  { %805 = vperm.xlu1 %5527, %v126_v40   ;;  %1471 = vperm.xlu0 %5528, %v126_v40  }
  0xd5   :  { %v5990_v52 = vpop.permute.xlu1 %505  ;;  %v5992_v55 = vpop.permute.xlu0 %1231 }
  0xd6   :  { %815 = vperm.xlu1 %5527, %v128_v49   ;;  %1479 = vperm.xlu0 %5528, %v128_v49  }
  0xd9   :  { %v5997_v61 = vpop.permute.xlu1 %515  ;;  %v5999_v1 = vpop.permute.xlu0 %1239 }
  0xda   :  { %825 = vperm.xlu1 %5527, %v130_v58   ;;  %1487 = vperm.xlu0 %5528, %v130_v58   ;;  %v140_v58 = vld [vmem:[%s10514_s0 + $0x3b8] sm:$0xff] }
  0xdd   :  { %v6004_v9 = vpop.permute.xlu1 %525  ;;  %v6006_v12 = vpop.permute.xlu0 %1247 }
  0xde   :  { %835 = vperm.xlu1 %5527, %v132_v6   ;;  %1495 = vperm.xlu0 %5528, %v132_v6  }
  0xe1   :  { %v6011_v18 = vpop.permute.xlu1 %535  ;;  %v6013_v21 = vpop.permute.xlu0 %1255 }
  0xe2   :  { %10547 = vst [vmem:[#allocation5_spill] sm:$0xff] %v6013_v21  ;;  %845 = vperm.xlu1 %5527, %v134_v15   ;;  %1503 = vperm.xlu0 %5528, %v134_v15  }
  0xe5   :  { %v6018_v27 = vpop.permute.xlu1 %545  ;;  %v6020_v30 = vpop.permute.xlu0 %1263 }
  0xe6   :  { %10548 = vst [vmem:[#allocation6_spill] sm:$0xff] %v6018_v27  ;;  %10549 = vst [vmem:[#allocation7_spill] sm:$0xff] %v6020_v30  ;;  %855 = vperm.xlu1 %5527, %v136_v24   ;;  %1511 = vperm.xlu0 %5528, %v136_v24   ;;  %v142_v24 = vld [vmem:[%s10514_s0 + $0x3c8] sm:$0xff] }
  0xe9   :  { %v6025_v40 = vpop.permute.xlu1 %555  ;;  %v6027_v49 = vpop.permute.xlu0 %1271 }
  0xea   :  { %10550 = vst [vmem:[#allocation8_spill] sm:$0xff] %v6025_v40  ;;  %10551 = vst [vmem:[#allocation9_spill] sm:$0xff] %v6027_v49  ;;  %865 = vperm.xlu1 %5527, %v138_v33   ;;  %1519 = vperm.xlu0 %5528, %v138_v33   ;;  %v144_v33 = vld [vmem:[%s10514_s0 + $0x3d8] sm:$0xff]  ;;  %v5549_v40 = vld [vmem:[%s10514_s0 + $0x48] sm:$0xff] }
  0xed   :  { %v6032_v6 = vpop.permute.xlu1 %565  ;;  %v6034_v15 = vpop.permute.xlu0 %1279 }
  0xee   :  { %10552 = vst [vmem:[#allocation10_spill] sm:$0xff] %v6032_v6  ;;  %10553 = vst [vmem:[#allocation11_spill] sm:$0xff] %v6034_v15  ;;  %875 = vperm.xlu1 %5527, %v140_v58   ;;  %1527 = vperm.xlu0 %5528, %v140_v58   ;;  %v146_v58 = vld [vmem:[%s10514_s0 + $0x3e8] sm:$0xff] }
  0xf1   :  { %v6039_v3 = vpop.permute.xlu1 %575  ;;  %v6041_v2 = vpop.permute.xlu0 %1287 }
  0xf2   :  { %10554 = vst [vmem:[#allocation12_spill] sm:$0xff] %v6039_v3  ;;  %10555 = vst [vmem:[#allocation13_spill] sm:$0xff] %v6041_v2  ;;  %885 = vperm.xlu1 %5527, %v142_v24   ;;  %1535 = vperm.xlu0 %5528, %v142_v24   ;;  %v148_v24 = vld [vmem:[%s10514_s0 + $0x3f8] sm:$0xff] }
  0xf5   :  { %v6046_v49 = vpop.permute.xlu1 %585  ;;  %v6048_v6 = vpop.permute.xlu0 %1295 }
  0xf6   :  { %10556 = vst [vmem:[#allocation14_spill] sm:$0xff] %v6046_v49  ;;  %10557 = vst [vmem:[#allocation15_spill] sm:$0xff] %v6048_v6  ;;  %895 = vperm.xlu1 %5527, %v144_v33   ;;  %1543 = vperm.xlu0 %5528, %v144_v33   ;;  %v22_v33 = vld [vmem:[%s10514_s0 + $0x8] sm:$0xff] }
  0xf9   :  { %v6053_v15 = vpop.permute.xlu1 %595  ;;  %v6055_v3 = vpop.permute.xlu0 %1303 }
  0xfa   :  { %10558 = vst [vmem:[#allocation16_spill] sm:$0xff] %v6053_v15  ;;  %10559 = vst [vmem:[#allocation17_spill] sm:$0xff] %v6055_v3  ;;  %905 = vperm.xlu1 %5527, %v146_v58   ;;  %1551 = vperm.xlu0 %5528, %v146_v58   ;;  %v10564_v3 = vmov 1   ;;  %v10524_v58 = vmov 2  }
  0xfd   :  { %v6060_v2 = vpop.permute.xlu1 %605  ;;  %v6062_v49 = vpop.permute.xlu0 %1311 }
  0xfe   :  { %10560 = vst [vmem:[#allocation18_spill] sm:$0xff] %v6060_v2  ;;  %10561 = vst [vmem:[#allocation19_spill] sm:$0xff] %v6062_v49  ;;  %915 = vperm.xlu1 %5527, %v148_v24   ;;  %1559 = vperm.xlu0 %5528, %v148_v24   ;;  %v25_v49 = vld [vmem:[%s10514_s0 + $0x20] sm:$0xff] }
 0x101   :  { %v6067_v6 = vpop.permute.xlu1 %615  ;;  %v6069_v15 = vpop.permute.xlu0 %1319 }
 0x102   :  { %10562 = vst [vmem:[#allocation20_spill] sm:$0xff] %v6067_v6  ;;  %10563 = vst [vmem:[#allocation21_spill] sm:$0xff] %v6069_v15  ;;  %5529 = vset.pattern.permute.xlu1 %v10564_v3  ;;  %5531 = vset.pattern.permute.xlu0 %v10524_v58  ;;  %v27_v3 = vld [vmem:[%s10514_s0 + $0x30] sm:$0xff] }
 0x103   :  { %1055 = vperm.xlu1 %5529, %v22_v33   ;;  %1827 = vperm.xlu0 %5531, %v22_v33   ;;  %v29_v33 = vld [vmem:[%s10514_s0 + $0x40] sm:$0xff] }
 0x105   :  { %v6076_v24 = vpop.permute.xlu1 %625  ;;  %v6078_v2 = vpop.permute.xlu0 %1327 }
 0x106   :  { %10565 = vst [vmem:[#allocation22_spill] sm:$0xff] %v6076_v24  ;;  %10566 = vst [vmem:[#allocation23_spill] sm:$0xff] %v6078_v2 }
 0x107   :  { %1059 = vperm.xlu1 %5529, %v5735_v0   ;;  %1839 = vperm.xlu0 %5531, %v25_v49   ;;  %v31_v0 = vld [vmem:[%s10514_s0 + $0x50] sm:$0xff] }
 0x109   :  { %v6084_v15 = vpop.permute.xlu1 %635  ;;  %v6086_v58 = vpop.permute.xlu0 %1335 }
 0x10a   :  { %10567 = vst [vmem:[#allocation24_spill] sm:$0xff] %v6084_v15  ;;  %10568 = vst [vmem:[#allocation25_spill] sm:$0xff] %v6086_v58 }
 0x10b   :  { %1067 = vperm.xlu1 %5529, %v25_v49   ;;  %1847 = vperm.xlu0 %5531, %v27_v3   ;;  %v33_v49 = vld [vmem:[%s10514_s0 + $0x60] sm:$0xff] }
 0x10d   :  { %v6091_v24 = vpop.permute.xlu1 %645  ;;  %v6093_v2 = vpop.permute.xlu0 %1343 }
 0x10e   :  { %10569 = vst [vmem:[#allocation26_spill] sm:$0xff] %v6091_v24  ;;  %10570 = vst [vmem:[#allocation27_spill] sm:$0xff] %v6093_v2 }
 0x10f   :  { %1075 = vperm.xlu1 %5529, %v27_v3   ;;  %1855 = vperm.xlu0 %5531, %v29_v33   ;;  %v35_v3 = vld [vmem:[%s10514_s0 + $0x70] sm:$0xff] }
 0x111   :  { %v6098_v6 = vpop.permute.xlu1 %655  ;;  %v6100_v15 = vpop.permute.xlu0 %1351 }
 0x112   :  { %10571 = vst [vmem:[#allocation28_spill] sm:$0xff] %v6098_v6  ;;  %10572 = vst [vmem:[#allocation29_spill] sm:$0xff] %v6100_v15 }
 0x113   :  { %1083 = vperm.xlu1 %5529, %v29_v33   ;;  %1863 = vperm.xlu0 %5531, %v31_v0   ;;  %v37_v33 = vld [vmem:[%s10514_s0 + $0x80] sm:$0xff] }
 0x115   :  { %v6105_v58 = vpop.permute.xlu1 %665  ;;  %v6107_v24 = vpop.permute.xlu0 %1359 }
 0x116   :  { %10573 = vst [vmem:[#allocation30_spill] sm:$0xff] %v6105_v58  ;;  %10574 = vst [vmem:[#allocation31_spill] sm:$0xff] %v6107_v24 }
 0x117   :  { %1091 = vperm.xlu1 %5529, %v31_v0   ;;  %1871 = vperm.xlu0 %5531, %v33_v49   ;;  %v39_v0 = vld [vmem:[%s10514_s0 + $0x90] sm:$0xff] }
 0x119   :  { %v6112_v2 = vpop.permute.xlu1 %675  ;;  %v6114_v6 = vpop.permute.xlu0 %1367 }
 0x11a   :  { %10575 = vst [vmem:[#allocation32_spill] sm:$0xff] %v6112_v2  ;;  %10576 = vst [vmem:[#allocation33_spill] sm:$0xff] %v6114_v6 }
 0x11b   :  { %1099 = vperm.xlu1 %5529, %v33_v49   ;;  %1879 = vperm.xlu0 %5531, %v35_v3   ;;  %v41_v49 = vld [vmem:[%s10514_s0 + $0xa0] sm:$0xff] }
 0x11d   :  { %v6119_v15 = vpop.permute.xlu1 %685  ;;  %v6121_v58 = vpop.permute.xlu0 %1375 }
 0x11e   :  { %10577 = vst [vmem:[#allocation34_spill] sm:$0xff] %v6119_v15  ;;  %10578 = vst [vmem:[#allocation35_spill] sm:$0xff] %v6121_v58 }
 0x11f   :  { %1107 = vperm.xlu1 %5529, %v35_v3   ;;  %1887 = vperm.xlu0 %5531, %v37_v33   ;;  %v43_v3 = vld [vmem:[%s10514_s0 + $0xb0] sm:$0xff] }
 0x121   :  { %v6126_v24 = vpop.permute.xlu1 %695  ;;  %v6128_v2 = vpop.permute.xlu0 %1383 }
 0x122   :  { %10579 = vst [vmem:[#allocation36_spill] sm:$0xff] %v6126_v24  ;;  %10580 = vst [vmem:[#allocation37_spill] sm:$0xff] %v6128_v2 }
 0x123   :  { %1115 = vperm.xlu1 %5529, %v37_v33   ;;  %1895 = vperm.xlu0 %5531, %v39_v0   ;;  %v45_v33 = vld [vmem:[%s10514_s0 + $0xc0] sm:$0xff] }
 0x125   :  { %v6133_v6 = vpop.permute.xlu1 %705  ;;  %v6135_v15 = vpop.permute.xlu0 %1391 }
 0x126   :  { %10581 = vst [vmem:[#allocation38_spill] sm:$0xff] %v6133_v6  ;;  %10582 = vst [vmem:[#allocation39_spill] sm:$0xff] %v6135_v15 }
 0x127   :  { %1123 = vperm.xlu1 %5529, %v39_v0   ;;  %1903 = vperm.xlu0 %5531, %v41_v49   ;;  %v47_v0 = vld [vmem:[%s10514_s0 + $0xd0] sm:$0xff] }
 0x129   :  { %v6140_v58 = vpop.permute.xlu1 %715  ;;  %v6142_v24 = vpop.permute.xlu0 %1399 }
 0x12a   :  { %10583 = vst [vmem:[#allocation40_spill] sm:$0xff] %v6140_v58  ;;  %10584 = vst [vmem:[#allocation41_spill] sm:$0xff] %v6142_v24 }
 0x12b   :  { %1131 = vperm.xlu1 %5529, %v41_v49   ;;  %1911 = vperm.xlu0 %5531, %v43_v3   ;;  %v49_v49 = vld [vmem:[%s10514_s0 + $0xe0] sm:$0xff] }
 0x12d   :  { %v6147_v2 = vpop.permute.xlu1 %725  ;;  %v6149_v6 = vpop.permute.xlu0 %1407 }
 0x12e   :  { %10585 = vst [vmem:[#allocation42_spill] sm:$0xff] %v6147_v2  ;;  %10586 = vst [vmem:[#allocation43_spill] sm:$0xff] %v6149_v6 }
 0x12f   :  { %1139 = vperm.xlu1 %5529, %v43_v3   ;;  %1919 = vperm.xlu0 %5531, %v45_v33   ;;  %v51_v3 = vld [vmem:[%s10514_s0 + $0xf0] sm:$0xff] }
 0x131   :  { %v6154_v15 = vpop.permute.xlu1 %735  ;;  %v6156_v58 = vpop.permute.xlu0 %1415 }
 0x132   :  { %10587 = vst [vmem:[#allocation44_spill] sm:$0xff] %v6154_v15  ;;  %10588 = vst [vmem:[#allocation45_spill] sm:$0xff] %v6156_v58 }
 0x133   :  { %1147 = vperm.xlu1 %5529, %v45_v33   ;;  %1927 = vperm.xlu0 %5531, %v47_v0   ;;  %v53_v33 = vld [vmem:[%s10514_s0 + $0x100] sm:$0xff] }
 0x135   :  { %v6161_v24 = vpop.permute.xlu1 %745  ;;  %v6163_v2 = vpop.permute.xlu0 %1423 }
 0x136   :  { %10589 = vst [vmem:[#allocation46_spill] sm:$0xff] %v6161_v24  ;;  %10590 = vst [vmem:[#allocation47_spill] sm:$0xff] %v6163_v2 }
 0x137   :  { %1155 = vperm.xlu1 %5529, %v47_v0   ;;  %1935 = vperm.xlu0 %5531, %v49_v49   ;;  %v55_v0 = vld [vmem:[%s10514_s0 + $0x110] sm:$0xff] }
 0x139   :  { %v6168_v6 = vpop.permute.xlu1 %755  ;;  %v6170_v15 = vpop.permute.xlu0 %1431 }
 0x13a   :  { %10591 = vst [vmem:[#allocation48_spill] sm:$0xff] %v6168_v6  ;;  %10592 = vst [vmem:[#allocation49_spill] sm:$0xff] %v6170_v15 }
 0x13b   :  { %1163 = vperm.xlu1 %5529, %v49_v49   ;;  %1943 = vperm.xlu0 %5531, %v51_v3   ;;  %v57_v49 = vld [vmem:[%s10514_s0 + $0x120] sm:$0xff] }
 0x13d   :  { %v6175_v58 = vpop.permute.xlu1 %765  ;;  %v6177_v24 = vpop.permute.xlu0 %1439 }
 0x13e   :  { %10593 = vst [vmem:[#allocation50_spill] sm:$0xff] %v6175_v58  ;;  %10594 = vst [vmem:[#allocation51_spill] sm:$0xff] %v6177_v24 }
 0x13f   :  { %1171 = vperm.xlu1 %5529, %v51_v3   ;;  %1951 = vperm.xlu0 %5531, %v53_v33   ;;  %v59_v3 = vld [vmem:[%s10514_s0 + $0x130] sm:$0xff] }
 0x141   :  { %v6182_v2 = vpop.permute.xlu1 %775  ;;  %v6184_v6 = vpop.permute.xlu0 %1447 }
 0x142   :  { %10595 = vst [vmem:[#allocation52_spill] sm:$0xff] %v6182_v2  ;;  %10596 = vst [vmem:[#allocation53_spill] sm:$0xff] %v6184_v6 }
 0x143   :  { %1179 = vperm.xlu1 %5529, %v53_v33   ;;  %1959 = vperm.xlu0 %5531, %v55_v0   ;;  %v61_v33 = vld [vmem:[%s10514_s0 + $0x140] sm:$0xff] }
 0x145   :  { %v6189_v15 = vpop.permute.xlu1 %785  ;;  %v6191_v58 = vpop.permute.xlu0 %1455 }
 0x146   :  { %10597 = vst [vmem:[#allocation54_spill] sm:$0xff] %v6189_v15  ;;  %10598 = vst [vmem:[#allocation55_spill] sm:$0xff] %v6191_v58 }
 0x147   :  { %1187 = vperm.xlu1 %5529, %v55_v0   ;;  %1967 = vperm.xlu0 %5531, %v57_v49   ;;  %v63_v0 = vld [vmem:[%s10514_s0 + $0x150] sm:$0xff] }
 0x149   :  { %v6196_v24 = vpop.permute.xlu1 %795  ;;  %v6198_v2 = vpop.permute.xlu0 %1463 }
 0x14a   :  { %10599 = vst [vmem:[#allocation56_spill] sm:$0xff] %v6196_v24  ;;  %10600 = vst [vmem:[#allocation57_spill] sm:$0xff] %v6198_v2 }
 0x14b   :  { %1195 = vperm.xlu1 %5529, %v57_v49   ;;  %1975 = vperm.xlu0 %5531, %v59_v3   ;;  %v65_v49 = vld [vmem:[%s10514_s0 + $0x160] sm:$0xff] }
 0x14d   :  { %v6203_v6 = vpop.permute.xlu1 %805  ;;  %v6205_v15 = vpop.permute.xlu0 %1471 }
 0x14e   :  { %10601 = vst [vmem:[#allocation58_spill] sm:$0xff] %v6203_v6  ;;  %10602 = vst [vmem:[#allocation59_spill] sm:$0xff] %v6205_v15 }
 0x14f   :  { %1203 = vperm.xlu1 %5529, %v59_v3   ;;  %1983 = vperm.xlu0 %5531, %v61_v33   ;;  %v67_v3 = vld [vmem:[%s10514_s0 + $0x170] sm:$0xff] }
 0x151   :  { %v6210_v58 = vpop.permute.xlu1 %815  ;;  %v6212_v24 = vpop.permute.xlu0 %1479 }
 0x152   :  { %10603 = vst [vmem:[#allocation60_spill] sm:$0xff] %v6210_v58  ;;  %10604 = vst [vmem:[#allocation61_spill] sm:$0xff] %v6212_v24 }
 0x153   :  { %1211 = vperm.xlu1 %5529, %v61_v33   ;;  %1991 = vperm.xlu0 %5531, %v63_v0   ;;  %v69_v33 = vld [vmem:[%s10514_s0 + $0x180] sm:$0xff] }
 0x155   :  { %v6217_v2 = vpop.permute.xlu1 %825  ;;  %v6219_v6 = vpop.permute.xlu0 %1487 }
 0x156   :  { %10605 = vst [vmem:[#allocation62_spill] sm:$0xff] %v6217_v2  ;;  %10606 = vst [vmem:[#allocation63_spill] sm:$0xff] %v6219_v6 }
 0x157   :  { %1219 = vperm.xlu1 %5529, %v63_v0   ;;  %1999 = vperm.xlu0 %5531, %v65_v49   ;;  %v71_v0 = vld [vmem:[%s10514_s0 + $0x190] sm:$0xff] }
 0x159   :  { %v6224_v15 = vpop.permute.xlu1 %835  ;;  %v6226_v58 = vpop.permute.xlu0 %1495 }
 0x15a   :  { %10607 = vst [vmem:[#allocation64_spill] sm:$0xff] %v6224_v15  ;;  %10608 = vst [vmem:[#allocation65_spill] sm:$0xff] %v6226_v58 }
 0x15b   :  { %1227 = vperm.xlu1 %5529, %v65_v49   ;;  %2007 = vperm.xlu0 %5531, %v67_v3   ;;  %v73_v49 = vld [vmem:[%s10514_s0 + $0x1a0] sm:$0xff] }
 0x15d   :  { %v6231_v24 = vpop.permute.xlu1 %845  ;;  %v6233_v2 = vpop.permute.xlu0 %1503 }
 0x15e   :  { %10609 = vst [vmem:[#allocation66_spill] sm:$0xff] %v6231_v24  ;;  %10610 = vst [vmem:[#allocation67_spill] sm:$0xff] %v6233_v2 }
 0x15f   :  { %1235 = vperm.xlu1 %5529, %v67_v3   ;;  %2015 = vperm.xlu0 %5531, %v69_v33   ;;  %v75_v3 = vld [vmem:[%s10514_s0 + $0x1b0] sm:$0xff] }
 0x161   :  { %v6238_v6 = vpop.permute.xlu1 %855  ;;  %v6240_v15 = vpop.permute.xlu0 %1511 }
 0x162   :  { %10611 = vst [vmem:[#allocation68_spill] sm:$0xff] %v6238_v6  ;;  %10612 = vst [vmem:[#allocation69_spill] sm:$0xff] %v6240_v15 }
 0x163   :  { %1243 = vperm.xlu1 %5529, %v69_v33   ;;  %2023 = vperm.xlu0 %5531, %v71_v0   ;;  %v77_v33 = vld [vmem:[%s10514_s0 + $0x1c0] sm:$0xff] }
 0x165   :  { %v6245_v58 = vpop.permute.xlu1 %865  ;;  %v6247_v24 = vpop.permute.xlu0 %1519 }
 0x166   :  { %10613 = vst [vmem:[#allocation70_spill] sm:$0xff] %v6245_v58  ;;  %10614 = vst [vmem:[#allocation71_spill] sm:$0xff] %v6247_v24 }
 0x167   :  { %1251 = vperm.xlu1 %5529, %v71_v0   ;;  %2031 = vperm.xlu0 %5531, %v73_v49   ;;  %v79_v0 = vld [vmem:[%s10514_s0 + $0x1d0] sm:$0xff] }
 0x169   :  { %v6252_v2 = vpop.permute.xlu1 %875  ;;  %v6254_v6 = vpop.permute.xlu0 %1527 }
 0x16a   :  { %10615 = vst [vmem:[#allocation72_spill] sm:$0xff] %v6252_v2  ;;  %10616 = vst [vmem:[#allocation73_spill] sm:$0xff] %v6254_v6 }
 0x16b   :  { %1259 = vperm.xlu1 %5529, %v73_v49   ;;  %2039 = vperm.xlu0 %5531, %v75_v3   ;;  %v81_v49 = vld [vmem:[%s10514_s0 + $0x1e0] sm:$0xff] }
 0x16d   :  { %v6259_v15 = vpop.permute.xlu1 %885  ;;  %v6261_v58 = vpop.permute.xlu0 %1535 }
 0x16e   :  { %10617 = vst [vmem:[#allocation74_spill] sm:$0xff] %v6259_v15  ;;  %10618 = vst [vmem:[#allocation75_spill] sm:$0xff] %v6261_v58 }
 0x16f   :  { %1267 = vperm.xlu1 %5529, %v75_v3   ;;  %2047 = vperm.xlu0 %5531, %v77_v33   ;;  %v83_v3 = vld [vmem:[%s10514_s0 + $0x1f0] sm:$0xff] }
 0x171   :  { %v6266_v24 = vpop.permute.xlu1 %895  ;;  %v6268_v2 = vpop.permute.xlu0 %1543 }
 0x172   :  { %10619 = vst [vmem:[#allocation76_spill] sm:$0xff] %v6266_v24  ;;  %10620 = vst [vmem:[#allocation77_spill] sm:$0xff] %v6268_v2 }
 0x173   :  { %1275 = vperm.xlu1 %5529, %v77_v33   ;;  %2055 = vperm.xlu0 %5531, %v79_v0   ;;  %v85_v33 = vld [vmem:[%s10514_s0 + $0x200] sm:$0xff] }
 0x175   :  { %v6273_v6 = vpop.permute.xlu1 %905  ;;  %v6275_v15 = vpop.permute.xlu0 %1551 }
 0x176   :  { %10621 = vst [vmem:[#allocation78_spill] sm:$0xff] %v6273_v6  ;;  %10622 = vst [vmem:[#allocation79_spill] sm:$0xff] %v6275_v15 }
 0x177   :  { %1283 = vperm.xlu1 %5529, %v79_v0   ;;  %2063 = vperm.xlu0 %5531, %v81_v49   ;;  %v87_v0 = vld [vmem:[%s10514_s0 + $0x210] sm:$0xff] }
 0x179   :  { %v6280_v58 = vpop.permute.xlu1 %915  ;;  %v6282_v24 = vpop.permute.xlu0 %1559 }
 0x17a   :  { %10623 = vst [vmem:[#allocation80_spill] sm:$0xff] %v6280_v58  ;;  %10624 = vst [vmem:[#allocation81_spill] sm:$0xff] %v6282_v24 }
 0x17b   :  { %1291 = vperm.xlu1 %5529, %v81_v49   ;;  %2071 = vperm.xlu0 %5531, %v83_v3   ;;  %v89_v49 = vld [vmem:[%s10514_s0 + $0x220] sm:$0xff] }
 0x17e   :  { %v6287_v2 = vpop.permute.xlu1 %1055  ;;  %v6289_v6 = vpop.permute.xlu0 %1827 }
 0x17f   :  { %10625 = vst [vmem:[#allocation82_spill] sm:$0xff] %v6287_v2  ;;  %10626 = vst [vmem:[#allocation83_spill] sm:$0xff] %v6289_v6  ;;  %1299 = vperm.xlu1 %5529, %v83_v3   ;;  %2079 = vperm.xlu0 %5531, %v85_v33   ;;  %v91_v3 = vld [vmem:[%s10514_s0 + $0x230] sm:$0xff] }
 0x182   :  { %v6294_v15 = vpop.permute.xlu1 %1059  ;;  %v6296_v58 = vpop.permute.xlu0 %1839 }
 0x183   :  { %10627 = vst [vmem:[#allocation84_spill] sm:$0xff] %v6294_v15  ;;  %10628 = vst [vmem:[#allocation85_spill] sm:$0xff] %v6296_v58  ;;  %1307 = vperm.xlu1 %5529, %v85_v33   ;;  %2087 = vperm.xlu0 %5531, %v87_v0   ;;  %v93_v33 = vld [vmem:[%s10514_s0 + $0x240] sm:$0xff] }
 0x186   :  { %v6301_v24 = vpop.permute.xlu1 %1067  ;;  %v6303_v2 = vpop.permute.xlu0 %1847 }
 0x187   :  { %10629 = vst [vmem:[#allocation86_spill] sm:$0xff] %v6301_v24  ;;  %10630 = vst [vmem:[#allocation87_spill] sm:$0xff] %v6303_v2  ;;  %1315 = vperm.xlu1 %5529, %v87_v0   ;;  %2095 = vperm.xlu0 %5531, %v89_v49   ;;  %v95_v0 = vld [vmem:[%s10514_s0 + $0x250] sm:$0xff] }
 0x18a   :  { %v6308_v6 = vpop.permute.xlu1 %1075  ;;  %v6310_v15 = vpop.permute.xlu0 %1855 }
 0x18b   :  { %10631 = vst [vmem:[#allocation88_spill] sm:$0xff] %v6308_v6  ;;  %10632 = vst [vmem:[#allocation89_spill] sm:$0xff] %v6310_v15  ;;  %1323 = vperm.xlu1 %5529, %v89_v49   ;;  %2103 = vperm.xlu0 %5531, %v91_v3   ;;  %v97_v49 = vld [vmem:[%s10514_s0 + $0x260] sm:$0xff] }
 0x18e   :  { %v6315_v58 = vpop.permute.xlu1 %1083  ;;  %v6317_v24 = vpop.permute.xlu0 %1863 }
 0x18f   :  { %10633 = vst [vmem:[#allocation90_spill] sm:$0xff] %v6315_v58  ;;  %10634 = vst [vmem:[#allocation91_spill] sm:$0xff] %v6317_v24  ;;  %1331 = vperm.xlu1 %5529, %v91_v3   ;;  %2111 = vperm.xlu0 %5531, %v93_v33   ;;  %v99_v3 = vld [vmem:[%s10514_s0 + $0x270] sm:$0xff] }
 0x192   :  { %v6322_v2 = vpop.permute.xlu1 %1091  ;;  %v6324_v6 = vpop.permute.xlu0 %1871 }
 0x193   :  { %10635 = vst [vmem:[#allocation92_spill] sm:$0xff] %v6322_v2  ;;  %10636 = vst [vmem:[#allocation93_spill] sm:$0xff] %v6324_v6  ;;  %1339 = vperm.xlu1 %5529, %v93_v33   ;;  %2119 = vperm.xlu0 %5531, %v95_v0   ;;  %v101_v33 = vld [vmem:[%s10514_s0 + $0x280] sm:$0xff] }
 0x196   :  { %v6329_v15 = vpop.permute.xlu1 %1099  ;;  %v6331_v58 = vpop.permute.xlu0 %1879 }
 0x197   :  { %10637 = vst [vmem:[#allocation94_spill] sm:$0xff] %v6329_v15  ;;  %10638 = vst [vmem:[#allocation95_spill] sm:$0xff] %v6331_v58  ;;  %1347 = vperm.xlu1 %5529, %v95_v0   ;;  %2127 = vperm.xlu0 %5531, %v97_v49   ;;  %v103_v0 = vld [vmem:[%s10514_s0 + $0x290] sm:$0xff] }
 0x19a   :  { %v6336_v24 = vpop.permute.xlu1 %1107  ;;  %v6338_v2 = vpop.permute.xlu0 %1887 }
 0x19b   :  { %10639 = vst [vmem:[#allocation96_spill] sm:$0xff] %v6336_v24  ;;  %10640 = vst [vmem:[#allocation97_spill] sm:$0xff] %v6338_v2  ;;  %1355 = vperm.xlu1 %5529, %v97_v49   ;;  %2135 = vperm.xlu0 %5531, %v99_v3   ;;  %v105_v49 = vld [vmem:[%s10514_s0 + $0x2a0] sm:$0xff] }
 0x19e   :  { %v6343_v6 = vpop.permute.xlu1 %1115  ;;  %v6345_v15 = vpop.permute.xlu0 %1895 }
 0x19f   :  { %10641 = vst [vmem:[#allocation98_spill] sm:$0xff] %v6343_v6  ;;  %10642 = vst [vmem:[#allocation99_spill] sm:$0xff] %v6345_v15  ;;  %1363 = vperm.xlu1 %5529, %v99_v3   ;;  %2143 = vperm.xlu0 %5531, %v101_v33   ;;  %v107_v3 = vld [vmem:[%s10514_s0 + $0x2b0] sm:$0xff] }
 0x1a2   :  { %v6350_v58 = vpop.permute.xlu1 %1123  ;;  %v6352_v24 = vpop.permute.xlu0 %1903 }
 0x1a3   :  { %10643 = vst [vmem:[#allocation100_spill] sm:$0xff] %v6350_v58  ;;  %10644 = vst [vmem:[#allocation101_spill] sm:$0xff] %v6352_v24  ;;  %1371 = vperm.xlu1 %5529, %v101_v33   ;;  %2151 = vperm.xlu0 %5531, %v103_v0   ;;  %v109_v33 = vld [vmem:[%s10514_s0 + $0x2c0] sm:$0xff] }
 0x1a6   :  { %v6357_v2 = vpop.permute.xlu1 %1131  ;;  %v6359_v6 = vpop.permute.xlu0 %1911 }
 0x1a7   :  { %10645 = vst [vmem:[#allocation102_spill] sm:$0xff] %v6357_v2  ;;  %10646 = vst [vmem:[#allocation103_spill] sm:$0xff] %v6359_v6  ;;  %1379 = vperm.xlu1 %5529, %v103_v0   ;;  %2159 = vperm.xlu0 %5531, %v105_v49   ;;  %v111_v0 = vld [vmem:[%s10514_s0 + $0x2d0] sm:$0xff] }
 0x1aa   :  { %v6364_v15 = vpop.permute.xlu1 %1139  ;;  %v6366_v58 = vpop.permute.xlu0 %1919 }
 0x1ab   :  { %10647 = vst [vmem:[#allocation104_spill] sm:$0xff] %v6364_v15  ;;  %10648 = vst [vmem:[#allocation105_spill] sm:$0xff] %v6366_v58  ;;  %1387 = vperm.xlu1 %5529, %v105_v49   ;;  %2167 = vperm.xlu0 %5531, %v107_v3   ;;  %v113_v49 = vld [vmem:[%s10514_s0 + $0x2e0] sm:$0xff] }
 0x1ae   :  { %v6371_v24 = vpop.permute.xlu1 %1147  ;;  %v6373_v2 = vpop.permute.xlu0 %1927 }
 0x1af   :  { %10649 = vst [vmem:[#allocation106_spill] sm:$0xff] %v6371_v24  ;;  %10650 = vst [vmem:[#allocation107_spill] sm:$0xff] %v6373_v2  ;;  %1395 = vperm.xlu1 %5529, %v107_v3   ;;  %2175 = vperm.xlu0 %5531, %v109_v33   ;;  %v115_v3 = vld [vmem:[%s10514_s0 + $0x2f0] sm:$0xff] }
 0x1b2   :  { %v6378_v6 = vpop.permute.xlu1 %1155  ;;  %v6380_v15 = vpop.permute.xlu0 %1935 }
 0x1b3   :  { %10651 = vst [vmem:[#allocation108_spill] sm:$0xff] %v6378_v6  ;;  %10652 = vst [vmem:[#allocation109_spill] sm:$0xff] %v6380_v15  ;;  %1403 = vperm.xlu1 %5529, %v109_v33   ;;  %2183 = vperm.xlu0 %5531, %v111_v0   ;;  %v117_v33 = vld [vmem:[%s10514_s0 + $0x300] sm:$0xff] }
 0x1b6   :  { %v6385_v58 = vpop.permute.xlu1 %1163  ;;  %v6387_v24 = vpop.permute.xlu0 %1943 }
 0x1b7   :  { %10653 = vst [vmem:[#allocation110_spill] sm:$0xff] %v6385_v58  ;;  %10654 = vst [vmem:[#allocation111_spill] sm:$0xff] %v6387_v24  ;;  %1411 = vperm.xlu1 %5529, %v111_v0   ;;  %2191 = vperm.xlu0 %5531, %v113_v49   ;;  %v119_v0 = vld [vmem:[%s10514_s0 + $0x310] sm:$0xff] }
 0x1ba   :  { %v6392_v2 = vpop.permute.xlu1 %1171  ;;  %v6394_v6 = vpop.permute.xlu0 %1951 }
 0x1bb   :  { %10655 = vst [vmem:[#allocation112_spill] sm:$0xff] %v6392_v2  ;;  %10656 = vst [vmem:[#allocation113_spill] sm:$0xff] %v6394_v6  ;;  %1419 = vperm.xlu1 %5529, %v113_v49   ;;  %2199 = vperm.xlu0 %5531, %v115_v3   ;;  %v121_v49 = vld [vmem:[%s10514_s0 + $0x320] sm:$0xff] }
 0x1be   :  { %v6399_v15 = vpop.permute.xlu1 %1179  ;;  %v6401_v58 = vpop.permute.xlu0 %1959 }
 0x1bf   :  { %10657 = vst [vmem:[#allocation114_spill] sm:$0xff] %v6399_v15  ;;  %10658 = vst [vmem:[#allocation115_spill] sm:$0xff] %v6401_v58  ;;  %1427 = vperm.xlu1 %5529, %v115_v3   ;;  %2207 = vperm.xlu0 %5531, %v117_v33   ;;  %v123_v3 = vld [vmem:[%s10514_s0 + $0x330] sm:$0xff] }
 0x1c2   :  { %v6406_v24 = vpop.permute.xlu1 %1187  ;;  %v6408_v2 = vpop.permute.xlu0 %1967 }
 0x1c3   :  { %10659 = vst [vmem:[#allocation116_spill] sm:$0xff] %v6406_v24  ;;  %10660 = vst [vmem:[#allocation117_spill] sm:$0xff] %v6408_v2  ;;  %1435 = vperm.xlu1 %5529, %v117_v33   ;;  %2215 = vperm.xlu0 %5531, %v119_v0   ;;  %v125_v33 = vld [vmem:[%s10514_s0 + $0x340] sm:$0xff] }
 0x1c6   :  { %v6413_v6 = vpop.permute.xlu1 %1195  ;;  %v6415_v15 = vpop.permute.xlu0 %1975 }
 0x1c7   :  { %10661 = vst [vmem:[#allocation118_spill] sm:$0xff] %v6413_v6  ;;  %10662 = vst [vmem:[#allocation119_spill] sm:$0xff] %v6415_v15  ;;  %1443 = vperm.xlu1 %5529, %v119_v0   ;;  %2223 = vperm.xlu0 %5531, %v121_v49   ;;  %v127_v0 = vld [vmem:[%s10514_s0 + $0x350] sm:$0xff] }
 0x1ca   :  { %v6420_v58 = vpop.permute.xlu1 %1203  ;;  %v6422_v24 = vpop.permute.xlu0 %1983 }
 0x1cb   :  { %10663 = vst [vmem:[#allocation120_spill] sm:$0xff] %v6420_v58  ;;  %10664 = vst [vmem:[#allocation121_spill] sm:$0xff] %v6422_v24  ;;  %1451 = vperm.xlu1 %5529, %v121_v49   ;;  %2231 = vperm.xlu0 %5531, %v123_v3   ;;  %v129_v49 = vld [vmem:[%s10514_s0 + $0x360] sm:$0xff] }
 0x1ce   :  { %v6427_v2 = vpop.permute.xlu1 %1211  ;;  %v6429_v6 = vpop.permute.xlu0 %1991 }
 0x1cf   :  { %10665 = vst [vmem:[#allocation122_spill] sm:$0xff] %v6427_v2  ;;  %10666 = vst [vmem:[#allocation123_spill] sm:$0xff] %v6429_v6  ;;  %1459 = vperm.xlu1 %5529, %v123_v3   ;;  %2239 = vperm.xlu0 %5531, %v125_v33   ;;  %v131_v3 = vld [vmem:[%s10514_s0 + $0x370] sm:$0xff] }
 0x1d2   :  { %v6434_v15 = vpop.permute.xlu1 %1219  ;;  %v6436_v58 = vpop.permute.xlu0 %1999 }
 0x1d3   :  { %10667 = vst [vmem:[#allocation124_spill] sm:$0xff] %v6434_v15  ;;  %10668 = vst [vmem:[#allocation125_spill] sm:$0xff] %v6436_v58  ;;  %1467 = vperm.xlu1 %5529, %v125_v33   ;;  %2247 = vperm.xlu0 %5531, %v127_v0   ;;  %v133_v33 = vld [vmem:[%s10514_s0 + $0x380] sm:$0xff] }
 0x1d6   :  { %v6441_v24 = vpop.permute.xlu1 %1227  ;;  %v6443_v2 = vpop.permute.xlu0 %2007 }
 0x1d7   :  { %10669 = vst [vmem:[#allocation126_spill] sm:$0xff] %v6441_v24  ;;  %10670 = vst [vmem:[#allocation127_spill] sm:$0xff] %v6443_v2  ;;  %1475 = vperm.xlu1 %5529, %v127_v0   ;;  %2255 = vperm.xlu0 %5531, %v129_v49   ;;  %v135_v0 = vld [vmem:[%s10514_s0 + $0x390] sm:$0xff] }
 0x1da   :  { %v6448_v6 = vpop.permute.xlu1 %1235  ;;  %v6450_v15 = vpop.permute.xlu0 %2015 }
 0x1db   :  { %10671 = vst [vmem:[#allocation128_spill] sm:$0xff] %v6448_v6  ;;  %10672 = vst [vmem:[#allocation129_spill] sm:$0xff] %v6450_v15  ;;  %1483 = vperm.xlu1 %5529, %v129_v49   ;;  %2263 = vperm.xlu0 %5531, %v131_v3   ;;  %v137_v49 = vld [vmem:[%s10514_s0 + $0x3a0] sm:$0xff] }
 0x1de   :  { %v6455_v58 = vpop.permute.xlu1 %1243  ;;  %v6457_v24 = vpop.permute.xlu0 %2023 }
 0x1df   :  { %10673 = vst [vmem:[#allocation130_spill] sm:$0xff] %v6455_v58  ;;  %10674 = vst [vmem:[#allocation131_spill] sm:$0xff] %v6457_v24  ;;  %1491 = vperm.xlu1 %5529, %v131_v3   ;;  %2271 = vperm.xlu0 %5531, %v133_v33   ;;  %v139_v3 = vld [vmem:[%s10514_s0 + $0x3b0] sm:$0xff] }
 0x1e2   :  { %v6462_v2 = vpop.permute.xlu1 %1251  ;;  %v6464_v6 = vpop.permute.xlu0 %2031 }
 0x1e3   :  { %10675 = vst [vmem:[#allocation132_spill] sm:$0xff] %v6462_v2  ;;  %10676 = vst [vmem:[#allocation133_spill] sm:$0xff] %v6464_v6  ;;  %1499 = vperm.xlu1 %5529, %v133_v33   ;;  %2279 = vperm.xlu0 %5531, %v135_v0   ;;  %v141_v33 = vld [vmem:[%s10514_s0 + $0x3c0] sm:$0xff] }
 0x1e6   :  { %v6469_v15 = vpop.permute.xlu1 %1259  ;;  %v6471_v58 = vpop.permute.xlu0 %2039 }
 0x1e7   :  { %10677 = vst [vmem:[#allocation134_spill] sm:$0xff] %v6469_v15  ;;  %10678 = vst [vmem:[#allocation135_spill] sm:$0xff] %v6471_v58  ;;  %1507 = vperm.xlu1 %5529, %v135_v0   ;;  %2287 = vperm.xlu0 %5531, %v137_v49   ;;  %v143_v0 = vld [vmem:[%s10514_s0 + $0x3d0] sm:$0xff] }
 0x1ea   :  { %v6476_v24 = vpop.permute.xlu1 %1267  ;;  %v6478_v2 = vpop.permute.xlu0 %2047 }
 0x1eb   :  { %10679 = vst [vmem:[#allocation136_spill] sm:$0xff] %v6476_v24  ;;  %10680 = vst [vmem:[#allocation137_spill] sm:$0xff] %v6478_v2  ;;  %1515 = vperm.xlu1 %5529, %v137_v49   ;;  %2295 = vperm.xlu0 %5531, %v139_v3   ;;  %v145_v49 = vld [vmem:[%s10514_s0 + $0x3e0] sm:$0xff] }
 0x1ee   :  { %v6483_v6 = vpop.permute.xlu1 %1275  ;;  %v6485_v15 = vpop.permute.xlu0 %2055 }
 0x1ef   :  { %10681 = vst [vmem:[#allocation138_spill] sm:$0xff] %v6483_v6  ;;  %10682 = vst [vmem:[#allocation139_spill] sm:$0xff] %v6485_v15  ;;  %1523 = vperm.xlu1 %5529, %v139_v3   ;;  %2303 = vperm.xlu0 %5531, %v141_v33   ;;  %v147_v3 = vld [vmem:[%s10514_s0 + $0x3f0] sm:$0xff] }
 0x1f2   :  { %v6490_v58 = vpop.permute.xlu1 %1283  ;;  %v6492_v24 = vpop.permute.xlu0 %2063 }
 0x1f3   :  { %10683 = vst [vmem:[#allocation140_spill] sm:$0xff] %v6490_v58  ;;  %10684 = vst [vmem:[#allocation141_spill] sm:$0xff] %v6492_v24  ;;  %1531 = vperm.xlu1 %5529, %v141_v33   ;;  %2311 = vperm.xlu0 %5531, %v143_v0  }
 0x1f6   :  { %v6497_v2 = vpop.permute.xlu1 %1291  ;;  %v6499_v6 = vpop.permute.xlu0 %2071 }
 0x1f7   :  { %10685 = vst [vmem:[#allocation142_spill] sm:$0xff] %v6497_v2  ;;  %10686 = vst [vmem:[#allocation143_spill] sm:$0xff] %v6499_v6  ;;  %1539 = vperm.xlu1 %5529, %v143_v0   ;;  %2319 = vperm.xlu0 %5531, %v145_v49   ;;  %v10526_v2 = vmov 3   ;;  %v6516_v0 = vld [vmem:[%s10514_s0] sm:$0xff] }
 0x1fa   :  { %v6504_v15 = vpop.permute.xlu1 %1299  ;;  %v6506_v58 = vpop.permute.xlu0 %2079 }
 0x1fb   :  { %10687 = vst [vmem:[#allocation144_spill] sm:$0xff] %v6504_v15  ;;  %10688 = vst [vmem:[#allocation145_spill] sm:$0xff] %v6506_v58  ;;  %1547 = vperm.xlu1 %5529, %v145_v49   ;;  %2327 = vperm.xlu0 %5531, %v147_v3   ;;  %v10693_v49 = vmov 2  }
 0x1fe   :  { %v6508_v33 = vpop.permute.xlu1 %1307  ;;  %v6510_v24 = vpop.permute.xlu0 %2087 }
 0x1ff   :  { %10689 = vst [vmem:[#allocation146_spill] sm:$0xff] %v6508_v33  ;;  %10690 = vst [vmem:[#allocation147_spill] sm:$0xff] %v6510_v24  ;;  %1555 = vperm.xlu1 %5529, %v147_v3   ;;  %5532 = vset.pattern.permute.xlu0 %v10526_v2  ;;  %v5545_v3 = vld [vmem:[%s10514_s0 + $0x18] sm:$0xff]  ;;  %v6535_v33 = vld [vmem:[%s10514_s0 + $0x10] sm:$0xff] }
 0x200   :  { %2595 = vperm.xlu0 %5532, %v6516_v0  }
 0x202   :  { %v6519_v15 = vpop.permute.xlu1 %1315  ;;  %v6521_v58 = vpop.permute.xlu0 %2095 }
 0x203   :  { %10691 = vst [vmem:[#allocation148_spill] sm:$0xff] %v6519_v15  ;;  %10692 = vst [vmem:[#allocation149_spill] sm:$0xff] %v6521_v58  ;;  %5530 = vset.pattern.permute.xlu1 %v10693_v49  ;;  %v5547_v49 = vld [vmem:[%s10514_s0 + $0x28] sm:$0xff] }
 0x204   :  { %1823 = vperm.xlu1 %5530, %v6516_v0   ;;  %2607 = vperm.xlu0 %5532, %v5545_v3  }
 0x206   :  { %v6528_v2 = vpop.permute.xlu1 %1323  ;;  %v6530_v24 = vpop.permute.xlu0 %2103 }
 0x207   :  { %10694 = vst [vmem:[#allocation150_spill] sm:$0xff] %v6528_v2  ;;  %10695 = vst [vmem:[#allocation151_spill] sm:$0xff] %v6530_v24  ;;  %v5548_v24 = vld [vmem:[%s10514_s0 + $0x38] sm:$0xff] }
 0x208   :  { %1831 = vperm.xlu1 %5530, %v6535_v33   ;;  %2615 = vperm.xlu0 %5532, %v5547_v49  }
 0x20a   :  { %v6541_v58 = vpop.permute.xlu1 %1331  ;;  %v6543_v15 = vpop.permute.xlu0 %2111 }
 0x20b   :  { %10696 = vst [vmem:[#allocation152_spill] sm:$0xff] %v6541_v58  ;;  %10697 = vst [vmem:[#allocation153_spill] sm:$0xff] %v6543_v15 }
 0x20c   :  { %1835 = vperm.xlu1 %5530, %v5545_v3   ;;  %2623 = vperm.xlu0 %5532, %v5548_v24   ;;  %v5550_v3 = vld [vmem:[%s10514_s0 + $0x58] sm:$0xff] }
 0x20e   :  { %v6548_v2 = vpop.permute.xlu1 %1339  ;;  %v6550_v6 = vpop.permute.xlu0 %2119 }
 0x20f   :  { %10698 = vst [vmem:[#allocation154_spill] sm:$0xff] %v6548_v2  ;;  %10699 = vst [vmem:[#allocation155_spill] sm:$0xff] %v6550_v6 }
 0x210   :  { %1843 = vperm.xlu1 %5530, %v5547_v49   ;;  %2631 = vperm.xlu0 %5532, %v5549_v40   ;;  %v5551_v49 = vld [vmem:[%s10514_s0 + $0x68] sm:$0xff] }
 0x212   :  { %v6555_v30 = vpop.permute.xlu1 %1347  ;;  %v6557_v58 = vpop.permute.xlu0 %2127 }
 0x213   :  { %10700 = vst [vmem:[#allocation156_spill] sm:$0xff] %v6555_v30  ;;  %10701 = vst [vmem:[#allocation157_spill] sm:$0xff] %v6557_v58 }
 0x214   :  { %1851 = vperm.xlu1 %5530, %v5548_v24   ;;  %2639 = vperm.xlu0 %5532, %v5550_v3   ;;  %v5552_v24 = vld [vmem:[%s10514_s0 + $0x78] sm:$0xff] }
 0x216   :  { %v6562_v15 = vpop.permute.xlu1 %1355  ;;  %v6564_v2 = vpop.permute.xlu0 %2135 }
 0x217   :  { %10702 = vst [vmem:[#allocation158_spill] sm:$0xff] %v6562_v15  ;;  %10703 = vst [vmem:[#allocation159_spill] sm:$0xff] %v6564_v2 }
 0x218   :  { %1859 = vperm.xlu1 %5530, %v5549_v40   ;;  %2647 = vperm.xlu0 %5532, %v5551_v49   ;;  %v5553_v40 = vld [vmem:[%s10514_s0 + $0x88] sm:$0xff] }
 0x21a   :  { %v6569_v6 = vpop.permute.xlu1 %1363  ;;  %v6571_v30 = vpop.permute.xlu0 %2143 }
 0x21b   :  { %10704 = vst [vmem:[#allocation160_spill] sm:$0xff] %v6569_v6  ;;  %10705 = vst [vmem:[#allocation161_spill] sm:$0xff] %v6571_v30 }
 0x21c   :  { %1867 = vperm.xlu1 %5530, %v5550_v3   ;;  %2655 = vperm.xlu0 %5532, %v5552_v24   ;;  %v5554_v3 = vld [vmem:[%s10514_s0 + $0x98] sm:$0xff] }
 0x21e   :  { %v6576_v58 = vpop.permute.xlu1 %1371  ;;  %v6578_v15 = vpop.permute.xlu0 %2151 }
 0x21f   :  { %10706 = vst [vmem:[#allocation162_spill] sm:$0xff] %v6576_v58  ;;  %10707 = vst [vmem:[#allocation163_spill] sm:$0xff] %v6578_v15 }
 0x220   :  { %1875 = vperm.xlu1 %5530, %v5551_v49   ;;  %2663 = vperm.xlu0 %5532, %v5553_v40   ;;  %v5555_v49 = vld [vmem:[%s10514_s0 + $0xa8] sm:$0xff] }
 0x222   :  { %v6583_v2 = vpop.permute.xlu1 %1379  ;;  %v6585_v6 = vpop.permute.xlu0 %2159 }
 0x223   :  { %10708 = vst [vmem:[#allocation164_spill] sm:$0xff] %v6583_v2  ;;  %10709 = vst [vmem:[#allocation165_spill] sm:$0xff] %v6585_v6 }
 0x224   :  { %1883 = vperm.xlu1 %5530, %v5552_v24   ;;  %2671 = vperm.xlu0 %5532, %v5554_v3   ;;  %v5556_v24 = vld [vmem:[%s10514_s0 + $0xb8] sm:$0xff] }
 0x226   :  { %v6590_v30 = vpop.permute.xlu1 %1387  ;;  %v6592_v58 = vpop.permute.xlu0 %2167 }
 0x227   :  { %10710 = vst [vmem:[#allocation166_spill] sm:$0xff] %v6590_v30  ;;  %10711 = vst [vmem:[#allocation167_spill] sm:$0xff] %v6592_v58 }
 0x228   :  { %1891 = vperm.xlu1 %5530, %v5553_v40   ;;  %2679 = vperm.xlu0 %5532, %v5555_v49   ;;  %v5557_v40 = vld [vmem:[%s10514_s0 + $0xc8] sm:$0xff] }
 0x22a   :  { %v6597_v15 = vpop.permute.xlu1 %1395  ;;  %v6599_v2 = vpop.permute.xlu0 %2175 }
 0x22b   :  { %10712 = vst [vmem:[#allocation168_spill] sm:$0xff] %v6597_v15  ;;  %10713 = vst [vmem:[#allocation169_spill] sm:$0xff] %v6599_v2 }
 0x22c   :  { %1899 = vperm.xlu1 %5530, %v5554_v3   ;;  %2687 = vperm.xlu0 %5532, %v5556_v24   ;;  %v5558_v3 = vld [vmem:[%s10514_s0 + $0xd8] sm:$0xff] }
 0x22e   :  { %v6604_v6 = vpop.permute.xlu1 %1403  ;;  %v6606_v30 = vpop.permute.xlu0 %2183 }
 0x22f   :  { %10714 = vst [vmem:[#allocation170_spill] sm:$0xff] %v6604_v6  ;;  %10715 = vst [vmem:[#allocation171_spill] sm:$0xff] %v6606_v30 }
 0x230   :  { %1907 = vperm.xlu1 %5530, %v5555_v49   ;;  %2695 = vperm.xlu0 %5532, %v5557_v40   ;;  %v5559_v49 = vld [vmem:[%s10514_s0 + $0xe8] sm:$0xff] }
 0x232   :  { %v6611_v58 = vpop.permute.xlu1 %1411  ;;  %v6613_v15 = vpop.permute.xlu0 %2191 }
 0x233   :  { %10716 = vst [vmem:[#allocation172_spill] sm:$0xff] %v6611_v58  ;;  %10717 = vst [vmem:[#allocation173_spill] sm:$0xff] %v6613_v15 }
 0x234   :  { %1915 = vperm.xlu1 %5530, %v5556_v24   ;;  %2703 = vperm.xlu0 %5532, %v5558_v3   ;;  %v5560_v24 = vld [vmem:[%s10514_s0 + $0xf8] sm:$0xff] }
 0x236   :  { %v6618_v2 = vpop.permute.xlu1 %1419  ;;  %v6620_v6 = vpop.permute.xlu0 %2199 }
 0x237   :  { %10718 = vst [vmem:[#allocation174_spill] sm:$0xff] %v6618_v2  ;;  %10719 = vst [vmem:[#allocation175_spill] sm:$0xff] %v6620_v6 }
 0x238   :  { %1923 = vperm.xlu1 %5530, %v5557_v40   ;;  %2711 = vperm.xlu0 %5532, %v5559_v49   ;;  %v5561_v40 = vld [vmem:[%s10514_s0 + $0x108] sm:$0xff] }
 0x23a   :  { %v6625_v30 = vpop.permute.xlu1 %1427  ;;  %v6627_v58 = vpop.permute.xlu0 %2207 }
 0x23b   :  { %10720 = vst [vmem:[#allocation176_spill] sm:$0xff] %v6625_v30  ;;  %10721 = vst [vmem:[#allocation177_spill] sm:$0xff] %v6627_v58 }
 0x23c   :  { %1931 = vperm.xlu1 %5530, %v5558_v3   ;;  %2719 = vperm.xlu0 %5532, %v5560_v24   ;;  %v5562_v3 = vld [vmem:[%s10514_s0 + $0x118] sm:$0xff] }
 0x23e   :  { %v6632_v15 = vpop.permute.xlu1 %1435  ;;  %v6634_v2 = vpop.permute.xlu0 %2215 }
 0x23f   :  { %10722 = vst [vmem:[#allocation178_spill] sm:$0xff] %v6632_v15  ;;  %10723 = vst [vmem:[#allocation179_spill] sm:$0xff] %v6634_v2 }
 0x240   :  { %1939 = vperm.xlu1 %5530, %v5559_v49   ;;  %2727 = vperm.xlu0 %5532, %v5561_v40   ;;  %v5563_v49 = vld [vmem:[%s10514_s0 + $0x128] sm:$0xff] }
 0x242   :  { %v6639_v6 = vpop.permute.xlu1 %1443  ;;  %v6641_v30 = vpop.permute.xlu0 %2223 }
 0x243   :  { %10724 = vst [vmem:[#allocation180_spill] sm:$0xff] %v6639_v6  ;;  %10725 = vst [vmem:[#allocation181_spill] sm:$0xff] %v6641_v30 }
 0x244   :  { %1947 = vperm.xlu1 %5530, %v5560_v24   ;;  %2735 = vperm.xlu0 %5532, %v5562_v3   ;;  %v5564_v24 = vld [vmem:[%s10514_s0 + $0x138] sm:$0xff] }
 0x246   :  { %v6646_v58 = vpop.permute.xlu1 %1451  ;;  %v6648_v15 = vpop.permute.xlu0 %2231 }
 0x247   :  { %10726 = vst [vmem:[#allocation182_spill] sm:$0xff] %v6646_v58  ;;  %10727 = vst [vmem:[#allocation183_spill] sm:$0xff] %v6648_v15 }
 0x248   :  { %1955 = vperm.xlu1 %5530, %v5561_v40   ;;  %2743 = vperm.xlu0 %5532, %v5563_v49   ;;  %v5565_v40 = vld [vmem:[%s10514_s0 + $0x148] sm:$0xff] }
 0x24a   :  { %v6653_v2 = vpop.permute.xlu1 %1459  ;;  %v6655_v6 = vpop.permute.xlu0 %2239 }
 0x24b   :  { %10728 = vst [vmem:[#allocation184_spill] sm:$0xff] %v6653_v2  ;;  %10729 = vst [vmem:[#allocation185_spill] sm:$0xff] %v6655_v6 }
 0x24c   :  { %1963 = vperm.xlu1 %5530, %v5562_v3   ;;  %2751 = vperm.xlu0 %5532, %v5564_v24   ;;  %v5566_v3 = vld [vmem:[%s10514_s0 + $0x158] sm:$0xff] }
 0x24e   :  { %v6660_v30 = vpop.permute.xlu1 %1467  ;;  %v6662_v58 = vpop.permute.xlu0 %2247 }
 0x24f   :  { %10730 = vst [vmem:[#allocation186_spill] sm:$0xff] %v6660_v30  ;;  %10731 = vst [vmem:[#allocation187_spill] sm:$0xff] %v6662_v58 }
 0x250   :  { %1971 = vperm.xlu1 %5530, %v5563_v49   ;;  %2759 = vperm.xlu0 %5532, %v5565_v40   ;;  %v5567_v49 = vld [vmem:[%s10514_s0 + $0x168] sm:$0xff] }
 0x252   :  { %v6667_v15 = vpop.permute.xlu1 %1475  ;;  %v6669_v2 = vpop.permute.xlu0 %2255 }
 0x253   :  { %10732 = vst [vmem:[#allocation188_spill] sm:$0xff] %v6667_v15  ;;  %10733 = vst [vmem:[#allocation189_spill] sm:$0xff] %v6669_v2 }
 0x254   :  { %1979 = vperm.xlu1 %5530, %v5564_v24   ;;  %2767 = vperm.xlu0 %5532, %v5566_v3   ;;  %v5568_v24 = vld [vmem:[%s10514_s0 + $0x178] sm:$0xff] }
 0x256   :  { %v6674_v6 = vpop.permute.xlu1 %1483  ;;  %v6676_v30 = vpop.permute.xlu0 %2263 }
 0x257   :  { %10734 = vst [vmem:[#allocation190_spill] sm:$0xff] %v6674_v6  ;;  %10735 = vst [vmem:[#allocation191_spill] sm:$0xff] %v6676_v30 }
 0x258   :  { %1987 = vperm.xlu1 %5530, %v5565_v40   ;;  %2775 = vperm.xlu0 %5532, %v5567_v49   ;;  %v5569_v40 = vld [vmem:[%s10514_s0 + $0x188] sm:$0xff] }
 0x25a   :  { %v6681_v58 = vpop.permute.xlu1 %1491  ;;  %v6683_v15 = vpop.permute.xlu0 %2271 }
 0x25b   :  { %10736 = vst [vmem:[#allocation192_spill] sm:$0xff] %v6681_v58  ;;  %10737 = vst [vmem:[#allocation193_spill] sm:$0xff] %v6683_v15 }
 0x25c   :  { %1995 = vperm.xlu1 %5530, %v5566_v3   ;;  %2783 = vperm.xlu0 %5532, %v5568_v24   ;;  %v5570_v3 = vld [vmem:[%s10514_s0 + $0x198] sm:$0xff] }
 0x25e   :  { %v6688_v2 = vpop.permute.xlu1 %1499  ;;  %v6690_v6 = vpop.permute.xlu0 %2279 }
 0x25f   :  { %10738 = vst [vmem:[#allocation194_spill] sm:$0xff] %v6688_v2  ;;  %10739 = vst [vmem:[#allocation195_spill] sm:$0xff] %v6690_v6 }
 0x260   :  { %2003 = vperm.xlu1 %5530, %v5567_v49   ;;  %2791 = vperm.xlu0 %5532, %v5569_v40   ;;  %v5571_v49 = vld [vmem:[%s10514_s0 + $0x1a8] sm:$0xff] }
 0x262   :  { %v6695_v30 = vpop.permute.xlu1 %1507  ;;  %v6697_v58 = vpop.permute.xlu0 %2287 }
 0x263   :  { %10740 = vst [vmem:[#allocation196_spill] sm:$0xff] %v6695_v30  ;;  %10741 = vst [vmem:[#allocation197_spill] sm:$0xff] %v6697_v58 }
 0x264   :  { %2011 = vperm.xlu1 %5530, %v5568_v24   ;;  %2799 = vperm.xlu0 %5532, %v5570_v3   ;;  %v5572_v24 = vld [vmem:[%s10514_s0 + $0x1b8] sm:$0xff] }
 0x266   :  { %v6702_v15 = vpop.permute.xlu1 %1515  ;;  %v6704_v2 = vpop.permute.xlu0 %2295 }
 0x267   :  { %10742 = vst [vmem:[#allocation198_spill] sm:$0xff] %v6702_v15  ;;  %10743 = vst [vmem:[#allocation199_spill] sm:$0xff] %v6704_v2 }
 0x268   :  { %2019 = vperm.xlu1 %5530, %v5569_v40   ;;  %2807 = vperm.xlu0 %5532, %v5571_v49   ;;  %v5573_v40 = vld [vmem:[%s10514_s0 + $0x1c8] sm:$0xff] }
 0x26a   :  { %v6709_v6 = vpop.permute.xlu1 %1523  ;;  %v6711_v30 = vpop.permute.xlu0 %2303 }
 0x26b   :  { %10744 = vst [vmem:[#allocation200_spill] sm:$0xff] %v6709_v6  ;;  %10745 = vst [vmem:[#allocation201_spill] sm:$0xff] %v6711_v30 }
 0x26c   :  { %2027 = vperm.xlu1 %5530, %v5570_v3   ;;  %2815 = vperm.xlu0 %5532, %v5572_v24   ;;  %v5574_v3 = vld [vmem:[%s10514_s0 + $0x1d8] sm:$0xff] }
 0x26e   :  { %v6716_v58 = vpop.permute.xlu1 %1531  ;;  %v6718_v15 = vpop.permute.xlu0 %2311 }
 0x26f   :  { %10746 = vst [vmem:[#allocation202_spill] sm:$0xff] %v6716_v58  ;;  %10747 = vst [vmem:[#allocation203_spill] sm:$0xff] %v6718_v15 }
 0x270   :  { %2035 = vperm.xlu1 %5530, %v5571_v49   ;;  %2823 = vperm.xlu0 %5532, %v5573_v40   ;;  %v5575_v49 = vld [vmem:[%s10514_s0 + $0x1e8] sm:$0xff] }
 0x272   :  { %v6723_v2 = vpop.permute.xlu1 %1539  ;;  %v6725_v6 = vpop.permute.xlu0 %2319 }
 0x273   :  { %10748 = vst [vmem:[#allocation204_spill] sm:$0xff] %v6723_v2  ;;  %10749 = vst [vmem:[#allocation205_spill] sm:$0xff] %v6725_v6 }
 0x274   :  { %2043 = vperm.xlu1 %5530, %v5572_v24   ;;  %2831 = vperm.xlu0 %5532, %v5574_v3   ;;  %v5576_v24 = vld [vmem:[%s10514_s0 + $0x1f8] sm:$0xff] }
 0x276   :  { %v6730_v30 = vpop.permute.xlu1 %1547  ;;  %v6732_v58 = vpop.permute.xlu0 %2327 }
 0x277   :  { %10750 = vst [vmem:[#allocation206_spill] sm:$0xff] %v6730_v30  ;;  %10751 = vst [vmem:[#allocation207_spill] sm:$0xff] %v6732_v58 }
 0x278   :  { %2051 = vperm.xlu1 %5530, %v5573_v40   ;;  %2839 = vperm.xlu0 %5532, %v5575_v49   ;;  %v5577_v40 = vld [vmem:[%s10514_s0 + $0x208] sm:$0xff] }
 0x27a   :  { %v6737_v15 = vpop.permute.xlu1 %1555 }
 0x27b   :  { %10752 = vst [vmem:[#allocation208_spill] sm:$0xff] %v6737_v15  ;;  %v6739_v2 = vpop.permute.xlu0 %2595 }
 0x27c   :  { %10753 = vst [vmem:[#allocation209_spill] sm:$0xff] %v6739_v2  ;;  %2059 = vperm.xlu1 %5530, %v5574_v3   ;;  %2847 = vperm.xlu0 %5532, %v5576_v24   ;;  %v5578_v3 = vld [vmem:[%s10514_s0 + $0x218] sm:$0xff] }
 0x27f   :  { %v6744_v6 = vpop.permute.xlu1 %1823  ;;  %v6746_v30 = vpop.permute.xlu0 %2607 }
 0x280   :  { %10754 = vst [vmem:[#allocation210_spill] sm:$0xff] %v6744_v6  ;;  %10755 = vst [vmem:[#allocation211_spill] sm:$0xff] %v6746_v30  ;;  %2067 = vperm.xlu1 %5530, %v5575_v49   ;;  %2855 = vperm.xlu0 %5532, %v5577_v40   ;;  %v5579_v49 = vld [vmem:[%s10514_s0 + $0x228] sm:$0xff] }
 0x283   :  { %v6751_v58 = vpop.permute.xlu1 %1831  ;;  %v6753_v15 = vpop.permute.xlu0 %2615 }
 0x284   :  { %10756 = vst [vmem:[#allocation212_spill] sm:$0xff] %v6751_v58  ;;  %10757 = vst [vmem:[#allocation213_spill] sm:$0xff] %v6753_v15  ;;  %2075 = vperm.xlu1 %5530, %v5576_v24   ;;  %2863 = vperm.xlu0 %5532, %v5578_v3   ;;  %v5580_v24 = vld [vmem:[%s10514_s0 + $0x238] sm:$0xff] }
 0x287   :  { %v6758_v2 = vpop.permute.xlu1 %1835  ;;  %v6760_v6 = vpop.permute.xlu0 %2623 }
 0x288   :  { %10758 = vst [vmem:[#allocation214_spill] sm:$0xff] %v6758_v2  ;;  %10759 = vst [vmem:[#allocation215_spill] sm:$0xff] %v6760_v6  ;;  %2083 = vperm.xlu1 %5530, %v5577_v40   ;;  %2871 = vperm.xlu0 %5532, %v5579_v49   ;;  %v5581_v40 = vld [vmem:[%s10514_s0 + $0x248] sm:$0xff] }
 0x28b   :  { %v6765_v30 = vpop.permute.xlu1 %1843  ;;  %v6767_v58 = vpop.permute.xlu0 %2631 }
 0x28c   :  { %10760 = vst [vmem:[#allocation216_spill] sm:$0xff] %v6765_v30  ;;  %10761 = vst [vmem:[#allocation217_spill] sm:$0xff] %v6767_v58  ;;  %2091 = vperm.xlu1 %5530, %v5578_v3   ;;  %2879 = vperm.xlu0 %5532, %v5580_v24   ;;  %v5582_v3 = vld [vmem:[%s10514_s0 + $0x258] sm:$0xff] }
 0x28f   :  { %v6772_v15 = vpop.permute.xlu1 %1851  ;;  %v6774_v2 = vpop.permute.xlu0 %2639 }
 0x290   :  { %10762 = vst [vmem:[#allocation218_spill] sm:$0xff] %v6772_v15  ;;  %10763 = vst [vmem:[#allocation219_spill] sm:$0xff] %v6774_v2  ;;  %2099 = vperm.xlu1 %5530, %v5579_v49   ;;  %2887 = vperm.xlu0 %5532, %v5581_v40   ;;  %v5583_v49 = vld [vmem:[%s10514_s0 + $0x268] sm:$0xff] }
 0x293   :  { %v6779_v6 = vpop.permute.xlu1 %1859  ;;  %v6781_v30 = vpop.permute.xlu0 %2647 }
 0x294   :  { %10764 = vst [vmem:[#allocation220_spill] sm:$0xff] %v6779_v6  ;;  %10765 = vst [vmem:[#allocation221_spill] sm:$0xff] %v6781_v30  ;;  %2107 = vperm.xlu1 %5530, %v5580_v24   ;;  %2895 = vperm.xlu0 %5532, %v5582_v3   ;;  %v5584_v24 = vld [vmem:[%s10514_s0 + $0x278] sm:$0xff] }
 0x297   :  { %v6786_v58 = vpop.permute.xlu1 %1867  ;;  %v6788_v15 = vpop.permute.xlu0 %2655 }
 0x298   :  { %10766 = vst [vmem:[#allocation222_spill] sm:$0xff] %v6786_v58  ;;  %10767 = vst [vmem:[#allocation223_spill] sm:$0xff] %v6788_v15  ;;  %2115 = vperm.xlu1 %5530, %v5581_v40   ;;  %2903 = vperm.xlu0 %5532, %v5583_v49   ;;  %v5585_v40 = vld [vmem:[%s10514_s0 + $0x288] sm:$0xff] }
 0x29b   :  { %v6793_v2 = vpop.permute.xlu1 %1875  ;;  %v6795_v6 = vpop.permute.xlu0 %2663 }
 0x29c   :  { %10768 = vst [vmem:[#allocation224_spill] sm:$0xff] %v6793_v2  ;;  %10769 = vst [vmem:[#allocation225_spill] sm:$0xff] %v6795_v6  ;;  %2123 = vperm.xlu1 %5530, %v5582_v3   ;;  %2911 = vperm.xlu0 %5532, %v5584_v24   ;;  %v5586_v3 = vld [vmem:[%s10514_s0 + $0x298] sm:$0xff] }
 0x29f   :  { %v6800_v30 = vpop.permute.xlu1 %1883  ;;  %v6802_v58 = vpop.permute.xlu0 %2671 }
 0x2a0   :  { %10770 = vst [vmem:[#allocation226_spill] sm:$0xff] %v6800_v30  ;;  %10771 = vst [vmem:[#allocation227_spill] sm:$0xff] %v6802_v58  ;;  %2131 = vperm.xlu1 %5530, %v5583_v49   ;;  %2919 = vperm.xlu0 %5532, %v5585_v40   ;;  %v5587_v49 = vld [vmem:[%s10514_s0 + $0x2a8] sm:$0xff] }
 0x2a3   :  { %v6807_v15 = vpop.permute.xlu1 %1891  ;;  %v6809_v2 = vpop.permute.xlu0 %2679 }
 0x2a4   :  { %10772 = vst [vmem:[#allocation228_spill] sm:$0xff] %v6807_v15  ;;  %10773 = vst [vmem:[#allocation229_spill] sm:$0xff] %v6809_v2  ;;  %2139 = vperm.xlu1 %5530, %v5584_v24   ;;  %2927 = vperm.xlu0 %5532, %v5586_v3   ;;  %v5588_v24 = vld [vmem:[%s10514_s0 + $0x2b8] sm:$0xff] }
 0x2a7   :  { %v6814_v6 = vpop.permute.xlu1 %1899  ;;  %v6816_v30 = vpop.permute.xlu0 %2687 }
 0x2a8   :  { %10774 = vst [vmem:[#allocation230_spill] sm:$0xff] %v6814_v6  ;;  %10775 = vst [vmem:[#allocation231_spill] sm:$0xff] %v6816_v30  ;;  %2147 = vperm.xlu1 %5530, %v5585_v40   ;;  %2935 = vperm.xlu0 %5532, %v5587_v49   ;;  %v5589_v40 = vld [vmem:[%s10514_s0 + $0x2c8] sm:$0xff] }
 0x2ab   :  { %v6821_v58 = vpop.permute.xlu1 %1907  ;;  %v6823_v15 = vpop.permute.xlu0 %2695 }
 0x2ac   :  { %10776 = vst [vmem:[#allocation232_spill] sm:$0xff] %v6821_v58  ;;  %10777 = vst [vmem:[#allocation233_spill] sm:$0xff] %v6823_v15  ;;  %2155 = vperm.xlu1 %5530, %v5586_v3   ;;  %2943 = vperm.xlu0 %5532, %v5588_v24   ;;  %v5590_v3 = vld [vmem:[%s10514_s0 + $0x2d8] sm:$0xff] }
 0x2af   :  { %v6828_v2 = vpop.permute.xlu1 %1915  ;;  %v6830_v6 = vpop.permute.xlu0 %2703 }
 0x2b0   :  { %10778 = vst [vmem:[#allocation234_spill] sm:$0xff] %v6828_v2  ;;  %10779 = vst [vmem:[#allocation235_spill] sm:$0xff] %v6830_v6  ;;  %2163 = vperm.xlu1 %5530, %v5587_v49   ;;  %2951 = vperm.xlu0 %5532, %v5589_v40   ;;  %v5591_v49 = vld [vmem:[%s10514_s0 + $0x2e8] sm:$0xff] }
 0x2b3   :  { %v6835_v30 = vpop.permute.xlu1 %1923  ;;  %v6837_v58 = vpop.permute.xlu0 %2711 }
 0x2b4   :  { %10780 = vst [vmem:[#allocation236_spill] sm:$0xff] %v6835_v30  ;;  %10781 = vst [vmem:[#allocation237_spill] sm:$0xff] %v6837_v58  ;;  %2171 = vperm.xlu1 %5530, %v5588_v24   ;;  %2959 = vperm.xlu0 %5532, %v5590_v3   ;;  %v5592_v24 = vld [vmem:[%s10514_s0 + $0x2f8] sm:$0xff] }
 0x2b7   :  { %v6842_v15 = vpop.permute.xlu1 %1931  ;;  %v6844_v2 = vpop.permute.xlu0 %2719 }
 0x2b8   :  { %10782 = vst [vmem:[#allocation238_spill] sm:$0xff] %v6842_v15  ;;  %10783 = vst [vmem:[#allocation239_spill] sm:$0xff] %v6844_v2  ;;  %2179 = vperm.xlu1 %5530, %v5589_v40   ;;  %2967 = vperm.xlu0 %5532, %v5591_v49   ;;  %v5593_v40 = vld [vmem:[%s10514_s0 + $0x308] sm:$0xff] }
 0x2bb   :  { %v6849_v6 = vpop.permute.xlu1 %1939  ;;  %v6851_v30 = vpop.permute.xlu0 %2727 }
 0x2bc   :  { %10784 = vst [vmem:[#allocation240_spill] sm:$0xff] %v6849_v6  ;;  %10785 = vst [vmem:[#allocation241_spill] sm:$0xff] %v6851_v30  ;;  %2187 = vperm.xlu1 %5530, %v5590_v3   ;;  %2975 = vperm.xlu0 %5532, %v5592_v24   ;;  %v5594_v3 = vld [vmem:[%s10514_s0 + $0x318] sm:$0xff] }
 0x2bf   :  { %v6856_v58 = vpop.permute.xlu1 %1947  ;;  %v6858_v15 = vpop.permute.xlu0 %2735 }
 0x2c0   :  { %10786 = vst [vmem:[#allocation242_spill] sm:$0xff] %v6856_v58  ;;  %10787 = vst [vmem:[#allocation243_spill] sm:$0xff] %v6858_v15  ;;  %2195 = vperm.xlu1 %5530, %v5591_v49   ;;  %2983 = vperm.xlu0 %5532, %v5593_v40   ;;  %v5595_v49 = vld [vmem:[%s10514_s0 + $0x328] sm:$0xff] }
 0x2c3   :  { %v6863_v2 = vpop.permute.xlu1 %1955  ;;  %v6865_v6 = vpop.permute.xlu0 %2743 }
 0x2c4   :  { %10788 = vst [vmem:[#allocation244_spill] sm:$0xff] %v6863_v2  ;;  %10789 = vst [vmem:[#allocation245_spill] sm:$0xff] %v6865_v6  ;;  %2203 = vperm.xlu1 %5530, %v5592_v24   ;;  %2991 = vperm.xlu0 %5532, %v5594_v3   ;;  %v5596_v24 = vld [vmem:[%s10514_s0 + $0x338] sm:$0xff] }
 0x2c7   :  { %v6870_v30 = vpop.permute.xlu1 %1963  ;;  %v6872_v58 = vpop.permute.xlu0 %2751 }
 0x2c8   :  { %10790 = vst [vmem:[#allocation246_spill] sm:$0xff] %v6870_v30  ;;  %10791 = vst [vmem:[#allocation247_spill] sm:$0xff] %v6872_v58  ;;  %2211 = vperm.xlu1 %5530, %v5593_v40   ;;  %2999 = vperm.xlu0 %5532, %v5595_v49   ;;  %v5597_v40 = vld [vmem:[%s10514_s0 + $0x348] sm:$0xff] }
 0x2cb   :  { %v6877_v15 = vpop.permute.xlu1 %1971  ;;  %v6879_v2 = vpop.permute.xlu0 %2759 }
 0x2cc   :  { %10792 = vst [vmem:[#allocation248_spill] sm:$0xff] %v6877_v15  ;;  %10793 = vst [vmem:[#allocation249_spill] sm:$0xff] %v6879_v2  ;;  %2219 = vperm.xlu1 %5530, %v5594_v3   ;;  %3007 = vperm.xlu0 %5532, %v5596_v24   ;;  %v5598_v3 = vld [vmem:[%s10514_s0 + $0x358] sm:$0xff] }
 0x2cf   :  { %v6884_v6 = vpop.permute.xlu1 %1979  ;;  %v6886_v30 = vpop.permute.xlu0 %2767 }
 0x2d0   :  { %10794 = vst [vmem:[#allocation250_spill] sm:$0xff] %v6884_v6  ;;  %10795 = vst [vmem:[#allocation251_spill] sm:$0xff] %v6886_v30  ;;  %2227 = vperm.xlu1 %5530, %v5595_v49   ;;  %3015 = vperm.xlu0 %5532, %v5597_v40   ;;  %v5599_v49 = vld [vmem:[%s10514_s0 + $0x368] sm:$0xff] }
 0x2d3   :  { %v6891_v58 = vpop.permute.xlu1 %1987  ;;  %v6893_v15 = vpop.permute.xlu0 %2775 }
 0x2d4   :  { %10796 = vst [vmem:[#allocation252_spill] sm:$0xff] %v6891_v58  ;;  %10797 = vst [vmem:[#allocation253_spill] sm:$0xff] %v6893_v15  ;;  %2235 = vperm.xlu1 %5530, %v5596_v24   ;;  %3023 = vperm.xlu0 %5532, %v5598_v3   ;;  %v5600_v24 = vld [vmem:[%s10514_s0 + $0x378] sm:$0xff] }
 0x2d7   :  { %v6898_v2 = vpop.permute.xlu1 %1995  ;;  %v6900_v6 = vpop.permute.xlu0 %2783 }
 0x2d8   :  { %10798 = vst [vmem:[#allocation254_spill] sm:$0xff] %v6898_v2  ;;  %10799 = vst [vmem:[#allocation255_spill] sm:$0xff] %v6900_v6  ;;  %2243 = vperm.xlu1 %5530, %v5597_v40   ;;  %3031 = vperm.xlu0 %5532, %v5599_v49   ;;  %v5601_v40 = vld [vmem:[%s10514_s0 + $0x388] sm:$0xff] }
 0x2db   :  { %v6905_v30 = vpop.permute.xlu1 %2003  ;;  %v6907_v58 = vpop.permute.xlu0 %2791 }
 0x2dc   :  { %10800 = vst [vmem:[#allocation256_spill] sm:$0xff] %v6905_v30  ;;  %10801 = vst [vmem:[#allocation257_spill] sm:$0xff] %v6907_v58  ;;  %2251 = vperm.xlu1 %5530, %v5598_v3   ;;  %3039 = vperm.xlu0 %5532, %v5600_v24   ;;  %v5602_v3 = vld [vmem:[%s10514_s0 + $0x398] sm:$0xff] }
 0x2df   :  { %v6912_v15 = vpop.permute.xlu1 %2011  ;;  %v6914_v2 = vpop.permute.xlu0 %2799 }
 0x2e0   :  { %10802 = vst [vmem:[#allocation258_spill] sm:$0xff] %v6912_v15  ;;  %10803 = vst [vmem:[#allocation259_spill] sm:$0xff] %v6914_v2  ;;  %2259 = vperm.xlu1 %5530, %v5599_v49   ;;  %3047 = vperm.xlu0 %5532, %v5601_v40   ;;  %v5603_v49 = vld [vmem:[%s10514_s0 + $0x3a8] sm:$0xff] }
 0x2e3   :  { %v6919_v6 = vpop.permute.xlu1 %2019  ;;  %v6921_v30 = vpop.permute.xlu0 %2807 }
 0x2e4   :  { %10804 = vst [vmem:[#allocation260_spill] sm:$0xff] %v6919_v6  ;;  %10805 = vst [vmem:[#allocation261_spill] sm:$0xff] %v6921_v30  ;;  %2267 = vperm.xlu1 %5530, %v5600_v24   ;;  %3055 = vperm.xlu0 %5532, %v5602_v3   ;;  %v5604_v24 = vld [vmem:[%s10514_s0 + $0x3b8] sm:$0xff] }
 0x2e7   :  { %v6926_v58 = vpop.permute.xlu1 %2027  ;;  %v6928_v15 = vpop.permute.xlu0 %2815 }
 0x2e8   :  { %10806 = vst [vmem:[#allocation262_spill] sm:$0xff] %v6926_v58  ;;  %10807 = vst [vmem:[#allocation263_spill] sm:$0xff] %v6928_v15  ;;  %2275 = vperm.xlu1 %5530, %v5601_v40   ;;  %3063 = vperm.xlu0 %5532, %v5603_v49   ;;  %v5605_v40 = vld [vmem:[%s10514_s0 + $0x3c8] sm:$0xff] }
 0x2eb   :  { %v6933_v2 = vpop.permute.xlu1 %2035  ;;  %v6935_v6 = vpop.permute.xlu0 %2823 }
 0x2ec   :  { %10808 = vst [vmem:[#allocation264_spill] sm:$0xff] %v6933_v2  ;;  %10809 = vst [vmem:[#allocation265_spill] sm:$0xff] %v6935_v6  ;;  %2283 = vperm.xlu1 %5530, %v5602_v3   ;;  %3071 = vperm.xlu0 %5532, %v5604_v24   ;;  %v5606_v3 = vld [vmem:[%s10514_s0 + $0x3d8] sm:$0xff] }
 0x2ef   :  { %v6940_v30 = vpop.permute.xlu1 %2043  ;;  %v6942_v58 = vpop.permute.xlu0 %2831 }
 0x2f0   :  { %10810 = vst [vmem:[#allocation266_spill] sm:$0xff] %v6940_v30  ;;  %10811 = vst [vmem:[#allocation267_spill] sm:$0xff] %v6942_v58  ;;  %2291 = vperm.xlu1 %5530, %v5603_v49   ;;  %3079 = vperm.xlu0 %5532, %v5605_v40   ;;  %v5607_v49 = vld [vmem:[%s10514_s0 + $0x3e8] sm:$0xff] }
 0x2f3   :  { %v6947_v15 = vpop.permute.xlu1 %2051  ;;  %v6949_v2 = vpop.permute.xlu0 %2839 }
 0x2f4   :  { %10812 = vst [vmem:[#allocation268_spill] sm:$0xff] %v6947_v15  ;;  %10813 = vst [vmem:[#allocation269_spill] sm:$0xff] %v6949_v2  ;;  %2299 = vperm.xlu1 %5530, %v5604_v24   ;;  %3087 = vperm.xlu0 %5532, %v5606_v3   ;;  %v5608_v24 = vld [vmem:[%s10514_s0 + $0x3f8] sm:$0xff] }
 0x2f7   :  { %v6954_v6 = vpop.permute.xlu1 %2059  ;;  %v6956_v30 = vpop.permute.xlu0 %2847 }
 0x2f8   :  { %10814 = vst [vmem:[#allocation270_spill] sm:$0xff] %v6954_v6  ;;  %10815 = vst [vmem:[#allocation271_spill] sm:$0xff] %v6956_v30  ;;  %2307 = vperm.xlu1 %5530, %v5605_v40   ;;  %3095 = vperm.xlu0 %5532, %v5607_v49   ;;  %v10820_v40 = vmov 0  }
 0x2fb   :  { %v6961_v58 = vpop.permute.xlu1 %2067  ;;  %v6963_v15 = vpop.permute.xlu0 %2855 }
 0x2fc   :  { %10816 = vst [vmem:[#allocation272_spill] sm:$0xff] %v6961_v58  ;;  %10817 = vst [vmem:[#allocation273_spill] sm:$0xff] %v6963_v15  ;;  %2315 = vperm.xlu1 %5530, %v5606_v3   ;;  %3103 = vperm.xlu0 %5532, %v5608_v24   ;;  %v5609_v3 = vld [vmem:[%s10514_s0 + $0x8] sm:$0xff] }
 0x2ff   :  { %v6968_v2 = vpop.permute.xlu1 %2075  ;;  %v6970_v6 = vpop.permute.xlu0 %2863 }
 0x300   :  { %10818 = vst [vmem:[#allocation274_spill] sm:$0xff] %v6968_v2  ;;  %10819 = vst [vmem:[#allocation275_spill] sm:$0xff] %v6970_v6  ;;  %2323 = vperm.xlu1 %5530, %v5607_v49   ;;  %5534 = vset.pattern.permute.xlu0 %v10820_v40  ;;  %v10825_v6 = vmov 3  }
 0x301   :  { %280 = vperm.xlu0 %5534, %v6516_v0   ;;  %v5610_v0 = vld [vmem:[%s10514_s0 + $0x20] sm:$0xff] }
 0x303   :  { %v6974_v30 = vpop.permute.xlu1 %2083  ;;  %v6976_v58 = vpop.permute.xlu0 %2871 }
 0x304   :  { %10821 = vst [vmem:[#allocation276_spill] sm:$0xff] %v6974_v30  ;;  %10822 = vst [vmem:[#allocation277_spill] sm:$0xff] %v6976_v58  ;;  %2331 = vperm.xlu1 %5530, %v5608_v24   ;;  %v5611_v58 = vld [vmem:[%s10514_s0 + $0x30] sm:$0xff] }
 0x305   :  { %285 = vperm.xlu0 %5534, %v5609_v3  }
 0x307   :  { %v6981_v15 = vpop.permute.xlu1 %2091  ;;  %v6983_v2 = vpop.permute.xlu0 %2879 }
 0x308   :  { %10823 = vst [vmem:[#allocation278_spill] sm:$0xff] %v6981_v15  ;;  %10824 = vst [vmem:[#allocation279_spill] sm:$0xff] %v6983_v2  ;;  %5533 = vset.pattern.permute.xlu1 %v10825_v6 }
 0x309   :  { %2599 = vperm.xlu1 %5533, %v5609_v3   ;;  %300 = vperm.xlu0 %5534, %v5610_v0   ;;  %v5612_v3 = vld [vmem:[%s10514_s0 + $0x40] sm:$0xff] }
 0x30b   :  { %v6989_v49 = vpop.permute.xlu1 %2099  ;;  %v6991_v24 = vpop.permute.xlu0 %2887 }
 0x30c   :  { %10826 = vst [vmem:[#allocation280_spill] sm:$0xff] %v6989_v49  ;;  %10827 = vst [vmem:[#allocation281_spill] sm:$0xff] %v6991_v24 }
 0x30d   :  { %2603 = vperm.xlu1 %5533, %v6535_v33   ;;  %310 = vperm.xlu0 %5534, %v5611_v58   ;;  %v5613_v33 = vld [vmem:[%s10514_s0 + $0x50] sm:$0xff] }
 0x30f   :  { %v6997_v2 = vpop.permute.xlu1 %2107  ;;  %v6999_v6 = vpop.permute.xlu0 %2895 }
 0x310   :  { %10828 = vst [vmem:[#allocation282_spill] sm:$0xff] %v6997_v2  ;;  %10829 = vst [vmem:[#allocation283_spill] sm:$0xff] %v6999_v6 }
 0x311   :  { %2611 = vperm.xlu1 %5533, %v5610_v0   ;;  %320 = vperm.xlu0 %5534, %v5612_v3   ;;  %v5614_v0 = vld [vmem:[%s10514_s0 + $0x60] sm:$0xff] }
 0x313   :  { %v7004_v49 = vpop.permute.xlu1 %2115  ;;  %v7006_v24 = vpop.permute.xlu0 %2903 }
 0x314   :  { %10830 = vst [vmem:[#allocation284_spill] sm:$0xff] %v7004_v49  ;;  %10831 = vst [vmem:[#allocation285_spill] sm:$0xff] %v7006_v24 }
 0x315   :  { %2619 = vperm.xlu1 %5533, %v5611_v58   ;;  %330 = vperm.xlu0 %5534, %v5613_v33   ;;  %v5615_v58 = vld [vmem:[%s10514_s0 + $0x70] sm:$0xff] }
 0x317   :  { %v7011_v15 = vpop.permute.xlu1 %2123  ;;  %v7013_v2 = vpop.permute.xlu0 %2911 }
 0x318   :  { %10832 = vst [vmem:[#allocation286_spill] sm:$0xff] %v7011_v15  ;;  %10833 = vst [vmem:[#allocation287_spill] sm:$0xff] %v7013_v2 }
 0x319   :  { %2627 = vperm.xlu1 %5533, %v5612_v3   ;;  %340 = vperm.xlu0 %5534, %v5614_v0   ;;  %v5616_v3 = vld [vmem:[%s10514_s0 + $0x80] sm:$0xff] }
 0x31b   :  { %v7018_v6 = vpop.permute.xlu1 %2131  ;;  %v7020_v49 = vpop.permute.xlu0 %2919 }
 0x31c   :  { %10834 = vst [vmem:[#allocation288_spill] sm:$0xff] %v7018_v6  ;;  %10835 = vst [vmem:[#allocation289_spill] sm:$0xff] %v7020_v49 }
 0x31d   :  { %2635 = vperm.xlu1 %5533, %v5613_v33   ;;  %350 = vperm.xlu0 %5534, %v5615_v58   ;;  %v5617_v33 = vld [vmem:[%s10514_s0 + $0x90] sm:$0xff] }
 0x31f   :  { %v7025_v24 = vpop.permute.xlu1 %2139  ;;  %v7027_v15 = vpop.permute.xlu0 %2927 }
 0x320   :  { %10836 = vst [vmem:[#allocation290_spill] sm:$0xff] %v7025_v24  ;;  %10837 = vst [vmem:[#allocation291_spill] sm:$0xff] %v7027_v15 }
 0x321   :  { %2643 = vperm.xlu1 %5533, %v5614_v0   ;;  %360 = vperm.xlu0 %5534, %v5616_v3   ;;  %v5618_v0 = vld [vmem:[%s10514_s0 + $0xa0] sm:$0xff] }
 0x323   :  { %v7032_v2 = vpop.permute.xlu1 %2147  ;;  %v7034_v6 = vpop.permute.xlu0 %2935 }
 0x324   :  { %10838 = vst [vmem:[#allocation292_spill] sm:$0xff] %v7032_v2  ;;  %10839 = vst [vmem:[#allocation293_spill] sm:$0xff] %v7034_v6 }
 0x325   :  { %2651 = vperm.xlu1 %5533, %v5615_v58   ;;  %370 = vperm.xlu0 %5534, %v5617_v33   ;;  %v5619_v58 = vld [vmem:[%s10514_s0 + $0xb0] sm:$0xff] }
 0x327   :  { %v7039_v49 = vpop.permute.xlu1 %2155  ;;  %v7041_v24 = vpop.permute.xlu0 %2943 }
 0x328   :  { %10840 = vst [vmem:[#allocation294_spill] sm:$0xff] %v7039_v49  ;;  %10841 = vst [vmem:[#allocation295_spill] sm:$0xff] %v7041_v24 }
 0x329   :  { %2659 = vperm.xlu1 %5533, %v5616_v3   ;;  %380 = vperm.xlu0 %5534, %v5618_v0   ;;  %v5620_v3 = vld [vmem:[%s10514_s0 + $0xc0] sm:$0xff] }
 0x32b   :  { %v7046_v15 = vpop.permute.xlu1 %2163  ;;  %v7048_v2 = vpop.permute.xlu0 %2951 }
 0x32c   :  { %10842 = vst [vmem:[#allocation296_spill] sm:$0xff] %v7046_v15  ;;  %10843 = vst [vmem:[#allocation297_spill] sm:$0xff] %v7048_v2 }
 0x32d   :  { %2667 = vperm.xlu1 %5533, %v5617_v33   ;;  %390 = vperm.xlu0 %5534, %v5619_v58   ;;  %v5621_v33 = vld [vmem:[%s10514_s0 + $0xd0] sm:$0xff] }
 0x32f   :  { %v7053_v6 = vpop.permute.xlu1 %2171  ;;  %v7055_v49 = vpop.permute.xlu0 %2959 }
 0x330   :  { %10844 = vst [vmem:[#allocation298_spill] sm:$0xff] %v7053_v6  ;;  %10845 = vst [vmem:[#allocation299_spill] sm:$0xff] %v7055_v49 }
 0x331   :  { %2675 = vperm.xlu1 %5533, %v5618_v0   ;;  %400 = vperm.xlu0 %5534, %v5620_v3   ;;  %v5622_v0 = vld [vmem:[%s10514_s0 + $0xe0] sm:$0xff] }
 0x333   :  { %v7060_v24 = vpop.permute.xlu1 %2179  ;;  %v7062_v15 = vpop.permute.xlu0 %2967 }
 0x334   :  { %10846 = vst [vmem:[#allocation300_spill] sm:$0xff] %v7060_v24  ;;  %10847 = vst [vmem:[#allocation301_spill] sm:$0xff] %v7062_v15 }
 0x335   :  { %2683 = vperm.xlu1 %5533, %v5619_v58   ;;  %410 = vperm.xlu0 %5534, %v5621_v33   ;;  %v5623_v58 = vld [vmem:[%s10514_s0 + $0xf0] sm:$0xff] }
 0x337   :  { %v7067_v2 = vpop.permute.xlu1 %2187  ;;  %v7069_v6 = vpop.permute.xlu0 %2975 }
 0x338   :  { %10848 = vst [vmem:[#allocation302_spill] sm:$0xff] %v7067_v2  ;;  %10849 = vst [vmem:[#allocation303_spill] sm:$0xff] %v7069_v6 }
 0x339   :  { %2691 = vperm.xlu1 %5533, %v5620_v3   ;;  %420 = vperm.xlu0 %5534, %v5622_v0   ;;  %v5624_v3 = vld [vmem:[%s10514_s0 + $0x100] sm:$0xff] }
 0x33b   :  { %v7074_v49 = vpop.permute.xlu1 %2195  ;;  %v7076_v24 = vpop.permute.xlu0 %2983 }
 0x33c   :  { %10850 = vst [vmem:[#allocation304_spill] sm:$0xff] %v7074_v49  ;;  %10851 = vst [vmem:[#allocation305_spill] sm:$0xff] %v7076_v24 }
 0x33d   :  { %2699 = vperm.xlu1 %5533, %v5621_v33   ;;  %430 = vperm.xlu0 %5534, %v5623_v58   ;;  %v5625_v33 = vld [vmem:[%s10514_s0 + $0x110] sm:$0xff] }
 0x33f   :  { %v7081_v15 = vpop.permute.xlu1 %2203  ;;  %v7083_v2 = vpop.permute.xlu0 %2991 }
 0x340   :  { %10852 = vst [vmem:[#allocation306_spill] sm:$0xff] %v7081_v15  ;;  %10853 = vst [vmem:[#allocation307_spill] sm:$0xff] %v7083_v2 }
 0x341   :  { %2707 = vperm.xlu1 %5533, %v5622_v0   ;;  %440 = vperm.xlu0 %5534, %v5624_v3   ;;  %v5626_v0 = vld [vmem:[%s10514_s0 + $0x120] sm:$0xff] }
 0x343   :  { %v7088_v6 = vpop.permute.xlu1 %2211  ;;  %v7090_v49 = vpop.permute.xlu0 %2999 }
 0x344   :  { %10854 = vst [vmem:[#allocation308_spill] sm:$0xff] %v7088_v6  ;;  %10855 = vst [vmem:[#allocation309_spill] sm:$0xff] %v7090_v49 }
 0x345   :  { %2715 = vperm.xlu1 %5533, %v5623_v58   ;;  %450 = vperm.xlu0 %5534, %v5625_v33   ;;  %v5627_v58 = vld [vmem:[%s10514_s0 + $0x130] sm:$0xff] }
 0x347   :  { %v7095_v24 = vpop.permute.xlu1 %2219  ;;  %v7097_v15 = vpop.permute.xlu0 %3007 }
 0x348   :  { %10856 = vst [vmem:[#allocation310_spill] sm:$0xff] %v7095_v24  ;;  %10857 = vst [vmem:[#allocation311_spill] sm:$0xff] %v7097_v15 }
 0x349   :  { %2723 = vperm.xlu1 %5533, %v5624_v3   ;;  %460 = vperm.xlu0 %5534, %v5626_v0   ;;  %v5628_v3 = vld [vmem:[%s10514_s0 + $0x140] sm:$0xff] }
 0x34b   :  { %v7102_v2 = vpop.permute.xlu1 %2227  ;;  %v7104_v6 = vpop.permute.xlu0 %3015 }
 0x34c   :  { %10858 = vst [vmem:[#allocation312_spill] sm:$0xff] %v7102_v2  ;;  %10859 = vst [vmem:[#allocation313_spill] sm:$0xff] %v7104_v6 }
 0x34d   :  { %2731 = vperm.xlu1 %5533, %v5625_v33   ;;  %470 = vperm.xlu0 %5534, %v5627_v58   ;;  %v5629_v33 = vld [vmem:[%s10514_s0 + $0x150] sm:$0xff] }
 0x34f   :  { %v7109_v49 = vpop.permute.xlu1 %2235  ;;  %v7111_v24 = vpop.permute.xlu0 %3023 }
 0x350   :  { %10860 = vst [vmem:[#allocation314_spill] sm:$0xff] %v7109_v49  ;;  %10861 = vst [vmem:[#allocation315_spill] sm:$0xff] %v7111_v24 }
 0x351   :  { %2739 = vperm.xlu1 %5533, %v5626_v0   ;;  %480 = vperm.xlu0 %5534, %v5628_v3   ;;  %v5630_v0 = vld [vmem:[%s10514_s0 + $0x160] sm:$0xff] }
 0x353   :  { %v7116_v15 = vpop.permute.xlu1 %2243  ;;  %v7118_v2 = vpop.permute.xlu0 %3031 }
 0x354   :  { %10862 = vst [vmem:[#allocation316_spill] sm:$0xff] %v7116_v15  ;;  %10863 = vst [vmem:[#allocation317_spill] sm:$0xff] %v7118_v2 }
 0x355   :  { %2747 = vperm.xlu1 %5533, %v5627_v58   ;;  %490 = vperm.xlu0 %5534, %v5629_v33   ;;  %v5631_v58 = vld [vmem:[%s10514_s0 + $0x170] sm:$0xff] }
 0x357   :  { %v7123_v6 = vpop.permute.xlu1 %2251  ;;  %v7125_v49 = vpop.permute.xlu0 %3039 }
 0x358   :  { %10864 = vst [vmem:[#allocation318_spill] sm:$0xff] %v7123_v6  ;;  %10865 = vst [vmem:[#allocation319_spill] sm:$0xff] %v7125_v49 }
 0x359   :  { %2755 = vperm.xlu1 %5533, %v5628_v3   ;;  %500 = vperm.xlu0 %5534, %v5630_v0   ;;  %v5632_v3 = vld [vmem:[%s10514_s0 + $0x180] sm:$0xff] }
 0x35b   :  { %v7130_v24 = vpop.permute.xlu1 %2259  ;;  %v7132_v15 = vpop.permute.xlu0 %3047 }
 0x35c   :  { %10866 = vst [vmem:[#allocation320_spill] sm:$0xff] %v7130_v24  ;;  %10867 = vst [vmem:[#allocation321_spill] sm:$0xff] %v7132_v15 }
 0x35d   :  { %2763 = vperm.xlu1 %5533, %v5629_v33   ;;  %510 = vperm.xlu0 %5534, %v5631_v58   ;;  %v5633_v33 = vld [vmem:[%s10514_s0 + $0x190] sm:$0xff] }
 0x35f   :  { %v7137_v2 = vpop.permute.xlu1 %2267  ;;  %v7139_v6 = vpop.permute.xlu0 %3055 }
 0x360   :  { %10868 = vst [vmem:[#allocation322_spill] sm:$0xff] %v7137_v2  ;;  %10869 = vst [vmem:[#allocation323_spill] sm:$0xff] %v7139_v6 }
 0x361   :  { %2771 = vperm.xlu1 %5533, %v5630_v0   ;;  %520 = vperm.xlu0 %5534, %v5632_v3   ;;  %v5634_v0 = vld [vmem:[%s10514_s0 + $0x1a0] sm:$0xff] }
 0x363   :  { %v7144_v49 = vpop.permute.xlu1 %2275  ;;  %v7146_v24 = vpop.permute.xlu0 %3063 }
 0x364   :  { %10870 = vst [vmem:[#allocation324_spill] sm:$0xff] %v7144_v49  ;;  %10871 = vst [vmem:[#allocation325_spill] sm:$0xff] %v7146_v24 }
 0x365   :  { %2779 = vperm.xlu1 %5533, %v5631_v58   ;;  %530 = vperm.xlu0 %5534, %v5633_v33   ;;  %v5635_v58 = vld [vmem:[%s10514_s0 + $0x1b0] sm:$0xff] }
 0x367   :  { %v7151_v15 = vpop.permute.xlu1 %2283  ;;  %v7153_v2 = vpop.permute.xlu0 %3071 }
 0x368   :  { %10872 = vst [vmem:[#allocation326_spill] sm:$0xff] %v7151_v15  ;;  %10873 = vst [vmem:[#allocation327_spill] sm:$0xff] %v7153_v2 }
 0x369   :  { %2787 = vperm.xlu1 %5533, %v5632_v3   ;;  %540 = vperm.xlu0 %5534, %v5634_v0   ;;  %v5636_v3 = vld [vmem:[%s10514_s0 + $0x1c0] sm:$0xff] }
 0x36b   :  { %v7158_v6 = vpop.permute.xlu1 %2291  ;;  %v7160_v49 = vpop.permute.xlu0 %3079 }
 0x36c   :  { %10874 = vst [vmem:[#allocation328_spill] sm:$0xff] %v7158_v6  ;;  %10875 = vst [vmem:[#allocation329_spill] sm:$0xff] %v7160_v49 }
 0x36d   :  { %2795 = vperm.xlu1 %5533, %v5633_v33   ;;  %550 = vperm.xlu0 %5534, %v5635_v58   ;;  %v5637_v33 = vld [vmem:[%s10514_s0 + $0x1d0] sm:$0xff] }
 0x36f   :  { %v7165_v24 = vpop.permute.xlu1 %2299  ;;  %v7167_v15 = vpop.permute.xlu0 %3087 }
 0x370   :  { %10876 = vst [vmem:[#allocation330_spill] sm:$0xff] %v7165_v24  ;;  %10877 = vst [vmem:[#allocation331_spill] sm:$0xff] %v7167_v15 }
 0x371   :  { %2803 = vperm.xlu1 %5533, %v5634_v0   ;;  %560 = vperm.xlu0 %5534, %v5636_v3   ;;  %v5638_v0 = vld [vmem:[%s10514_s0 + $0x1e0] sm:$0xff] }
 0x373   :  { %v7172_v2 = vpop.permute.xlu1 %2307  ;;  %v7174_v6 = vpop.permute.xlu0 %3095 }
 0x374   :  { %10878 = vst [vmem:[#allocation332_spill] sm:$0xff] %v7172_v2  ;;  %10879 = vst [vmem:[#allocation333_spill] sm:$0xff] %v7174_v6 }
 0x375   :  { %2811 = vperm.xlu1 %5533, %v5635_v58   ;;  %570 = vperm.xlu0 %5534, %v5637_v33   ;;  %v5639_v58 = vld [vmem:[%s10514_s0 + $0x1f0] sm:$0xff] }
 0x377   :  { %v7179_v49 = vpop.permute.xlu1 %2315  ;;  %v7181_v24 = vpop.permute.xlu0 %3103 }
 0x378   :  { %10880 = vst [vmem:[#allocation334_spill] sm:$0xff] %v7179_v49  ;;  %10881 = vst [vmem:[#allocation335_spill] sm:$0xff] %v7181_v24 }
 0x379   :  { %2819 = vperm.xlu1 %5533, %v5636_v3   ;;  %580 = vperm.xlu0 %5534, %v5638_v0   ;;  %v5640_v3 = vld [vmem:[%s10514_s0 + $0x200] sm:$0xff] }
 0x37b   :  { %v7186_v15 = vpop.permute.xlu1 %2323 }
 0x37c   :  { %10882 = vst [vmem:[#allocation336_spill] sm:$0xff] %v7186_v15  ;;  %v7188_v2 = vpop.permute.xlu0 %280 }
 0x37d   :  { %10883 = vst [vmem:[#allocation337_spill] sm:$0xff] %v7188_v2  ;;  %2827 = vperm.xlu1 %5533, %v5637_v33   ;;  %590 = vperm.xlu0 %5534, %v5639_v58   ;;  %v5641_v33 = vld [vmem:[%s10514_s0 + $0x210] sm:$0xff] }
 0x37f   :  { %v7193_v6 = vpop.permute.xlu1 %2331 }
 0x380   :  { %10884 = vst [vmem:[#allocation338_spill] sm:$0xff] %v7193_v6  ;;  %v7195_v49 = vpop.permute.xlu0 %285 }
 0x381   :  { %10885 = vst [vmem:[#allocation339_spill] sm:$0xff] %v7195_v49  ;;  %2835 = vperm.xlu1 %5533, %v5638_v0   ;;  %600 = vperm.xlu0 %5534, %v5640_v3   ;;  %v5642_v0 = vld [vmem:[%s10514_s0 + $0x220] sm:$0xff] }
 0x384   :  { %v7200_v24 = vpop.permute.xlu1 %2599  ;;  %v7202_v15 = vpop.permute.xlu0 %300 }
 0x385   :  { %10886 = vst [vmem:[#allocation340_spill] sm:$0xff] %v7200_v24  ;;  %10887 = vst [vmem:[#allocation341_spill] sm:$0xff] %v7202_v15  ;;  %2843 = vperm.xlu1 %5533, %v5639_v58   ;;  %610 = vperm.xlu0 %5534, %v5641_v33   ;;  %v5643_v58 = vld [vmem:[%s10514_s0 + $0x230] sm:$0xff] }
 0x388   :  { %v7207_v30 = vpop.permute.xlu1 %2603  ;;  %v7209_v6 = vpop.permute.xlu0 %310 }
 0x389   :  { %10888 = vst [vmem:[#allocation342_spill] sm:$0xff] %v7207_v30  ;;  %10889 = vst [vmem:[#allocation343_spill] sm:$0xff] %v7209_v6  ;;  %2851 = vperm.xlu1 %5533, %v5640_v3   ;;  %620 = vperm.xlu0 %5534, %v5642_v0   ;;  %v5644_v3 = vld [vmem:[%s10514_s0 + $0x240] sm:$0xff] }
 0x38c   :  { %v7214_v2 = vpop.permute.xlu1 %2611  ;;  %v7216_v24 = vpop.permute.xlu0 %320 }
 0x38d   :  { %10890 = vst [vmem:[#allocation344_spill] sm:$0xff] %v7214_v2  ;;  %10891 = vst [vmem:[#allocation345_spill] sm:$0xff] %v7216_v24  ;;  %2859 = vperm.xlu1 %5533, %v5641_v33   ;;  %630 = vperm.xlu0 %5534, %v5643_v58   ;;  %v5645_v33 = vld [vmem:[%s10514_s0 + $0x250] sm:$0xff] }
 0x390   :  { %v7221_v15 = vpop.permute.xlu1 %2619  ;;  %v7223_v30 = vpop.permute.xlu0 %330 }
 0x391   :  { %10892 = vst [vmem:[#allocation346_spill] sm:$0xff] %v7221_v15  ;;  %10893 = vst [vmem:[#allocation347_spill] sm:$0xff] %v7223_v30  ;;  %2867 = vperm.xlu1 %5533, %v5642_v0   ;;  %640 = vperm.xlu0 %5534, %v5644_v3   ;;  %v5646_v0 = vld [vmem:[%s10514_s0 + $0x260] sm:$0xff] }
 0x394   :  { %v7228_v6 = vpop.permute.xlu1 %2627  ;;  %v7230_v2 = vpop.permute.xlu0 %340 }
 0x395   :  { %10894 = vst [vmem:[#allocation348_spill] sm:$0xff] %v7228_v6  ;;  %10895 = vst [vmem:[#allocation349_spill] sm:$0xff] %v7230_v2  ;;  %2875 = vperm.xlu1 %5533, %v5643_v58   ;;  %650 = vperm.xlu0 %5534, %v5645_v33   ;;  %v5647_v58 = vld [vmem:[%s10514_s0 + $0x270] sm:$0xff] }
 0x398   :  { %v7235_v24 = vpop.permute.xlu1 %2635  ;;  %v7237_v15 = vpop.permute.xlu0 %350 }
 0x399   :  { %10896 = vst [vmem:[#allocation350_spill] sm:$0xff] %v7235_v24  ;;  %10897 = vst [vmem:[#allocation351_spill] sm:$0xff] %v7237_v15  ;;  %2883 = vperm.xlu1 %5533, %v5644_v3   ;;  %660 = vperm.xlu0 %5534, %v5646_v0   ;;  %v5648_v3 = vld [vmem:[%s10514_s0 + $0x280] sm:$0xff] }
 0x39c   :  { %v7242_v30 = vpop.permute.xlu1 %2643  ;;  %v7244_v6 = vpop.permute.xlu0 %360 }
 0x39d   :  { %10898 = vst [vmem:[#allocation352_spill] sm:$0xff] %v7242_v30  ;;  %10899 = vst [vmem:[#allocation353_spill] sm:$0xff] %v7244_v6  ;;  %2891 = vperm.xlu1 %5533, %v5645_v33   ;;  %670 = vperm.xlu0 %5534, %v5647_v58   ;;  %v5649_v33 = vld [vmem:[%s10514_s0 + $0x290] sm:$0xff] }
 0x3a0   :  { %v7249_v2 = vpop.permute.xlu1 %2651  ;;  %v7251_v24 = vpop.permute.xlu0 %370 }
 0x3a1   :  { %10900 = vst [vmem:[#allocation354_spill] sm:$0xff] %v7249_v2  ;;  %10901 = vst [vmem:[#allocation355_spill] sm:$0xff] %v7251_v24  ;;  %2899 = vperm.xlu1 %5533, %v5646_v0   ;;  %680 = vperm.xlu0 %5534, %v5648_v3   ;;  %v5650_v0 = vld [vmem:[%s10514_s0 + $0x2a0] sm:$0xff] }
 0x3a4   :  { %v7256_v15 = vpop.permute.xlu1 %2659  ;;  %v7258_v30 = vpop.permute.xlu0 %380 }
 0x3a5   :  { %10902 = vst [vmem:[#allocation356_spill] sm:$0xff] %v7256_v15  ;;  %10903 = vst [vmem:[#allocation357_spill] sm:$0xff] %v7258_v30  ;;  %2907 = vperm.xlu1 %5533, %v5647_v58   ;;  %690 = vperm.xlu0 %5534, %v5649_v33   ;;  %v5651_v58 = vld [vmem:[%s10514_s0 + $0x2b0] sm:$0xff] }
 0x3a8   :  { %v7263_v6 = vpop.permute.xlu1 %2667  ;;  %v7265_v2 = vpop.permute.xlu0 %390 }
 0x3a9   :  { %10904 = vst [vmem:[#allocation358_spill] sm:$0xff] %v7263_v6  ;;  %10905 = vst [vmem:[#allocation359_spill] sm:$0xff] %v7265_v2  ;;  %2915 = vperm.xlu1 %5533, %v5648_v3   ;;  %700 = vperm.xlu0 %5534, %v5650_v0   ;;  %v5652_v3 = vld [vmem:[%s10514_s0 + $0x2c0] sm:$0xff] }
 0x3ac   :  { %v7270_v24 = vpop.permute.xlu1 %2675  ;;  %v7272_v15 = vpop.permute.xlu0 %400 }
 0x3ad   :  { %10906 = vst [vmem:[#allocation360_spill] sm:$0xff] %v7270_v24  ;;  %10907 = vst [vmem:[#allocation361_spill] sm:$0xff] %v7272_v15  ;;  %2923 = vperm.xlu1 %5533, %v5649_v33   ;;  %710 = vperm.xlu0 %5534, %v5651_v58   ;;  %v5653_v33 = vld [vmem:[%s10514_s0 + $0x2d0] sm:$0xff] }
 0x3b0   :  { %v7277_v30 = vpop.permute.xlu1 %2683  ;;  %v7279_v6 = vpop.permute.xlu0 %410 }
 0x3b1   :  { %10908 = vst [vmem:[#allocation362_spill] sm:$0xff] %v7277_v30  ;;  %10909 = vst [vmem:[#allocation363_spill] sm:$0xff] %v7279_v6  ;;  %2931 = vperm.xlu1 %5533, %v5650_v0   ;;  %720 = vperm.xlu0 %5534, %v5652_v3   ;;  %v5654_v0 = vld [vmem:[%s10514_s0 + $0x2e0] sm:$0xff] }
 0x3b4   :  { %v7284_v2 = vpop.permute.xlu1 %2691  ;;  %v7286_v24 = vpop.permute.xlu0 %420 }
 0x3b5   :  { %10910 = vst [vmem:[#allocation364_spill] sm:$0xff] %v7284_v2  ;;  %10911 = vst [vmem:[#allocation365_spill] sm:$0xff] %v7286_v24  ;;  %2939 = vperm.xlu1 %5533, %v5651_v58   ;;  %730 = vperm.xlu0 %5534, %v5653_v33   ;;  %v5655_v58 = vld [vmem:[%s10514_s0 + $0x2f0] sm:$0xff] }
 0x3b8   :  { %v7291_v15 = vpop.permute.xlu1 %2699  ;;  %v7293_v30 = vpop.permute.xlu0 %430 }
 0x3b9   :  { %10912 = vst [vmem:[#allocation366_spill] sm:$0xff] %v7291_v15  ;;  %10913 = vst [vmem:[#allocation367_spill] sm:$0xff] %v7293_v30  ;;  %2947 = vperm.xlu1 %5533, %v5652_v3   ;;  %740 = vperm.xlu0 %5534, %v5654_v0   ;;  %v5656_v3 = vld [vmem:[%s10514_s0 + $0x300] sm:$0xff] }
 0x3bc   :  { %v7298_v6 = vpop.permute.xlu1 %2707  ;;  %v7300_v2 = vpop.permute.xlu0 %440 }
 0x3bd   :  { %10914 = vst [vmem:[#allocation368_spill] sm:$0xff] %v7298_v6  ;;  %10915 = vst [vmem:[#allocation369_spill] sm:$0xff] %v7300_v2  ;;  %2955 = vperm.xlu1 %5533, %v5653_v33   ;;  %750 = vperm.xlu0 %5534, %v5655_v58   ;;  %v5657_v33 = vld [vmem:[%s10514_s0 + $0x310] sm:$0xff] }
 0x3c0   :  { %v7305_v24 = vpop.permute.xlu1 %2715  ;;  %v7307_v15 = vpop.permute.xlu0 %450 }
 0x3c1   :  { %10916 = vst [vmem:[#allocation370_spill] sm:$0xff] %v7305_v24  ;;  %10917 = vst [vmem:[#allocation371_spill] sm:$0xff] %v7307_v15  ;;  %2963 = vperm.xlu1 %5533, %v5654_v0   ;;  %760 = vperm.xlu0 %5534, %v5656_v3   ;;  %v5658_v0 = vld [vmem:[%s10514_s0 + $0x320] sm:$0xff] }
 0x3c4   :  { %v7312_v30 = vpop.permute.xlu1 %2723  ;;  %v7314_v6 = vpop.permute.xlu0 %460 }
 0x3c5   :  { %10918 = vst [vmem:[#allocation372_spill] sm:$0xff] %v7312_v30  ;;  %10919 = vst [vmem:[#allocation373_spill] sm:$0xff] %v7314_v6  ;;  %2971 = vperm.xlu1 %5533, %v5655_v58   ;;  %770 = vperm.xlu0 %5534, %v5657_v33   ;;  %v5659_v58 = vld [vmem:[%s10514_s0 + $0x330] sm:$0xff] }
 0x3c8   :  { %v7319_v2 = vpop.permute.xlu1 %2731  ;;  %v7321_v24 = vpop.permute.xlu0 %470 }
 0x3c9   :  { %10920 = vst [vmem:[#allocation374_spill] sm:$0xff] %v7319_v2  ;;  %10921 = vst [vmem:[#allocation375_spill] sm:$0xff] %v7321_v24  ;;  %2979 = vperm.xlu1 %5533, %v5656_v3   ;;  %780 = vperm.xlu0 %5534, %v5658_v0   ;;  %v5660_v3 = vld [vmem:[%s10514_s0 + $0x340] sm:$0xff] }
 0x3cc   :  { %v7326_v15 = vpop.permute.xlu1 %2739  ;;  %v7328_v30 = vpop.permute.xlu0 %480 }
 0x3cd   :  { %10922 = vst [vmem:[#allocation376_spill] sm:$0xff] %v7326_v15  ;;  %10923 = vst [vmem:[#allocation377_spill] sm:$0xff] %v7328_v30  ;;  %2987 = vperm.xlu1 %5533, %v5657_v33   ;;  %790 = vperm.xlu0 %5534, %v5659_v58   ;;  %v5661_v33 = vld [vmem:[%s10514_s0 + $0x350] sm:$0xff]  ;;  %v10528_v30 = vlaneseq }
 0x3d0   :  { %v7333_v6 = vpop.permute.xlu1 %2747  ;;  %v7335_v2 = vpop.permute.xlu0 %490 }
 0x3d1   :  { %10924 = vst [vmem:[#allocation378_spill] sm:$0xff] %v7333_v6  ;;  %10925 = vst [vmem:[#allocation379_spill] sm:$0xff] %v7335_v2  ;;  %2995 = vperm.xlu1 %5533, %v5658_v0   ;;  %800 = vperm.xlu0 %5534, %v5660_v3   ;;  %v5662_v0 = vld [vmem:[%s10514_s0 + $0x360] sm:$0xff] }
 0x3d4   :  { %v7340_v24 = vpop.permute.xlu1 %2755  ;;  %v7342_v15 = vpop.permute.xlu0 %500 }
 0x3d5   :  { %10926 = vst [vmem:[#allocation380_spill] sm:$0xff] %v7340_v24  ;;  %10927 = vst [vmem:[#allocation381_spill] sm:$0xff] %v7342_v15  ;;  %3003 = vperm.xlu1 %5533, %v5659_v58   ;;  %810 = vperm.xlu0 %5534, %v5661_v33   ;;  %v7355_v24 = vshrl.u32 %v10528_v30, 7 }
 0x3d7   :  { %10930 = vst [vmem:[#allocation384_spill] sm:$0xff] %v7355_v24  ;;  %v10529_v58 = vsub.s32 1, %v7355_v24 }
 0x3d8   :  { %v7347_v6 = vpop.permute.xlu1 %2763  ;;  %v7349_v2 = vpop.permute.xlu0 %510 }
 0x3d9   :  { %10928 = vst [vmem:[#allocation382_spill] sm:$0xff] %v7347_v6  ;;  %10929 = vst [vmem:[#allocation383_spill] sm:$0xff] %v7349_v2  ;;  %3011 = vperm.xlu1 %5533, %v5660_v3   ;;  %820 = vperm.xlu0 %5534, %v5662_v0   ;;  %v5663_v2 = vld [vmem:[%s10514_s0 + $0x370] sm:$0xff]  ;;  %v10530_v3 = vsub.s32 0, %v7355_v24  ;;  %v7369_v6 = vld [vmem:[%s10517_s3] sm:$0xf] }
 0x3da   :  { %10933 = vst [vmem:[#allocation387_spill] sm:$0xff] %v7369_v6  ;;  %v7374_v30 = vrot.slane %v7369_v6, %v10529_v58 }
 0x3db   :  { %v7386_v49 = vrot.slane %v7369_v6, %v10530_v3 }
 0x3dc   :  { %v7358_v15 = vpop.permute.xlu1 %2771  ;;  %v7360_v40 = vpop.permute.xlu0 %520  ;;  %v1569_v58 = vmul.f32 %v7374_v30, %v5845_v39  ;;  %v1571_v21 = vmul.f32 %v7374_v30, %v5852_v42  ;;  %v1573_v6 = vmul.f32 %v7374_v30, %v5859_v45  ;;  %v1579_v45 = vmul.f32 %v7374_v30, %v5880_v54 }
 0x3dd   :  { %10931 = vst [vmem:[#allocation385_spill] sm:$0xff] %v7358_v15  ;;  %10932 = vst [vmem:[#allocation386_spill] sm:$0xff] %v7360_v40  ;;  %3019 = vperm.xlu1 %5533, %v5661_v33   ;;  %830 = vperm.xlu0 %5534, %v5663_v2   ;;  %v5664_v40 = vld [vmem:[%s10514_s0 + $0x380] sm:$0xff]  ;;  %v925_v27 = vmul.f32 %v7386_v49, %v5843_v38  ;;  %v929_v3 = vmul.f32 %v7386_v49, %v5857_v44  ;;  %v5665_v38 = vld [vmem:[%s10514_s0 + $0x390] sm:$0xff] }
 0x3de   :  { %v931_v39 = vmul.f32 %v7386_v49, %v5864_v47  ;;  %v933_v42 = vmul.f32 %v7386_v49, %v5871_v50  ;;  %v1577_v44 = vmul.f32 %v7374_v30, %v5873_v51  ;;  %v1581_v47 = vmul.f32 %v7374_v30, %v5887_v57  ;;  %v5666_v51 = vld [vmem:[%s10514_s0 + $0x3a0] sm:$0xff] }
 0x3df   :  { %v7429_v50 = vmul.f32 %v7386_v49, %v5836_v35  ;;  %v7438_v54 = vadd.f32 %v1569_v58, %v925_v27  ;;  %v7442_v57 = vadd.f32 %v1573_v6, %v929_v3  ;;  %v1585_v27 = vmul.f32 %v7374_v30, %v5901_v63 }
 0x3e0   :  { %v7376_v15 = vpop.permute.xlu1 %2779  ;;  %v7378_v33 = vpop.permute.xlu0 %530  ;;  %v7446_v35 = vadd.f32 %v1577_v44, %v933_v42  ;;  %v1587_v3 = vmul.f32 %v7374_v30, %v5908_v5  ;;  %v947_v63 = vmul.f32 %v7386_v49, %v5920_v10  ;;  %v949_v5 = vmul.f32 %v7386_v49, %v5927_v13 }
 0x3e1   :  { %10934 = vst [vmem:[#allocation388_spill] sm:$0xff] %v7376_v15  ;;  %10935 = vst [vmem:[#allocation389_spill] sm:$0xff] %v7378_v33  ;;  %3027 = vperm.xlu1 %5533, %v5662_v0   ;;  %840 = vperm.xlu0 %5534, %v5664_v40   ;;  %v927_v33 = vmul.f32 %v7386_v49, %v5850_v41  ;;  %v1575_v41 = vmul.f32 %v7374_v30, %v5866_v48 }
 0x3e2   :  { %10940 = vst [vmem:[#allocation394_spill] sm:$0xff] %v7429_v50  ;;  %v939_v50 = vmul.f32 %v7386_v49, %v5892_v59  ;;  %v945_v59 = vmul.f32 %v7386_v49, %v5913_v7  ;;  %v1593_v7 = vmul.f32 %v7374_v30, %v5929_v14  ;;  %v1597_v10 = vmul.f32 %v7374_v30, %v5943_v20 }
 0x3e3   :  { %v1599_v13 = vmul.f32 %v7374_v30, %v5950_v23  ;;  %v957_v14 = vmul.f32 %v7386_v49, %v5955_v25  ;;  %v1603_v20 = vmul.f32 %v7374_v30, %v5964_v29  ;;  %v961_v23 = vmul.f32 %v7386_v49, %v5969_v31 }
 0x3e4   :  { %v7394_v0 = vpop.permute.xlu1 %2787  ;;  %v7396_v15 = vpop.permute.xlu0 %540  ;;  %v1605_v25 = vmul.f32 %v7374_v30, %v5971_v32  ;;  %v965_v29 = vmul.f32 %v7386_v49, %v5983_v43  ;;  %v967_v42 = vmul.f32 %v7386_v49, %v5990_v52  ;;  %v1611_v31 = vmul.f32 %v7374_v30, %v5992_v55  ;;  %v5669_v55 = vld [vmem:[%s10514_s0 + $0x3d0] sm:$0xff] }
 0x3e5   :  { %10936 = vst [vmem:[#allocation390_spill] sm:$0xff] %v7394_v0  ;;  %10937 = vst [vmem:[#allocation391_spill] sm:$0xff] %v7396_v15  ;;  %3035 = vperm.xlu1 %5533, %v5663_v2   ;;  %850 = vperm.xlu0 %5534, %v5665_v38   ;;  %v935_v2 = vmul.f32 %v7386_v49, %v5878_v53  ;;  %v937_v15 = vmul.f32 %v7386_v49, %v5885_v56 }
 0x3e6   :  { %v7436_v53 = vmul.f32 %v7374_v30, %v5838_v36  ;;  %v7440_v56 = vadd.f32 %v1571_v21, %v927_v33  ;;  %v1583_v36 = vmul.f32 %v7374_v30, %v5894_v60  ;;  %v941_v21 = vmul.f32 %v7386_v49, %v5899_v62  ;;  %v5667_v60 = vld [vmem:[%s10514_s0 + $0x3b0] sm:$0xff] }
 0x3e7   :  { %v1589_v62 = vmul.f32 %v7374_v30, %v5915_v8  ;;  %v951_v33 = vmul.f32 %v7386_v49, %v5934_v16  ;;  %v953_v8 = vmul.f32 %v7386_v49, %v5941_v19  ;;  %v959_v19 = vmul.f32 %v7386_v49, %v5962_v28 }
 0x3e8   :  { %v7423_v0 = vpop.permute.xlu1 %2795  ;;  %v7425_v48 = vpop.permute.xlu0 %550  ;;  %v1607_v28 = vmul.f32 %v7374_v30, %v5978_v37  ;;  %v7526_v44 = vadd.f32 %v1583_v36, %v939_v50  ;;  %v7528_v32 = vadd.f32 %v1585_v27, %v941_v21  ;;  %v7555_v21 = vadd.f32 %v1605_v25, %v961_v23  ;;  %v10959_v25 = vld [vmem:[#allocation13_spill] sm:$0xff] }
 0x3e9   :  { %10938 = vst [vmem:[#allocation392_spill] sm:$0xff] %v7423_v0  ;;  %10939 = vst [vmem:[#allocation393_spill] sm:$0xff] %v7425_v48  ;;  %3043 = vperm.xlu1 %5533, %v5664_v40   ;;  %860 = vperm.xlu0 %5534, %v5666_v51   ;;  %v7444_v48 = vadd.f32 %v1575_v41, %v931_v39  ;;  %v7448_v40 = vadd.f32 %v1579_v45, %v935_v2 }
 0x3ea   :  { %v7450_v0 = vadd.f32 %v1581_v47, %v937_v15  ;;  %v943_v15 = vmul.f32 %v7386_v49, %v5906_v4  ;;  %v1591_v4 = vmul.f32 %v7374_v30, %v5922_v11  ;;  %v955_v11 = vmul.f32 %v7386_v49, %v5948_v22  ;;  %v5668_v22 = vld [vmem:[%s10514_s0 + $0x3c0] sm:$0xff] }
 0x3eb   :  { %v1609_v41 = vmul.f32 %v7374_v30, %v5985_v46  ;;  %v7532_v2 = vadd.f32 %v1589_v62, %v945_v59  ;;  %v7540_v46 = vadd.f32 %v1593_v7, %v949_v5  ;;  %v7547_v47 = vadd.f32 %v1597_v10, %v953_v8  ;;  %v10954_v10 = vld [vmem:[#allocation8_spill] sm:$0xff] }
 0x3ec   :  { %v7460_v6 = vpop.permute.xlu1 %2803  ;;  %v7462_v58 = vpop.permute.xlu0 %560  ;;  %v7538_v45 = vadd.f32 %v1591_v4, %v947_v63  ;;  %v7549_v50 = vadd.f32 %v1599_v13, %v955_v11  ;;  %v7553_v36 = vadd.f32 %v1603_v20, %v959_v19  ;;  %v969_v59 = vmul.f32 %v7386_v49, %v5997_v61  ;;  %v10952_v61 = vld [vmem:[#allocation6_spill] sm:$0xff]  ;;  %v10955_v13 = vld [vmem:[#allocation9_spill] sm:$0xff]  ;;  %v10957_v19 = vld [vmem:[#allocation11_spill] sm:$0xff] }
 0x3ed   :  { %10941 = vst [vmem:[#allocation395_spill] sm:$0xff] %v7460_v6  ;;  %10942 = vst [vmem:[#allocation396_spill] sm:$0xff] %v7462_v58  ;;  %3051 = vperm.xlu1 %5533, %v5665_v38   ;;  %870 = vperm.xlu0 %5534, %v5667_v60   ;;  %v1595_v38 = vmul.f32 %v7374_v30, %v5936_v17  ;;  %v1601_v17 = vmul.f32 %v7374_v30, %v5957_v26  ;;  %v10976_v58 = vld [vmem:[#allocation27_spill] sm:$0xff] }
 0x3ee   :  { %v963_v26 = vmul.f32 %v7386_v49, %v5976_v34  ;;  %v7530_v34 = vadd.f32 %v1587_v3, %v943_v15  ;;  %v7559_v15 = vadd.f32 %v1609_v41, %v965_v29  ;;  %v7561_v3 = vadd.f32 %v1611_v31, %v967_v42  ;;  %v10961_v41 = vld [vmem:[#allocation15_spill] sm:$0xff]  ;;  %v10962_v31 = vld [vmem:[#allocation16_spill] sm:$0xff] }
 0x3ef   :  { %v7542_v52 = vadd.f32 %v1595_v38, %v951_v33  ;;  %v971_v62 = vmul.f32 %v7386_v49, %v6004_v9  ;;  %v1615_v63 = vmul.f32 %v7374_v30, %v6006_v12  ;;  %v973_v7 = vmul.f32 %v7386_v49, %v6011_v18  ;;  %v10951_v33 = vld [vmem:[#allocation5_spill] sm:$0xff]  ;;  %v10953_v9 = vld [vmem:[#allocation7_spill] sm:$0xff] }
 0x3f0   :  { %v7497_v39 = vpop.permute.xlu1 %2811  ;;  %v7499_v16 = vpop.permute.xlu0 %570  ;;  %v7557_v27 = vadd.f32 %v1607_v28, %v963_v26  ;;  %10947 = vst [vmem:[#allocation401_spill] sm:$0xff] %v7559_v15  ;;  %10948 = vst [vmem:[#allocation402_spill] sm:$0xff] %v7561_v3  ;;  %v1617_v38 = vmul.f32 %v7374_v30, %v10951_v33  ;;  %v975_v8 = vmul.f32 %v7386_v49, %v10952_v61  ;;  %v10960_v28 = vld [vmem:[#allocation14_spill] sm:$0xff]  ;;  %v10963_v61 = vld [vmem:[#allocation17_spill] sm:$0xff] }
 0x3f1   :  { %10943 = vst [vmem:[#allocation397_spill] sm:$0xff] %v7497_v39  ;;  %10944 = vst [vmem:[#allocation398_spill] sm:$0xff] %v7499_v16  ;;  %3059 = vperm.xlu1 %5533, %v5666_v51   ;;  %880 = vperm.xlu0 %5534, %v5668_v22   ;;  %v7551_v51 = vadd.f32 %v1601_v17, %v957_v14  ;;  %v1619_v12 = vmul.f32 %v7374_v30, %v10953_v9  ;;  %v10956_v14 = vld [vmem:[#allocation10_spill] sm:$0xff] }
 0x3f2   :  { %v977_v11 = vmul.f32 %v7386_v49, %v10954_v10  ;;  %v1621_v18 = vmul.f32 %v7374_v30, %v10955_v13  ;;  %v979_v17 = vmul.f32 %v7386_v49, %v10956_v14  ;;  %v1623_v20 = vmul.f32 %v7374_v30, %v10957_v19  ;;  %v10964_v10 = vld [vmem:[#allocation18_spill] sm:$0xff] }
 0x3f3   :  { %v1625_v26 = vmul.f32 %v7374_v30, %v10959_v25  ;;  %v983_v29 = vmul.f32 %v7386_v49, %v10960_v28  ;;  %v1627_v42 = vmul.f32 %v7374_v30, %v10961_v41  ;;  %v985_v33 = vmul.f32 %v7386_v49, %v10962_v31  ;;  %v10968_v28 = vld [vmem:[#allocation20_spill] sm:$0xff]  ;;  %v10969_v41 = vld [vmem:[#allocation21_spill] sm:$0xff]  ;;  %v10975_v31 = vld [vmem:[#allocation26_spill] sm:$0xff] }
 0x3f4   :  { %v7534_v37 = vpop.permute.xlu1 %2819  ;;  %v7536_v43 = vpop.permute.xlu0 %580  ;;  %v1629_v9 = vmul.f32 %v7374_v30, %v10963_v61  ;;  %v987_v13 = vmul.f32 %v7386_v49, %v10964_v10  ;;  %v5671_v61 = vld [vmem:[%s10514_s0 + $0x3f0] sm:$0xff]  ;;  %v995_v39 = vmul.f32 %v7386_v49, %v10975_v31  ;;  %v1639_v6 = vmul.f32 %v7374_v30, %v10976_v58 }
 0x3f5   :  { %10945 = vst [vmem:[#allocation399_spill] sm:$0xff] %v7534_v37  ;;  %10946 = vst [vmem:[#allocation400_spill] sm:$0xff] %v7536_v43  ;;  %3067 = vperm.xlu1 %5533, %v5667_v60   ;;  %890 = vperm.xlu0 %5534, %v5669_v55   ;;  %v1613_v60 = vmul.f32 %v7374_v30, %v5999_v1  ;;  %v5670_v1 = vld [vmem:[%s10514_s0 + $0x3e0] sm:$0xff]  ;;  %v10970_v10 = vld [vmem:[#allocation22_spill] sm:$0xff]  ;;  %v7640_v3 = vadd.f32 %v1619_v12, %v975_v8  ;;  %v10990_v8 = vsub.s32 2, %v7355_v24 }
 0x3f6   :  { %v10972_v43 = vld [vmem:[#allocation24_spill] sm:$0xff]  ;;  %v10973_v37 = vld [vmem:[#allocation25_spill] sm:$0xff]  ;;  %v10991_v12 = vld [vmem:[#allocation387_spill] sm:$0xff] }
 0x3f7   :  { %v7630_v16 = vadd.f32 %v1613_v60, %v969_v59  ;;  %10978 = vst [vmem:[#allocation9_spill] sm:$0xff] %v7640_v3  ;;  %v7652_v60 = vadd.f32 %v1627_v42, %v983_v29  ;;  %v10997_v42 = vld [vmem:[#allocation32_spill] sm:$0xff]  ;;  %v11002_v31 = vld [vmem:[#allocation35_spill] sm:$0xff]  ;;  %v11023_v3 = vmov 0  }
 0x3f8   :  { %v7571_v4 = vpop.permute.xlu1 %2827  ;;  %v7573_v5 = vpop.permute.xlu0 %590 }
 0x3f9   :  { %10949 = vst [vmem:[#allocation403_spill] sm:$0xff] %v7571_v4  ;;  %10950 = vst [vmem:[#allocation404_spill] sm:$0xff] %v7573_v5  ;;  %3075 = vperm.xlu1 %5533, %v5668_v22   ;;  %900 = vperm.xlu0 %5534, %v5670_v1   ;;  %v10958_v22 = vld [vmem:[#allocation12_spill] sm:$0xff]  ;;  %v989_v5 = vmul.f32 %v7386_v49, %v10968_v28  ;;  %v1633_v4 = vmul.f32 %v7374_v30, %v10969_v41 }
 0x3fa   :  { %v981_v23 = vmul.f32 %v7386_v49, %v10958_v22  ;;  %v10967_v22 = vld [vmem:[#allocation19_spill] sm:$0xff]  ;;  %v993_v28 = vmul.f32 %v7386_v49, %v10972_v43  ;;  %v1637_v41 = vmul.f32 %v7374_v30, %v10973_v37  ;;  %v7644_v43 = vadd.f32 %v1623_v20, %v979_v17  ;;  %10984 = vst [vmem:[#allocation15_spill] sm:$0xff] %v7652_v60  ;;  %v10993_v17 = vld [vmem:[#allocation28_spill] sm:$0xff]  ;;  %v11014_v60 = vld [vmem:[#allocation46_spill] sm:$0xff] }
 0x3fb   :  { %v1631_v25 = vmul.f32 %v7374_v30, %v10967_v22  ;;  %v7658_v58 = vadd.f32 %v1633_v4, %v989_v5  ;;  %v997_v20 = vmul.f32 %v7386_v49, %v10993_v17  ;;  %v10996_v5 = vld [vmem:[#allocation31_spill] sm:$0xff] }
 0x3fc   :  { %v7608_v14 = vpop.permute.xlu1 %2835  ;;  %v7610_v19 = vpop.permute.xlu0 %600  ;;  %10980 = vst [vmem:[#allocation11_spill] sm:$0xff] %v7644_v43  ;;  %v7650_v59 = vadd.f32 %v1625_v26, %v981_v23  ;;  %v10994_v23 = vld [vmem:[#allocation29_spill] sm:$0xff]  ;;  %v1643_v29 = vmul.f32 %v7374_v30, %v10996_v5  ;;  %v11006_v5 = vld [vmem:[#allocation39_spill] sm:$0xff] }
 0x3fd   :  { %10965 = vst [vmem:[#allocation5_spill] sm:$0xff] %v7608_v14  ;;  %10966 = vst [vmem:[#allocation6_spill] sm:$0xff] %v7610_v19  ;;  %3083 = vperm.xlu1 %5533, %v5669_v55   ;;  %910 = vperm.xlu0 %5534, %v5671_v61   ;;  %v991_v19 = vmul.f32 %v7386_v49, %v10970_v10  ;;  %v10971_v14 = vld [vmem:[#allocation23_spill] sm:$0xff]  ;;  %v7632_v55 = vadd.f32 %v1615_v63, %v971_v62 }
 0x3fe   :  { %v1635_v22 = vmul.f32 %v7374_v30, %v10971_v14  ;;  %v7638_v10 = vadd.f32 %v1617_v38, %v973_v7  ;;  %v7642_v14 = vadd.f32 %v1621_v18, %v977_v11  ;;  %10983 = vst [vmem:[#allocation14_spill] sm:$0xff] %v7650_v59  ;;  %v7654_v62 = vadd.f32 %v1629_v9, %v985_v33  ;;  %v10998_v9 = vld [vmem:[#allocation33_spill] sm:$0xff]  ;;  %v11016_v59 = vld [vmem:[#allocation48_spill] sm:$0xff] }
 0x3ff   :  { %10974 = vst [vmem:[#allocation7_spill] sm:$0xff] %v7632_v55  ;;  %v7656_v63 = vadd.f32 %v1631_v25, %v987_v13  ;;  %10987 = vst [vmem:[#allocation18_spill] sm:$0xff] %v7658_v58  ;;  %v7662_v38 = vadd.f32 %v1637_v41, %v993_v28  ;;  %v7667_v11 = vrot.slane %v10991_v12, %v10990_v8  ;;  %v11003_v28 = vld [vmem:[#allocation36_spill] sm:$0xff]  ;;  %v11004_v8 = vld [vmem:[#allocation37_spill] sm:$0xff] }
 0x400   :  { %10977 = vst [vmem:[#allocation8_spill] sm:$0xff] %v7638_v10  ;;  %10979 = vst [vmem:[#allocation10_spill] sm:$0xff] %v7642_v14  ;;  %v7646_v15 = vpop.permute.xlu1 %2843  ;;  %v7648_v37 = vpop.permute.xlu0 %610  ;;  %v7660_v7 = vadd.f32 %v1635_v22, %v991_v19  ;;  %v7669_v18 = vadd.f32 %v1639_v6, %v995_v39  ;;  %v1641_v26 = vmul.f32 %v7374_v30, %v10994_v23  ;;  %v10999_v6 = vld [vmem:[#allocation34_spill] sm:$0xff] }
 0x401   :  { %10981 = vst [vmem:[#allocation12_spill] sm:$0xff] %v7646_v15  ;;  %10982 = vst [vmem:[#allocation13_spill] sm:$0xff] %v7648_v37  ;;  %3091 = vperm.xlu1 %5533, %v5670_v1   ;;  %v10995_v1 = vld [vmem:[#allocation30_spill] sm:$0xff]  ;;  %v1001_v33 = vmul.f32 %v7386_v49, %v10997_v42  ;;  %v1645_v13 = vmul.f32 %v7374_v30, %v10998_v9  ;;  %v1003_v39 = vmul.f32 %v7386_v49, %v10999_v6  ;;  %v11007_v9 = vld [vmem:[#allocation40_spill] sm:$0xff] }
 0x402   :  { %10985 = vst [vmem:[#allocation16_spill] sm:$0xff] %v7654_v62  ;;  %10986 = vst [vmem:[#allocation17_spill] sm:$0xff] %v7656_v63  ;;  %v999_v4 = vmul.f32 %v7386_v49, %v10995_v1  ;;  %v1647_v22 = vmul.f32 %v7374_v30, %v11002_v31  ;;  %v1005_v41 = vmul.f32 %v7386_v49, %v11003_v28  ;;  %v11005_v23 = vld [vmem:[#allocation38_spill] sm:$0xff]  ;;  %v11010_v28 = vld [vmem:[#allocation43_spill] sm:$0xff] }
 0x403   :  { %10988 = vst [vmem:[#allocation19_spill] sm:$0xff] %v7660_v7  ;;  %10989 = vst [vmem:[#allocation20_spill] sm:$0xff] %v7662_v38  ;;  %v1649_v17 = vmul.f32 %v7374_v30, %v11004_v8  ;;  %v1007_v1 = vmul.f32 %v7386_v49, %v11005_v23  ;;  %v1651_v42 = vmul.f32 %v7374_v30, %v11006_v5  ;;  %v11009_v31 = vld [vmem:[#allocation42_spill] sm:$0xff]  ;;  %v11011_v8 = vld [vmem:[#allocation44_spill] sm:$0xff] }
 0x404   :  { %10992 = vst [vmem:[#allocation21_spill] sm:$0xff] %v7669_v18  ;;  %v7685_v19 = vpop.permute.xlu1 %2851  ;;  %v7687_v25 = vpop.permute.xlu0 %620  ;;  %v1009_v6 = vmul.f32 %v7386_v49, %v11007_v9  ;;  %v11008_v18 = vld [vmem:[#allocation41_spill] sm:$0xff]  ;;  %v1011_v7 = vmul.f32 %v7386_v49, %v11009_v31  ;;  %v1655_v58 = vmul.f32 %v7374_v30, %v11010_v28  ;;  %v1013_v63 = vmul.f32 %v7386_v49, %v11011_v8  ;;  %v11013_v62 = vld [vmem:[#allocation339_spill] sm:$0xff] }
 0x405   :  { %11000 = vst [vmem:[#allocation22_spill] sm:$0xff] %v7685_v19  ;;  %11001 = vst [vmem:[#allocation23_spill] sm:$0xff] %v7687_v25  ;;  %3099 = vperm.xlu1 %5533, %v5671_v61   ;;  %v1653_v38 = vmul.f32 %v7374_v30, %v11008_v18  ;;  %v11012_v23 = vld [vmem:[#allocation45_spill] sm:$0xff]  ;;  %v923_v5 = vmul.f32 %v7386_v49, %v11013_v62  ;;  %v1015_v9 = vmul.f32 %v7386_v49, %v11014_v60  ;;  %v11015_v25 = vld [vmem:[#allocation47_spill] sm:$0xff] }
 0x406   :  { %v1657_v61 = vmul.f32 %v7374_v30, %v11012_v23  ;;  %v1659_v18 = vmul.f32 %v7374_v30, %v11015_v25  ;;  %v1017_v31 = vmul.f32 %v7386_v49, %v11016_v59  ;;  %v11017_v19 = vld [vmem:[#allocation49_spill] sm:$0xff]  ;;  %v11020_v23 = vld [vmem:[#allocation50_spill] sm:$0xff]  ;;  %v11021_v62 = vld [vmem:[#allocation51_spill] sm:$0xff]  ;;  %v7733_v59 = vadd.f32 %v1641_v26, %v997_v20 }
 0x407   :  { %v1661_v28 = vmul.f32 %v7374_v30, %v11017_v19  ;;  %v1019_v43 = vmul.f32 %v7386_v49, %v11020_v23  ;;  %v1663_v15 = vmul.f32 %v7374_v30, %v11021_v62  ;;  %v11022_v60 = vld [vmem:[#allocation82_spill] sm:$0xff]  ;;  %v7735_v19 = vadd.f32 %v1643_v29, %v999_v4 }
 0x408   :  { %v7721_v37 = vpop.permute.xlu1 %2859  ;;  %v7723_v8 = vpop.permute.xlu0 %630  ;;  %v1567_v14 = vmul.f32 %v7374_v30, %v11022_v60  ;;  %v7741_v10 = vadd.f32 %v1649_v17, %v1005_v41  ;;  %v7743_v23 = vadd.f32 %v1651_v42, %v1007_v1  ;;  %v7745_v62 = vadd.f32 %v1653_v38, %v1009_v6  ;;  %v11036_v38 = vld [vmem:[#allocation83_spill] sm:$0xff]  ;;  %v11042_v42 = vld [vmem:[#allocation57_spill] sm:$0xff] }
 0x409   :  { %11018 = vst [vmem:[#allocation24_spill] sm:$0xff] %v7721_v37  ;;  %11019 = vst [vmem:[#allocation25_spill] sm:$0xff] %v7723_v8  ;;  %5535 = vset.pattern.permute.xlu1 %v11023_v3  ;;  %v7737_v37 = vadd.f32 %v1645_v13, %v1001_v33  ;;  %v7739_v8 = vadd.f32 %v1647_v22, %v1003_v39  ;;  %v7747_v60 = vadd.f32 %v1655_v58, %v1011_v7  ;;  %v11035_v33 = vld [vmem:[#allocation52_spill] sm:$0xff]  ;;  %v11038_v7 = vld [vmem:[#allocation53_spill] sm:$0xff] }
 0x40a   :  { %11024 = vst [vmem:[#allocation26_spill] sm:$0xff] %v7735_v19  ;;  %11027 = vst [vmem:[#allocation28_spill] sm:$0xff] %v7741_v10  ;;  %v1695_v55 = vadd.f32 %v1567_v14, %v923_v5  ;;  %v7749_v25 = vadd.f32 %v1657_v61, %v1013_v63  ;;  %v7751_v3 = vadd.f32 %v1659_v18, %v1015_v9  ;;  %v11037_v58 = vsub.s32 3, %v7355_v24  ;;  %v11039_v22 = vld [vmem:[#allocation54_spill] sm:$0xff]  ;;  %v11040_v17 = vld [vmem:[#allocation55_spill] sm:$0xff] }
 0x40b   :  { %11025 = vst [vmem:[#allocation27_spill] sm:$0xff] %v7737_v37  ;;  %11026 = vst [vmem:[#allocation387_spill] sm:$0xff] %v7739_v8  ;;  %v7753_v20 = vadd.f32 %v1661_v28, %v1017_v31  ;;  %v7759_v29 = vadd.f32 %v1663_v15, %v1019_v43  ;;  %v1021_v13 = vmul.f32 %v7386_v49, %v11035_v33  ;;  %v11041_v43 = vld [vmem:[#allocation56_spill] sm:$0xff]  ;;  %v11045_v31 = vld [vmem:[#allocation58_spill] sm:$0xff] }
 0x40c   :  { %11028 = vst [vmem:[#allocation29_spill] sm:$0xff] %v7743_v23  ;;  %11029 = vst [vmem:[#allocation30_spill] sm:$0xff] %v7745_v62  ;;  %v7755_v26 = vpop.permute.xlu1 %2867  ;;  %v7757_v4 = vpop.permute.xlu0 %640  ;;  %v2339_v14 = vmul.f32 %v7667_v11, %v11036_v38  ;;  %v7768_v63 = vrot.slane %v10991_v12, %v11037_v58  ;;  %v1665_v39 = vmul.f32 %v7374_v30, %v11038_v7  ;;  %v11043_v61 = vld [vmem:[#allocation84_spill] sm:$0xff]  ;;  %v11046_v33 = vld [vmem:[#allocation59_spill] sm:$0xff] }
 0x40d   :  { %11030 = vst [vmem:[#allocation31_spill] sm:$0xff] %v7747_v60  ;;  %11031 = vst [vmem:[#allocation32_spill] sm:$0xff] %v7749_v25  ;;  %v1023_v41 = vmul.f32 %v7386_v49, %v11039_v22  ;;  %v1667_v15 = vmul.f32 %v7374_v30, %v11040_v17  ;;  %v1025_v1 = vmul.f32 %v7386_v49, %v11041_v43  ;;  %v11044_v9 = vld [vmem:[#allocation340_spill] sm:$0xff]  ;;  %v11048_v22 = vld [vmem:[#allocation61_spill] sm:$0xff] }
 0x40e   :  { %11032 = vst [vmem:[#allocation33_spill] sm:$0xff] %v7751_v3  ;;  %11033 = vst [vmem:[#allocation34_spill] sm:$0xff] %v7753_v20  ;;  %v1669_v6 = vmul.f32 %v7374_v30, %v11042_v42  ;;  %v1568_v5 = vmul.f32 %v7374_v30, %v11043_v61  ;;  %v2467_v12 = vadd.f32 %v2339_v14, %v1695_v55  ;;  %v11047_v58 = vld [vmem:[#allocation60_spill] sm:$0xff]  ;;  %v11049_v55 = vld [vmem:[#allocation62_spill] sm:$0xff] }
 0x40f   :  { %11034 = vst [vmem:[#allocation35_spill] sm:$0xff] %v7759_v29  ;;  %v3111_v18 = vmul.f32 %v7768_v63, %v11044_v9  ;;  %v1027_v28 = vmul.f32 %v7386_v49, %v11045_v31  ;;  %v1671_v38 = vmul.f32 %v7374_v30, %v11046_v33  ;;  %v1029_v7 = vmul.f32 %v7386_v49, %v11047_v58  ;;  %v11050_v61 = vld [vmem:[#allocation63_spill] sm:$0xff]  ;;  %v11051_v31 = vld [vmem:[#allocation212_spill] sm:$0xff]  ;;  %v11052_v33 = vld [vmem:[#allocation341_spill] sm:$0xff] }
 0x410   :  { %v1673_v17 = vmul.f32 %v7374_v30, %v11048_v22  ;;  %v7792_v43 = vpop.permute.xlu1 %2875  ;;  %v7794_v42 = vpop.permute.xlu0 %650  ;;  %v1031_v14 = vmul.f32 %v7386_v49, %v11049_v55  ;;  %v1675_v9 = vmul.f32 %v7374_v30, %v11050_v61  ;;  %v2340_v29 = vmul.f32 %v7667_v11, %v11051_v31  ;;  %v11055_v22 = vld [vmem:[#allocation64_spill] sm:$0xff]  ;;  %v11056_v60 = vld [vmem:[#allocation65_spill] sm:$0xff]  ;;  %v11057_v55 = vld [vmem:[#allocation394_spill] sm:$0xff] }
 0x411   :  { %v926_v20 = vmul.f32 %v7386_v49, %v11052_v33  ;;  %v7804_v58 = vadd.f32 %v1665_v39, %v1021_v13  ;;  %v7806_v3 = vadd.f32 %v1667_v15, %v1023_v41  ;;  %v1033_v25 = vmul.f32 %v7386_v49, %v11055_v22  ;;  %v11058_v10 = vld [vmem:[#allocation86_spill] sm:$0xff]  ;;  %v11063_v41 = vld [vmem:[#allocation337_spill] sm:$0xff] }
 0x412   :  { %v1677_v62 = vmul.f32 %v7374_v30, %v11056_v60  ;;  %v1696_v23 = vadd.f32 %v1568_v5, %v11057_v55  ;;  %v1570_v61 = vmul.f32 %v7374_v30, %v11058_v10  ;;  %v3239_v8 = vadd.f32 %v3111_v18, %v2467_v12  ;;  %v11059_v31 = vld [vmem:[#allocation342_spill] sm:$0xff] }
 0x413   :  { %11053 = vst [vmem:[#allocation36_spill] sm:$0xff] %v7804_v58  ;;  %11054 = vst [vmem:[#allocation37_spill] sm:$0xff] %v7806_v3  ;;  %v3112_v37 = vmul.f32 %v7768_v63, %v11059_v31  ;;  %v7817_v33 = vadd.f32 %v1669_v6, %v1025_v1  ;;  %v7819_v13 = vadd.f32 %v1671_v38, %v1027_v28  ;;  %v150_v10 = vld [vmem:[%s10515_s1 + $0x8] sm:$0xff]  ;;  %v11065_v6 = vld [vmem:[#allocation343_spill] sm:$0xff] }
 0x414   :  { %v7821_v39 = vadd.f32 %v1673_v17, %v1029_v7  ;;  %v922_v15 = vmul.f32 %v7386_v49, %v11063_v41  ;;  %v7825_v22 = vpop.permute.xlu1 %2883  ;;  %v7827_v60 = vpop.permute.xlu0 %660  ;;  %v7832_v5 = vadd.f32 %v1675_v9, %v1031_v14  ;;  %v2468_v12 = vadd.f32 %v2340_v29, %v1696_v23  ;;  %v11067_v38 = vld [vmem:[#allocation66_spill] sm:$0xff]  ;;  %v11068_v17 = vld [vmem:[#allocation67_spill] sm:$0xff]  ;;  %v11069_v31 = vld [vmem:[#allocation85_spill] sm:$0xff] }
 0x415   :  { %11060 = vst [vmem:[#allocation38_spill] sm:$0xff] %v7817_v33  ;;  %11061 = vst [vmem:[#allocation39_spill] sm:$0xff] %v7819_v13  ;;  %v1698_v1 = vadd.f32 %v1570_v61, %v926_v20  ;;  %v928_v18 = vmul.f32 %v7386_v49, %v11065_v6  ;;  %v7836_v28 = vadd.f32 %v1677_v62, %v1033_v25  ;;  %v11071_v23 = vld [vmem:[#allocation344_spill] sm:$0xff]  ;;  %v11073_v62 = vld [vmem:[#allocation69_spill] sm:$0xff] }
 0x416   :  { %11062 = vst [vmem:[#allocation40_spill] sm:$0xff] %v7821_v39  ;;  %11064 = vst [vmem:[#allocation41_spill] sm:$0xff] %v7832_v5  ;;  %v1035_v7 = vmul.f32 %v7386_v49, %v11067_v38  ;;  %v1679_v55 = vmul.f32 %v7374_v30, %v11068_v17  ;;  %v2342_v41 = vmul.f32 %v7667_v11, %v11069_v31  ;;  %v11070_v39 = vld [vmem:[#allocation88_spill] sm:$0xff]  ;;  %v11074_v38 = vld [vmem:[#allocation70_spill] sm:$0xff] }
 0x417   :  { %11066 = vst [vmem:[#allocation42_spill] sm:$0xff] %v7836_v28  ;;  %v1572_v14 = vmul.f32 %v7374_v30, %v11070_v39  ;;  %v3240_v9 = vadd.f32 %v3112_v37, %v2468_v12  ;;  %v3114_v20 = vmul.f32 %v7768_v63, %v11071_v23  ;;  %v3367_v29 = vmul.f32 %v3239_v8, %v150_v10  ;;  %v11072_v61 = vld [vmem:[#allocation68_spill] sm:$0xff]  ;;  %v151_v37 = vld [vmem:[%s10515_s1 + $0x10] sm:$0xff]  ;;  %v11076_v23 = vld [vmem:[#allocation345_spill] sm:$0xff] }
 0x418   :  { %v1037_v25 = vmul.f32 %v7386_v49, %v11072_v61  ;;  %v1681_v6 = vmul.f32 %v7374_v30, %v11073_v62  ;;  %v1039_v17 = vmul.f32 %v7386_v49, %v11074_v38  ;;  %v1694_v28 = vadd.f32 %v7436_v53, %v922_v15  ;;  %v7855_v31 = vpop.permute.xlu1 %2891  ;;  %v7857_v5 = vpop.permute.xlu0 %670  ;;  %v11075_v8 = vld [vmem:[#allocation71_spill] sm:$0xff]  ;;  %v11078_v53 = vld [vmem:[#allocation90_spill] sm:$0xff] }
 0x419   :  { %v1683_v39 = vmul.f32 %v7374_v30, %v11075_v8  ;;  %v1700_v10 = vadd.f32 %v1572_v14, %v928_v18  ;;  %v2470_v12 = vadd.f32 %v2342_v41, %v1698_v1  ;;  %v930_v61 = vmul.f32 %v7386_v49, %v11076_v23  ;;  %v11077_v62 = vld [vmem:[#allocation87_spill] sm:$0xff]  ;;  %v11079_v13 = vld [vmem:[#allocation210_spill] sm:$0xff] }
 0x41a   :  { %v2344_v38 = vmul.f32 %v7667_v11, %v11077_v62  ;;  %v1574_v15 = vmul.f32 %v7374_v30, %v11078_v53  ;;  %v2338_v33 = vmul.f32 %v7667_v11, %v11079_v13  ;;  %v11080_v58 = vld [vmem:[#allocation346_spill] sm:$0xff]  ;;  %v3498_v18 = vsel %vm3494_vm0, %v3367_v29, 0.0 }
 0x41b   :  { %v3242_v3 = vadd.f32 %v3114_v20, %v2470_v12  ;;  %v3116_v24 = vmul.f32 %v7768_v63, %v11080_v58  ;;  %v3368_v1 = vmul.f32 %v3240_v9, %v151_v37  ;;  %v7875_v41 = vadd.f32 %v1679_v55, %v1035_v7  ;;  %v11083_v8 = vld [vmem:[#allocation214_spill] sm:$0xff]  ;;  %v153_v58 = vld [vmem:[%s10515_s1 + $0x20] sm:$0xff]  ;;  %v11087_v55 = vld [vmem:[#allocation347_spill] sm:$0xff] }
 0x41c   :  { %v7877_v14 = vadd.f32 %v1681_v6, %v1037_v25  ;;  %v2341_v23 = vmul.f32 %v7667_v11, %v11083_v8  ;;  %v2466_v62 = vadd.f32 %v2338_v33, %v1694_v28  ;;  %v7881_v53 = vpop.permute.xlu1 %2899  ;;  %3499 = vadd.xlane.f32.xlu0 %v3498_v18  ;;  %v7883_v13 = vpop.permute.xlu0 %680  ;;  %v7888_v20 = vadd.f32 %v1683_v39, %v1039_v17  ;;  %v11088_v25 = vld [vmem:[#allocation89_spill] sm:$0xff]  ;;  %v11089_v33 = vld [vmem:[#allocation92_spill] sm:$0xff] }
 0x41d   :  { %11081 = vst [vmem:[#allocation43_spill] sm:$0xff] %v7875_v41  ;;  %11084 = vst [vmem:[#allocation45_spill] sm:$0xff] %v7881_v53  ;;  %v1702_v9 = vadd.f32 %v1574_v15, %v930_v61  ;;  %v2472_v7 = vadd.f32 %v2344_v38, %v1700_v10  ;;  %v932_v29 = vmul.f32 %v7386_v49, %v11087_v55  ;;  %v11090_v37 = vld [vmem:[#allocation209_spill] sm:$0xff]  ;;  %v11091_v18 = vld [vmem:[#allocation216_spill] sm:$0xff]  ;;  %v3501_v10 = vsel %vm3494_vm0, %v3368_v1, 0.0 }
 0x41e   :  { %11082 = vst [vmem:[#allocation44_spill] sm:$0xff] %v7877_v14  ;;  %11085 = vst [vmem:[#allocation339_spill] sm:$0xff] %v7883_v13  ;;  %v2346_v6 = vmul.f32 %v7667_v11, %v11088_v25  ;;  %v1576_v28 = vmul.f32 %v7374_v30, %v11089_v33  ;;  %v3110_v12 = vmul.f32 %v7768_v63, %v11090_v37  ;;  %v11092_v17 = vld [vmem:[#allocation348_spill] sm:$0xff]  ;;  %v11095_v55 = vld [vmem:[#allocation73_spill] sm:$0xff] }
 0x41f   :  { %11086 = vst [vmem:[#allocation46_spill] sm:$0xff] %v7888_v20  ;;  %v2343_v8 = vmul.f32 %v7667_v11, %v11091_v18  ;;  %v3244_v14 = vadd.f32 %v3116_v24, %v2472_v7  ;;  %v3118_v39 = vmul.f32 %v7768_v63, %v11092_v17  ;;  %v3370_v61 = vmul.f32 %v3242_v3, %v153_v58  ;;  %v11093_v38 = vld [vmem:[#allocation72_spill] sm:$0xff]  ;;  %v155_v1 = vld [vmem:[%s10515_s1 + $0x30] sm:$0xff]  ;;  %v11267_v53 = vld [vmem:[#allocation153_spill] sm:$0xff] }
 0x420   :  { %v7905_v15 = vmul.f32 %v7386_v49, %v11093_v38  ;;  %v7909_v25 = vmul.f32 %v7374_v30, %v11095_v55  ;;  %v2469_v33 = vadd.f32 %v2341_v23, %v7438_v54  ;;  %v7912_v37 = vpop.permute.xlu1 %2907  ;;  %3502 = vadd.xlane.f32.xlu0 %v3501_v10  ;;  %v7914_v24 = vpop.permute.xlu0 %690  ;;  %v3238_v3 = vadd.f32 %v3110_v12, %v2466_v62  ;;  %v11099_v58 = vld [vmem:[#allocation91_spill] sm:$0xff]  ;;  %v11100_v38 = vld [vmem:[#allocation349_spill] sm:$0xff]  ;;  %v11102_v20 = vld [vmem:[#allocation94_spill] sm:$0xff] }
 0x421   :  { %11097 = vst [vmem:[#allocation49_spill] sm:$0xff] %v7912_v37  ;;  %11098 = vst [vmem:[#allocation50_spill] sm:$0xff] %v7914_v24  ;;  %v2348_v7 = vmul.f32 %v7667_v11, %v11099_v58  ;;  %v1704_v18 = vadd.f32 %v1576_v28, %v932_v29  ;;  %v2474_v17 = vadd.f32 %v2346_v6, %v1702_v9  ;;  %v149_v54 = vld [vmem:[%s10515_s1] sm:$0xff]  ;;  %v11104_v9 = vld [vmem:[#allocation350_spill] sm:$0xff]  ;;  %v3507_v28 = vsel %vm3494_vm0, %v3370_v61, 0.0 }
 0x422   :  { %11094 = vst [vmem:[#allocation47_spill] sm:$0xff] %v7905_v15  ;;  %11096 = vst [vmem:[#allocation48_spill] sm:$0xff] %v7909_v25  ;;  %v934_v55 = vmul.f32 %v7386_v49, %v11100_v38  ;;  %v11101_v23 = vld [vmem:[#allocation93_spill] sm:$0xff]  ;;  %v1578_v41 = vmul.f32 %v7374_v30, %v11102_v20  ;;  %v11103_v25 = vld [vmem:[#allocation211_spill] sm:$0xff]  ;;  %v2471_v12 = vadd.f32 %v2343_v8, %v7440_v56 }
 0x423   :  { %v2350_v10 = vmul.f32 %v7667_v11, %v11101_v23  ;;  %v3113_v62 = vmul.f32 %v7768_v63, %v11103_v25  ;;  %v3246_v29 = vadd.f32 %v3118_v39, %v2474_v17  ;;  %v3120_v6 = vmul.f32 %v7768_v63, %v11104_v9  ;;  %v11105_v38 = vld [vmem:[#allocation213_spill] sm:$0xff]  ;;  %v11106_v24 = vld [vmem:[#allocation218_spill] sm:$0xff]  ;;  %v11109_v39 = vld [vmem:[#allocation95_spill] sm:$0xff] }
 0x424   :  { %v3372_v58 = vmul.f32 %v3244_v14, %v155_v1  ;;  %v3115_v15 = vmul.f32 %v7768_v63, %v11105_v38  ;;  %v2345_v23 = vmul.f32 %v7667_v11, %v11106_v24  ;;  %v7940_v37 = vpop.permute.xlu1 %2915  ;;  %3508 = vadd.xlane.f32.xlu0 %v3507_v28  ;;  %v7942_v20 = vpop.permute.xlu0 %700  ;;  %v3366_v25 = vmul.f32 %v3238_v3, %v149_v54  ;;  %v157_v56 = vld [vmem:[%s10515_s1 + $0x40] sm:$0xff]  ;;  %v11110_v17 = vld [vmem:[#allocation351_spill] sm:$0xff] }
 0x425   :  { %11107 = vst [vmem:[#allocation51_spill] sm:$0xff] %v7940_v37  ;;  %11108 = vst [vmem:[#allocation82_spill] sm:$0xff] %v7942_v20  ;;  %v3241_v8 = vadd.f32 %v3113_v62, %v2469_v33  ;;  %v2352_v14 = vmul.f32 %v7667_v11, %v11109_v39  ;;  %v1706_v61 = vadd.f32 %v1578_v41, %v934_v55  ;;  %v152_v24 = vld [vmem:[%s10515_s1 + $0x18] sm:$0xff]  ;;  %v11112_v54 = vld [vmem:[#allocation97_spill] sm:$0xff] }
 0x426   :  { %v2476_v1 = vadd.f32 %v2348_v7, %v1704_v18  ;;  %v936_v9 = vmul.f32 %v7386_v49, %v11110_v17  ;;  %v11111_v28 = vld [vmem:[#allocation96_spill] sm:$0xff]  ;;  %v2354_v38 = vmul.f32 %v7667_v11, %v11112_v54  ;;  %v11113_v20 = vld [vmem:[#allocation98_spill] sm:$0xff]  ;;  %v3243_v62 = vadd.f32 %v3115_v15, %v2471_v12 }
 0x427   :  { %v1580_v3 = vmul.f32 %v7374_v30, %v11111_v28  ;;  %v1582_v33 = vmul.f32 %v7374_v30, %v11113_v20  ;;  %v11114_v41 = vld [vmem:[#allocation352_spill] sm:$0xff]  ;;  %v3513_v18 = vsel %vm3494_vm0, %v3372_v58, 0.0  ;;  %v3374_v55 = vmul.f32 %v3246_v29, %v157_v56  ;;  %v154_v17 = vld [vmem:[%s10515_s1 + $0x28] sm:$0xff]  ;;  %v159_v12 = vld [vmem:[%s10515_s1 + $0x50] sm:$0xff] }
 0x428   :  { %v3248_v39 = vadd.f32 %v3120_v6, %v2476_v1  ;;  %v3122_v7 = vmul.f32 %v7768_v63, %v11114_v41  ;;  %v2473_v28 = vadd.f32 %v2345_v23, %v7442_v57  ;;  %v11115_v37 = vld [vmem:[#allocation220_spill] sm:$0xff]  ;;  %3514 = vadd.xlane.f32.xlu0 %v3513_v18  ;;  %v3495_v20 = vsel %vm3494_vm0, %v3366_v25, 0.0  ;;  %v11116_v6 = vld [vmem:[#allocation99_spill] sm:$0xff]  ;;  %v11117_v1 = vld [vmem:[#allocation353_spill] sm:$0xff]  ;;  %v7979_v23 = vpop.permute.xlu0 %710 }
 0x429   :  { %v2347_v54 = vmul.f32 %v7667_v11, %v11115_v37  ;;  %v3369_v15 = vmul.f32 %v3241_v8, %v152_v24  ;;  %v7975_v29 = vmul.f32 %v7667_v11, %v11116_v6  ;;  %v1708_v58 = vadd.f32 %v1580_v3, %v936_v9  ;;  %11118 = vst [vmem:[#allocation52_spill] sm:$0xff] %v7979_v23  ;;  %v11119_v37 = vld [vmem:[#allocation100_spill] sm:$0xff]  ;;  %v11120_v8 = vld [vmem:[#allocation101_spill] sm:$0xff]  ;;  %v11121_v41 = vld [vmem:[#allocation215_spill] sm:$0xff]  ;;  %v7989_v6 = vpop.permute.xlu1 %2923 }
 0x42a   :  { %v2478_v56 = vadd.f32 %v2350_v10, %v1706_v61  ;;  %v938_v57 = vmul.f32 %v7386_v49, %v11117_v1  ;;  %3496 = vadd.xlane.f32.xlu1 %v3495_v20  ;;  %v1584_v25 = vmul.f32 %v7374_v30, %v11119_v37  ;;  %v7985_v24 = vmul.f32 %v7667_v11, %v11120_v8  ;;  %v11123_v61 = vld [vmem:[#allocation354_spill] sm:$0xff]  ;;  %v11141_v13 = vld [vmem:[#allocation108_spill] sm:$0xff] }
 0x42b   :  { %v3117_v18 = vmul.f32 %v7768_v63, %v11121_v41  ;;  %11122 = vst [vmem:[#allocation83_spill] sm:$0xff] %v7989_v6  ;;  %v3371_v9 = vmul.f32 %v3243_v62, %v154_v17  ;;  %v3124_v3 = vmul.f32 %v7768_v63, %v11123_v61  ;;  %v3519_v1 = vsel %vm3494_vm0, %v3374_v55, 0.0  ;;  %v11124_v37 = vld [vmem:[#allocation222_spill] sm:$0xff]  ;;  %v161_v41 = vld [vmem:[%s10515_s1 + $0x60] sm:$0xff]  ;;  %v11126_v55 = vld [vmem:[#allocation355_spill] sm:$0xff] }
 0x42c   :  { %v3250_v10 = vadd.f32 %v3122_v7, %v2478_v56  ;;  %v3376_v20 = vmul.f32 %v3248_v39, %v159_v12  ;;  %v2475_v23 = vadd.f32 %v2347_v54, %v7444_v48  ;;  %v2349_v19 = vmul.f32 %v7667_v11, %v11124_v37  ;;  %3520 = vadd.xlane.f32.xlu0 %v3519_v1  ;;  %v11125_v7 = vld [vmem:[#allocation102_spill] sm:$0xff]  ;;  %v156_v48 = vld [vmem:[%s10515_s1 + $0x38] sm:$0xff]  ;;  %v8019_v37 = vpop.permute.xlu0 %720 }
 0x42d   :  { %v3504_v8 = vsel %vm3494_vm0, %v3369_v15, 0.0  ;;  %v3245_v62 = vadd.f32 %v3117_v18, %v2473_v28  ;;  %v1586_v17 = vmul.f32 %v7374_v30, %v11125_v7  ;;  %v1710_v56 = vadd.f32 %v1582_v33, %v938_v57  ;;  %v11127_v54 = vld [vmem:[#allocation103_spill] sm:$0xff]  ;;  %v11128_v12 = vld [vmem:[#allocation104_spill] sm:$0xff]  ;;  %v11129_v18 = vld [vmem:[#allocation217_spill] sm:$0xff]  ;;  %11131 = vst [vmem:[#allocation53_spill] sm:$0xff] %v8019_v37 }
 0x42e   :  { %v2480_v61 = vadd.f32 %v2352_v14, %v1708_v58  ;;  %v940_v39 = vmul.f32 %v7386_v49, %v11126_v55  ;;  %3505 = vadd.xlane.f32.xlu1 %v3504_v8  ;;  %v8010_v15 = vmul.f32 %v7667_v11, %v11127_v54  ;;  %v1588_v28 = vmul.f32 %v7374_v30, %v11128_v12  ;;  %v11130_v58 = vld [vmem:[#allocation356_spill] sm:$0xff]  ;;  %v8025_v12 = vpop.permute.xlu1 %2931 }
 0x42f   :  { %v3119_v1 = vmul.f32 %v7768_v63, %v11129_v18  ;;  %v3510_v14 = vsel %vm3494_vm0, %v3371_v9, 0.0  ;;  %v3126_v57 = vmul.f32 %v7768_v63, %v11130_v58  ;;  %v3525_v8 = vsel %vm3494_vm0, %v3376_v20, 0.0  ;;  %v11132_v54 = vld [vmem:[#allocation224_spill] sm:$0xff]  ;;  %11133 = vst [vmem:[#allocation54_spill] sm:$0xff] %v8025_v12  ;;  %v163_v9 = vld [vmem:[%s10515_s1 + $0x70] sm:$0xff] }
 0x430   :  { %v3252_v33 = vadd.f32 %v3124_v3, %v2480_v61  ;;  %v3378_v7 = vmul.f32 %v3250_v10, %v161_v41  ;;  %v2477_v55 = vadd.f32 %v2349_v19, %v7446_v35  ;;  %v2351_v6 = vmul.f32 %v7667_v11, %v11132_v54  ;;  %3526 = vadd.xlane.f32.xlu0 %v3525_v8  ;;  %v11134_v61 = vld [vmem:[#allocation105_spill] sm:$0xff]  ;;  %v11137_v8 = vld [vmem:[#allocation107_spill] sm:$0xff] }
 0x431   :  { %v3373_v18 = vmul.f32 %v3245_v62, %v156_v48  ;;  %v3247_v3 = vadd.f32 %v3119_v1, %v2475_v23  ;;  %v8032_v58 = vmul.f32 %v7667_v11, %v11134_v61  ;;  %v1712_v20 = vadd.f32 %v1584_v25, %v940_v39  ;;  %v11135_v41 = vld [vmem:[#allocation357_spill] sm:$0xff]  ;;  %v11136_v62 = vld [vmem:[#allocation106_spill] sm:$0xff]  ;;  %v11138_v1 = vld [vmem:[#allocation219_spill] sm:$0xff] }
 0x432   :  { %v2482_v10 = vadd.f32 %v2354_v38, %v1710_v56  ;;  %v942_v35 = vmul.f32 %v7386_v49, %v11135_v41  ;;  %3511 = vadd.xlane.f32.xlu1 %v3510_v14  ;;  %v158_v19 = vld [vmem:[%s10515_s1 + $0x48] sm:$0xff]  ;;  %v1590_v48 = vmul.f32 %v7374_v30, %v11136_v62  ;;  %v8043_v23 = vmul.f32 %v7667_v11, %v11137_v8 }
 0x433   :  { %v3121_v54 = vmul.f32 %v7768_v63, %v11138_v1  ;;  %v11139_v25 = vld [vmem:[#allocation226_spill] sm:$0xff]  ;;  %v3531_v61 = vsel %vm3494_vm0, %v3378_v7, 0.0  ;;  %v3380_v41 = vmul.f32 %v3252_v33, %v163_v9  ;;  %v2479_v37 = vadd.f32 %v2351_v6, %v7448_v40  ;;  %v165_v1 = vld [vmem:[%s10515_s1 + $0x80] sm:$0xff]  ;;  %v11142_v7 = vld [vmem:[#allocation359_spill] sm:$0xff]  ;;  %v8064_v40 = vpop.permute.xlu0 %730 }
 0x434   :  { %v2353_v38 = vmul.f32 %v7667_v11, %v11139_v25  ;;  %v3254_v56 = vadd.f32 %v3126_v57, %v2482_v10  ;;  %v11140_v39 = vld [vmem:[#allocation358_spill] sm:$0xff]  ;;  %3532 = vadd.xlane.f32.xlu0 %v3531_v61  ;;  %v3516_v62 = vsel %vm3494_vm0, %v3373_v18, 0.0  ;;  %v3375_v8 = vmul.f32 %v3247_v3, %v158_v19  ;;  %11143 = vst [vmem:[#allocation55_spill] sm:$0xff] %v8064_v40  ;;  %v160_v6 = vld [vmem:[%s10515_s1 + $0x58] sm:$0xff]  ;;  %v11144_v18 = vld [vmem:[#allocation109_spill] sm:$0xff] }
 0x435   :  { %v3128_v14 = vmul.f32 %v7768_v63, %v11140_v39  ;;  %v3249_v12 = vadd.f32 %v3121_v54, %v2477_v55  ;;  %v8059_v57 = vmul.f32 %v7374_v30, %v11141_v13  ;;  %v1714_v10 = vadd.f32 %v1586_v17, %v942_v35  ;;  %v11145_v9 = vld [vmem:[#allocation221_spill] sm:$0xff]  ;;  %v11146_v17 = vld [vmem:[#allocation223_spill] sm:$0xff]  ;;  %v11148_v19 = vld [vmem:[#allocation360_spill] sm:$0xff] }
 0x436   :  { %v2484_v25 = vadd.f32 %v7975_v29, %v1712_v20  ;;  %v944_v33 = vmul.f32 %v7386_v49, %v11142_v7  ;;  %3517 = vadd.xlane.f32.xlu1 %v3516_v62  ;;  %v8071_v55 = vmul.f32 %v7667_v11, %v11144_v18  ;;  %v3123_v13 = vmul.f32 %v7768_v63, %v11145_v9  ;;  %v8078_v20 = vpop.permute.xlu1 %2939  ;;  %v11149_v62 = vld [vmem:[#allocation228_spill] sm:$0xff] }
 0x437   :  { %v3125_v29 = vmul.f32 %v7768_v63, %v11146_v17  ;;  %v2481_v3 = vadd.f32 %v2353_v38, %v7450_v0  ;;  %11147 = vst [vmem:[#allocation56_spill] sm:$0xff] %v8078_v20  ;;  %v3130_v54 = vmul.f32 %v7768_v63, %v11148_v19  ;;  %v3537_v39 = vsel %vm3494_vm0, %v3380_v41, 0.0  ;;  %v167_v0 = vld [vmem:[%s10515_s1 + $0x90] sm:$0xff]  ;;  %v11154_v19 = vld [vmem:[#allocation113_spill] sm:$0xff] }
 0x438   :  { %v3256_v35 = vadd.f32 %v3128_v14, %v2484_v25  ;;  %v3382_v61 = vmul.f32 %v3254_v56, %v165_v1  ;;  %v2355_v7 = vmul.f32 %v7667_v11, %v11149_v62  ;;  %3538 = vadd.xlane.f32.xlu0 %v3537_v39  ;;  %v3522_v18 = vsel %vm3494_vm0, %v3375_v8, 0.0  ;;  %v11150_v17 = vld [vmem:[#allocation110_spill] sm:$0xff]  ;;  %v11151_v56 = vld [vmem:[#allocation361_spill] sm:$0xff]  ;;  %v11152_v8 = vld [vmem:[#allocation111_spill] sm:$0xff]  ;;  %v8113_v62 = vpop.permute.xlu0 %740 }
 0x439   :  { %v3377_v9 = vmul.f32 %v3249_v12, %v160_v6  ;;  %v3251_v38 = vadd.f32 %v3123_v13, %v2479_v37  ;;  %v8091_v14 = vmul.f32 %v7374_v30, %v11150_v17  ;;  %v1716_v25 = vadd.f32 %v1588_v28, %v944_v33  ;;  %v162_v12 = vld [vmem:[%s10515_s1 + $0x68] sm:$0xff]  ;;  %v11153_v37 = vld [vmem:[#allocation112_spill] sm:$0xff]  ;;  %11156 = vst [vmem:[#allocation57_spill] sm:$0xff] %v8113_v62 }
 0x43a   :  { %v2486_v41 = vadd.f32 %v7985_v24, %v1714_v10  ;;  %v946_v1 = vmul.f32 %v7386_v49, %v11151_v56  ;;  %3523 = vadd.xlane.f32.xlu1 %v3522_v18  ;;  %v8101_v6 = vmul.f32 %v7667_v11, %v11152_v8  ;;  %v8105_v13 = vmul.f32 %v7374_v30, %v11153_v37  ;;  %v11155_v33 = vld [vmem:[#allocation362_spill] sm:$0xff]  ;;  %v164_v56 = vld [vmem:[%s10515_s1 + $0x78] sm:$0xff]  ;;  %v8122_v40 = vpop.permute.xlu1 %2947 }
 0x43b   :  { %v8109_v28 = vmul.f32 %v7667_v11, %v11154_v19  ;;  %v3253_v24 = vadd.f32 %v3125_v29, %v2481_v3  ;;  %v3132_v39 = vmul.f32 %v7768_v63, %v11155_v33  ;;  %v3543_v18 = vsel %vm3494_vm0, %v3382_v61, 0.0  ;;  %v11157_v37 = vld [vmem:[#allocation230_spill] sm:$0xff]  ;;  %11158 = vst [vmem:[#allocation84_spill] sm:$0xff] %v8122_v40  ;;  %v11161_v33 = vld [vmem:[#allocation115_spill] sm:$0xff] }
 0x43c   :  { %v3258_v10 = vadd.f32 %v3130_v54, %v2486_v41  ;;  %v3384_v17 = vmul.f32 %v3256_v35, %v167_v0  ;;  %v2483_v8 = vadd.f32 %v2355_v7, %v7526_v44  ;;  %v2357_v19 = vmul.f32 %v7667_v11, %v11157_v37  ;;  %3544 = vadd.xlane.f32.xlu0 %v3543_v18  ;;  %v169_v54 = vld [vmem:[%s10515_s1 + $0xa0] sm:$0xff]  ;;  %v11159_v35 = vld [vmem:[#allocation114_spill] sm:$0xff]  ;;  %v11160_v7 = vld [vmem:[#allocation363_spill] sm:$0xff] }
 0x43d   :  { %v3528_v29 = vsel %vm3494_vm0, %v3377_v9, 0.0  ;;  %v3379_v3 = vmul.f32 %v3251_v38, %v162_v12  ;;  %v8130_v61 = vmul.f32 %v7374_v30, %v11159_v35  ;;  %v1718_v0 = vadd.f32 %v1590_v48, %v946_v1  ;;  %v11162_v9 = vld [vmem:[#allocation116_spill] sm:$0xff]  ;;  %v11163_v12 = vld [vmem:[#allocation225_spill] sm:$0xff]  ;;  %v11225_v20 = vld [vmem:[#allocation138_spill] sm:$0xff] }
 0x43e   :  { %v2488_v44 = vadd.f32 %v8010_v15, %v1716_v25  ;;  %v948_v41 = vmul.f32 %v7386_v49, %v11160_v7  ;;  %3529 = vadd.xlane.f32.xlu1 %v3528_v29  ;;  %v8137_v18 = vmul.f32 %v7667_v11, %v11161_v33  ;;  %v8141_v38 = vmul.f32 %v7374_v30, %v11162_v9  ;;  %v11164_v48 = vld [vmem:[#allocation364_spill] sm:$0xff] }
 0x43f   :  { %v3127_v37 = vmul.f32 %v7768_v63, %v11163_v12  ;;  %v3381_v35 = vmul.f32 %v3253_v24, %v164_v56  ;;  %v3134_v15 = vmul.f32 %v7768_v63, %v11164_v48  ;;  %v3549_v25 = vsel %vm3494_vm0, %v3384_v17, 0.0  ;;  %v11165_v7 = vld [vmem:[#allocation232_spill] sm:$0xff]  ;;  %v171_v12 = vld [vmem:[%s10515_s1 + $0xb0] sm:$0xff] }
 0x440   :  { %v3260_v62 = vadd.f32 %v3132_v39, %v2488_v44  ;;  %v3386_v1 = vmul.f32 %v3258_v10, %v169_v54  ;;  %v2485_v29 = vadd.f32 %v2357_v19, %v7528_v32  ;;  %v2359_v33 = vmul.f32 %v7667_v11, %v11165_v7  ;;  %3550 = vadd.xlane.f32.xlu0 %v3549_v25  ;;  %v11166_v39 = vld [vmem:[#allocation117_spill] sm:$0xff]  ;;  %v8163_v54 = vpop.permute.xlu0 %750  ;;  %v11169_v44 = vld [vmem:[#allocation118_spill] sm:$0xff] }
 0x441   :  { %v3534_v9 = vsel %vm3494_vm0, %v3379_v3, 0.0  ;;  %v3255_v24 = vadd.f32 %v3127_v37, %v2483_v8  ;;  %v8157_v56 = vmul.f32 %v7667_v11, %v11166_v39  ;;  %v1720_v17 = vadd.f32 %v8059_v57, %v948_v41  ;;  %v11167_v32 = vld [vmem:[#allocation365_spill] sm:$0xff]  ;;  %11168 = vst [vmem:[#allocation340_spill] sm:$0xff] %v8163_v54  ;;  %v11170_v37 = vld [vmem:[#allocation119_spill] sm:$0xff]  ;;  %v11173_v7 = vld [vmem:[#allocation366_spill] sm:$0xff] }
 0x442   :  { %v2490_v10 = vadd.f32 %v8032_v58, %v1718_v0  ;;  %v950_v19 = vmul.f32 %v7386_v49, %v11167_v32  ;;  %3535 = vadd.xlane.f32.xlu1 %v3534_v9  ;;  %v166_v3 = vld [vmem:[%s10515_s1 + $0x88] sm:$0xff]  ;;  %v8170_v8 = vmul.f32 %v7374_v30, %v11169_v44  ;;  %v8174_v48 = vmul.f32 %v7667_v11, %v11170_v37  ;;  %v11171_v57 = vld [vmem:[#allocation227_spill] sm:$0xff]  ;;  %v8178_v0 = vpop.permute.xlu1 %2955 }
 0x443   :  { %v3129_v58 = vmul.f32 %v7768_v63, %v11171_v57  ;;  %11172 = vst [vmem:[#allocation58_spill] sm:$0xff] %v8178_v0  ;;  %v3540_v41 = vsel %vm3494_vm0, %v3381_v35, 0.0  ;;  %v3136_v9 = vmul.f32 %v7768_v63, %v11173_v7  ;;  %v3555_v39 = vsel %vm3494_vm0, %v3386_v1, 0.0  ;;  %v11174_v54 = vld [vmem:[#allocation234_spill] sm:$0xff]  ;;  %v173_v57 = vld [vmem:[%s10515_s1 + $0xc0] sm:$0xff]  ;;  %v11176_v1 = vld [vmem:[#allocation367_spill] sm:$0xff] }
 0x444   :  { %v3262_v25 = vadd.f32 %v3134_v15, %v2490_v10  ;;  %v3388_v32 = vmul.f32 %v3260_v62, %v171_v12  ;;  %v2487_v44 = vadd.f32 %v2359_v33, %v7530_v34  ;;  %v2361_v37 = vmul.f32 %v7667_v11, %v11174_v54  ;;  %3556 = vadd.xlane.f32.xlu0 %v3555_v39  ;;  %v11175_v35 = vld [vmem:[#allocation120_spill] sm:$0xff]  ;;  %v11177_v12 = vld [vmem:[#allocation121_spill] sm:$0xff]  ;;  %v8215_v7 = vpop.permute.xlu0 %760 }
 0x445   :  { %v3383_v40 = vmul.f32 %v3255_v24, %v166_v3  ;;  %v3257_v0 = vadd.f32 %v3129_v58, %v2485_v29  ;;  %v8192_v15 = vmul.f32 %v7374_v30, %v11175_v35  ;;  %v1722_v10 = vadd.f32 %v8091_v14, %v950_v19  ;;  %v168_v33 = vld [vmem:[%s10515_s1 + $0x98] sm:$0xff]  ;;  %v11178_v29 = vld [vmem:[#allocation122_spill] sm:$0xff]  ;;  %v11179_v3 = vld [vmem:[#allocation229_spill] sm:$0xff]  ;;  %11182 = vst [vmem:[#allocation59_spill] sm:$0xff] %v8215_v7 }
 0x446   :  { %v2492_v62 = vadd.f32 %v8043_v23, %v1720_v17  ;;  %v952_v34 = vmul.f32 %v7386_v49, %v11176_v1  ;;  %3541 = vadd.xlane.f32.xlu1 %v3540_v41  ;;  %v8203_v24 = vmul.f32 %v7667_v11, %v11177_v12  ;;  %v8207_v54 = vmul.f32 %v7374_v30, %v11178_v29  ;;  %v11180_v23 = vld [vmem:[#allocation236_spill] sm:$0xff]  ;;  %v8219_v12 = vpop.permute.xlu1 %2963 }
 0x447   :  { %v3131_v14 = vmul.f32 %v7768_v63, %v11179_v3  ;;  %v2363_v17 = vmul.f32 %v7667_v11, %v11180_v23  ;;  %v11181_v58 = vld [vmem:[#allocation368_spill] sm:$0xff]  ;;  %v3561_v39 = vsel %vm3494_vm0, %v3388_v32, 0.0  ;;  %v3390_v35 = vmul.f32 %v3262_v25, %v173_v57  ;;  %11183 = vst [vmem:[#allocation60_spill] sm:$0xff] %v8219_v12  ;;  %v11184_v23 = vld [vmem:[#allocation123_spill] sm:$0xff] }
 0x448   :  { %v3264_v19 = vadd.f32 %v3136_v9, %v2492_v62  ;;  %v3138_v41 = vmul.f32 %v7768_v63, %v11181_v58  ;;  %v2489_v1 = vadd.f32 %v2361_v37, %v7532_v2  ;;  %3562 = vadd.xlane.f32.xlu0 %v3561_v39  ;;  %v3546_v29 = vsel %vm3494_vm0, %v3383_v40, 0.0  ;;  %v175_v9 = vld [vmem:[%s10515_s1 + $0xd0] sm:$0xff]  ;;  %v11185_v2 = vld [vmem:[#allocation369_spill] sm:$0xff] }
 0x449   :  { %v3385_v3 = vmul.f32 %v3257_v0, %v168_v33  ;;  %v3259_v62 = vadd.f32 %v3131_v14, %v2487_v44  ;;  %v8227_v58 = vmul.f32 %v7667_v11, %v11184_v23  ;;  %v1724_v32 = vadd.f32 %v8105_v13, %v952_v34  ;;  %v170_v40 = vld [vmem:[%s10515_s1 + $0xa8] sm:$0xff]  ;;  %v11186_v0 = vld [vmem:[#allocation124_spill] sm:$0xff]  ;;  %v11187_v44 = vld [vmem:[#allocation231_spill] sm:$0xff] }
 0x44a   :  { %v2494_v25 = vadd.f32 %v8071_v55, %v1722_v10  ;;  %v954_v37 = vmul.f32 %v7386_v49, %v11185_v2  ;;  %3547 = vadd.xlane.f32.xlu1 %v3546_v29  ;;  %v8238_v57 = vmul.f32 %v7374_v30, %v11186_v0  ;;  %v3133_v33 = vmul.f32 %v7768_v63, %v11187_v44  ;;  %v11188_v14 = vld [vmem:[#allocation233_spill] sm:$0xff]  ;;  %v11189_v34 = vld [vmem:[#allocation370_spill] sm:$0xff] }
 0x44b   :  { %v3135_v13 = vmul.f32 %v7768_v63, %v11188_v14  ;;  %v2491_v55 = vadd.f32 %v2363_v17, %v7538_v45  ;;  %v3140_v39 = vmul.f32 %v7768_v63, %v11189_v34  ;;  %v3567_v29 = vsel %vm3494_vm0, %v3390_v35, 0.0  ;;  %v11190_v2 = vld [vmem:[#allocation238_spill] sm:$0xff]  ;;  %v177_v44 = vld [vmem:[%s10515_s1 + $0xe0] sm:$0xff]  ;;  %v11192_v35 = vld [vmem:[#allocation371_spill] sm:$0xff] }
 0x44c   :  { %v3266_v10 = vadd.f32 %v3138_v41, %v2494_v25  ;;  %v3392_v23 = vmul.f32 %v3264_v19, %v175_v9  ;;  %v2365_v7 = vmul.f32 %v7667_v11, %v11190_v2  ;;  %3568 = vadd.xlane.f32.xlu0 %v3567_v29  ;;  %v3552_v0 = vsel %vm3494_vm0, %v3385_v3, 0.0  ;;  %v11191_v45 = vld [vmem:[#allocation125_spill] sm:$0xff]  ;;  %v8262_v25 = vpop.permute.xlu0 %770  ;;  %v172_v3 = vld [vmem:[%s10515_s1 + $0xb8] sm:$0xff] }
 0x44d   :  { %v3387_v12 = vmul.f32 %v3259_v62, %v170_v40  ;;  %v3261_v14 = vadd.f32 %v3133_v33, %v2489_v1  ;;  %v8256_v17 = vmul.f32 %v7667_v11, %v11191_v45  ;;  %v1726_v41 = vadd.f32 %v8130_v61, %v954_v37  ;;  %11193 = vst [vmem:[#allocation61_spill] sm:$0xff] %v8262_v25  ;;  %v11194_v62 = vld [vmem:[#allocation126_spill] sm:$0xff]  ;;  %v11195_v40 = vld [vmem:[#allocation127_spill] sm:$0xff]  ;;  %v11196_v61 = vld [vmem:[#allocation128_spill] sm:$0xff] }
 0x44e   :  { %v2496_v19 = vadd.f32 %v8101_v6, %v1724_v32  ;;  %v956_v9 = vmul.f32 %v7386_v49, %v11192_v35  ;;  %3553 = vadd.xlane.f32.xlu1 %v3552_v0  ;;  %v8269_v1 = vmul.f32 %v7374_v30, %v11194_v62  ;;  %v8273_v33 = vmul.f32 %v7667_v11, %v11195_v40  ;;  %v8279_v32 = vpop.permute.xlu1 %2971  ;;  %v11198_v29 = vld [vmem:[#allocation372_spill] sm:$0xff]  ;;  %v174_v35 = vld [vmem:[%s10515_s1 + $0xc8] sm:$0xff] }
 0x44f   :  { %v8277_v6 = vmul.f32 %v7374_v30, %v11196_v61  ;;  %11197 = vst [vmem:[#allocation62_spill] sm:$0xff] %v8279_v32  ;;  %v3263_v37 = vadd.f32 %v3135_v13, %v2491_v55  ;;  %v3142_v2 = vmul.f32 %v7768_v63, %v11198_v29  ;;  %v3573_v0 = vsel %vm3494_vm0, %v3392_v23, 0.0  ;;  %v11199_v40 = vld [vmem:[#allocation240_spill] sm:$0xff]  ;;  %v179_v55 = vld [vmem:[%s10515_s1 + $0xf0] sm:$0xff] }
 0x450   :  { %v3268_v34 = vadd.f32 %v3140_v39, %v2496_v19  ;;  %v3394_v45 = vmul.f32 %v3266_v10, %v177_v44  ;;  %v2493_v62 = vadd.f32 %v2365_v7, %v7540_v46  ;;  %v2367_v61 = vmul.f32 %v7667_v11, %v11199_v40  ;;  %3574 = vadd.xlane.f32.xlu0 %v3573_v0  ;;  %v11200_v39 = vld [vmem:[#allocation129_spill] sm:$0xff]  ;;  %v11202_v19 = vld [vmem:[#allocation130_spill] sm:$0xff]  ;;  %v11204_v29 = vld [vmem:[#allocation235_spill] sm:$0xff] }
 0x451   :  { %v3558_v25 = vsel %vm3494_vm0, %v3387_v12, 0.0  ;;  %v3389_v13 = vmul.f32 %v3261_v14, %v172_v3  ;;  %v8296_v10 = vmul.f32 %v7667_v11, %v11200_v39  ;;  %v1728_v23 = vadd.f32 %v8141_v38, %v956_v9  ;;  %v11201_v46 = vld [vmem:[#allocation373_spill] sm:$0xff]  ;;  %v11203_v14 = vld [vmem:[#allocation131_spill] sm:$0xff]  ;;  %v11205_v38 = vld [vmem:[#allocation374_spill] sm:$0xff] }
 0x452   :  { %v2498_v44 = vadd.f32 %v8109_v28, %v1726_v41  ;;  %v958_v7 = vmul.f32 %v7386_v49, %v11201_v46  ;;  %3559 = vadd.xlane.f32.xlu1 %v3558_v25  ;;  %v8304_v12 = vmul.f32 %v7374_v30, %v11202_v19  ;;  %v8308_v3 = vmul.f32 %v7667_v11, %v11203_v14  ;;  %v8314_v41 = vpop.permute.xlu0 %780  ;;  %v11207_v19 = vld [vmem:[#allocation242_spill] sm:$0xff]  ;;  %v8320_v14 = vpop.permute.xlu1 %2979 }
 0x453   :  { %v3137_v0 = vmul.f32 %v7768_v63, %v11204_v29  ;;  %v3391_v40 = vmul.f32 %v3263_v37, %v174_v35  ;;  %v3144_v28 = vmul.f32 %v7768_v63, %v11205_v38  ;;  %11206 = vst [vmem:[#allocation63_spill] sm:$0xff] %v8314_v41  ;;  %v3579_v9 = vsel %vm3494_vm0, %v3394_v45, 0.0  ;;  %11208 = vst [vmem:[#allocation212_spill] sm:$0xff] %v8320_v14  ;;  %v181_v37 = vld [vmem:[%s10515_s1 + $0x100] sm:$0xff]  ;;  %v11210_v45 = vld [vmem:[#allocation375_spill] sm:$0xff] }
 0x454   :  { %v3270_v39 = vadd.f32 %v3142_v2, %v2498_v44  ;;  %v3396_v25 = vmul.f32 %v3268_v34, %v179_v55  ;;  %v2495_v46 = vadd.f32 %v2367_v61, %v7542_v52  ;;  %v2369_v32 = vmul.f32 %v7667_v11, %v11207_v19  ;;  %3580 = vadd.xlane.f32.xlu0 %v3579_v9  ;;  %v11209_v35 = vld [vmem:[#allocation132_spill] sm:$0xff]  ;;  %v11211_v55 = vld [vmem:[#allocation133_spill] sm:$0xff] }
 0x455   :  { %v3564_v29 = vsel %vm3494_vm0, %v3389_v13, 0.0  ;;  %v3265_v2 = vadd.f32 %v3137_v0, %v2493_v62  ;;  %v8328_v44 = vmul.f32 %v7374_v30, %v11209_v35  ;;  %v1730_v34 = vadd.f32 %v8170_v8, %v958_v7  ;;  %v176_v13 = vld [vmem:[%s10515_s1 + $0xd8] sm:$0xff]  ;;  %v11212_v62 = vld [vmem:[#allocation134_spill] sm:$0xff]  ;;  %v11213_v9 = vld [vmem:[#allocation237_spill] sm:$0xff] }
 0x456   :  { %v2500_v52 = vadd.f32 %v8137_v18, %v1728_v23  ;;  %v960_v61 = vmul.f32 %v7386_v49, %v11210_v45  ;;  %3565 = vadd.xlane.f32.xlu1 %v3564_v29  ;;  %v8339_v38 = vmul.f32 %v7667_v11, %v11211_v55  ;;  %v8343_v0 = vmul.f32 %v7374_v30, %v11212_v62  ;;  %v11214_v7 = vld [vmem:[#allocation376_spill] sm:$0xff] }
 0x457   :  { %v3139_v8 = vmul.f32 %v7768_v63, %v11213_v9  ;;  %v3570_v18 = vsel %vm3494_vm0, %v3391_v40, 0.0  ;;  %v3146_v19 = vmul.f32 %v7768_v63, %v11214_v7  ;;  %v3585_v29 = vsel %vm3494_vm0, %v3396_v25, 0.0  ;;  %v11215_v55 = vld [vmem:[#allocation244_spill] sm:$0xff]  ;;  %v183_v9 = vld [vmem:[%s10515_s1 + $0x110] sm:$0xff]  ;;  %v11217_v25 = vld [vmem:[#allocation377_spill] sm:$0xff]  ;;  %v8382_v7 = vpop.permute.xlu1 %2987 }
 0x458   :  { %v3272_v23 = vadd.f32 %v3144_v28, %v2500_v52  ;;  %v3398_v35 = vmul.f32 %v3270_v39, %v181_v37  ;;  %v2497_v45 = vadd.f32 %v2369_v32, %v7547_v47  ;;  %v2371_v41 = vmul.f32 %v7667_v11, %v11215_v55  ;;  %3586 = vadd.xlane.f32.xlu0 %v3585_v29  ;;  %v11216_v40 = vld [vmem:[#allocation135_spill] sm:$0xff]  ;;  %v8365_v32 = vpop.permute.xlu0 %790  ;;  %v178_v37 = vld [vmem:[%s10515_s1 + $0xe8] sm:$0xff] }
 0x459   :  { %v3393_v62 = vmul.f32 %v3265_v2, %v176_v13  ;;  %v3267_v14 = vadd.f32 %v3139_v8, %v2495_v46  ;;  %v8359_v28 = vmul.f32 %v7667_v11, %v11216_v40  ;;  %v1732_v52 = vadd.f32 %v8192_v15, %v960_v61  ;;  %11218 = vst [vmem:[#allocation341_spill] sm:$0xff] %v8365_v32  ;;  %v11219_v2 = vld [vmem:[#allocation136_spill] sm:$0xff]  ;;  %v11220_v13 = vld [vmem:[#allocation137_spill] sm:$0xff]  ;;  %v11221_v15 = vld [vmem:[#allocation239_spill] sm:$0xff] }
 0x45a   :  { %v2502_v39 = vadd.f32 %v8157_v56, %v1730_v34  ;;  %v962_v47 = vmul.f32 %v7386_v49, %v11217_v25  ;;  %3571 = vadd.xlane.f32.xlu1 %v3570_v18  ;;  %v8372_v46 = vmul.f32 %v7374_v30, %v11219_v2  ;;  %v8376_v8 = vmul.f32 %v7667_v11, %v11220_v13  ;;  %v11222_v34 = vld [vmem:[#allocation246_spill] sm:$0xff] }
 0x45b   :  { %v3141_v56 = vmul.f32 %v7768_v63, %v11221_v15  ;;  %v2373_v61 = vmul.f32 %v7667_v11, %v11222_v34  ;;  %11223 = vst [vmem:[#allocation64_spill] sm:$0xff] %v8382_v7  ;;  %v11224_v29 = vld [vmem:[#allocation378_spill] sm:$0xff]  ;;  %v3591_v40 = vsel %vm3494_vm0, %v3398_v35, 0.0  ;;  %v3400_v25 = vmul.f32 %v3272_v23, %v183_v9  ;;  %v185_v15 = vld [vmem:[%s10515_s1 + $0x120] sm:$0xff]  ;;  %v11226_v23 = vld [vmem:[#allocation379_spill] sm:$0xff] }
 0x45c   :  { %v3274_v18 = vadd.f32 %v3146_v19, %v2502_v39  ;;  %v3148_v55 = vmul.f32 %v7768_v63, %v11224_v29  ;;  %v2499_v2 = vadd.f32 %v2371_v41, %v7549_v50  ;;  %3592 = vadd.xlane.f32.xlu0 %v3591_v40  ;;  %v3576_v13 = vsel %vm3494_vm0, %v3393_v62, 0.0  ;;  %v180_v41 = vld [vmem:[%s10515_s1 + $0xf8] sm:$0xff] }
 0x45d   :  { %v3395_v32 = vmul.f32 %v3267_v14, %v178_v37  ;;  %v3269_v34 = vadd.f32 %v3141_v56, %v2497_v45  ;;  %v8394_v19 = vmul.f32 %v7374_v30, %v11225_v20  ;;  %v1734_v39 = vadd.f32 %v8207_v54, %v962_v47  ;;  %v11227_v14 = vld [vmem:[#allocation139_spill] sm:$0xff]  ;;  %v11228_v45 = vld [vmem:[#allocation241_spill] sm:$0xff]  ;;  %v11230_v47 = vld [vmem:[#allocation380_spill] sm:$0xff]  ;;  %v8414_v56 = vpop.permute.xlu0 %800 }
 0x45e   :  { %v2504_v35 = vadd.f32 %v8174_v48, %v1732_v52  ;;  %v964_v50 = vmul.f32 %v7386_v49, %v11226_v23  ;;  %3577 = vadd.xlane.f32.xlu1 %v3576_v13  ;;  %v8405_v62 = vmul.f32 %v7667_v11, %v11227_v14  ;;  %v3143_v20 = vmul.f32 %v7768_v63, %v11228_v45  ;;  %v11229_v9 = vld [vmem:[#allocation243_spill] sm:$0xff]  ;;  %v11232_v13 = vld [vmem:[#allocation248_spill] sm:$0xff]  ;;  %v8419_v14 = vpop.permute.xlu1 %2995 }
 0x45f   :  { %v3145_v54 = vmul.f32 %v7768_v63, %v11229_v9  ;;  %v2501_v48 = vadd.f32 %v2373_v61, %v7551_v51  ;;  %v3150_v37 = vmul.f32 %v7768_v63, %v11230_v47  ;;  %11231 = vst [vmem:[#allocation65_spill] sm:$0xff] %v8414_v56  ;;  %v3597_v29 = vsel %vm3494_vm0, %v3400_v25, 0.0  ;;  %11233 = vst [vmem:[#allocation394_spill] sm:$0xff] %v8419_v14  ;;  %v187_v51 = vld [vmem:[%s10515_s1 + $0x130] sm:$0xff] }
 0x460   :  { %v3276_v52 = vadd.f32 %v3148_v55, %v2504_v35  ;;  %v3402_v40 = vmul.f32 %v3274_v18, %v185_v15  ;;  %v2375_v23 = vmul.f32 %v7667_v11, %v11232_v13  ;;  %3598 = vadd.xlane.f32.xlu0 %v3597_v29  ;;  %v3582_v45 = vsel %vm3494_vm0, %v3395_v32, 0.0  ;;  %v11234_v55 = vld [vmem:[#allocation140_spill] sm:$0xff]  ;;  %v11235_v15 = vld [vmem:[#allocation381_spill] sm:$0xff]  ;;  %v11238_v29 = vld [vmem:[#allocation143_spill] sm:$0xff] }
 0x461   :  { %v3397_v9 = vmul.f32 %v3269_v34, %v180_v41  ;;  %v3271_v61 = vadd.f32 %v3143_v20, %v2499_v2  ;;  %v8427_v35 = vmul.f32 %v7374_v30, %v11234_v55  ;;  %v1736_v18 = vadd.f32 %v8238_v57, %v964_v50  ;;  %v182_v32 = vld [vmem:[%s10515_s1 + $0x108] sm:$0xff] }
 0x462   :  { %v2506_v25 = vadd.f32 %v8203_v24, %v1734_v39  ;;  %v966_v47 = vmul.f32 %v7386_v49, %v11235_v15  ;;  %3583 = vadd.xlane.f32.xlu1 %v3582_v45  ;;  %v11236_v34 = vld [vmem:[#allocation141_spill] sm:$0xff]  ;;  %v11237_v2 = vld [vmem:[#allocation142_spill] sm:$0xff]  ;;  %v8446_v57 = vmul.f32 %v7667_v11, %v11238_v29  ;;  %v3273_v24 = vadd.f32 %v3145_v54, %v2501_v48  ;;  %v184_v15 = vld [vmem:[%s10515_s1 + $0x118] sm:$0xff] }
 0x463   :  { %v8438_v41 = vmul.f32 %v7667_v11, %v11236_v34  ;;  %v8442_v20 = vmul.f32 %v7374_v30, %v11237_v2  ;;  %v11239_v50 = vld [vmem:[#allocation382_spill] sm:$0xff]  ;;  %v3603_v45 = vsel %vm3494_vm0, %v3402_v40, 0.0  ;;  %v3404_v55 = vmul.f32 %v3276_v52, %v187_v51  ;;  %v189_v48 = vld [vmem:[%s10515_s1 + $0x140] sm:$0xff] }
 0x464   :  { %v3278_v39 = vadd.f32 %v3150_v37, %v2506_v25  ;;  %v3152_v13 = vmul.f32 %v7768_v63, %v11239_v50  ;;  %v2503_v34 = vadd.f32 %v2375_v23, %v7553_v36  ;;  %v11240_v2 = vld [vmem:[#allocation250_spill] sm:$0xff]  ;;  %3604 = vadd.xlane.f32.xlu0 %v3603_v45  ;;  %v3588_v29 = vsel %vm3494_vm0, %v3397_v9, 0.0  ;;  %v11241_v37 = vld [vmem:[#allocation144_spill] sm:$0xff]  ;;  %v11242_v36 = vld [vmem:[#allocation383_spill] sm:$0xff]  ;;  %v8469_v25 = vpop.permute.xlu0 %810 }
 0x465   :  { %v2377_v56 = vmul.f32 %v7667_v11, %v11240_v2  ;;  %v3399_v54 = vmul.f32 %v3271_v61, %v182_v32  ;;  %v8463_v52 = vmul.f32 %v7374_v30, %v11241_v37  ;;  %v1738_v40 = vadd.f32 %v8269_v1, %v966_v47  ;;  %11243 = vst [vmem:[#allocation86_spill] sm:$0xff] %v8469_v25  ;;  %v11244_v9 = vld [vmem:[#allocation145_spill] sm:$0xff]  ;;  %v11245_v32 = vld [vmem:[#allocation146_spill] sm:$0xff]  ;;  %v8481_v1 = vpop.permute.xlu1 %3003  ;;  %v11249_v25 = vld [vmem:[#allocation252_spill] sm:$0xff] }
 0x466   :  { %v2508_v51 = vadd.f32 %v8227_v58, %v1736_v18  ;;  %v968_v23 = vmul.f32 %v7386_v49, %v11242_v36  ;;  %3589 = vadd.xlane.f32.xlu1 %v3588_v29  ;;  %v8473_v61 = vmul.f32 %v7667_v11, %v11244_v9  ;;  %v8477_v50 = vmul.f32 %v7374_v30, %v11245_v32  ;;  %v11246_v45 = vld [vmem:[#allocation245_spill] sm:$0xff] }
 0x467   :  { %v3147_v2 = vmul.f32 %v7768_v63, %v11246_v45  ;;  %11247 = vst [vmem:[#allocation342_spill] sm:$0xff] %v8481_v1  ;;  %v3401_v58 = vmul.f32 %v3273_v24, %v184_v15  ;;  %v11248_v47 = vld [vmem:[#allocation385_spill] sm:$0xff]  ;;  %v3609_v29 = vsel %vm3494_vm0, %v3404_v55, 0.0  ;;  %v3406_v36 = vmul.f32 %v3278_v39, %v189_v48  ;;  %v191_v45 = vld [vmem:[%s10515_s1 + $0x150] sm:$0xff]  ;;  %v11252_v48 = vld [vmem:[#allocation148_spill] sm:$0xff] }
 0x468   :  { %v3280_v18 = vadd.f32 %v3152_v13, %v2508_v51  ;;  %v3154_v37 = vmul.f32 %v7768_v63, %v11248_v47  ;;  %v2505_v9 = vadd.f32 %v2377_v56, %v7555_v21  ;;  %v2379_v14 = vmul.f32 %v7667_v11, %v11249_v25  ;;  %3610 = vadd.xlane.f32.xlu0 %v3609_v29  ;;  %v11250_v13 = vld [vmem:[#allocation147_spill] sm:$0xff]  ;;  %v11251_v21 = vld [vmem:[#allocation386_spill] sm:$0xff]  ;;  %v8517_v29 = vpop.permute.xlu0 %820 }
 0x469   :  { %v3594_v32 = vsel %vm3494_vm0, %v3399_v54, 0.0  ;;  %v3275_v24 = vadd.f32 %v3147_v2, %v2503_v34  ;;  %v8495_v15 = vmul.f32 %v7667_v11, %v11250_v13  ;;  %v1740_v55 = vadd.f32 %v8277_v6, %v968_v23  ;;  %v186_v54 = vld [vmem:[%s10515_s1 + $0x128] sm:$0xff]  ;;  %v11254_v2 = vld [vmem:[#allocation247_spill] sm:$0xff]  ;;  %v11255_v23 = vld [vmem:[#allocation388_spill] sm:$0xff]  ;;  %11256 = vst [vmem:[#allocation337_spill] sm:$0xff] %v8517_v29  ;;  %v8523_v1 = vpop.permute.xlu1 %3011 }
 0x46a   :  { %v2510_v39 = vadd.f32 %v8256_v17, %v1738_v40  ;;  %v970_v56 = vmul.f32 %v7386_v49, %v11251_v21  ;;  %3595 = vadd.xlane.f32.xlu1 %v3594_v32  ;;  %v8506_v51 = vmul.f32 %v7374_v30, %v11252_v48  ;;  %v11253_v34 = vld [vmem:[#allocation149_spill] sm:$0xff]  ;;  %v3149_v6 = vmul.f32 %v7768_v63, %v11254_v2  ;;  %v11257_v48 = vld [vmem:[#allocation254_spill] sm:$0xff] }
 0x46b   :  { %v8510_v25 = vmul.f32 %v7667_v11, %v11253_v34  ;;  %v3600_v17 = vsel %vm3494_vm0, %v3401_v58, 0.0  ;;  %v3156_v47 = vmul.f32 %v7768_v63, %v11255_v23  ;;  %v3615_v32 = vsel %vm3494_vm0, %v3406_v36, 0.0  ;;  %11258 = vst [vmem:[#allocation343_spill] sm:$0xff] %v8523_v1  ;;  %v193_v58 = vld [vmem:[%s10515_s1 + $0x160] sm:$0xff] }
 0x46c   :  { %v3282_v40 = vadd.f32 %v3154_v37, %v2510_v39  ;;  %v3408_v13 = vmul.f32 %v3280_v18, %v191_v45  ;;  %v2507_v21 = vadd.f32 %v2379_v14, %v7557_v27  ;;  %v2381_v34 = vmul.f32 %v7667_v11, %v11257_v48  ;;  %3616 = vadd.xlane.f32.xlu0 %v3615_v32  ;;  %v11259_v39 = vld [vmem:[#allocation150_spill] sm:$0xff]  ;;  %v11260_v14 = vld [vmem:[#allocation389_spill] sm:$0xff]  ;;  %v188_v45 = vld [vmem:[%s10515_s1 + $0x138] sm:$0xff] }
 0x46d   :  { %v3403_v2 = vmul.f32 %v3275_v24, %v186_v54  ;;  %v3277_v37 = vadd.f32 %v3149_v6, %v2505_v9  ;;  %v8530_v23 = vmul.f32 %v7374_v30, %v11259_v39  ;;  %v1742_v18 = vadd.f32 %v8304_v12, %v970_v56  ;;  %v11261_v24 = vld [vmem:[#allocation151_spill] sm:$0xff]  ;;  %v11262_v9 = vld [vmem:[#allocation152_spill] sm:$0xff]  ;;  %v11263_v32 = vld [vmem:[#allocation249_spill] sm:$0xff] }
 0x46e   :  { %v2512_v27 = vadd.f32 %v8273_v33, %v1740_v55  ;;  %v972_v36 = vmul.f32 %v7386_v49, %v11260_v14  ;;  %3601 = vadd.xlane.f32.xlu1 %v3600_v17  ;;  %v8541_v54 = vmul.f32 %v7667_v11, %v11261_v24  ;;  %v8545_v6 = vmul.f32 %v7374_v30, %v11262_v9  ;;  %v11264_v33 = vld [vmem:[#allocation256_spill] sm:$0xff]  ;;  %v11265_v17 = vld [vmem:[#allocation390_spill] sm:$0xff]  ;;  %v11266_v29 = vld [vmem:[#allocation401_spill] sm:$0xff] }
 0x46f   :  { %v3151_v12 = vmul.f32 %v7768_v63, %v11263_v32  ;;  %v2383_v55 = vmul.f32 %v7667_v11, %v11264_v33  ;;  %v3158_v48 = vmul.f32 %v7768_v63, %v11265_v17  ;;  %v3621_v39 = vsel %vm3494_vm0, %v3408_v13, 0.0  ;;  %v195_v32 = vld [vmem:[%s10515_s1 + $0x170] sm:$0xff] }
 0x470   :  { %v3284_v56 = vadd.f32 %v3156_v47, %v2512_v27  ;;  %v3410_v14 = vmul.f32 %v3282_v40, %v193_v58  ;;  %v2509_v24 = vadd.f32 %v2381_v34, %v11266_v29  ;;  %3622 = vadd.xlane.f32.xlu0 %v3621_v39  ;;  %v3606_v1 = vsel %vm3494_vm0, %v3403_v2, 0.0  ;;  %v11268_v40 = vld [vmem:[#allocation391_spill] sm:$0xff]  ;;  %v8567_v34 = vpop.permute.xlu0 %830  ;;  %v190_v2 = vld [vmem:[%s10515_s1 + $0x148] sm:$0xff] }
 0x471   :  { %v3405_v9 = vmul.f32 %v3277_v37, %v188_v45  ;;  %v3279_v7 = vadd.f32 %v3151_v12, %v2507_v21  ;;  %v8561_v47 = vmul.f32 %v7667_v11, %v11267_v53  ;;  %v1744_v27 = vadd.f32 %v8328_v44, %v972_v36  ;;  %11269 = vst [vmem:[#allocation66_spill] sm:$0xff] %v8567_v34  ;;  %v11270_v58 = vld [vmem:[#allocation154_spill] sm:$0xff]  ;;  %v11271_v53 = vld [vmem:[#allocation251_spill] sm:$0xff]  ;;  %v11272_v44 = vld [vmem:[#allocation253_spill] sm:$0xff]  ;;  %v8581_v45 = vpop.permute.xlu1 %3019 }
 0x472   :  { %v2514_v13 = vadd.f32 %v8296_v10, %v1742_v18  ;;  %v974_v29 = vmul.f32 %v7386_v49, %v11268_v40  ;;  %3607 = vadd.xlane.f32.xlu1 %v3606_v1  ;;  %v8574_v21 = vmul.f32 %v7374_v30, %v11270_v58  ;;  %v3153_v37 = vmul.f32 %v7768_v63, %v11271_v53  ;;  %v11273_v18 = vld [vmem:[#allocation402_spill] sm:$0xff]  ;;  %v11275_v1 = vld [vmem:[#allocation392_spill] sm:$0xff] }
 0x473   :  { %v3155_v10 = vmul.f32 %v7768_v63, %v11272_v44  ;;  %v2511_v36 = vadd.f32 %v2383_v55, %v11273_v18  ;;  %11274 = vst [vmem:[#allocation67_spill] sm:$0xff] %v8581_v45  ;;  %v3160_v33 = vmul.f32 %v7768_v63, %v11275_v1  ;;  %v3627_v17 = vsel %vm3494_vm0, %v3410_v14, 0.0  ;;  %v11276_v40 = vld [vmem:[#allocation258_spill] sm:$0xff]  ;;  %v197_v55 = vld [vmem:[%s10515_s1 + $0x180] sm:$0xff]  ;;  %v11277_v18 = vld [vmem:[#allocation155_spill] sm:$0xff] }
 0x474   :  { %v3286_v12 = vadd.f32 %v3158_v48, %v2514_v13  ;;  %v3412_v39 = vmul.f32 %v3284_v56, %v195_v32  ;;  %v2385_v58 = vmul.f32 %v7667_v11, %v11276_v40  ;;  %3628 = vadd.xlane.f32.xlu0 %v3627_v17  ;;  %v3612_v53 = vsel %vm3494_vm0, %v3405_v9, 0.0  ;;  %v11278_v14 = vld [vmem:[#allocation393_spill] sm:$0xff]  ;;  %v11279_v9 = vld [vmem:[#allocation156_spill] sm:$0xff]  ;;  %v11281_v1 = vld [vmem:[#allocation158_spill] sm:$0xff]  ;;  %v8617_v40 = vpop.permute.xlu0 %840 }
 0x475   :  { %v3407_v34 = vmul.f32 %v3279_v7, %v190_v2  ;;  %v3281_v44 = vadd.f32 %v3153_v37, %v2509_v24  ;;  %v8594_v48 = vmul.f32 %v7667_v11, %v11277_v18  ;;  %v1746_v13 = vadd.f32 %v8343_v0, %v974_v29  ;;  %v192_v7 = vld [vmem:[%s10515_s1 + $0x158] sm:$0xff]  ;;  %v11280_v24 = vld [vmem:[#allocation157_spill] sm:$0xff]  ;;  %11283 = vst [vmem:[#allocation85_spill] sm:$0xff] %v8617_v40  ;;  %v8626_v45 = vpop.permute.xlu1 %3027 }
 0x476   :  { %v2516_v56 = vadd.f32 %v8308_v3, %v1744_v27  ;;  %v976_v32 = vmul.f32 %v7386_v49, %v11278_v14  ;;  %3613 = vadd.xlane.f32.xlu1 %v3612_v53  ;;  %v8605_v2 = vmul.f32 %v7374_v30, %v11279_v9  ;;  %v8609_v37 = vmul.f32 %v7667_v11, %v11280_v24  ;;  %v11282_v29 = vld [vmem:[#allocation395_spill] sm:$0xff]  ;;  %v194_v14 = vld [vmem:[%s10515_s1 + $0x168] sm:$0xff]  ;;  %v11284_v24 = vld [vmem:[#allocation260_spill] sm:$0xff] }
 0x477   :  { %v8613_v0 = vmul.f32 %v7374_v30, %v11281_v1  ;;  %v3283_v3 = vadd.f32 %v3155_v10, %v2511_v36  ;;  %v3162_v17 = vmul.f32 %v7768_v63, %v11282_v29  ;;  %v3633_v53 = vsel %vm3494_vm0, %v3412_v39, 0.0  ;;  %11285 = vst [vmem:[#allocation88_spill] sm:$0xff] %v8626_v45  ;;  %v11288_v29 = vld [vmem:[#allocation160_spill] sm:$0xff]  ;;  %v11293_v45 = vld [vmem:[#allocation262_spill] sm:$0xff] }
 0x478   :  { %v3288_v27 = vadd.f32 %v3160_v33, %v2516_v56  ;;  %v3414_v18 = vmul.f32 %v3286_v12, %v197_v55  ;;  %v2513_v9 = vadd.f32 %v2385_v58, %v7630_v16  ;;  %v2387_v1 = vmul.f32 %v7667_v11, %v11284_v24  ;;  %3634 = vadd.xlane.f32.xlu0 %v3633_v53  ;;  %v199_v33 = vld [vmem:[%s10515_s1 + $0x190] sm:$0xff]  ;;  %v11287_v58 = vld [vmem:[#allocation396_spill] sm:$0xff] }
 0x479   :  { %v3618_v10 = vsel %vm3494_vm0, %v3407_v34, 0.0  ;;  %v3409_v36 = vmul.f32 %v3281_v44, %v192_v7  ;;  %v11286_v12 = vld [vmem:[#allocation159_spill] sm:$0xff]  ;;  %v1748_v55 = vadd.f32 %v8372_v46, %v976_v32  ;;  %v2518_v16 = vadd.f32 %v8339_v38, %v1746_v13  ;;  %v11289_v44 = vld [vmem:[#allocation161_spill] sm:$0xff] }
 0x47a   :  { %v8634_v39 = vmul.f32 %v7667_v11, %v11286_v12  ;;  %v978_v56 = vmul.f32 %v7386_v49, %v11287_v58  ;;  %3619 = vadd.xlane.f32.xlu1 %v3618_v10  ;;  %v8642_v34 = vmul.f32 %v7374_v30, %v11288_v29  ;;  %v8646_v7 = vmul.f32 %v7667_v11, %v11289_v44  ;;  %v11290_v53 = vld [vmem:[#allocation255_spill] sm:$0xff]  ;;  %v11291_v46 = vld [vmem:[#allocation397_spill] sm:$0xff] }
 0x47b   :  { %v3157_v24 = vmul.f32 %v7768_v63, %v11290_v53  ;;  %v3411_v12 = vmul.f32 %v3283_v3, %v194_v14  ;;  %v3290_v40 = vadd.f32 %v3162_v17, %v2518_v16  ;;  %v3164_v38 = vmul.f32 %v7768_v63, %v11291_v46  ;;  %v11292_v10 = vld [vmem:[#allocation7_spill] sm:$0xff]  ;;  %v201_v53 = vld [vmem:[%s10515_s1 + $0x1a0] sm:$0xff]  ;;  %v11294_v17 = vld [vmem:[#allocation162_spill] sm:$0xff] }
 0x47c   :  { %v3639_v13 = vsel %vm3494_vm0, %v3414_v18, 0.0  ;;  %v3416_v32 = vmul.f32 %v3288_v27, %v199_v33  ;;  %v2515_v58 = vadd.f32 %v2387_v1, %v11292_v10  ;;  %v2389_v29 = vmul.f32 %v7667_v11, %v11293_v45  ;;  %v11295_v1 = vld [vmem:[#allocation398_spill] sm:$0xff]  ;;  %v8668_v45 = vpop.permute.xlu0 %850  ;;  %v11297_v16 = vld [vmem:[#allocation163_spill] sm:$0xff] }
 0x47d   :  { %3640 = vadd.xlane.f32.xlu0 %v3639_v13  ;;  %v3624_v44 = vsel %vm3494_vm0, %v3409_v36, 0.0  ;;  %v3285_v3 = vadd.f32 %v3157_v24, %v2513_v9  ;;  %v8662_v14 = vmul.f32 %v7374_v30, %v11294_v17  ;;  %v1750_v18 = vadd.f32 %v8394_v19, %v978_v56  ;;  %11296 = vst [vmem:[#allocation344_spill] sm:$0xff] %v8668_v45  ;;  %v196_v36 = vld [vmem:[%s10515_s1 + $0x178] sm:$0xff]  ;;  %v11301_v19 = vld [vmem:[#allocation257_spill] sm:$0xff] }
 0x47e   :  { %v2520_v27 = vadd.f32 %v8359_v28, %v1748_v55  ;;  %v980_v33 = vmul.f32 %v7386_v49, %v11295_v1  ;;  %3625 = vadd.xlane.f32.xlu1 %v3624_v44  ;;  %v8675_v9 = vmul.f32 %v7667_v11, %v11297_v16  ;;  %v11299_v24 = vld [vmem:[#allocation164_spill] sm:$0xff]  ;;  %v3159_v28 = vmul.f32 %v7768_v63, %v11301_v19  ;;  %v8683_v55 = vpop.permute.xlu1 %3035  ;;  %v11303_v10 = vld [vmem:[#allocation399_spill] sm:$0xff] }
 0x47f   :  { %v8679_v46 = vmul.f32 %v7374_v30, %v11299_v24  ;;  %11302 = vst [vmem:[#allocation70_spill] sm:$0xff] %v8683_v55  ;;  %v3630_v56 = vsel %vm3494_vm0, %v3411_v12, 0.0  ;;  %v3166_v44 = vmul.f32 %v7768_v63, %v11303_v10  ;;  %v3645_v17 = vsel %vm3494_vm0, %v3416_v32, 0.0  ;;  %v11304_v16 = vld [vmem:[#allocation8_spill] sm:$0xff]  ;;  %v203_v19 = vld [vmem:[%s10515_s1 + $0x1b0] sm:$0xff]  ;;  %v11306_v12 = vld [vmem:[#allocation165_spill] sm:$0xff] }
 0x480   :  { %11298 = vst [vmem:[#allocation68_spill] sm:$0xff] %v8675_v9  ;;  %v3292_v13 = vadd.f32 %v3164_v38, %v2520_v27  ;;  %v3418_v1 = vmul.f32 %v3290_v40, %v201_v53  ;;  %v2517_v45 = vadd.f32 %v2389_v29, %v11304_v16  ;;  %v11305_v9 = vld [vmem:[#allocation264_spill] sm:$0xff]  ;;  %v3287_v55 = vadd.f32 %v3159_v28, %v2515_v58  ;;  %v198_v53 = vld [vmem:[%s10515_s1 + $0x188] sm:$0xff]  ;;  %v11310_v58 = vld [vmem:[#allocation167_spill] sm:$0xff] }
 0x481   :  { %11300 = vst [vmem:[#allocation69_spill] sm:$0xff] %v8679_v46  ;;  %v2391_v24 = vmul.f32 %v7667_v11, %v11305_v9  ;;  %3646 = vadd.xlane.f32.xlu0 %v3645_v17  ;;  %v3413_v46 = vmul.f32 %v3285_v3, %v196_v36  ;;  %v8697_v38 = vmul.f32 %v7667_v11, %v11306_v12  ;;  %v11308_v32 = vld [vmem:[#allocation400_spill] sm:$0xff]  ;;  %v11309_v3 = vld [vmem:[#allocation166_spill] sm:$0xff]  ;;  %v11311_v28 = vld [vmem:[#allocation259_spill] sm:$0xff]  ;;  %v8720_v17 = vpop.permute.xlu0 %860 }
 0x482   :  { %v1752_v27 = vadd.f32 %v8427_v35, %v980_v33  ;;  %v2522_v40 = vadd.f32 %v8376_v8, %v1750_v18  ;;  %v982_v29 = vmul.f32 %v7386_v49, %v11308_v32  ;;  %3631 = vadd.xlane.f32.xlu1 %v3630_v56  ;;  %v8708_v36 = vmul.f32 %v7374_v30, %v11309_v3  ;;  %v11312_v8 = vld [vmem:[#allocation266_spill] sm:$0xff]  ;;  %v11313_v56 = vld [vmem:[#allocation403_spill] sm:$0xff]  ;;  %v11315_v32 = vld [vmem:[#allocation9_spill] sm:$0xff] }
 0x483   :  { %11307 = vst [vmem:[#allocation71_spill] sm:$0xff] %v8697_v38  ;;  %v8712_v9 = vmul.f32 %v7667_v11, %v11310_v58  ;;  %v3161_v35 = vmul.f32 %v7768_v63, %v11311_v28  ;;  %v2393_v18 = vmul.f32 %v7667_v11, %v11312_v8  ;;  %v3168_v10 = vmul.f32 %v7768_v63, %v11313_v56  ;;  %v8724_v38 = vpop.permute.xlu1 %3043  ;;  %v11317_v8 = vld [vmem:[#allocation168_spill] sm:$0xff] }
 0x484   :  { %v3294_v33 = vadd.f32 %v3166_v44, %v2522_v40  ;;  %11314 = vst [vmem:[#allocation345_spill] sm:$0xff] %v8720_v17  ;;  %v3651_v16 = vsel %vm3494_vm0, %v3418_v1, 0.0  ;;  %v3420_v12 = vmul.f32 %v3292_v13, %v203_v19  ;;  %v2519_v3 = vadd.f32 %v2391_v24, %v11315_v32  ;;  %11316 = vst [vmem:[#allocation87_spill] sm:$0xff] %v8724_v38  ;;  %v205_v44 = vld [vmem:[%s10515_s1 + $0x1c0] sm:$0xff] }
 0x485   :  { %3652 = vadd.xlane.f32.xlu0 %v3651_v16  ;;  %v3636_v58 = vsel %vm3494_vm0, %v3413_v46, 0.0  ;;  %v3415_v28 = vmul.f32 %v3287_v55, %v198_v53  ;;  %v3289_v40 = vadd.f32 %v3161_v35, %v2517_v45  ;;  %v8732_v56 = vmul.f32 %v7374_v30, %v11317_v8  ;;  %v11318_v24 = vld [vmem:[#allocation404_spill] sm:$0xff]  ;;  %v11319_v55 = vld [vmem:[#allocation169_spill] sm:$0xff]  ;;  %v11322_v16 = vld [vmem:[#allocation263_spill] sm:$0xff] }
 0x486   :  { %v1754_v1 = vadd.f32 %v8442_v20, %v982_v29  ;;  %v2524_v13 = vadd.f32 %v8405_v62, %v1752_v27  ;;  %v984_v19 = vmul.f32 %v7386_v49, %v11318_v24  ;;  %3637 = vadd.xlane.f32.xlu1 %v3636_v58  ;;  %v200_v46 = vld [vmem:[%s10515_s1 + $0x198] sm:$0xff]  ;;  %v8743_v53 = vmul.f32 %v7667_v11, %v11319_v55  ;;  %v11321_v45 = vld [vmem:[#allocation261_spill] sm:$0xff]  ;;  %v11323_v29 = vld [vmem:[#allocation10_spill] sm:$0xff] }
 0x487   :  { %v3163_v35 = vmul.f32 %v7768_v63, %v11321_v45  ;;  %v3165_v20 = vmul.f32 %v7768_v63, %v11322_v16  ;;  %v2521_v62 = vadd.f32 %v2393_v18, %v11323_v29  ;;  %v11324_v32 = vld [vmem:[#allocation5_spill] sm:$0xff]  ;;  %v3657_v8 = vsel %vm3494_vm0, %v3420_v12, 0.0  ;;  %v11325_v17 = vld [vmem:[#allocation268_spill] sm:$0xff]  ;;  %v207_v45 = vld [vmem:[%s10515_s1 + $0x1d0] sm:$0xff] }
 0x488   :  { %11320 = vst [vmem:[#allocation90_spill] sm:$0xff] %v8743_v53  ;;  %v3296_v27 = vadd.f32 %v3168_v10, %v2524_v13  ;;  %v3170_v58 = vmul.f32 %v7768_v63, %v11324_v32  ;;  %v3422_v24 = vmul.f32 %v3294_v33, %v205_v44  ;;  %v2395_v38 = vmul.f32 %v7667_v11, %v11325_v17  ;;  %v11326_v18 = vld [vmem:[#allocation170_spill] sm:$0xff]  ;;  %v8767_v44 = vpop.permute.xlu0 %870  ;;  %v11334_v32 = vld [vmem:[#allocation12_spill] sm:$0xff] }
 0x489   :  { %3658 = vadd.xlane.f32.xlu0 %v3657_v8  ;;  %v3642_v55 = vsel %vm3494_vm0, %v3415_v28, 0.0  ;;  %v3417_v53 = vmul.f32 %v3289_v40, %v200_v46  ;;  %v3291_v16 = vadd.f32 %v3163_v35, %v2519_v3  ;;  %v8761_v10 = vmul.f32 %v7374_v30, %v11326_v18  ;;  %v11327_v12 = vld [vmem:[#allocation6_spill] sm:$0xff]  ;;  %11328 = vst [vmem:[#allocation210_spill] sm:$0xff] %v8767_v44  ;;  %v11329_v40 = vld [vmem:[#allocation171_spill] sm:$0xff]  ;;  %v11330_v46 = vld [vmem:[#allocation172_spill] sm:$0xff] }
 0x48a   :  { %v1756_v13 = vadd.f32 %v8463_v52, %v984_v19  ;;  %v2526_v33 = vadd.f32 %v8438_v41, %v1754_v1  ;;  %v986_v17 = vmul.f32 %v7386_v49, %v11327_v12  ;;  %3643 = vadd.xlane.f32.xlu1 %v3642_v55  ;;  %v202_v28 = vld [vmem:[%s10515_s1 + $0x1a8] sm:$0xff]  ;;  %v8774_v3 = vmul.f32 %v7667_v11, %v11329_v40  ;;  %v8784_v1 = vpop.permute.xlu1 %3051  ;;  %v204_v12 = vld [vmem:[%s10515_s1 + $0x1b8] sm:$0xff] }
 0x48b   :  { %v8778_v35 = vmul.f32 %v7374_v30, %v11330_v46  ;;  %v11331_v52 = vld [vmem:[#allocation173_spill] sm:$0xff]  ;;  %11333 = vst [vmem:[#allocation214_spill] sm:$0xff] %v8784_v1  ;;  %v3293_v19 = vadd.f32 %v3165_v20, %v2521_v62  ;;  %v3172_v8 = vmul.f32 %v7768_v63, %v11334_v32  ;;  %v3663_v55 = vsel %vm3494_vm0, %v3422_v24, 0.0  ;;  %v11335_v40 = vld [vmem:[#allocation11_spill] sm:$0xff]  ;;  %v11336_v44 = vld [vmem:[#allocation270_spill] sm:$0xff] }
 0x48c   :  { %v8782_v41 = vmul.f32 %v7667_v11, %v11331_v52  ;;  %v3298_v29 = vadd.f32 %v3170_v58, %v2526_v33  ;;  %v3424_v18 = vmul.f32 %v3296_v27, %v207_v45  ;;  %v2523_v46 = vadd.f32 %v2395_v38, %v11335_v40  ;;  %v209_v62 = vld [vmem:[%s10515_s1 + $0x1e0] sm:$0xff]  ;;  %v11337_v58 = vld [vmem:[#allocation174_spill] sm:$0xff] }
 0x48d   :  { %v2397_v52 = vmul.f32 %v7667_v11, %v11336_v44  ;;  %3664 = vadd.xlane.f32.xlu0 %v3663_v55  ;;  %v3648_v1 = vsel %vm3494_vm0, %v3417_v53, 0.0  ;;  %v3419_v20 = vmul.f32 %v3291_v16, %v202_v28  ;;  %v8801_v27 = vmul.f32 %v7374_v30, %v11337_v58  ;;  %v11338_v38 = vld [vmem:[#allocation13_spill] sm:$0xff]  ;;  %v11339_v44 = vld [vmem:[#allocation175_spill] sm:$0xff]  ;;  %v11341_v16 = vld [vmem:[#allocation176_spill] sm:$0xff] }
 0x48e   :  { %11332 = vst [vmem:[#allocation346_spill] sm:$0xff] %v8782_v41  ;;  %v1758_v24 = vadd.f32 %v8477_v50, %v986_v17  ;;  %v2528_v45 = vadd.f32 %v8446_v57, %v1756_v13  ;;  %v988_v33 = vmul.f32 %v7386_v49, %v11338_v38  ;;  %3649 = vadd.xlane.f32.xlu1 %v3648_v1  ;;  %v11342_v32 = vld [vmem:[#allocation265_spill] sm:$0xff]  ;;  %v11343_v50 = vld [vmem:[#allocation22_spill] sm:$0xff]  ;;  %v8819_v13 = vpop.permute.xlu0 %880  ;;  %v3669_v17 = vsel %vm3494_vm0, %v3424_v18, 0.0 }
 0x48f   :  { %v8809_v53 = vmul.f32 %v7667_v11, %v11339_v44  ;;  %v8813_v28 = vmul.f32 %v7374_v30, %v11341_v16  ;;  %v3167_v55 = vmul.f32 %v7768_v63, %v11342_v32  ;;  %v3421_v40 = vmul.f32 %v3293_v19, %v204_v12  ;;  %11344 = vst [vmem:[#allocation89_spill] sm:$0xff] %v8819_v13  ;;  %v11345_v38 = vld [vmem:[#allocation14_spill] sm:$0xff]  ;;  %v8825_v16 = vpop.permute.xlu1 %3059  ;;  %v11348_v12 = vld [vmem:[#allocation177_spill] sm:$0xff] }
 0x490   :  { %v3300_v58 = vadd.f32 %v3172_v8, %v2528_v45  ;;  %v3174_v57 = vmul.f32 %v7768_v63, %v11343_v50  ;;  %v3426_v1 = vmul.f32 %v3298_v29, %v209_v62  ;;  %v2525_v44 = vadd.f32 %v2397_v52, %v11345_v38  ;;  %11347 = vst [vmem:[#allocation92_spill] sm:$0xff] %v8825_v16  ;;  %v211_v19 = vld [vmem:[%s10515_s1 + $0x1f0] sm:$0xff]  ;;  %v11356_v16 = vld [vmem:[#allocation276_spill] sm:$0xff] }
 0x491   :  { %11340 = vst [vmem:[#allocation347_spill] sm:$0xff] %v8809_v53  ;;  %v11346_v53 = vld [vmem:[#allocation272_spill] sm:$0xff]  ;;  %3670 = vadd.xlane.f32.xlu0 %v3669_v17  ;;  %v3654_v32 = vsel %vm3494_vm0, %v3419_v20, 0.0  ;;  %v3295_v8 = vadd.f32 %v3167_v55, %v2523_v46  ;;  %v8833_v45 = vmul.f32 %v7667_v11, %v11348_v12  ;;  %v1760_v29 = vadd.f32 %v8506_v51, %v988_v33  ;;  %v11350_v52 = vld [vmem:[#allocation23_spill] sm:$0xff]  ;;  %v206_v20 = vld [vmem:[%s10515_s1 + $0x1c8] sm:$0xff] }
 0x492   :  { %v2399_v41 = vmul.f32 %v7667_v11, %v11346_v53  ;;  %v2530_v18 = vadd.f32 %v8473_v61, %v1758_v24  ;;  %v990_v62 = vmul.f32 %v7386_v49, %v11350_v52  ;;  %3655 = vadd.xlane.f32.xlu1 %v3654_v32  ;;  %v11351_v53 = vld [vmem:[#allocation178_spill] sm:$0xff]  ;;  %v11352_v46 = vld [vmem:[#allocation267_spill] sm:$0xff]  ;;  %v3660_v61 = vsel %vm3494_vm0, %v3421_v40, 0.0  ;;  %v11354_v33 = vld [vmem:[#allocation24_spill] sm:$0xff] }
 0x493   :  { %11349 = vst [vmem:[#allocation209_spill] sm:$0xff] %v8833_v45  ;;  %v8844_v50 = vmul.f32 %v7374_v30, %v11351_v53  ;;  %v3169_v55 = vmul.f32 %v7768_v63, %v11352_v46  ;;  %v11353_v17 = vld [vmem:[#allocation274_spill] sm:$0xff]  ;;  %v3176_v38 = vmul.f32 %v7768_v63, %v11354_v33  ;;  %v3675_v32 = vsel %vm3494_vm0, %v3426_v1, 0.0  ;;  %v11355_v52 = vld [vmem:[#allocation15_spill] sm:$0xff]  ;;  %v213_v46 = vld [vmem:[%s10515_s1 + $0x200] sm:$0xff]  ;;  %v8882_v33 = vpop.permute.xlu1 %3067 }
 0x494   :  { %v2401_v51 = vmul.f32 %v7667_v11, %v11353_v17  ;;  %v3302_v24 = vadd.f32 %v3174_v57, %v2530_v18  ;;  %v3428_v12 = vmul.f32 %v3300_v58, %v211_v19  ;;  %v2527_v13 = vadd.f32 %v2399_v41, %v11355_v52  ;;  %v11357_v40 = vld [vmem:[#allocation179_spill] sm:$0xff]  ;;  %v11358_v1 = vld [vmem:[#allocation25_spill] sm:$0xff]  ;;  %v8868_v19 = vpop.permute.xlu0 %890 }
 0x495   :  { %v2403_v53 = vmul.f32 %v7667_v11, %v11356_v16  ;;  %3676 = vadd.xlane.f32.xlu0 %v3675_v32  ;;  %v3423_v45 = vmul.f32 %v3295_v8, %v206_v20  ;;  %v3297_v17 = vadd.f32 %v3169_v55, %v2525_v44  ;;  %v8862_v57 = vmul.f32 %v7667_v11, %v11357_v40  ;;  %v208_v16 = vld [vmem:[%s10515_s1 + $0x1d8] sm:$0xff]  ;;  %v11361_v20 = vld [vmem:[#allocation269_spill] sm:$0xff] }
 0x496   :  { %v1762_v18 = vadd.f32 %v8530_v23, %v990_v62  ;;  %v2532_v58 = vadd.f32 %v8495_v15, %v1760_v29  ;;  %v992_v41 = vmul.f32 %v7386_v49, %v11358_v1  ;;  %11359 = vst [vmem:[#allocation216_spill] sm:$0xff] %v8868_v19  ;;  %3661 = vadd.xlane.f32.xlu1 %v3660_v61  ;;  %v11360_v8 = vld [vmem:[#allocation180_spill] sm:$0xff]  ;;  %v11362_v23 = vld [vmem:[#allocation271_spill] sm:$0xff]  ;;  %v3681_v52 = vsel %vm3494_vm0, %v3428_v12, 0.0  ;;  %v11364_v1 = vld [vmem:[#allocation17_spill] sm:$0xff] }
 0x497   :  { %v8875_v44 = vmul.f32 %v7374_v30, %v11360_v8  ;;  %v3171_v55 = vmul.f32 %v7768_v63, %v11361_v20  ;;  %v3173_v15 = vmul.f32 %v7768_v63, %v11362_v23  ;;  %v11363_v29 = vld [vmem:[#allocation16_spill] sm:$0xff]  ;;  %v3178_v61 = vmul.f32 %v7768_v63, %v7755_v26  ;;  %v215_v23 = vld [vmem:[%s10515_s1 + $0x210] sm:$0xff]  ;;  %v11366_v12 = vld [vmem:[#allocation273_spill] sm:$0xff] }
 0x498   :  { %v2529_v62 = vadd.f32 %v2401_v51, %v11363_v29  ;;  %v3304_v32 = vadd.f32 %v3176_v38, %v2532_v58  ;;  %v3430_v40 = vmul.f32 %v3302_v24, %v213_v46  ;;  %v2531_v8 = vadd.f32 %v2403_v53, %v11364_v1  ;;  %v11365_v29 = vld [vmem:[#allocation278_spill] sm:$0xff]  ;;  %v11367_v46 = vld [vmem:[#allocation275_spill] sm:$0xff] }
 0x499   :  { %3682 = vadd.xlane.f32.xlu0 %v3681_v52  ;;  %v3666_v19 = vsel %vm3494_vm0, %v3423_v45, 0.0  ;;  %v3425_v20 = vmul.f32 %v3297_v17, %v208_v16  ;;  %v3299_v51 = vadd.f32 %v3171_v55, %v2527_v13  ;;  %v2405_v38 = vmul.f32 %v7667_v11, %v11365_v29  ;;  %v210_v45 = vld [vmem:[%s10515_s1 + $0x1e8] sm:$0xff]  ;;  %v11368_v17 = vld [vmem:[#allocation280_spill] sm:$0xff]  ;;  %v8917_v29 = vpop.permute.xlu1 %3075 }
 0x49a   :  { %v1764_v58 = vadd.f32 %v8545_v6, %v992_v41  ;;  %v2534_v26 = vadd.f32 %v8510_v25, %v1762_v18  ;;  %v994_v24 = vmul.f32 %v7386_v49, %v7757_v4  ;;  %3667 = vadd.xlane.f32.xlu1 %v3666_v19  ;;  %v3175_v53 = vmul.f32 %v7768_v63, %v11366_v12  ;;  %v8909_v4 = vpop.permute.xlu0 %900  ;;  %v212_v55 = vld [vmem:[%s10515_s1 + $0x1f8] sm:$0xff]  ;;  %v11369_v52 = vld [vmem:[#allocation277_spill] sm:$0xff] }
 0x49b   :  { %v3177_v13 = vmul.f32 %v7768_v63, %v11367_v46  ;;  %v2407_v16 = vmul.f32 %v7667_v11, %v11368_v17  ;;  %v3301_v6 = vadd.f32 %v3173_v15, %v2529_v62  ;;  %v3180_v25 = vmul.f32 %v7768_v63, %v7792_v43  ;;  %v217_v43 = vld [vmem:[%s10515_s1 + $0x220] sm:$0xff]  ;;  %v11371_v46 = vld [vmem:[#allocation19_spill] sm:$0xff] }
 0x49c   :  { %v3306_v41 = vadd.f32 %v3178_v61, %v2534_v26  ;;  %v3687_v18 = vsel %vm3494_vm0, %v3430_v40, 0.0  ;;  %v3432_v19 = vmul.f32 %v3304_v32, %v215_v23  ;;  %v3179_v1 = vmul.f32 %v7768_v63, %v11369_v52  ;;  %v11370_v40 = vld [vmem:[#allocation18_spill] sm:$0xff] }
 0x49d   :  { %3688 = vadd.xlane.f32.xlu0 %v3687_v18  ;;  %v3672_v15 = vsel %vm3494_vm0, %v3425_v20, 0.0  ;;  %v3427_v62 = vmul.f32 %v3299_v51, %v210_v45  ;;  %v3303_v61 = vadd.f32 %v3175_v53, %v2531_v8  ;;  %v2533_v32 = vadd.f32 %v2405_v38, %v11370_v40  ;;  %v11372_v18 = vld [vmem:[#allocation282_spill] sm:$0xff]  ;;  %v11373_v51 = vld [vmem:[#allocation284_spill] sm:$0xff] }
 0x49e   :  { %v1766_v23 = vadd.f32 %v8574_v21, %v994_v24  ;;  %v2536_v26 = vadd.f32 %v8541_v54, %v1764_v58  ;;  %v996_v12 = vmul.f32 %v7386_v49, %v7794_v42  ;;  %3673 = vadd.xlane.f32.xlu1 %v3672_v15  ;;  %v2535_v17 = vadd.f32 %v2407_v16, %v11371_v46  ;;  %v214_v8 = vld [vmem:[%s10515_s1 + $0x208] sm:$0xff]  ;;  %v11374_v58 = vld [vmem:[#allocation279_spill] sm:$0xff]  ;;  %v11376_v40 = vld [vmem:[#allocation20_spill] sm:$0xff] }
 0x49f   :  { %v2409_v20 = vmul.f32 %v7667_v11, %v11372_v18  ;;  %v2411_v45 = vmul.f32 %v7667_v11, %v11373_v51  ;;  %v3429_v52 = vmul.f32 %v3301_v6, %v212_v55  ;;  %v3182_v54 = vmul.f32 %v7768_v63, %v7825_v22  ;;  %v11375_v53 = vld [vmem:[#allocation286_spill] sm:$0xff]  ;;  %v11377_v46 = vld [vmem:[#allocation21_spill] sm:$0xff]  ;;  %v8955_v18 = vpop.permute.xlu1 %3083  ;;  %v216_v51 = vld [vmem:[%s10515_s1 + $0x218] sm:$0xff] }
 0x4a0   :  { %v3308_v21 = vadd.f32 %v3180_v25, %v2536_v26  ;;  %v3693_v42 = vsel %vm3494_vm0, %v3432_v19, 0.0  ;;  %v3434_v38 = vmul.f32 %v3306_v41, %v217_v43  ;;  %v3181_v24 = vmul.f32 %v7768_v63, %v11374_v58  ;;  %v219_v25 = vld [vmem:[%s10515_s1 + $0x230] sm:$0xff]  ;;  %v8951_v19 = vpop.permute.xlu0 %910 }
 0x4a1   :  { %v2413_v16 = vmul.f32 %v7667_v11, %v11375_v53  ;;  %v998_v6 = vmul.f32 %v7386_v49, %v7827_v60  ;;  %3694 = vadd.xlane.f32.xlu0 %v3693_v42  ;;  %v3678_v55 = vsel %vm3494_vm0, %v3427_v62, 0.0  ;;  %v1768_v22 = vadd.f32 %v8605_v2, %v996_v12 }
 0x4a2   :  { %v2538_v41 = vadd.f32 %v8561_v47, %v1766_v23  ;;  %3679 = vadd.xlane.f32.xlu1 %v3678_v55  ;;  %v3431_v15 = vmul.f32 %v3303_v61, %v214_v8  ;;  %v3305_v43 = vadd.f32 %v3177_v13, %v2533_v32  ;;  %v2537_v26 = vadd.f32 %v2409_v20, %v11376_v40  ;;  %v218_v32 = vld [vmem:[%s10515_s1 + $0x228] sm:$0xff] }
 0x4a3   :  { %v2539_v60 = vadd.f32 %v2411_v45, %v11377_v46  ;;  %v3684_v62 = vsel %vm3494_vm0, %v3429_v52, 0.0  ;;  %v3307_v2 = vadd.f32 %v3179_v1, %v2535_v17  ;;  %v3184_v47 = vmul.f32 %v7768_v63, %v7855_v31  ;;  %v11378_v23 = vld [vmem:[#allocation281_spill] sm:$0xff]  ;;  %v11379_v17 = vld [vmem:[#allocation288_spill] sm:$0xff]  ;;  %v8994_v46 = vpop.permute.xlu1 %3091 }
 0x4a4   :  { %v3310_v12 = vadd.f32 %v3182_v54, %v2538_v41  ;;  %v3699_v61 = vsel %vm3494_vm0, %v3434_v38, 0.0  ;;  %v3436_v13 = vmul.f32 %v3308_v21, %v219_v25  ;;  %v3183_v20 = vmul.f32 %v7768_v63, %v11378_v23  ;;  %v221_v31 = vld [vmem:[%s10515_s1 + $0x240] sm:$0xff] }
 0x4a5   :  { %v2541_v45 = vadd.f32 %v2413_v16, %v7733_v59  ;;  %v1770_v52 = vadd.f32 %v8613_v0, %v998_v6  ;;  %v1000_v1 = vmul.f32 %v7386_v49, %v7857_v5  ;;  %3700 = vadd.xlane.f32.xlu0 %v3699_v61  ;;  %v2415_v8 = vmul.f32 %v7667_v11, %v11379_v17  ;;  %v8979_v54 = vpop.xlane.xlu0 %3499  ;;  %v11380_v0 = vld [vmem:[#allocation283_spill] sm:$0xff]  ;;  %v11381_v5 = vld [vmem:[#allocation45_spill] sm:$0xff] }
 0x4a6   :  { %v2540_v21 = vadd.f32 %v8594_v48, %v1768_v22  ;;  %3685 = vadd.xlane.f32.xlu1 %v3684_v62  ;;  %v3690_v59 = vsel %vm3494_vm0, %v3431_v15, 0.0  ;;  %v3433_v42 = vmul.f32 %v3305_v43, %v216_v51  ;;  %v3185_v38 = vmul.f32 %v7768_v63, %v11380_v0  ;;  %v220_v48 = vld [vmem:[%s10515_s1 + $0x238] sm:$0xff] }
 0x4a7   :  { %v3186_v58 = vmul.f32 %v7768_v63, %v11381_v5  ;;  %v3435_v53 = vmul.f32 %v3307_v2, %v218_v32  ;;  %v3309_v16 = vadd.f32 %v3181_v24, %v2537_v26  ;;  %v3705_v55 = vsel %vm3494_vm0, %v3436_v13, 0.0  ;;  %v11382_v43 = vld [vmem:[#allocation339_spill] sm:$0xff]  ;;  %v222_v26 = vld [vmem:[%s10515_s1 + $0x248] sm:$0xff] }
 0x4a8   :  { %v3312_v6 = vadd.f32 %v3184_v47, %v2540_v21  ;;  %v3438_v25 = vmul.f32 %v3310_v12, %v221_v31  ;;  %v3311_v22 = vadd.f32 %v3183_v20, %v2539_v60  ;;  %v1772_v41 = vadd.f32 %v8642_v34, %v1000_v1  ;;  %v223_v24 = vld [vmem:[%s10515_s1 + $0x250] sm:$0xff]  ;;  %v11383_v60 = vld [vmem:[#allocation181_spill] sm:$0xff]  ;;  %v224_v13 = vld [vmem:[%s10515_s1 + $0x258] sm:$0xff] }
 0x4a9   :  { %v2542_v15 = vadd.f32 %v8609_v37, %v1770_v52  ;;  %v1002_v40 = vmul.f32 %v7386_v49, %v11382_v43  ;;  %3706 = vadd.xlane.f32.xlu0 %v3705_v55  ;;  %v3313_v62 = vadd.f32 %v3185_v38, %v2541_v45  ;;  %v9004_v34 = vmul.f32 %v7667_v11, %v11383_v60  ;;  %v11384_v37 = vld [vmem:[#allocation182_spill] sm:$0xff]  ;;  %v9011_v47 = vpop.xlane.xlu0 %3502  ;;  %v11386_v32 = vld [vmem:[#allocation285_spill] sm:$0xff] }
 0x4aa   :  { %v9008_v51 = vmul.f32 %v7374_v30, %v11384_v37  ;;  %v11385_v2 = vld [vmem:[#allocation26_spill] sm:$0xff]  ;;  %3691 = vadd.xlane.f32.xlu1 %v3690_v59  ;;  %v3696_v61 = vsel %vm3494_vm0, %v3433_v42, 0.0  ;;  %v3187_v23 = vmul.f32 %v7768_v63, %v11386_v32  ;;  %v11387_v45 = vld [vmem:[#allocation49_spill] sm:$0xff]  ;;  %v3437_v1 = vmul.f32 %v3309_v16, %v220_v48  ;;  %v11390_v16 = vld [vmem:[#allocation287_spill] sm:$0xff] }
 0x4ab   :  { %v2543_v12 = vadd.f32 %v2415_v8, %v11385_v2  ;;  %v3314_v20 = vadd.f32 %v3186_v58, %v2542_v15  ;;  %v3188_v52 = vmul.f32 %v7768_v63, %v11387_v45  ;;  %v11388_v31 = vlaneseq  ;;  %v225_v59 = vld [vmem:[%s10515_s1 + $0x260] sm:$0xff]  ;;  %v11391_v48 = vld [vmem:[#allocation290_spill] sm:$0xff]  ;;  %v11397_v32 = vld [vmem:[#allocation291_spill] sm:$0xff] }
 0x4ac   :  { %v3711_v8 = vsel %vm3494_vm0, %v3438_v25, 0.0  ;;  %v3440_v21 = vmul.f32 %v3312_v6, %v223_v24  ;;  %v3439_v42 = vmul.f32 %v3311_v22, %v222_v26  ;;  %v1774_v0 = vadd.f32 %v8662_v14, %v1002_v40  ;;  %v11392_v6 = vld [vmem:[#allocation50_spill] sm:$0xff]  ;;  %v11393_v40 = vld [vmem:[#allocation51_spill] sm:$0xff]  ;;  %v11395_v37 = vld [vmem:[#allocation384_spill] sm:$0xff] }
 0x4ad   :  { %v9022_v17 = vand.u32 127, %v11388_v31  ;;  %v2544_v38 = vadd.f32 %v8634_v39, %v1772_v41  ;;  %3712 = vadd.xlane.f32.xlu0 %v3711_v8  ;;  %v3702_v5 = vsel %vm3494_vm0, %v3435_v53, 0.0  ;;  %v3441_v58 = vmul.f32 %v3313_v62, %v224_v13  ;;  %v9037_v43 = vpop.xlane.xlu0 %3508  ;;  %v9041_v41 = vpop.permute.xlu1 %3099  ;;  %v226_v26 = vld [vmem:[%s10515_s1 + $0x268] sm:$0xff]  ;;  %v11399_v31 = vld [vmem:[#allocation27_spill] sm:$0xff] }
 0x4ae   :  { %v3189_v55 = vmul.f32 %v7768_v63, %v11390_v16  ;;  %v2417_v25 = vmul.f32 %v7667_v11, %v11391_v48  ;;  %v1004_v15 = vmul.f32 %v7386_v49, %v11392_v6  ;;  %3697 = vadd.xlane.f32.xlu1 %v3696_v61  ;;  %v3315_v22 = vadd.f32 %v3187_v23, %v2543_v12  ;;  %v11394_v62 = vld [vmem:[#allocation289_spill] sm:$0xff]  ;;  %v227_v61 = vld [vmem:[%s10515_s1 + $0x270] sm:$0xff] }
 0x4af   :  { %11389 = vst [vmem:[#allocation348_spill] sm:$0xff] %v9022_v17  ;;  %v3316_v14 = vadd.f32 %v3188_v52, %v2544_v38  ;;  %v3190_v39 = vmul.f32 %v7768_v63, %v11393_v40  ;;  %v3442_v53 = vmul.f32 %v3314_v20, %v225_v59  ;;  %v3708_v24 = vsel %vm3494_vm0, %v3437_v1, 0.0  ;;  %v11398_v45 = vld [vmem:[#allocation82_spill] sm:$0xff]  ;;  %v11401_v38 = vld [vmem:[#allocation69_spill] sm:$0xff] }
 0x4b0   :  { %v3191_v60 = vmul.f32 %v7768_v63, %v11394_v62  ;;  %v9051_v2 = vsub.s32 %v9022_v17, %v11395_v37  ;;  %v3717_v12 = vsel %vm3494_vm0, %v3440_v21, 0.0  ;;  %v3714_v13 = vsel %vm3494_vm0, %v3439_v42, 0.0  ;;  %v11400_v21 = vld [vmem:[#allocation292_spill] sm:$0xff]  ;;  %v11506_v37 = vld [vmem:[#allocation197_spill] sm:$0xff] }
 0x4b1   :  { %v9060_v23 = vmul.f32 %v7768_v63, %v11397_v32  ;;  %v2546_v20 = vadd.f32 %v8646_v7, %v1774_v0  ;;  %v1006_v52 = vmul.f32 %v7386_v49, %v11398_v45  ;;  %3718 = vadd.xlane.f32.xlu0 %v3717_v12  ;;  %v9066_v1 = vsel %vm3494_vm0, %v3441_v58, 0.0  ;;  %v9072_v16 = vpop.xlane.xlu0 %3514  ;;  %v11402_v58 = vld [vmem:[#allocation83_spill] sm:$0xff]  ;;  %v11406_v32 = vld [vmem:[#allocation68_spill] sm:$0xff] }
 0x4b2   :  { %11396 = vst [vmem:[#allocation72_spill] sm:$0xff] %v9051_v2  ;;  %v2545_v8 = vadd.f32 %v2417_v25, %v11399_v31  ;;  %v2419_v59 = vmul.f32 %v7667_v11, %v11400_v21  ;;  %v1776_v42 = vadd.f32 %v11401_v38, %v1004_v15  ;;  %3703 = vadd.xlane.f32.xlu1 %v3702_v5  ;;  %v3723_v6 = vsel %vm3494_vm0, %v3442_v53, 0.0  ;;  %v11403_v5 = vld [vmem:[#allocation293_spill] sm:$0xff]  ;;  %v11405_v53 = vld [vmem:[#allocation387_spill] sm:$0xff] }
 0x4b3   :  { %v9074_v48 = vmul.f32 %v3315_v22, %v226_v26  ;;  %v3318_v7 = vadd.f32 %v3190_v39, %v2546_v20  ;;  %v3497_v0 = vpop.xlane.xlu1 %3496  ;;  %v3444_v40 = vmul.f32 %v3316_v14, %v227_v61  ;;  %v3192_v62 = vmul.f32 %v7768_v63, %v11402_v58  ;;  %v11404_v39 = vld [vmem:[#allocation52_spill] sm:$0xff]  ;;  %v11408_v58 = vld [vmem:[#allocation294_spill] sm:$0xff] }
 0x4b4   :  { %v4016_v25 = vrot.slane %v8979_v54, %v9051_v2  ;;  %v4012_v12 = vrot.slane %v3497_v0, %v9051_v2  ;;  %v9084_v15 = vmul.f32 %v7768_v63, %v11403_v5  ;;  %v1778_v22 = vadd.f32 %v8708_v36, %v1006_v52  ;;  %v229_v54 = vld [vmem:[%s10515_s1 + $0x280] sm:$0xff]  ;;  %v11407_v52 = vld [vmem:[#allocation54_spill] sm:$0xff] }
 0x4b5   :  { %v1008_v26 = vmul.f32 %v7386_v49, %v11404_v39  ;;  %v4020_v14 = vrot.slane %v9011_v47, %v9051_v2  ;;  %3724 = vadd.xlane.f32.xlu0 %v3723_v6  ;;  %v2547_v61 = vadd.f32 %v2419_v59, %v11405_v53  ;;  %v2548_v20 = vadd.f32 %v11406_v32, %v1776_v42  ;;  %v9097_v31 = vpop.xlane.xlu0 %3520  ;;  %v228_v59 = vld [vmem:[%s10515_s1 + $0x278] sm:$0xff] }
 0x4b6   :  { %v4522_v45 = vsel %vm4521_vm1, %v4016_v25, %v4012_v12  ;;  %3709 = vadd.xlane.f32.xlu1 %v3708_v24  ;;  %v3317_v36 = vadd.f32 %v3189_v55, %v2545_v8  ;;  %v3194_v21 = vmul.f32 %v7768_v63, %v11407_v52  ;;  %v3729_v0 = vsel %vm3494_vm0, %v3444_v40, 0.0  ;;  %v11409_v25 = vld [vmem:[#allocation71_spill] sm:$0xff] }
 0x4b7   :  { %v3506_v47 = vpop.xlane.xlu1 %3505  ;;  %v4524_v38 = vsel %vm4523_vm2, %v4020_v14, %v4522_v45  ;;  %v3320_v42 = vadd.f32 %v3192_v62, %v2548_v20  ;;  %v3446_v24 = vmul.f32 %v3318_v7, %v229_v54  ;;  %v2421_v55 = vmul.f32 %v7667_v11, %v11408_v58  ;;  %v231_v40 = vld [vmem:[%s10515_s1 + $0x290] sm:$0xff]  ;;  %v11410_v62 = vld [vmem:[#allocation53_spill] sm:$0xff] }
 0x4b8   :  { %v4024_v6 = vrot.slane %v3506_v47, %v9051_v2  ;;  %v1780_v8 = vadd.f32 %v8732_v56, %v1008_v26  ;;  %v2550_v12 = vadd.f32 %v11409_v25, %v1778_v22  ;;  %v4028_v5 = vrot.slane %v9037_v43, %v9051_v2  ;;  %v11411_v22 = vld [vmem:[#allocation56_spill] sm:$0xff] }
 0x4b9   :  { %3730 = vadd.xlane.f32.xlu0 %v3729_v0  ;;  %v1010_v39 = vmul.f32 %v7386_v49, %v11410_v62  ;;  %v9119_v14 = vpop.xlane.xlu0 %3526  ;;  %v3445_v54 = vmul.f32 %v3317_v36, %v228_v59  ;;  %v3319_v56 = vadd.f32 %v3191_v60, %v2547_v61  ;;  %v3196_v53 = vmul.f32 %v7768_v63, %v11411_v22  ;;  %v11412_v36 = vld [vmem:[#allocation28_spill] sm:$0xff]  ;;  %v11414_v0 = vld [vmem:[#allocation298_spill] sm:$0xff]  ;;  %v11418_v22 = vld [vmem:[#allocation57_spill] sm:$0xff] }
 0x4ba   :  { %v4526_v7 = vsel %vm4525_vm3, %v4024_v6, %v4524_v38  ;;  %3715 = vadd.xlane.f32.xlu1 %v3714_v13  ;;  %v3322_v26 = vadd.f32 %v3194_v21, %v2550_v12  ;;  %v3735_v45 = vsel %vm3494_vm0, %v3446_v24, 0.0  ;;  %v3448_v52 = vmul.f32 %v3320_v42, %v231_v40  ;;  %v233_v13 = vld [vmem:[%s10515_s1 + $0x2a0] sm:$0xff]  ;;  %v11415_v6 = vld [vmem:[#allocation55_spill] sm:$0xff] }
 0x4bb   :  { %v3512_v43 = vpop.xlane.xlu1 %3511  ;;  %v4528_v32 = vsel %vm4527_vm4, %v4028_v5, %v4526_v7  ;;  %v2549_v60 = vadd.f32 %v2421_v55, %v11412_v36  ;;  %v11413_v61 = vld [vmem:[#allocation296_spill] sm:$0xff]  ;;  %v2552_v47 = vadd.f32 %v8712_v9, %v1780_v8  ;;  %v4036_v38 = vrot.slane %v9072_v16, %v9051_v2  ;;  %v230_v9 = vld [vmem:[%s10515_s1 + $0x288] sm:$0xff]  ;;  %v11417_v7 = vld [vmem:[#allocation295_spill] sm:$0xff] }
 0x4bc   :  { %v4032_v20 = vrot.slane %v3512_v43, %v9051_v2  ;;  %v2423_v21 = vmul.f32 %v7667_v11, %v11413_v61  ;;  %v2425_v59 = vmul.f32 %v7667_v11, %v11414_v0  ;;  %v1782_v42 = vadd.f32 %v8761_v10, %v1010_v39  ;;  %v11416_v10 = vld [vmem:[#allocation84_spill] sm:$0xff]  ;;  %v235_v39 = vld [vmem:[%s10515_s1 + $0x2b0] sm:$0xff]  ;;  %v11420_v61 = vld [vmem:[#allocation29_spill] sm:$0xff] }
 0x4bd   :  { %3736 = vadd.xlane.f32.xlu0 %v3735_v45  ;;  %v1012_v24 = vmul.f32 %v7386_v49, %v11415_v6  ;;  %v9142_v55 = vpop.xlane.xlu0 %3532  ;;  %v3324_v16 = vadd.f32 %v3196_v53, %v2552_v47  ;;  %v3450_v25 = vmul.f32 %v3322_v26, %v233_v13  ;;  %v3198_v5 = vmul.f32 %v7768_v63, %v11416_v10  ;;  %v11419_v45 = vld [vmem:[#allocation90_spill] sm:$0xff] }
 0x4be   :  { %v4530_v58 = vsel %vm4529_vm5, %v4032_v20, %v4528_v32  ;;  %3721 = vadd.xlane.f32.xlu1 %v9066_v1  ;;  %v3741_v62 = vsel %vm3494_vm0, %v3448_v52, 0.0  ;;  %v3726_v1 = vsel %vm3494_vm0, %v9074_v48, 0.0  ;;  %v3197_v26 = vmul.f32 %v7768_v63, %v11417_v7 }
 0x4bf   :  { %v3518_v8 = vpop.xlane.xlu1 %3517  ;;  %v4532_v12 = vsel %vm4531_vm6, %v4036_v38, %v4530_v58  ;;  %v1014_v53 = vmul.f32 %v7386_v49, %v11418_v22  ;;  %v3732_v43 = vsel %vm3494_vm0, %v3445_v54, 0.0  ;;  %v3447_v32 = vmul.f32 %v3319_v56, %v230_v9  ;;  %v11421_v38 = vld [vmem:[#allocation30_spill] sm:$0xff] }
 0x4c0   :  { %v4040_v40 = vrot.slane %v3518_v8, %v9051_v2  ;;  %v1784_v20 = vadd.f32 %v8778_v35, %v1012_v24  ;;  %v2554_v52 = vadd.f32 %v11419_v45, %v1782_v42  ;;  %v3321_v13 = vadd.f32 %v9060_v23, %v2549_v60  ;;  %v232_v35 = vld [vmem:[%s10515_s1 + $0x298] sm:$0xff]  ;;  %v11422_v24 = vld [vmem:[#allocation58_spill] sm:$0xff] }
 0x4c1   :  { %3742 = vadd.xlane.f32.xlu0 %v3741_v62  ;;  %v9164_v48 = vpop.xlane.xlu0 %3538  ;;  %v2551_v47 = vadd.f32 %v2423_v21, %v11420_v61  ;;  %v2553_v0 = vadd.f32 %v2425_v59, %v11421_v38  ;;  %v3747_v54 = vsel %vm3494_vm0, %v3450_v25, 0.0  ;;  %v3452_v56 = vmul.f32 %v3324_v16, %v235_v39  ;;  %v11423_v21 = vld [vmem:[#allocation300_spill] sm:$0xff]  ;;  %v11426_v45 = vld [vmem:[#allocation31_spill] sm:$0xff] }
 0x4c2   :  { %3727 = vadd.xlane.f32.xlu1 %v3726_v1  ;;  %v9168_v36 = vsel %vm4533_vm7, %v4040_v40, %v4532_v12  ;;  %v3326_v42 = vadd.f32 %v3198_v5, %v2554_v52  ;;  %v3200_v58 = vmul.f32 %v7768_v63, %v11422_v24  ;;  %v4044_v23 = vrot.slane %v9097_v31, %v9051_v2  ;;  %v11424_v8 = vld [vmem:[#allocation340_spill] sm:$0xff] }
 0x4c3   :  { %v3524_v6 = vpop.xlane.xlu1 %3523  ;;  %v2427_v59 = vmul.f32 %v7667_v11, %v11423_v21  ;;  %v1786_v9 = vadd.f32 %v8801_v27, %v1014_v53  ;;  %v1016_v16 = vmul.f32 %v7386_v49, %v11424_v8  ;;  %v4052_v25 = vrot.slane %v9119_v14, %v9051_v2  ;;  %v237_v12 = vld [vmem:[%s10515_s1 + $0x2c0] sm:$0xff] }
 0x4c4   :  { %v4048_v60 = vrot.slane %v3524_v6, %v9051_v2  ;;  %v2556_v31 = vadd.f32 %v8774_v3, %v1784_v20  ;;  %v3738_v27 = vsel %vm3494_vm0, %v3447_v32, 0.0  ;;  %v3449_v40 = vmul.f32 %v3321_v13, %v232_v35  ;;  %v11425_v62 = vld [vmem:[#allocation60_spill] sm:$0xff]  ;;  %v11427_v13 = vld [vmem:[#allocation346_spill] sm:$0xff] }
 0x4c5   :  { %3748 = vadd.xlane.f32.xlu0 %v3747_v54  ;;  %v9193_v5 = vpop.xlane.xlu0 %3544  ;;  %v3202_v1 = vmul.f32 %v7768_v63, %v11425_v62  ;;  %v3323_v7 = vadd.f32 %v9084_v15, %v2551_v47  ;;  %v3325_v22 = vadd.f32 %v3197_v26, %v2553_v0  ;;  %v3753_v20 = vsel %vm3494_vm0, %v3452_v56, 0.0  ;;  %v239_v15 = vld [vmem:[%s10515_s1 + $0x2d0] sm:$0xff]  ;;  %v234_v26 = vld [vmem:[%s10515_s1 + $0x2a8] sm:$0xff] }
 0x4c6   :  { %v4535_v10 = vsel %vm4521_vm1, %v4048_v60, %v4044_v23  ;;  %3733 = vadd.xlane.f32.xlu1 %v3732_v43  ;;  %v3328_v53 = vadd.f32 %v3200_v58, %v2556_v31  ;;  %v3454_v43 = vmul.f32 %v3326_v42, %v237_v12  ;;  %v2555_v52 = vadd.f32 %v2427_v59, %v11426_v45  ;;  %v11428_v47 = vld [vmem:[#allocation297_spill] sm:$0xff]  ;;  %v11429_v6 = vld [vmem:[#allocation302_spill] sm:$0xff]  ;;  %v11430_v54 = vld [vmem:[#allocation59_spill] sm:$0xff] }
 0x4c7   :  { %v3530_v39 = vpop.xlane.xlu1 %3529  ;;  %v4536_v14 = vsel %vm4523_vm2, %v4052_v25, %v4535_v10  ;;  %v1788_v32 = vadd.f32 %v8813_v28, %v1016_v16  ;;  %v2558_v61 = vadd.f32 %v11427_v13, %v1786_v9  ;;  %v4060_v38 = vrot.slane %v9142_v55, %v9051_v2  ;;  %v236_v42 = vld [vmem:[%s10515_s1 + $0x2b8] sm:$0xff]  ;;  %v11431_v58 = vld [vmem:[#allocation62_spill] sm:$0xff]  ;;  %v241_v12 = vld [vmem:[%s10515_s1 + $0x2e0] sm:$0xff] }
 0x4c8   :  { %v4056_v3 = vrot.slane %v3530_v39, %v9051_v2  ;;  %v3199_v0 = vmul.f32 %v7768_v63, %v11428_v47  ;;  %v2429_v28 = vmul.f32 %v7667_v11, %v11429_v6  ;;  %v1018_v56 = vmul.f32 %v7386_v49, %v11430_v54  ;;  %v11432_v31 = vld [vmem:[#allocation347_spill] sm:$0xff]  ;;  %v11433_v39 = vld [vmem:[#allocation32_spill] sm:$0xff]  ;;  %v11438_v6 = vld [vmem:[#allocation301_spill] sm:$0xff] }
 0x4c9   :  { %3754 = vadd.xlane.f32.xlu0 %v3753_v20  ;;  %v9220_v35 = vpop.xlane.xlu0 %3550  ;;  %v3330_v24 = vadd.f32 %v3202_v1, %v2558_v61  ;;  %v3204_v23 = vmul.f32 %v7768_v63, %v11431_v58  ;;  %v3744_v59 = vsel %vm3494_vm0, %v3449_v40, 0.0  ;;  %v3759_v8 = vsel %vm3494_vm0, %v3454_v43, 0.0  ;;  %v11435_v43 = vld [vmem:[#allocation304_spill] sm:$0xff]  ;;  %v11439_v54 = vld [vmem:[#allocation63_spill] sm:$0xff]  ;;  %v11440_v58 = vld [vmem:[#allocation209_spill] sm:$0xff] }
 0x4ca   :  { %v4537_v55 = vsel %vm4525_vm3, %v4056_v3, %v4536_v14  ;;  %3739 = vadd.xlane.f32.xlu1 %v3738_v27  ;;  %v3456_v16 = vmul.f32 %v3328_v53, %v239_v15  ;;  %v3451_v25 = vmul.f32 %v3323_v7, %v234_v26  ;;  %v2560_v10 = vadd.f32 %v11432_v31, %v1788_v32  ;;  %v11434_v3 = vld [vmem:[#allocation61_spill] sm:$0xff] }
 0x4cb   :  { %v3536_v60 = vpop.xlane.xlu1 %3535  ;;  %v4538_v21 = vsel %vm4527_vm4, %v4060_v38, %v4537_v55  ;;  %v4068_v27 = vrot.slane %v9164_v48, %v9051_v2  ;;  %v3453_v62 = vmul.f32 %v3325_v22, %v236_v42  ;;  %v3327_v1 = vadd.f32 %v3199_v0, %v2555_v52  ;;  %v238_v22 = vld [vmem:[%s10515_s1 + $0x2c8] sm:$0xff]  ;;  %v11436_v52 = vld [vmem:[#allocation299_spill] sm:$0xff]  ;;  %v11437_v38 = vld [vmem:[#allocation212_spill] sm:$0xff] }
 0x4cc   :  { %v4064_v9 = vrot.slane %v3536_v60, %v9051_v2  ;;  %v2557_v40 = vadd.f32 %v2429_v28, %v11433_v39  ;;  %v1790_v14 = vadd.f32 %v8844_v50, %v1018_v56  ;;  %v1020_v53 = vmul.f32 %v7386_v49, %v11434_v3  ;;  %v243_v0 = vld [vmem:[%s10515_s1 + $0x2f0] sm:$0xff] }
 0x4cd   :  { %3760 = vadd.xlane.f32.xlu0 %v3759_v8  ;;  %v9242_v20 = vpop.xlane.xlu0 %3556  ;;  %v2431_v45 = vmul.f32 %v7667_v11, %v11435_v43  ;;  %v3332_v32 = vadd.f32 %v3204_v23, %v2560_v10  ;;  %v3458_v13 = vmul.f32 %v3330_v24, %v241_v12  ;;  %v3201_v61 = vmul.f32 %v7768_v63, %v11436_v52 }
 0x4ce   :  { %v4539_v7 = vsel %vm4529_vm5, %v4064_v9, %v4538_v21  ;;  %3745 = vadd.xlane.f32.xlu1 %v3744_v59  ;;  %v3206_v15 = vmul.f32 %v7768_v63, %v11437_v38  ;;  %v3765_v47 = vsel %vm3494_vm0, %v3456_v16, 0.0  ;;  %v3203_v28 = vmul.f32 %v7768_v63, %v11438_v6  ;;  %v11442_v9 = vld [vmem:[#allocation33_spill] sm:$0xff]  ;;  %v11448_v6 = vld [vmem:[#allocation34_spill] sm:$0xff] }
 0x4cf   :  { %v3542_v48 = vpop.xlane.xlu1 %3541  ;;  %v4540_v50 = vsel %vm4531_vm6, %v4068_v27, %v4539_v7  ;;  %v1022_v56 = vmul.f32 %v7386_v49, %v11439_v54  ;;  %v3750_v55 = vsel %vm3494_vm0, %v3451_v25, 0.0  ;;  %v3756_v42 = vsel %vm3494_vm0, %v3453_v62, 0.0  ;;  %v11443_v27 = vld [vmem:[#allocation64_spill] sm:$0xff]  ;;  %v11445_v7 = vld [vmem:[#allocation341_spill] sm:$0xff] }
 0x4d0   :  { %v4072_v26 = vrot.slane %v3542_v48, %v9051_v2  ;;  %v1792_v24 = vadd.f32 %v8875_v44, %v1020_v53  ;;  %v2562_v23 = vadd.f32 %v11440_v58, %v1790_v14  ;;  %v3455_v21 = vmul.f32 %v3327_v1, %v238_v22  ;;  %v240_v1 = vld [vmem:[%s10515_s1 + $0x2d8] sm:$0xff]  ;;  %v11444_v14 = vld [vmem:[#allocation306_spill] sm:$0xff] }
 0x4d1   :  { %3766 = vadd.xlane.f32.xlu0 %v3765_v47  ;;  %v9267_v60 = vpop.xlane.xlu0 %3562  ;;  %v2559_v8 = vadd.f32 %v2431_v45, %v11442_v9  ;;  %v3771_v12 = vsel %vm3494_vm0, %v3458_v13, 0.0  ;;  %v3460_v31 = vmul.f32 %v3332_v32, %v243_v0  ;;  %v3329_v25 = vadd.f32 %v3201_v61, %v2557_v40  ;;  %v11446_v45 = vld [vmem:[#allocation184_spill] sm:$0xff]  ;;  %v247_v58 = vld [vmem:[%s10515_s1 + $0x310] sm:$0xff] }
 0x4d2   :  { %3751 = vadd.xlane.f32.xlu1 %v3750_v55  ;;  %v9270_v59 = vsel %vm4533_vm7, %v4072_v26, %v4540_v50  ;;  %v3334_v10 = vadd.f32 %v3206_v15, %v2562_v23  ;;  %v3208_v44 = vmul.f32 %v7768_v63, %v11443_v27  ;;  %v4076_v62 = vrot.slane %v9193_v5, %v9051_v2  ;;  %v245_v5 = vld [vmem:[%s10515_s1 + $0x300] sm:$0xff]  ;;  %v11447_v50 = vld [vmem:[#allocation394_spill] sm:$0xff]  ;;  %v11450_v23 = vld [vmem:[#allocation47_spill] sm:$0xff] }
 0x4d3   :  { %11441 = vst [vmem:[#allocation73_spill] sm:$0xff] %v9270_v59  ;;  %v3548_v16 = vpop.xlane.xlu1 %3547  ;;  %v2433_v3 = vmul.f32 %v7667_v11, %v11444_v14  ;;  %v1794_v53 = vadd.f32 %v9008_v51, %v1022_v56  ;;  %v1024_v40 = vmul.f32 %v7386_v49, %v11445_v7  ;;  %v4084_v43 = vrot.slane %v9220_v35, %v9051_v2  ;;  %v11449_v56 = vld [vmem:[#allocation308_spill] sm:$0xff] }
 0x4d4   :  { %v4080_v39 = vrot.slane %v3548_v16, %v9051_v2  ;;  %v1668_v32 = vmul.f32 %v7374_v30, %v11446_v45  ;;  %v2564_v48 = vadd.f32 %v8862_v57, %v1792_v24  ;;  %v3762_v22 = vsel %vm3494_vm0, %v3455_v21, 0.0  ;;  %v11451_v21 = vld [vmem:[#allocation48_spill] sm:$0xff]  ;;  %v11457_v45 = vld [vmem:[#allocation35_spill] sm:$0xff] }
 0x4d5   :  { %3772 = vadd.xlane.f32.xlu0 %v3771_v12  ;;  %v9296_v51 = vpop.xlane.xlu0 %3568  ;;  %v3210_v35 = vmul.f32 %v7768_v63, %v11447_v50  ;;  %v3457_v38 = vmul.f32 %v3329_v25, %v240_v1  ;;  %v3331_v15 = vadd.f32 %v3203_v28, %v2559_v8  ;;  %v3777_v57 = vsel %vm3494_vm0, %v3460_v31, 0.0  ;;  %v242_v28 = vld [vmem:[%s10515_s1 + $0x2e8] sm:$0xff]  ;;  %v11452_v8 = vld [vmem:[#allocation183_spill] sm:$0xff] }
 0x4d6   :  { %v4542_v13 = vsel %vm4521_vm1, %v4080_v39, %v4076_v62  ;;  %3757 = vadd.xlane.f32.xlu1 %v3756_v42  ;;  %v3336_v26 = vadd.f32 %v3208_v44, %v2564_v48  ;;  %v3462_v0 = vmul.f32 %v3334_v10, %v245_v5  ;;  %v2561_v54 = vadd.f32 %v2433_v3, %v11448_v6  ;;  %v11453_v12 = vld [vmem:[#allocation65_spill] sm:$0xff]  ;;  %v11454_v10 = vld [vmem:[#allocation186_spill] sm:$0xff]  ;;  %v11455_v44 = vld [vmem:[#allocation303_spill] sm:$0xff] }
 0x4d7   :  { %v3554_v52 = vpop.xlane.xlu1 %3553  ;;  %v4543_v61 = vsel %vm4523_vm2, %v4084_v43, %v4542_v13  ;;  %v2435_v55 = vmul.f32 %v7667_v11, %v11449_v56  ;;  %v1796_v42 = vadd.f32 %v1668_v32, %v1024_v40  ;;  %v2566_v24 = vadd.f32 %v9004_v34, %v1794_v53  ;;  %v11456_v1 = vld [vmem:[#allocation342_spill] sm:$0xff]  ;;  %v249_v5 = vld [vmem:[%s10515_s1 + $0x320] sm:$0xff] }
 0x4d8   :  { %v4088_v47 = vrot.slane %v3554_v52, %v9051_v2  ;;  %v9316_v9 = vadd.f32 %v11451_v21, %v11450_v23  ;;  %v2440_v16 = vmul.f32 %v7667_v11, %v11452_v8  ;;  %v1026_v31 = vmul.f32 %v7386_v49, %v11453_v12  ;;  %v11458_v48 = vld [vmem:[#allocation310_spill] sm:$0xff]  ;;  %v11462_v6 = vld [vmem:[#allocation305_spill] sm:$0xff]  ;;  %v11463_v56 = vld [vmem:[#allocation312_spill] sm:$0xff] }
 0x4d9   :  { %3778 = vadd.xlane.f32.xlu0 %v3777_v57  ;;  %v9325_v25 = vpop.xlane.xlu0 %3574  ;;  %v1670_v27 = vmul.f32 %v7374_v30, %v11454_v10  ;;  %v3205_v62 = vmul.f32 %v7768_v63, %v11455_v44  ;;  %v3338_v39 = vadd.f32 %v3210_v35, %v2566_v24  ;;  %v3212_v14 = vmul.f32 %v7768_v63, %v11456_v1  ;;  %v11459_v35 = vld [vmem:[#allocation185_spill] sm:$0xff]  ;;  %v11465_v21 = vld [vmem:[#allocation190_spill] sm:$0xff] }
 0x4da   :  { %v9323_v34 = vsel %vm4525_vm3, %v4088_v47, %v4543_v61  ;;  %3763 = vadd.xlane.f32.xlu1 %v3762_v22  ;;  %v3783_v53 = vsel %vm3494_vm0, %v3462_v0, 0.0  ;;  %v3768_v7 = vsel %vm3494_vm0, %v3457_v38, 0.0  ;;  %v3464_v40 = vmul.f32 %v3336_v26, %v247_v58  ;;  %v11460_v61 = vld [vmem:[#allocation187_spill] sm:$0xff] }
 0x4db   :  { %v9333_v3 = vpop.xlane.xlu1 %3559  ;;  %v3459_v43 = vmul.f32 %v3331_v15, %v242_v28  ;;  %v2563_v32 = vadd.f32 %v2435_v55, %v11457_v45  ;;  %v2437_v13 = vmul.f32 %v7667_v11, %v11458_v48  ;;  %v2568_v22 = vadd.f32 %v2440_v16, %v1796_v42  ;;  %v11461_v15 = vld [vmem:[#allocation86_spill] sm:$0xff]  ;;  %v244_v0 = vld [vmem:[%s10515_s1 + $0x2f8] sm:$0xff]  ;;  %v11469_v45 = vld [vmem:[#allocation337_spill] sm:$0xff] }
 0x4dc   :  { %v3333_v50 = vadd.f32 %v3205_v62, %v2561_v54  ;;  %v2442_v52 = vmul.f32 %v7667_v11, %v11459_v35  ;;  %v2444_v38 = vmul.f32 %v7667_v11, %v11460_v61  ;;  %v1798_v26 = vadd.f32 %v1670_v27, %v1026_v31  ;;  %v11464_v28 = vld [vmem:[#allocation188_spill] sm:$0xff]  ;;  %v11466_v16 = vld [vmem:[#allocation343_spill] sm:$0xff] }
 0x4dd   :  { %3784 = vadd.xlane.f32.xlu0 %v3783_v53  ;;  %v1028_v47 = vmul.f32 %v7386_v49, %v11461_v15  ;;  %v9349_v57 = vpop.xlane.xlu0 %3580  ;;  %v3207_v54 = vmul.f32 %v7768_v63, %v11462_v6  ;;  %v2439_v55 = vmul.f32 %v7667_v11, %v11463_v56  ;;  %v3340_v42 = vadd.f32 %v3212_v14, %v2568_v22  ;;  %v251_v10 = vld [vmem:[%s10515_s1 + $0x330] sm:$0xff]  ;;  %v11467_v27 = vld [vmem:[#allocation36_spill] sm:$0xff]  ;;  %v11471_v22 = vld [vmem:[#allocation309_spill] sm:$0xff] }
 0x4de   :  { %3769 = vadd.xlane.f32.xlu1 %v3768_v7  ;;  %v3466_v58 = vmul.f32 %v3338_v39, %v249_v5  ;;  %v1672_v23 = vmul.f32 %v7374_v30, %v11464_v28  ;;  %v1674_v8 = vmul.f32 %v7374_v30, %v11465_v21  ;;  %v3214_v12 = vmul.f32 %v7768_v63, %v11466_v16  ;;  %v11468_v14 = vld [vmem:[#allocation307_spill] sm:$0xff]  ;;  %v11475_v16 = vld [vmem:[#allocation66_spill] sm:$0xff] }
 0x4df   :  { %v9358_v24 = vpop.xlane.xlu1 %3565  ;;  %v3789_v31 = vsel %vm3494_vm0, %v3464_v40, 0.0  ;;  %v2565_v44 = vadd.f32 %v2437_v13, %v11467_v27  ;;  %v3774_v62 = vsel %vm3494_vm0, %v3459_v43, 0.0  ;;  %v3461_v39 = vmul.f32 %v3333_v50, %v244_v0  ;;  %v246_v13 = vld [vmem:[%s10515_s1 + $0x308] sm:$0xff] }
 0x4e0   :  { %v3335_v1 = vadd.f32 %v3207_v54, %v2563_v32  ;;  %v3209_v53 = vmul.f32 %v7768_v63, %v11468_v14  ;;  %v1800_v7 = vadd.f32 %v1672_v23, %v1028_v47  ;;  %v2570_v5 = vadd.f32 %v2442_v52, %v1798_v26  ;;  %v11472_v50 = vld [vmem:[#allocation37_spill] sm:$0xff]  ;;  %v11473_v26 = vld [vmem:[#allocation67_spill] sm:$0xff]  ;;  %v11474_v54 = vld [vmem:[#allocation314_spill] sm:$0xff] }
 0x4e1   :  { %3790 = vadd.xlane.f32.xlu0 %v3789_v31  ;;  %v1030_v48 = vmul.f32 %v7386_v49, %v11469_v45  ;;  %v9376_v40 = vpop.xlane.xlu0 %3586  ;;  %v3211_v43 = vmul.f32 %v7768_v63, %v11471_v22  ;;  %v2567_v32 = vadd.f32 %v2439_v55, %v11472_v50  ;;  %v3795_v61 = vsel %vm3494_vm0, %v3466_v58, 0.0  ;;  %v11476_v27 = vld [vmem:[#allocation74_spill] sm:$0xff] }
 0x4e2   :  { %3775 = vadd.xlane.f32.xlu1 %v3774_v62  ;;  %11470 = vst [vmem:[#allocation91_spill] sm:$0xff] %v9376_v40  ;;  %v3468_v15 = vmul.f32 %v3340_v42, %v251_v10  ;;  %v3342_v52 = vadd.f32 %v3214_v12, %v2570_v5  ;;  %v3216_v47 = vmul.f32 %v7768_v63, %v11473_v26  ;;  %v3780_v28 = vsel %vm3494_vm0, %v3461_v39, 0.0  ;;  %v253_v42 = vld [vmem:[%s10515_s1 + $0x340] sm:$0xff]  ;;  %v248_v10 = vld [vmem:[%s10515_s1 + $0x318] sm:$0xff]  ;;  %v11480_v22 = vld [vmem:[#allocation38_spill] sm:$0xff] }
 0x4e3   :  { %v3572_v35 = vpop.xlane.xlu1 %3571  ;;  %v4108_v0 = vrot.slane %v9296_v51, %v9051_v2  ;;  %v2441_v56 = vmul.f32 %v7667_v11, %v11474_v54  ;;  %v3463_v55 = vmul.f32 %v3335_v1, %v246_v13  ;;  %v3337_v58 = vadd.f32 %v3209_v53, %v2565_v44  ;;  %v11477_v44 = vld [vmem:[#allocation189_spill] sm:$0xff] }
 0x4e4   :  { %v4112_v6 = vrot.slane %v3572_v35, %v9051_v2  ;;  %v1802_v23 = vadd.f32 %v1674_v8, %v1030_v48  ;;  %v2572_v21 = vadd.f32 %v2444_v38, %v1800_v7  ;;  %v1032_v12 = vmul.f32 %v7386_v49, %v11475_v16  ;;  %v11478_v8 = vld [vmem:[#allocation192_spill] sm:$0xff]  ;;  %v250_v13 = vld [vmem:[%s10515_s1 + $0x328] sm:$0xff] }
 0x4e5   :  { %3796 = vadd.xlane.f32.xlu0 %v3795_v61  ;;  %v9401_v31 = vpop.xlane.xlu0 %3592  ;;  %v9408_v62 = vmul.f32 %v7386_v49, %v11476_v27  ;;  %v2446_v38 = vmul.f32 %v7667_v11, %v11477_v44  ;;  %v1676_v39 = vmul.f32 %v7374_v30, %v11478_v8  ;;  %v3339_v14 = vadd.f32 %v3211_v43, %v2567_v32  ;;  %v11479_v7 = vld [vmem:[#allocation88_spill] sm:$0xff]  ;;  %v255_v32 = vld [vmem:[%s10515_s1 + $0x350] sm:$0xff] }
 0x4e6   :  { %v9399_v51 = vsel %vm4521_vm1, %v4112_v6, %v4108_v0  ;;  %3781 = vadd.xlane.f32.xlu1 %v3780_v28  ;;  %v3344_v53 = vadd.f32 %v3216_v47, %v2572_v21  ;;  %v3218_v5 = vmul.f32 %v7768_v63, %v11479_v7  ;;  %v3801_v45 = vsel %vm3494_vm0, %v3468_v15, 0.0  ;;  %v11481_v35 = vld [vmem:[#allocation316_spill] sm:$0xff]  ;;  %v11482_v47 = vld [vmem:[#allocation75_spill] sm:$0xff]  ;;  %v11483_v6 = vld [vmem:[#allocation85_spill] sm:$0xff] }
 0x4e7   :  { %v9414_v1 = vpop.xlane.xlu1 %3577  ;;  %v3470_v48 = vmul.f32 %v3342_v52, %v253_v42  ;;  %v2569_v50 = vadd.f32 %v2441_v56, %v11480_v22  ;;  %v2443_v61 = vmul.f32 %v7667_v11, %v11481_v35  ;;  %v3786_v26 = vsel %vm3494_vm0, %v3463_v55, 0.0  ;;  %v11484_v28 = vld [vmem:[#allocation191_spill] sm:$0xff]  ;;  %v11485_v42 = vld [vmem:[#allocation194_spill] sm:$0xff] }
 0x4e8   :  { %v3465_v43 = vmul.f32 %v3337_v58, %v248_v10  ;;  %v9431_v15 = vmul.f32 %v7374_v30, %v11482_v47  ;;  %v1804_v52 = vadd.f32 %v1676_v39, %v1032_v12  ;;  %v2574_v0 = vadd.f32 %v2446_v38, %v1802_v23  ;;  %v11486_v21 = vld [vmem:[#allocation311_spill] sm:$0xff]  ;;  %v11487_v23 = vld [vmem:[#allocation70_spill] sm:$0xff] }
 0x4e9   :  { %3802 = vadd.xlane.f32.xlu0 %v3801_v45  ;;  %v1034_v54 = vmul.f32 %v7386_v49, %v11483_v6  ;;  %v9435_v56 = vpop.xlane.xlu0 %3598  ;;  %v2448_v55 = vmul.f32 %v7667_v11, %v11484_v28  ;;  %v1678_v58 = vmul.f32 %v7374_v30, %v11485_v42  ;;  %v3213_v16 = vmul.f32 %v7768_v63, %v11486_v21  ;;  %v11488_v39 = vld [vmem:[#allocation39_spill] sm:$0xff]  ;;  %v11489_v45 = vld [vmem:[#allocation318_spill] sm:$0xff]  ;;  %v11494_v42 = vld [vmem:[#allocation313_spill] sm:$0xff] }
 0x4ea   :  { %3787 = vadd.xlane.f32.xlu1 %v3786_v26  ;;  %v3467_v27 = vmul.f32 %v3339_v14, %v250_v13  ;;  %v3346_v12 = vadd.f32 %v3218_v5, %v2574_v0  ;;  %v3220_v44 = vmul.f32 %v7768_v63, %v11487_v23  ;;  %v3807_v38 = vsel %vm3494_vm0, %v3470_v48, 0.0  ;;  %v257_v26 = vld [vmem:[%s10515_s1 + $0x360] sm:$0xff]  ;;  %v11495_v21 = vld [vmem:[#allocation87_spill] sm:$0xff] }
 0x4eb   :  { %v9443_v10 = vpop.xlane.xlu1 %3583  ;;  %v3472_v8 = vmul.f32 %v3344_v53, %v255_v32  ;;  %v2571_v7 = vadd.f32 %v2443_v61, %v11488_v39  ;;  %v2445_v22 = vmul.f32 %v7667_v11, %v11489_v45  ;;  %v3792_v35 = vsel %vm3494_vm0, %v3465_v43, 0.0  ;;  %v11490_v5 = vld [vmem:[#allocation76_spill] sm:$0xff]  ;;  %v11492_v0 = vld [vmem:[#allocation193_spill] sm:$0xff] }
 0x4ec   :  { %v3341_v14 = vadd.f32 %v3213_v16, %v2569_v50  ;;  %v9457_v13 = vmul.f32 %v7386_v49, %v11490_v5  ;;  %v1806_v47 = vadd.f32 %v1678_v58, %v1034_v54  ;;  %v2576_v48 = vadd.f32 %v2448_v55, %v1804_v52  ;;  %v11491_v53 = vld [vmem:[#allocation344_spill] sm:$0xff] }
 0x4ed   :  { %3808 = vadd.xlane.f32.xlu0 %v3807_v38  ;;  %v1036_v61 = vmul.f32 %v7386_v49, %v11491_v53  ;;  %v9461_v32 = vpop.xlane.xlu0 %3604  ;;  %v252_v43 = vld [vmem:[%s10515_s1 + $0x338] sm:$0xff]  ;;  %v2450_v6 = vmul.f32 %v7667_v11, %v11492_v0  ;;  %v3215_v54 = vmul.f32 %v7768_v63, %v11494_v42  ;;  %v3798_v55 = vsel %vm3494_vm0, %v3467_v27, 0.0  ;;  %v259_v0 = vld [vmem:[%s10515_s1 + $0x370] sm:$0xff]  ;;  %v11498_v27 = vld [vmem:[#allocation77_spill] sm:$0xff] }
 0x4ee   :  { %3793 = vadd.xlane.f32.xlu1 %v3792_v35  ;;  %v11493_v50 = vld [vmem:[#allocation196_spill] sm:$0xff]  ;;  %v3348_v58 = vadd.f32 %v3220_v44, %v2576_v48  ;;  %v3222_v16 = vmul.f32 %v7768_v63, %v11495_v21  ;;  %v3813_v23 = vsel %vm3494_vm0, %v3472_v8, 0.0  ;;  %v3474_v38 = vmul.f32 %v3346_v12, %v257_v26  ;;  %v11499_v21 = vld [vmem:[#allocation345_spill] sm:$0xff]  ;;  %v11500_v26 = vld [vmem:[#allocation195_spill] sm:$0xff] }
 0x4ef   :  { %v1680_v28 = vmul.f32 %v7374_v30, %v11493_v50  ;;  %v9472_v52 = vpop.xlane.xlu1 %3589  ;;  %v11496_v39 = vld [vmem:[#allocation40_spill] sm:$0xff]  ;;  %v3469_v53 = vmul.f32 %v3341_v14, %v252_v43  ;;  %v3343_v50 = vadd.f32 %v3215_v54, %v2571_v7  ;;  %v1689_v44 = vmul.f32 %v7374_v30, %v11498_v27  ;;  %v11501_v43 = vld [vmem:[#allocation198_spill] sm:$0xff]  ;;  %v11502_v54 = vld [vmem:[#allocation315_spill] sm:$0xff] }
 0x4f0   :  { %v2573_v45 = vadd.f32 %v2445_v22, %v11496_v39  ;;  %v11497_v35 = vld [vmem:[#allocation320_spill] sm:$0xff]  ;;  %v2578_v42 = vadd.f32 %v2450_v6, %v1806_v47  ;;  %v1038_v12 = vmul.f32 %v7386_v49, %v11499_v21  ;;  %v254_v22 = vld [vmem:[%s10515_s1 + $0x348] sm:$0xff]  ;;  %v2452_v14 = vmul.f32 %v7667_v11, %v11500_v26 }
 0x4f1   :  { %v2447_v5 = vmul.f32 %v7667_v11, %v11497_v35  ;;  %3814 = vadd.xlane.f32.xlu0 %v3813_v23  ;;  %v1808_v48 = vadd.f32 %v1680_v28, %v1036_v61  ;;  %v9488_v8 = vpop.xlane.xlu0 %3610  ;;  %v1682_v7 = vmul.f32 %v7374_v30, %v11501_v43  ;;  %v3217_v61 = vmul.f32 %v7768_v63, %v11502_v54  ;;  %v11503_v47 = vld [vmem:[#allocation322_spill] sm:$0xff]  ;;  %v11505_v21 = vld [vmem:[#allocation41_spill] sm:$0xff] }
 0x4f2   :  { %3799 = vadd.xlane.f32.xlu1 %v3798_v55  ;;  %v2449_v6 = vmul.f32 %v7667_v11, %v11503_v47  ;;  %v3350_v55 = vadd.f32 %v3222_v16, %v2578_v42  ;;  %v11504_v23 = vld [vmem:[#allocation214_spill] sm:$0xff]  ;;  %v3819_v35 = vsel %vm3494_vm0, %v3474_v38, 0.0  ;;  %v3476_v27 = vmul.f32 %v3348_v58, %v259_v0  ;;  %v261_v54 = vld [vmem:[%s10515_s1 + $0x380] sm:$0xff] }
 0x4f3   :  { %v9501_v28 = vpop.xlane.xlu1 %3595  ;;  %v3224_v39 = vmul.f32 %v7768_v63, %v11504_v23  ;;  %v2575_v26 = vadd.f32 %v2447_v5, %v11505_v21  ;;  %v3804_v43 = vsel %vm3494_vm0, %v3469_v53, 0.0  ;;  %v3471_v17 = vmul.f32 %v3343_v50, %v254_v22  ;;  %v11507_v23 = vld [vmem:[#allocation210_spill] sm:$0xff]  ;;  %v256_v5 = vld [vmem:[%s10515_s1 + $0x358] sm:$0xff]  ;;  %v11509_v50 = vld [vmem:[#allocation317_spill] sm:$0xff] }
 0x4f4   :  { %v3345_v47 = vadd.f32 %v3217_v61, %v2573_v45  ;;  %v2454_v16 = vmul.f32 %v7667_v11, %v11506_v37  ;;  %v1810_v42 = vadd.f32 %v1682_v7, %v1038_v12  ;;  %v2580_v59 = vadd.f32 %v2452_v14, %v1808_v48  ;;  %v11508_v53 = vld [vmem:[#allocation200_spill] sm:$0xff]  ;;  %v11510_v22 = vld [vmem:[#allocation319_spill] sm:$0xff]  ;;  %v11511_v48 = vld [vmem:[#allocation42_spill] sm:$0xff] }
 0x4f5   :  { %3820 = vadd.xlane.f32.xlu0 %v3819_v35  ;;  %v1040_v38 = vmul.f32 %v7386_v49, %v11507_v23  ;;  %v9515_v58 = vpop.xlane.xlu0 %3616  ;;  %v1684_v0 = vmul.f32 %v7374_v30, %v11508_v53  ;;  %v3219_v45 = vmul.f32 %v7768_v63, %v11509_v50  ;;  %v3221_v37 = vmul.f32 %v7768_v63, %v11510_v22  ;;  %v11512_v61 = vld [vmem:[#allocation92_spill] sm:$0xff] }
 0x4f6   :  { %3805 = vadd.xlane.f32.xlu1 %v3804_v43  ;;  %v2577_v12 = vadd.f32 %v2449_v6, %v11511_v48  ;;  %v3352_v7 = vadd.f32 %v3224_v39, %v2580_v59  ;;  %v3226_v35 = vmul.f32 %v7768_v63, %v11512_v61  ;;  %v3825_v21 = vsel %vm3494_vm0, %v3476_v27, 0.0  ;;  %v11513_v23 = vld [vmem:[#allocation324_spill] sm:$0xff]  ;;  %v263_v6 = vld [vmem:[%s10515_s1 + $0x390] sm:$0xff]  ;;  %v11514_v27 = vld [vmem:[#allocation89_spill] sm:$0xff] }
 0x4f7   :  { %v9527_v14 = vpop.xlane.xlu1 %3601  ;;  %v3478_v43 = vmul.f32 %v3350_v55, %v261_v54  ;;  %v2451_v53 = vmul.f32 %v7667_v11, %v11513_v23  ;;  %v3810_v50 = vsel %vm3494_vm0, %v3471_v17, 0.0  ;;  %v3473_v40 = vmul.f32 %v3345_v47, %v256_v5  ;;  %v258_v17 = vld [vmem:[%s10515_s1 + $0x368] sm:$0xff] }
 0x4f8   :  { %v3347_v22 = vadd.f32 %v3219_v45, %v2575_v26  ;;  %v9540_v59 = vadd.f32 %v9431_v15, %v9408_v62  ;;  %v1812_v39 = vadd.f32 %v1684_v0, %v1040_v38  ;;  %v2582_v48 = vadd.f32 %v2454_v16, %v1810_v42  ;;  %v11515_v26 = vld [vmem:[#allocation199_spill] sm:$0xff]  ;;  %v11516_v62 = vld [vmem:[#allocation202_spill] sm:$0xff] }
 0x4f9   :  { %3826 = vadd.xlane.f32.xlu0 %v3825_v21  ;;  %v1042_v55 = vmul.f32 %v7386_v49, %v11514_v27  ;;  %v9544_v54 = vpop.xlane.xlu0 %3622  ;;  %v9550_v47 = vadd.f32 %v1689_v44, %v9457_v13  ;;  %v2456_v5 = vmul.f32 %v7667_v11, %v11515_v26  ;;  %v1686_v15 = vmul.f32 %v7374_v30, %v11516_v62  ;;  %v260_v13 = vld [vmem:[%s10515_s1 + $0x378] sm:$0xff]  ;;  %v11518_v23 = vld [vmem:[#allocation326_spill] sm:$0xff] }
 0x4fa   :  { %3811 = vadd.xlane.f32.xlu1 %v3810_v50  ;;  %v3349_v42 = vadd.f32 %v3221_v37, %v2577_v12  ;;  %v3354_v38 = vadd.f32 %v3226_v35, %v2582_v48  ;;  %v3228_v0 = vmul.f32 %v7768_v63, %v8882_v33  ;;  %v3831_v45 = vsel %vm3494_vm0, %v3478_v43, 0.0  ;;  %v11517_v44 = vld [vmem:[#allocation43_spill] sm:$0xff]  ;;  %v265_v33 = vld [vmem:[%s10515_s1 + $0x3a0] sm:$0xff] }
 0x4fb   :  { %v9556_v16 = vpop.xlane.xlu1 %3607  ;;  %v3480_v61 = vmul.f32 %v3352_v7, %v263_v6  ;;  %v2579_v21 = vadd.f32 %v2451_v53, %v11517_v44  ;;  %v2453_v50 = vmul.f32 %v7667_v11, %v11518_v23  ;;  %v3816_v27 = vsel %vm3494_vm0, %v3473_v40, 0.0  ;;  %v11519_v12 = vld [vmem:[#allocation201_spill] sm:$0xff]  ;;  %v11520_v6 = vld [vmem:[#allocation216_spill] sm:$0xff]  ;;  %v11521_v26 = vld [vmem:[#allocation203_spill] sm:$0xff] }
 0x4fc   :  { %v3475_v37 = vmul.f32 %v3347_v22, %v258_v17  ;;  %v2458_v7 = vmul.f32 %v7667_v11, %v11519_v12  ;;  %v1814_v35 = vadd.f32 %v1686_v15, %v1042_v55  ;;  %v2584_v43 = vadd.f32 %v2456_v5, %v1812_v39  ;;  %v11522_v40 = vld [vmem:[#allocation204_spill] sm:$0xff]  ;;  %v11523_v17 = vld [vmem:[#allocation321_spill] sm:$0xff] }
 0x4fd   :  { %3832 = vadd.xlane.f32.xlu0 %v3831_v45  ;;  %v1044_v48 = vmul.f32 %v7386_v49, %v11520_v6  ;;  %v9575_v53 = vpop.xlane.xlu0 %3628  ;;  %v2460_v62 = vmul.f32 %v7667_v11, %v11521_v26  ;;  %v1688_v22 = vmul.f32 %v7374_v30, %v11522_v40  ;;  %v3223_v45 = vmul.f32 %v7768_v63, %v11523_v17  ;;  %v11525_v6 = vld [vmem:[#allocation328_spill] sm:$0xff]  ;;  %v267_v17 = vld [vmem:[%s10515_s1 + $0x3b0] sm:$0xff] }
 0x4fe   :  { %3817 = vadd.xlane.f32.xlu1 %v3816_v27  ;;  %v3477_v23 = vmul.f32 %v3349_v42, %v260_v13  ;;  %v3356_v55 = vadd.f32 %v3228_v0, %v2584_v43  ;;  %v3230_v39 = vmul.f32 %v7768_v63, %v8917_v29  ;;  %v3837_v5 = vsel %vm3494_vm0, %v3480_v61, 0.0  ;;  %v11524_v27 = vld [vmem:[#allocation44_spill] sm:$0xff]  ;;  %v11526_v0 = vld [vmem:[#allocation206_spill] sm:$0xff] }
 0x4ff   :  { %v9583_v44 = vpop.xlane.xlu1 %3613  ;;  %v3482_v15 = vmul.f32 %v3354_v38, %v265_v33  ;;  %v2581_v12 = vadd.f32 %v2453_v50, %v11524_v27  ;;  %v2455_v26 = vmul.f32 %v7667_v11, %v11525_v6  ;;  %v3822_v40 = vsel %vm3494_vm0, %v3475_v37, 0.0  ;;  %v262_v50 = vld [vmem:[%s10515_s1 + $0x388] sm:$0xff]  ;;  %v11528_v37 = vld [vmem:[#allocation323_spill] sm:$0xff] }
 0x500   :  { %v3351_v42 = vadd.f32 %v3223_v45, %v2579_v21  ;;  %v1690_v13 = vmul.f32 %v7374_v30, %v11526_v0  ;;  %v1816_v29 = vadd.f32 %v1688_v22, %v1044_v48  ;;  %v2586_v43 = vadd.f32 %v2458_v7, %v1814_v35  ;;  %v11530_v45 = vld [vmem:[#allocation332_spill] sm:$0xff] }
 0x501   :  { %3838 = vadd.xlane.f32.xlu0 %v3837_v5  ;;  %v1046_v38 = vmul.f32 %v7386_v49, %v8909_v4  ;;  %v9599_v61 = vpop.xlane.xlu0 %3634  ;;  %v3225_v33 = vmul.f32 %v7768_v63, %v11528_v37  ;;  %v11529_v5 = vld [vmem:[#allocation330_spill] sm:$0xff]  ;;  %v2459_v48 = vmul.f32 %v7667_v11, %v11530_v45  ;;  %v3828_v4 = vsel %vm3494_vm0, %v3477_v23, 0.0  ;;  %v269_v45 = vld [vmem:[%s10515_s1 + $0x3c0] sm:$0xff] }
 0x502   :  { %3823 = vadd.xlane.f32.xlu1 %v3822_v40  ;;  %11527 = vst [vmem:[#allocation349_spill] sm:$0xff] %v9599_v61  ;;  %v2457_v21 = vmul.f32 %v7667_v11, %v11529_v5  ;;  %v3358_v35 = vadd.f32 %v3230_v39, %v2586_v43  ;;  %v3232_v22 = vmul.f32 %v7768_v63, %v8955_v18  ;;  %v3843_v27 = vsel %vm3494_vm0, %v3482_v15, 0.0  ;;  %v11531_v40 = vld [vmem:[#allocation46_spill] sm:$0xff]  ;;  %v11532_v23 = vld [vmem:[#allocation205_spill] sm:$0xff]  ;;  %v11533_v43 = vld [vmem:[#allocation208_spill] sm:$0xff] }
 0x503   :  { %v9610_v7 = vpop.xlane.xlu1 %3619  ;;  %v3484_v6 = vmul.f32 %v3356_v55, %v267_v17  ;;  %v2583_v0 = vadd.f32 %v2455_v26, %v11531_v40  ;;  %v1048_v37 = vmul.f32 %v7386_v49, %v8951_v19  ;;  %v3479_v5 = vmul.f32 %v3351_v42, %v262_v50  ;;  %v264_v19 = vld [vmem:[%s10515_s1 + $0x398] sm:$0xff]  ;;  %v11534_v17 = vld [vmem:[#allocation325_spill] sm:$0xff] }
 0x504   :  { %v3353_v61 = vadd.f32 %v3225_v33, %v2581_v12  ;;  %v2462_v39 = vmul.f32 %v7667_v11, %v11532_v23  ;;  %v1692_v18 = vmul.f32 %v7374_v30, %v11533_v43  ;;  %v1818_v15 = vadd.f32 %v1690_v13, %v1046_v38  ;;  %v11535_v50 = vld [vmem:[#allocation327_spill] sm:$0xff] }
 0x505   :  { %3844 = vadd.xlane.f32.xlu0 %v3843_v27  ;;  %v2588_v55 = vadd.f32 %v2460_v62, %v1816_v29  ;;  %v3227_v42 = vmul.f32 %v7768_v63, %v11534_v17  ;;  %v3229_v12 = vmul.f32 %v7768_v63, %v11535_v50  ;;  %v2585_v33 = vadd.f32 %v2457_v21, %v9316_v9  ;;  %v271_v9 = vld [vmem:[%s10515_s1 + $0x3d0] sm:$0xff] }
 0x506   :  { %3829 = vadd.xlane.f32.xlu1 %v3828_v4  ;;  %v9626_v26 = vpop.xlane.xlu0 %3640  ;;  %v2587_v27 = vadd.f32 %v2459_v48, %v9540_v59  ;;  %v3234_v13 = vmul.f32 %v7768_v63, %v8994_v46  ;;  %v3849_v29 = vsel %vm3494_vm0, %v3484_v6, 0.0  ;;  %v3486_v38 = vmul.f32 %v3358_v35, %v269_v45  ;;  %v11536_v59 = vld [vmem:[#allocation78_spill] sm:$0xff]  ;;  %v11540_v45 = vld [vmem:[#allocation207_spill] sm:$0xff] }
 0x507   :  { %v9637_v40 = vpop.xlane.xlu1 %3625  ;;  %v3360_v62 = vadd.f32 %v3232_v22, %v2588_v55  ;;  %v1820_v4 = vadd.f32 %v1692_v18, %v1048_v37  ;;  %v3834_v23 = vsel %vm3494_vm0, %v3479_v5, 0.0  ;;  %v3481_v43 = vmul.f32 %v3353_v61, %v264_v19  ;;  %v11537_v22 = vld [vmem:[#allocation329_spill] sm:$0xff]  ;;  %v11538_v46 = vld [vmem:[#allocation334_spill] sm:$0xff]  ;;  %v11539_v5 = vld [vmem:[#allocation79_spill] sm:$0xff] }
 0x508   :  { %v3355_v21 = vadd.f32 %v3227_v42, %v2583_v0  ;;  %v1047_v48 = vmul.f32 %v7386_v49, %v11536_v59  ;;  %v3231_v55 = vmul.f32 %v7768_v63, %v11537_v22  ;;  %v2461_v6 = vmul.f32 %v7667_v11, %v11538_v46  ;;  %v266_v61 = vld [vmem:[%s10515_s1 + $0x3a8] sm:$0xff]  ;;  %v273_v46 = vld [vmem:[%s10515_s1 + $0x3e0] sm:$0xff] }
 0x509   :  { %3850 = vadd.xlane.f32.xlu0 %v3849_v29  ;;  %v2590_v35 = vadd.f32 %v2462_v39, %v1818_v15  ;;  %v1691_v0 = vmul.f32 %v7374_v30, %v11539_v5  ;;  %v2464_v18 = vmul.f32 %v7667_v11, %v11540_v45  ;;  %v3236_v19 = vmul.f32 %v7768_v63, %v9041_v41  ;;  %v268_v41 = vld [vmem:[%s10515_s1 + $0x3b8] sm:$0xff] }
 0x50a   :  { %3835 = vadd.xlane.f32.xlu1 %v3834_v23  ;;  %v9652_v37 = vpop.xlane.xlu0 %3646  ;;  %v3357_v42 = vadd.f32 %v3229_v12, %v2585_v33  ;;  %v3855_v15 = vsel %vm3494_vm0, %v3486_v38, 0.0  ;;  %v3488_v50 = vmul.f32 %v3360_v62, %v271_v9  ;;  %v3359_v29 = vadd.f32 %v3231_v55, %v2587_v27  ;;  %v270_v12 = vld [vmem:[%s10515_s1 + $0x3c8] sm:$0xff]  ;;  %v11541_v33 = vld [vmem:[#allocation80_spill] sm:$0xff]  ;;  %v11544_v55 = vld [vmem:[#allocation331_spill] sm:$0xff] }
 0x50b   :  { %v9663_v17 = vpop.xlane.xlu1 %3631  ;;  %v3362_v39 = vadd.f32 %v3234_v13, %v2590_v35  ;;  %v2592_v23 = vadd.f32 %v2464_v18, %v1820_v4  ;;  %v3840_v59 = vsel %vm3494_vm0, %v3481_v43, 0.0  ;;  %v3483_v22 = vmul.f32 %v3355_v21, %v266_v61  ;;  %v11542_v62 = vld [vmem:[#allocation81_spill] sm:$0xff]  ;;  %v11543_v4 = vld [vmem:[#allocation336_spill] sm:$0xff] }
 0x50c   :  { %v1049_v27 = vmul.f32 %v7386_v49, %v11541_v33  ;;  %v1693_v13 = vmul.f32 %v7374_v30, %v11542_v62  ;;  %v2589_v38 = vadd.f32 %v2461_v6, %v9550_v47  ;;  %v2463_v43 = vmul.f32 %v7667_v11, %v11543_v4  ;;  %v275_v30 = vld [vmem:[%s10515_s1 + $0x3f0] sm:$0xff] }
 0x50d   :  { %3856 = vadd.xlane.f32.xlu0 %v3855_v15  ;;  %v1819_v21 = vadd.f32 %v1691_v0, %v1047_v48  ;;  %v3233_v35 = vmul.f32 %v7768_v63, %v11544_v55  ;;  %v3364_v61 = vadd.f32 %v3236_v19, %v2592_v23  ;;  %v3861_v49 = vsel %vm3494_vm0, %v3488_v50, 0.0  ;;  %v11545_v19 = vld [vmem:[#allocation338_spill] sm:$0xff] }
 0x50e   :  { %3841 = vadd.xlane.f32.xlu1 %v3840_v59  ;;  %v9683_v9 = vpop.xlane.xlu0 %3652  ;;  %v3490_v45 = vmul.f32 %v3362_v39, %v273_v46  ;;  %v3485_v18 = vmul.f32 %v3357_v42, %v268_v41  ;;  %v3487_v47 = vmul.f32 %v3359_v29, %v270_v12  ;;  %v4144_v6 = vrot.slane %v9501_v28, %v9051_v2  ;;  %v11546_v39 = vld [vmem:[#allocation333_spill] sm:$0xff]  ;;  %v11547_v46 = vld [vmem:[#allocation335_spill] sm:$0xff] }
 0x50f   :  { %v9687_v5 = vpop.xlane.xlu1 %3637  ;;  %v3846_v48 = vsel %vm3494_vm0, %v3483_v22, 0.0  ;;  %v1821_v0 = vadd.f32 %v1693_v13, %v1049_v27  ;;  %v2591_v15 = vadd.f32 %v2463_v43, %v1819_v21  ;;  %v2465_v23 = vmul.f32 %v7667_v11, %v11545_v19  ;;  %v272_v12 = vld [vmem:[%s10515_s1 + $0x3d8] sm:$0xff] }
 0x510   :  { %v3361_v42 = vadd.f32 %v3233_v35, %v2589_v38  ;;  %v3235_v59 = vmul.f32 %v7768_v63, %v11546_v39  ;;  %v3237_v29 = vmul.f32 %v7768_v63, %v11547_v46  ;;  %v4140_v28 = vrot.slane %v9401_v31, %v9051_v2 }
 0x511   :  { %3862 = vadd.xlane.f32.xlu0 %v3861_v49  ;;  %v3492_v22 = vmul.f32 %v3364_v61, %v275_v30  ;;  %v4096_v11 = vrot.slane %v9333_v3, %v9051_v2  ;;  %v3867_v33 = vsel %vm3494_vm0, %v3490_v45, 0.0  ;;  %v3852_v27 = vsel %vm3494_vm0, %v3485_v18, 0.0  ;;  %v274_v49 = vld [vmem:[%s10515_s1 + $0x3e8] sm:$0xff] }
 0x512   :  { %3847 = vadd.xlane.f32.xlu1 %v3846_v48  ;;  %v9698_v50 = vpop.xlane.xlu0 %3658  ;;  %v3858_v62 = vsel %vm3494_vm0, %v3487_v47, 0.0  ;;  %v4092_v63 = vrot.slane %v9242_v20, %v9051_v2  ;;  %v4556_v31 = vsel %vm4521_vm1, %v4144_v6, %v4140_v28  ;;  %v4152_v13 = vrot.slane %v9527_v14, %v9051_v2 }
 0x513   :  { %v3644_v41 = vpop.xlane.xlu1 %3643  ;;  %v2593_v4 = vadd.f32 %v2465_v23, %v1821_v0  ;;  %v4148_v3 = vrot.slane %v9435_v56, %v9051_v2  ;;  %v3489_v21 = vmul.f32 %v3361_v42, %v272_v12  ;;  %v3363_v55 = vadd.f32 %v3235_v59, %v2591_v15 }
 0x514   :  { %v4208_v38 = vrot.slane %v3644_v41, %v9051_v2  ;;  %v4545_v20 = vsel %vm4527_vm4, %v4092_v63, %v9323_v34  ;;  %v4204_v35 = vrot.slane %v9626_v26, %v9051_v2  ;;  %v3873_v14 = vsel %vm3494_vm0, %v3492_v22, 0.0 }
 0x515   :  { %3868 = vadd.xlane.f32.xlu0 %v3867_v33  ;;  %v4100_v56 = vrot.slane %v9267_v60, %v9051_v2  ;;  %v4546_v45 = vsel %vm4529_vm5, %v4096_v11, %v4545_v20  ;;  %v4104_v18 = vrot.slane %v9358_v24, %v9051_v2  ;;  %v4557_v34 = vsel %vm4523_vm2, %v4148_v3, %v4556_v31 }
 0x516   :  { %3853 = vadd.xlane.f32.xlu1 %v3852_v27  ;;  %v9722_v43 = vpop.xlane.xlu0 %3664  ;;  %v4558_v26 = vsel %vm4525_vm3, %v4152_v13, %v4557_v34  ;;  %v4160_v30 = vrot.slane %v9556_v16, %v9051_v2  ;;  %v4570_v47 = vsel %vm4521_vm1, %v4208_v38, %v4204_v35  ;;  %v4156_v60 = vrot.slane %v9461_v32, %v9051_v2 }
 0x517   :  { %v3650_v61 = vpop.xlane.xlu1 %3649  ;;  %v4212_v48 = vrot.slane %v9652_v37, %v9051_v2  ;;  %v3864_v0 = vsel %vm3494_vm0, %v3489_v21, 0.0  ;;  %v3491_v15 = vmul.f32 %v3363_v55, %v274_v49  ;;  %v4116_v16 = vrot.slane %v9325_v25, %v9051_v2  ;;  %v276_v25 = vld [vmem:[%s10515_s1 + $0x3f8] sm:$0xff] }
 0x518   :  { %v4216_v6 = vrot.slane %v3650_v61, %v9051_v2  ;;  %v4657_v23 = vsel %vm4656_vm8, %v9168_v36, 0.0  ;;  %v4547_v42 = vsel %vm4531_vm6, %v4100_v56, %v4546_v45  ;;  %v3365_v39 = vadd.f32 %v3237_v29, %v2593_v4 }
 0x519   :  { %3874 = vadd.xlane.f32.xlu0 %v3873_v14  ;;  %v4120_v32 = vrot.slane %v9414_v1, %v9051_v2  ;;  %v4559_v37 = vsel %vm4527_vm4, %v4156_v60, %v4558_v26  ;;  %v4571_v59 = vsel %vm4523_vm2, %v4212_v48, %v4570_v47  ;;  %v4548_v46 = vsel %vm4533_vm7, %v4104_v18, %v4547_v42  ;;  %v11548_v47 = vld [vmem:[#allocation91_spill] sm:$0xff] }
 0x51a   :  { %3859 = vadd.xlane.f32.xlu1 %v3858_v62  ;;  %v9747_v24 = vpop.xlane.xlu0 %3670  ;;  %v4560_v28 = vsel %vm4529_vm5, %v4160_v30, %v4559_v37  ;;  %v4168_v36 = vrot.slane %v9583_v44, %v9051_v2  ;;  %v4572_v29 = vsel %vm4525_vm3, %v4216_v6, %v4571_v59  ;;  %v4164_v1 = vrot.slane %v9488_v8, %v9051_v2  ;;  %v11550_v59 = vld [vmem:[#allocation349_spill] sm:$0xff] }
 0x51b   :  { %v3656_v19 = vpop.xlane.xlu1 %3655  ;;  %v4176_v22 = vrot.slane %v9610_v7, %v9051_v2  ;;  %v4220_v12 = vrot.slane %v9683_v9, %v9051_v2  ;;  %v3870_v33 = vsel %vm3494_vm0, %v3491_v15, 0.0  ;;  %v4124_v44 = vrot.slane %v9349_v57, %v9051_v2 }
 0x51c   :  { %v4224_v41 = vrot.slane %v3656_v19, %v9051_v2  ;;  %v4550_v27 = vsel %vm4523_vm2, %v4116_v16, %v9399_v51  ;;  %v4663_v63 = vsel %vm4656_vm8, %v4548_v46, 0.0  ;;  %v3493_v8 = vmul.f32 %v3365_v39, %v276_v25  ;;  %v11549_v19 = vld [vmem:[#allocation73_spill] sm:$0xff] }
 0x51d   :  { %4658 = vadd.xlane.f32.xlu0 %v4657_v23  ;;  %v4551_v31 = vsel %vm4525_vm3, %v4120_v32, %v4550_v27  ;;  %v4172_v7 = vrot.slane %v9515_v58, %v9051_v2  ;;  %v4573_v9 = vsel %vm4527_vm4, %v4220_v12, %v4572_v29  ;;  %v4561_v13 = vsel %vm4531_vm6, %v4164_v1, %v4560_v28 }
 0x51e   :  { %3865 = vadd.xlane.f32.xlu1 %v3864_v0  ;;  %v3677_v11 = vpop.xlane.xlu0 %3676  ;;  %v4128_v38 = vrot.slane %v9443_v10, %v9051_v2  ;;  %v4574_v57 = vsel %vm4529_vm5, %v4224_v41, %v4573_v9  ;;  %v4562_v4 = vsel %vm4533_vm7, %v4168_v36, %v4561_v13  ;;  %v4184_v21 = vrot.slane %v9637_v40, %v9051_v2 }
 0x51f   :  { %v3662_v62 = vpop.xlane.xlu1 %3661  ;;  %v4563_v3 = vsel %vm4521_vm1, %v4176_v22, %v4172_v7  ;;  %v4228_v58 = vrot.slane %v9698_v50, %v9051_v2  ;;  %v4552_v20 = vsel %vm4527_vm4, %v4124_v44, %v4551_v31  ;;  %v4180_v10 = vrot.slane %v9544_v54, %v9051_v2 }
 0x520   :  { %v4232_v51 = vrot.slane %v3662_v62, %v9051_v2  ;;  %v4236_v61 = vrot.slane %v9722_v43, %v9051_v2  ;;  %v4669_v49 = vsel %vm4656_vm8, %v4562_v4, 0.0  ;;  %v4553_v56 = vsel %vm4529_vm5, %v4128_v38, %v4552_v20 }
 0x521   :  { %4664 = vadd.xlane.f32.xlu0 %v4663_v63  ;;  %v4575_v40 = vsel %vm4531_vm6, %v4228_v58, %v4574_v57  ;;  %v4564_v50 = vsel %vm4523_vm2, %v4180_v10, %v4563_v3  ;;  %v3876_v45 = vsel %vm3494_vm0, %v3493_v8, 0.0  ;;  %v4136_v54 = vrot.slane %v9472_v52, %v9051_v2 }
 0x522   :  { %3871 = vadd.xlane.f32.xlu1 %v3870_v33  ;;  %v3683_v55 = vpop.xlane.xlu0 %3682  ;;  %v4576_v18 = vsel %vm4533_vm7, %v4232_v51, %v4575_v40  ;;  %v4565_v43 = vsel %vm4525_vm3, %v4184_v21, %v4564_v50  ;;  %v4192_v34 = vrot.slane %v9663_v17, %v9051_v2  ;;  %v4132_v6 = vrot.slane %v11548_v47, %v9051_v2 }
 0x523   :  { %v3668_v35 = vpop.xlane.xlu1 %3667  ;;  %v4188_v60 = vrot.slane %v9575_v53, %v9051_v2  ;;  %v4244_v48 = vrot.slane %v9747_v24, %v9051_v2  ;;  %v4675_v15 = vsel %vm4656_vm8, %v4576_v18, 0.0  ;;  %v4660_v23 = vsel %vm4656_vm8, %v11549_v19, 0.0 }
 0x524   :  { %v4240_v14 = vrot.slane %v3668_v35, %v9051_v2  ;;  %v4554_v42 = vsel %vm4531_vm6, %v4132_v6, %v4553_v56  ;;  %v4200_v24 = vrot.slane %v9687_v5, %v9051_v2  ;;  %v4196_v46 = vrot.slane %v11550_v59, %v9051_v2 }
 0x525   :  { %4670 = vadd.xlane.f32.xlu0 %v4669_v49  ;;  %v4566_v17 = vsel %vm4527_vm4, %v4188_v60, %v4565_v43  ;;  %v4555_v37 = vsel %vm4533_vm7, %v4136_v54, %v4554_v42  ;;  %v4252_v25 = vrot.slane %v3677_v11, %v9051_v2  ;;  %v4260_v33 = vrot.slane %v3683_v55, %v9051_v2 }
 0x526   :  { %v4577_v26 = vsel %vm4521_vm1, %v4240_v14, %v4236_v61  ;;  %3877 = vadd.xlane.f32.xlu1 %v3876_v45  ;;  %v3689_v30 = vpop.xlane.xlu0 %3688  ;;  %v4567_v53 = vsel %vm4529_vm5, %v4192_v34, %v4566_v17  ;;  %v4666_v41 = vsel %vm4656_vm8, %v4555_v37, 0.0 }
 0x527   :  { %v3674_v0 = vpop.xlane.xlu1 %3673  ;;  %v4578_v16 = vsel %vm4523_vm2, %v4244_v48, %v4577_v26  ;;  %v4568_v5 = vsel %vm4531_vm6, %v4196_v46, %v4567_v53  ;;  %v4268_v7 = vrot.slane %v3689_v30, %v9051_v2 }
 0x528   :  { %v4248_v52 = vrot.slane %v3674_v0, %v9051_v2  ;;  %v4569_v12 = vsel %vm4533_vm7, %v4200_v24, %v4568_v5 }
 0x529   :  { %4676 = vadd.xlane.f32.xlu0 %v4675_v15  ;;  %v4672_v27 = vsel %vm4656_vm8, %v4569_v12, 0.0 }
 0x52a   :  { %v4579_v39 = vsel %vm4525_vm3, %v4248_v52, %v4578_v16  ;;  %4661 = vadd.xlane.f32.xlu1 %v4660_v23  ;;  %v3695_v32 = vpop.xlane.xlu0 %3694 }
 0x52b   :  { %v3680_v28 = vpop.xlane.xlu1 %3679  ;;  %v4580_v29 = vsel %vm4527_vm4, %v4252_v25, %v4579_v39  ;;  %v4276_v51 = vrot.slane %v3695_v32, %v9051_v2 }
 0x52c   :  { %v4256_v36 = vrot.slane %v3680_v28, %v9051_v2 }
 0x52e   :  { %v4581_v1 = vsel %vm4529_vm5, %v4256_v36, %v4580_v29  ;;  %4667 = vadd.xlane.f32.xlu1 %v4666_v41  ;;  %v3701_v22 = vpop.xlane.xlu0 %3700 }
 0x52f   :  { %v3686_v44 = vpop.xlane.xlu1 %3685  ;;  %v4582_v62 = vsel %vm4531_vm6, %v4260_v33, %v4581_v1  ;;  %v4284_v20 = vrot.slane %v3701_v22, %v9051_v2 }
 0x530   :  { %v4264_v11 = vrot.slane %v3686_v44, %v9051_v2 }
 0x532   :  { %4673 = vadd.xlane.f32.xlu1 %v4672_v27  ;;  %v3707_v63 = vpop.xlane.xlu0 %3706  ;;  %v4583_v8 = vsel %vm4533_vm7, %v4264_v11, %v4582_v62 }
 0x533   :  { %v3692_v31 = vpop.xlane.xlu1 %3691  ;;  %v4678_v13 = vsel %vm4656_vm8, %v4583_v8, 0.0  ;;  %v4292_v40 = vrot.slane %v3707_v63, %v9051_v2 }
 0x534   :  { %v4272_v9 = vrot.slane %v3692_v31, %v9051_v2 }
 0x536   :  { %v4584_v38 = vsel %vm4521_vm1, %v4272_v9, %v4268_v7  ;;  %4679 = vadd.xlane.f32.xlu1 %v4678_v13  ;;  %v3713_v57 = vpop.xlane.xlu0 %3712 }
 0x537   :  { %v3698_v4 = vpop.xlane.xlu1 %3697  ;;  %v4585_v21 = vsel %vm4523_vm2, %v4276_v51, %v4584_v38  ;;  %v4300_v26 = vrot.slane %v3713_v57, %v9051_v2 }
 0x538   :  { %v4280_v3 = vrot.slane %v3698_v4, %v9051_v2 }
 0x53a   :  { %v4586_v58 = vsel %vm4525_vm3, %v4280_v3, %v4585_v21  ;;  %v3719_v55 = vpop.xlane.xlu0 %3718 }
 0x53b   :  { %v3704_v10 = vpop.xlane.xlu1 %3703  ;;  %v4587_v61 = vsel %vm4527_vm4, %v4284_v20, %v4586_v58  ;;  %v4308_v60 = vrot.slane %v3719_v55, %v9051_v2 }
 0x53c   :  { %v4288_v35 = vrot.slane %v3704_v10, %v9051_v2 }
 0x53e   :  { %v4588_v14 = vsel %vm4529_vm5, %v4288_v35, %v4587_v61  ;;  %v3725_v49 = vpop.xlane.xlu0 %3724 }
 0x53f   :  { %v3710_v56 = vpop.xlane.xlu1 %3709  ;;  %v4589_v45 = vsel %vm4531_vm6, %v4292_v40, %v4588_v14  ;;  %v4316_v16 = vrot.slane %v3725_v49, %v9051_v2 }
 0x540   :  { %v4296_v50 = vrot.slane %v3710_v56, %v9051_v2 }
 0x542   :  { %v3731_v18 = vpop.xlane.xlu0 %3730  ;;  %v4590_v54 = vsel %vm4533_vm7, %v4296_v50, %v4589_v45 }
 0x543   :  { %v3716_v43 = vpop.xlane.xlu1 %3715  ;;  %v4681_v34 = vsel %vm4656_vm8, %v4590_v54, 0.0  ;;  %v4324_v39 = vrot.slane %v3731_v18, %v9051_v2 }
 0x544   :  { %v4304_v30 = vrot.slane %v3716_v43, %v9051_v2  ;;  %4682 = vadd.xlane.f32.xlu0 %v4681_v34 }
 0x546   :  { %v4591_v47 = vsel %vm4521_vm1, %v4304_v30, %v4300_v26  ;;  %v3737_v6 = vpop.xlane.xlu0 %3736 }
 0x547   :  { %v3722_v48 = vpop.xlane.xlu1 %3721  ;;  %v4592_v52 = vsel %vm4523_vm2, %v4308_v60, %v4591_v47  ;;  %v4332_v29 = vrot.slane %v3737_v6, %v9051_v2 }
 0x548   :  { %v4312_v0 = vrot.slane %v3722_v48, %v9051_v2 }
 0x54a   :  { %v4593_v15 = vsel %vm4525_vm3, %v4312_v0, %v4592_v52  ;;  %v3743_v17 = vpop.xlane.xlu0 %3742 }
 0x54b   :  { %v3728_v19 = vpop.xlane.xlu1 %3727  ;;  %v4594_v42 = vsel %vm4527_vm4, %v4316_v16, %v4593_v15  ;;  %v4340_v22 = vrot.slane %v3743_v17, %v9051_v2 }
 0x54c   :  { %v4320_v23 = vrot.slane %v3728_v19, %v9051_v2 }
 0x54e   :  { %v4595_v53 = vsel %vm4529_vm5, %v4320_v23, %v4594_v42  ;;  %v3749_v24 = vpop.xlane.xlu0 %3748 }
 0x54f   :  { %v3734_v32 = vpop.xlane.xlu1 %3733  ;;  %v4596_v59 = vsel %vm4531_vm6, %v4324_v39, %v4595_v53  ;;  %v4348_v62 = vrot.slane %v3749_v24, %v9051_v2 }
 0x550   :  { %v4328_v37 = vrot.slane %v3734_v32, %v9051_v2 }
 0x552   :  { %v3755_v46 = vpop.xlane.xlu0 %3754  ;;  %v4597_v25 = vsel %vm4533_vm7, %v4328_v37, %v4596_v59 }
 0x553   :  { %v3740_v28 = vpop.xlane.xlu1 %3739  ;;  %v4684_v36 = vsel %vm4656_vm8, %v4597_v25, 0.0  ;;  %v4356_v13 = vrot.slane %v3755_v46, %v9051_v2 }
 0x554   :  { %v4336_v41 = vrot.slane %v3740_v28, %v9051_v2  ;;  %4685 = vadd.xlane.f32.xlu1 %v4684_v36 }
 0x556   :  { %v4598_v5 = vsel %vm4521_vm1, %v4336_v41, %v4332_v29  ;;  %v3761_v1 = vpop.xlane.xlu0 %3760 }
 0x557   :  { %v3746_v12 = vpop.xlane.xlu1 %3745  ;;  %v4599_v44 = vsel %vm4523_vm2, %v4340_v22, %v4598_v5  ;;  %v4364_v55 = vrot.slane %v3761_v1, %v9051_v2 }
 0x558   :  { %v4344_v33 = vrot.slane %v3746_v12, %v9051_v2 }
 0x55a   :  { %v4600_v11 = vsel %vm4525_vm3, %v4344_v33, %v4599_v44  ;;  %v3767_v27 = vpop.xlane.xlu0 %3766 }
 0x55b   :  { %v3752_v63 = vpop.xlane.xlu1 %3751  ;;  %v4601_v31 = vsel %vm4527_vm4, %v4348_v62, %v4600_v11  ;;  %v4372_v61 = vrot.slane %v3767_v27, %v9051_v2 }
 0x55c   :  { %v4352_v8 = vrot.slane %v3752_v63, %v9051_v2 }
 0x55e   :  { %v4602_v7 = vsel %vm4529_vm5, %v4352_v8, %v4601_v31  ;;  %v3773_v9 = vpop.xlane.xlu0 %3772 }
 0x55f   :  { %v3758_v38 = vpop.xlane.xlu1 %3757  ;;  %v4603_v51 = vsel %vm4531_vm6, %v4356_v13, %v4602_v7  ;;  %v4380_v45 = vrot.slane %v3773_v9, %v9051_v2 }
 0x560   :  { %v4360_v57 = vrot.slane %v3758_v38, %v9051_v2 }
 0x562   :  { %v3779_v4 = vpop.xlane.xlu0 %3778  ;;  %v4604_v3 = vsel %vm4533_vm7, %v4360_v57, %v4603_v51 }
 0x563   :  { %v3764_v21 = vpop.xlane.xlu1 %3763  ;;  %v4687_v58 = vsel %vm4656_vm8, %v4604_v3, 0.0  ;;  %v4388_v30 = vrot.slane %v3779_v4, %v9051_v2 }
 0x564   :  { %v4368_v20 = vrot.slane %v3764_v21, %v9051_v2  ;;  %4688 = vadd.xlane.f32.xlu0 %v4687_v58 }
 0x566   :  { %v4605_v10 = vsel %vm4521_vm1, %v4368_v20, %v4364_v55  ;;  %v3785_v35 = vpop.xlane.xlu0 %3784 }
 0x567   :  { %v3770_v14 = vpop.xlane.xlu1 %3769  ;;  %v4606_v40 = vsel %vm4523_vm2, %v4372_v61, %v4605_v10  ;;  %v4396_v17 = vrot.slane %v3785_v35, %v9051_v2 }
 0x568   :  { %v4376_v49 = vrot.slane %v3770_v14, %v9051_v2 }
 0x56a   :  { %v4607_v56 = vsel %vm4525_vm3, %v4376_v49, %v4606_v40  ;;  %v3791_v50 = vpop.xlane.xlu0 %3790 }
 0x56b   :  { %v3776_v18 = vpop.xlane.xlu1 %3775  ;;  %v4608_v43 = vsel %vm4527_vm4, %v4380_v45, %v4607_v56  ;;  %v4404_v42 = vrot.slane %v3791_v50, %v9051_v2 }
 0x56c   :  { %v4384_v54 = vrot.slane %v3776_v18, %v9051_v2 }
 0x56e   :  { %v4609_v34 = vsel %vm4529_vm5, %v4384_v54, %v4608_v43  ;;  %v3797_v26 = vpop.xlane.xlu0 %3796 }
 0x56f   :  { %v3782_v47 = vpop.xlane.xlu1 %3781  ;;  %v4610_v60 = vsel %vm4531_vm6, %v4388_v30, %v4609_v34  ;;  %v4412_v59 = vrot.slane %v3797_v26, %v9051_v2 }
 0x570   :  { %v4392_v6 = vrot.slane %v3782_v47, %v9051_v2 }
 0x572   :  { %v3803_v48 = vpop.xlane.xlu0 %3802  ;;  %v4611_v0 = vsel %vm4533_vm7, %v4392_v6, %v4610_v60 }
 0x573   :  { %v3788_v52 = vpop.xlane.xlu1 %3787  ;;  %v4690_v15 = vsel %vm4656_vm8, %v4611_v0, 0.0  ;;  %v4420_v41 = vrot.slane %v3803_v48, %v9051_v2 }
 0x574   :  { %v4400_v16 = vrot.slane %v3788_v52, %v9051_v2  ;;  %4691 = vadd.xlane.f32.xlu1 %v4690_v15 }
 0x576   :  { %v4612_v19 = vsel %vm4521_vm1, %v4400_v16, %v4396_v17  ;;  %v3809_v23 = vpop.xlane.xlu0 %3808 }
 0x577   :  { %v3794_v53 = vpop.xlane.xlu1 %3793  ;;  %v4613_v39 = vsel %vm4523_vm2, %v4404_v42, %v4612_v19  ;;  %v4428_v27 = vrot.slane %v3809_v23, %v9051_v2 }
 0x578   :  { %v4408_v24 = vrot.slane %v3794_v53, %v9051_v2 }
 0x57a   :  { %v4614_v32 = vsel %vm4525_vm3, %v4408_v24, %v4613_v39  ;;  %v3815_v37 = vpop.xlane.xlu0 %3814 }
 0x57b   :  { %v3800_v46 = vpop.xlane.xlu1 %3799  ;;  %v4615_v28 = vsel %vm4527_vm4, %v4412_v59, %v4614_v32  ;;  %v4436_v31 = vrot.slane %v3815_v37, %v9051_v2 }
 0x57c   :  { %v4416_v25 = vrot.slane %v3800_v46, %v9051_v2 }
 0x57e   :  { %v4616_v36 = vsel %vm4529_vm5, %v4416_v25, %v4615_v28  ;;  %v3821_v29 = vpop.xlane.xlu0 %3820 }
 0x57f   :  { %v3806_v5 = vpop.xlane.xlu1 %3805  ;;  %v4617_v22 = vsel %vm4531_vm6, %v4420_v41, %v4616_v36  ;;  %v4444_v51 = vrot.slane %v3821_v29, %v9051_v2 }
 0x580   :  { %v4424_v1 = vrot.slane %v3806_v5, %v9051_v2 }
 0x582   :  { %v3827_v12 = vpop.xlane.xlu0 %3826  ;;  %v4618_v33 = vsel %vm4533_vm7, %v4424_v1, %v4617_v22 }
 0x583   :  { %v3812_v44 = vpop.xlane.xlu1 %3811  ;;  %v4693_v11 = vsel %vm4656_vm8, %v4618_v33, 0.0  ;;  %v4452_v20 = vrot.slane %v3827_v12, %v9051_v2 }
 0x584   :  { %v4432_v62 = vrot.slane %v3812_v44, %v9051_v2  ;;  %4694 = vadd.xlane.f32.xlu0 %v4693_v11 }
 0x586   :  { %v4619_v63 = vsel %vm4521_vm1, %v4432_v62, %v4428_v27  ;;  %v3833_v8 = vpop.xlane.xlu0 %3832 }
 0x587   :  { %v3818_v7 = vpop.xlane.xlu1 %3817  ;;  %v4620_v13 = vsel %vm4523_vm2, %v4436_v31, %v4619_v63  ;;  %v4460_v56 = vrot.slane %v3833_v8, %v9051_v2  ;;  %v9977_v31 = vld [vmem:[%s10516_s2] sm:$0xff] }
 0x588   :  { %v4440_v9 = vrot.slane %v3818_v7, %v9051_v2  ;;  %v9983_v7 = vld [vmem:[%s10516_s2 + $0x48] sm:$0xff] }
 0x58a   :  { %v4621_v38 = vsel %vm4525_vm3, %v4440_v9, %v4620_v13  ;;  %v3839_v57 = vpop.xlane.xlu0 %3838  ;;  %v9989_v9 = vld [vmem:[%s10516_s2 + $0x58] sm:$0xff]  ;;  %v9995_v13 = vld [vmem:[%s10516_s2 + $0x8] sm:$0xff] }
 0x58b   :  { %v3824_v4 = vpop.xlane.xlu1 %3823  ;;  %v4622_v21 = vsel %vm4527_vm4, %v4444_v51, %v4621_v38  ;;  %v4468_v54 = vrot.slane %v3839_v57, %v9051_v2  ;;  %v10000_v38 = vld [vmem:[%s10516_s2 + $0x68] sm:$0xff]  ;;  %v10007_v57 = vld [vmem:[%s10516_s2 + $0x10] sm:$0xff]  ;;  %v10012_v51 = vld [vmem:[%s10516_s2 + $0x78] sm:$0xff] }
 0x58c   :  { %v4448_v3 = vrot.slane %v3824_v4, %v9051_v2  ;;  %11551 = vst [vmem:[#allocation93_spill] sm:$0xff] %v10000_v38  ;;  %11552 = vst [vmem:[#allocation94_spill] sm:$0xff] %v10012_v51  ;;  %v10019_v4 = vld [vmem:[%s10516_s2 + $0x18] sm:$0xff] }
 0x58e   :  { %v4623_v58 = vsel %vm4529_vm5, %v4448_v3, %v4622_v21  ;;  %v3845_v55 = vpop.xlane.xlu0 %3844  ;;  %v11553_v3 = vmov 1   ;;  %v10026_v21 = vld [vmem:[%s10516_s2 + $0x20] sm:$0xff] }
 0x58f   :  { %v3830_v10 = vpop.xlane.xlu1 %3829  ;;  %v4624_v61 = vsel %vm4531_vm6, %v4452_v20, %v4623_v58  ;;  %v4476_v6 = vrot.slane %v3845_v55, %v9051_v2  ;;  %v10033_v58 = vld [vmem:[%s10516_s2 + $0x28] sm:$0xff]  ;;  %v10039_v55 = vld [vmem:[%s10516_s2 + $0x30] sm:$0xff]  ;;  %v10046_v20 = vld [vmem:[%s10516_s2 + $0x40] sm:$0xff] }
 0x590   :  { %v4456_v35 = vrot.slane %v3830_v10, %v9051_v2  ;;  %v10052_v10 = vld [vmem:[%s10516_s2 + $0x38] sm:$0xff] }
 0x591   :  { %11554 = vst [vmem:[#allocation211_spill] sm:$0xff] %v10052_v10 }
 0x592   :  { %v4625_v14 = vsel %vm4533_vm7, %v4456_v35, %v4624_v61  ;;  %v3851_v50 = vpop.xlane.xlu0 %3850  ;;  %v10058_v35 = vld [vmem:[%s10516_s2 + $0x50] sm:$0xff]  ;;  %v10065_v61 = vld [vmem:[%s10516_s2 + $0x60] sm:$0xff] }
 0x593   :  { %v3836_v49 = vpop.xlane.xlu1 %3835  ;;  %v4696_v40 = vsel %vm4656_vm8, %v4625_v14, 0.0  ;;  %v4484_v15 = vrot.slane %v3851_v50, %v9051_v2  ;;  %v10072_v14 = vld [vmem:[%s10516_s2 + $0x70] sm:$0xff]  ;;  %s5698_s2 = smov 124  }
 0x594   :  { %v4464_v45 = vrot.slane %v3836_v49, %v9051_v2  ;;  %4697 = vadd.xlane.f32.xlu1 %v4696_v40  ;;  %11555 = vst [vmem:[#allocation350_spill] sm:$0xff] %v10072_v14  ;;  %v11556_v49 = vmov 2   ;;  %v11557_v40 = vmov 3  }
 0x596   :  { %v4626_v18 = vsel %vm4521_vm1, %v4464_v45, %v4460_v56  ;;  %v3857_v30 = vpop.xlane.xlu0 %3856 }
 0x597   :  { %v3842_v43 = vpop.xlane.xlu1 %3841  ;;  %v4627_v26 = vsel %vm4523_vm2, %v4468_v54, %v4626_v18  ;;  %v4492_v39 = vrot.slane %v3857_v30, %v9051_v2 }
 0x598   :  { %v4472_v34 = vrot.slane %v3842_v43, %v9051_v2 }
 0x59a   :  { %v4628_v47 = vsel %vm4525_vm3, %v4472_v34, %v4627_v26  ;;  %v3863_v16 = vpop.xlane.xlu0 %3862 }
 0x59b   :  { %v3848_v60 = vpop.xlane.xlu1 %3847  ;;  %v4629_v0 = vsel %vm4527_vm4, %v4476_v6, %v4628_v47  ;;  %v4500_v46 = vrot.slane %v3863_v16, %v9051_v2 }
 0x59c   :  { %v4480_v48 = vrot.slane %v3848_v60, %v9051_v2 }
 0x59e   :  { %v4630_v52 = vsel %vm4529_vm5, %v4480_v48, %v4629_v0  ;;  %v3869_v37 = vpop.xlane.xlu0 %3868 }
 0x59f   :  { %v3854_v17 = vpop.xlane.xlu1 %3853  ;;  %v4631_v23 = vsel %vm4531_vm6, %v4484_v15, %v4630_v52  ;;  %v4508_v41 = vrot.slane %v3869_v37, %v9051_v2 }
 0x5a0   :  { %v4488_v19 = vrot.slane %v3854_v17, %v9051_v2 }
 0x5a2   :  { %v4632_v42 = vsel %vm4533_vm7, %v4488_v19, %v4631_v23  ;;  %v3875_v1 = vpop.xlane.xlu0 %3874 }
 0x5a3   :  { %v3860_v53 = vpop.xlane.xlu1 %3859  ;;  %v4699_v24 = vsel %vm4656_vm8, %v4632_v42, 0.0  ;;  %v4516_v44 = vrot.slane %v3875_v1, %v9051_v2 }
 0x5a4   :  { %v4496_v32 = vrot.slane %v3860_v53, %v9051_v2  ;;  %4700 = vadd.xlane.f32.xlu0 %v4699_v24 }
 0x5a6   :  { %v4633_v59 = vsel %vm4521_vm1, %v4496_v32, %v4492_v39  ;;  %v10098_v56 = vpop.xlane.xlu0 %4658  ;;  %vm5459_vm1 = vcmask 654912  }
 0x5a7   :  { %v3866_v25 = vpop.xlane.xlu1 %3865  ;;  %v4634_v36 = vsel %vm4523_vm2, %v4500_v46, %v4633_v59  ;;  %11558 = vst [vmem:[#allocation213_spill] sm:$0xff] %v10098_v56  ;;  %vm5466_vm2 = vcmask 720512  }
 0x5a8   :  { %v4504_v28 = vrot.slane %v3866_v25, %v9051_v2 }
 0x5aa   :  { %v4635_v29 = vsel %vm4525_vm3, %v4504_v28, %v4634_v36  ;;  %v10102_v50 = vpop.xlane.xlu0 %4664  ;;  %vm5473_vm3 = vcmask 786112  }
 0x5ab   :  { %v3872_v5 = vpop.xlane.xlu1 %3871  ;;  %v4636_v12 = vsel %vm4527_vm4, %v4508_v41, %v4635_v29  ;;  %11559 = vst [vmem:[#allocation218_spill] sm:$0xff] %v10102_v50  ;;  %vm5480_vm4 = vcmask 851712  }
 0x5ac   :  { %v4512_v22 = vrot.slane %v3872_v5, %v9051_v2 }
 0x5ae   :  { %v4637_v33 = vsel %vm4529_vm5, %v4512_v22, %v4636_v12  ;;  %v10108_v45 = vpop.xlane.xlu0 %4670  ;;  %v10214_v22 = vld [vmem:[%s10518_s4] sm:$0xf]  ;;  %s5699_s4 = smov 127   ;;  %vm5487_vm5 = vcmask 917312  }
 0x5af   :  { %v3878_v11 = vpop.xlane.xlu1 %3877  ;;  %v4638_v62 = vsel %vm4531_vm6, %v4516_v44, %v4637_v33  ;;  %11560 = vst [vmem:[#allocation95_spill] sm:$0xff] %v10108_v45  ;;  %v11574_v33 = vld [vmem:[#allocation384_spill] sm:$0xff]  ;;  %vm5494_vm6 = vcmask 982912  }
 0x5b0   :  { %v4520_v27 = vrot.slane %v3878_v11, %v9051_v2  ;;  %v11575_v44 = vsub.s32 1, %v11574_v33 }
 0x5b2   :  { %v4639_v63 = vsel %vm4533_vm7, %v4520_v27, %v4638_v62  ;;  %v10115_v54 = vpop.xlane.xlu0 %4676  ;;  %v10221_v11 = vrot.slane %v10214_v22, %v11575_v44  ;;  %v11576_v62 = vsub.s32 0, %v11574_v33  ;;  %vm5501_vm7 = vcmask 1048512  }
 0x5b3   :  { %v4702_v8 = vsel %vm4656_vm8, %v4639_v63, 0.0  ;;  %v10110_v18 = vpop.xlane.xlu1 %4661  ;;  %11562 = vst [vmem:[#allocation96_spill] sm:$0xff] %v10115_v54 }
 0x5b4   :  { %4703 = vadd.xlane.f32.xlu1 %v4702_v8  ;;  %11561 = vst [vmem:[#allocation351_spill] sm:$0xff] %v10110_v18  ;;  %v10226_v63 = vrot.slane %v10214_v22, %v11576_v62 }
 0x5b7   :  { %v10117_v43 = vpop.xlane.xlu1 %4667 }
 0x5b8   :  { %11563 = vst [vmem:[#allocation97_spill] sm:$0xff] %v10117_v43 }
 0x5ba   :  { %4724 = vperm.xlu0 %5534, %v9977_v31  }
 0x5bb   :  { %v10126_v26 = vpop.xlane.xlu1 %4673 }
 0x5bc   :  { %11565 = vst [vmem:[#allocation352_spill] sm:$0xff] %v10126_v26 }
 0x5be   :  { %4769 = vperm.xlu0 %5534, %v9983_v7  }
 0x5bf   :  { %v10134_v47 = vpop.xlane.xlu1 %4679 }
 0x5c0   :  { %11567 = vst [vmem:[#allocation99_spill] sm:$0xff] %v10134_v47 }
 0x5c2   :  { %4779 = vperm.xlu0 %5534, %v9989_v9  }
 0x5c5   :  { %4729 = vperm.xlu1 %5535, %v9995_v13  }
 0x5c6   :  { %4789 = vperm.xlu0 %5534, %v10000_v38  }
 0x5c9   :  { %4734 = vperm.xlu1 %5535, %v10007_v57  }
 0x5ca   :  { %4799 = vperm.xlu0 %5534, %v10012_v51  }
 0x5cd   :  { %4739 = vperm.xlu1 %5535, %v10019_v4   ;;  %v10122_v34 = vpop.xlane.xlu0 %4682 }
 0x5ce   :  { %5537 = vset.pattern.permute.xlu0 %v11553_v3  ;;  %11564 = vst [vmem:[#allocation98_spill] sm:$0xff] %v10122_v34 }
 0x5cf   :  { %4827 = vperm.xlu0 %5537, %v9995_v13  }
 0x5d1   :  { %4744 = vperm.xlu1 %5535, %v10026_v21  }
 0x5d3   :  { %4839 = vperm.xlu0 %5537, %v10026_v21  }
 0x5d5   :  { %4749 = vperm.xlu1 %5535, %v10033_v58  }
 0x5d7   :  { %4847 = vperm.xlu0 %5537, %v10039_v55  }
 0x5d9   :  { %4754 = vperm.xlu1 %5535, %v10039_v55  }
 0x5db   :  { %4855 = vperm.xlu0 %5537, %v10046_v20  }
 0x5dd   :  { %4759 = vperm.xlu1 %5535, %v10052_v10   ;;  %v10141_v60 = vpop.xlane.xlu1 %4685 }
 0x5de   :  { %11569 = vst [vmem:[#allocation100_spill] sm:$0xff] %v10141_v60 }
 0x5df   :  { %4863 = vperm.xlu0 %5537, %v10058_v35  }
 0x5e1   :  { %4764 = vperm.xlu1 %5535, %v10046_v20  }
 0x5e3   :  { %4871 = vperm.xlu0 %5537, %v10065_v61  }
 0x5e5   :  { %4774 = vperm.xlu1 %5535, %v10058_v35  }
 0x5e7   :  { %4879 = vperm.xlu0 %5537, %v10072_v14  }
 0x5e9   :  { %4784 = vperm.xlu1 %5535, %v10065_v61  }
 0x5eb   :  { %5538 = vset.pattern.permute.xlu0 %v11556_v49 }
 0x5ec   :  { %4923 = vperm.xlu0 %5538, %v9977_v31  }
 0x5ed   :  { %4794 = vperm.xlu1 %5535, %v10072_v14   ;;  %v10129_v30 = vpop.xlane.xlu0 %4688 }
 0x5ee   :  { %11566 = vst [vmem:[#allocation220_spill] sm:$0xff] %v10129_v30 }
 0x5f0   :  { %4935 = vperm.xlu0 %5538, %v10019_v4  }
 0x5f1   :  { %5536 = vset.pattern.permute.xlu1 %v11553_v3 }
 0x5f2   :  { %4823 = vperm.xlu1 %5536, %v9977_v31  }
 0x5f4   :  { %4943 = vperm.xlu0 %5538, %v10033_v58  }
 0x5f6   :  { %4831 = vperm.xlu1 %5536, %v10007_v57  }
 0x5f8   :  { %4951 = vperm.xlu0 %5538, %v10052_v10  }
 0x5fa   :  { %4835 = vperm.xlu1 %5536, %v10019_v4  }
 0x5fc   :  { %4959 = vperm.xlu0 %5538, %v9983_v7  }
 0x5fd   :  { %v10148_v0 = vpop.xlane.xlu1 %4691 }
 0x5fe   :  { %4843 = vperm.xlu1 %5536, %v10033_v58   ;;  %11571 = vst [vmem:[#allocation215_spill] sm:$0xff] %v10148_v0 }
 0x600   :  { %4967 = vperm.xlu0 %5538, %v9989_v9  }
 0x602   :  { %4851 = vperm.xlu1 %5536, %v10052_v10  }
 0x604   :  { %4975 = vperm.xlu0 %5538, %v10000_v38  }
 0x606   :  { %4859 = vperm.xlu1 %5536, %v9983_v7  }
 0x608   :  { %4983 = vperm.xlu0 %5538, %v10012_v51  }
 0x60a   :  { %4867 = vperm.xlu1 %5536, %v9989_v9  }
 0x60c   :  { %5541 = vset.pattern.permute.xlu0 %v11557_v40 }
 0x60d   :  { %5027 = vperm.xlu0 %5541, %v9995_v13   ;;  %v10136_v6 = vpop.xlane.xlu0 %4694 }
 0x60e   :  { %4875 = vperm.xlu1 %5536, %v10000_v38   ;;  %11568 = vst [vmem:[#allocation353_spill] sm:$0xff] %v10136_v6 }
 0x611   :  { %5039 = vperm.xlu0 %5541, %v10026_v21  }
 0x612   :  { %4883 = vperm.xlu1 %5536, %v10012_v51  }
 0x615   :  { %5047 = vperm.xlu0 %5541, %v10039_v55  }
 0x616   :  { %5539 = vset.pattern.permute.xlu1 %v11556_v49 }
 0x617   :  { %4927 = vperm.xlu1 %5539, %v9995_v13  }
 0x619   :  { %5055 = vperm.xlu0 %5541, %v10046_v20  }
 0x61b   :  { %4931 = vperm.xlu1 %5539, %v10007_v57  }
 0x61d   :  { %5063 = vperm.xlu0 %5541, %v10058_v35   ;;  %v10156_v15 = vpop.xlane.xlu1 %4697 }
 0x61e   :  { %11572 = vst [vmem:[#allocation354_spill] sm:$0xff] %v10156_v15 }
 0x61f   :  { %4939 = vperm.xlu1 %5539, %v10026_v21  }
 0x621   :  { %5124 = vrot.lane.b32.xlu0 %v9995_v13, %s5698_s2 }
 0x623   :  { %4947 = vperm.xlu1 %5539, %v10039_v55  }
 0x625   :  { %5126 = vrot.lane.b32.xlu0 %v10007_v57, %s5698_s2 }
 0x627   :  { %4955 = vperm.xlu1 %5539, %v10046_v20  }
 0x629   :  { %5128 = vrot.lane.b32.xlu0 %v10019_v4, %s5698_s2 }
 0x62b   :  { %4963 = vperm.xlu1 %5539, %v10058_v35  }
 0x62d   :  { %5130 = vrot.lane.b32.xlu0 %v10026_v21, %s5698_s2  ;;  %v10143_v48 = vpop.xlane.xlu0 %4700 }
 0x62e   :  { %11570 = vst [vmem:[#allocation101_spill] sm:$0xff] %v10143_v48  ;;  %v11577_v48 = vsub.s32 2, %v11574_v33 }
 0x62f   :  { %4971 = vperm.xlu1 %5539, %v10065_v61  }
 0x630   :  { %v10264_v60 = vrot.slane %v10214_v22, %v11577_v48 }
 0x631   :  { %5132 = vrot.lane.b32.xlu0 %v10033_v58, %s5698_s2 }
 0x633   :  { %4979 = vperm.xlu1 %5539, %v10072_v14  }
 0x635   :  { %v10150_v52 = vpop.permute.xlu0 %4724  ;;  %5134 = vrot.lane.b32.xlu0 %v10039_v55, %s5698_s2 }
 0x637   :  { %5540 = vset.pattern.permute.xlu1 %v11557_v40 }
 0x638   :  { %5023 = vperm.xlu1 %5540, %v9977_v31  }
 0x639   :  { %v10158_v17 = vpop.permute.xlu0 %4769  ;;  %5138 = vrot.lane.b32.xlu0 %v10046_v20, %s5698_s2 }
 0x63a   :  { %v4815_v43 = vmul.f32 %v10226_v63, %v10158_v17 }
 0x63c   :  { %5031 = vperm.xlu1 %5540, %v10007_v57  }
 0x63d   :  { %v10163_v16 = vpop.xlane.xlu1 %4703  ;;  %v10165_v19 = vpop.permute.xlu0 %4779  ;;  %5142 = vrot.lane.b32.xlu0 %v10058_v35, %s5698_s2 }
 0x63e   :  { %11573 = vst [vmem:[#allocation222_spill] sm:$0xff] %v10163_v16 }
 0x640   :  { %5035 = vperm.xlu1 %5540, %v10019_v4  }
 0x641   :  { %v10170_v23 = vpop.permute.xlu1 %4729  ;;  %v10172_v42 = vpop.permute.xlu0 %4789  ;;  %5146 = vrot.lane.b32.xlu0 %v10065_v61, %s5698_s2 }
 0x644   :  { %5043 = vperm.xlu1 %5540, %v10033_v58  }
 0x645   :  { %v10177_v53 = vpop.permute.xlu1 %4734  ;;  %v10179_v24 = vpop.permute.xlu0 %4799  ;;  %5150 = vrot.lane.b32.xlu0 %v10072_v14, %s5698_s2 }
 0x648   :  { %5051 = vperm.xlu1 %5540, %v10052_v10  }
 0x649   :  { %v10184_v39 = vpop.permute.xlu1 %4739 }
 0x64a   :  { %v10186_v32 = vpop.permute.xlu0 %4827 }
 0x64c   :  { %5059 = vperm.xlu1 %5540, %v9983_v7  }
 0x64d   :  { %v10189_v37 = vpop.permute.xlu1 %4744 }
 0x64e   :  { %v10191_v59 = vpop.permute.xlu0 %4839 }
 0x650   :  { %5122 = vrot.lane.b32.xlu1 %v9977_v31, %s5698_s2 }
 0x651   :  { %v10195_v46 = vpop.permute.xlu1 %4749 }
 0x652   :  { %v10197_v25 = vpop.permute.xlu0 %4847 }
 0x654   :  { %5067 = vperm.xlu1 %5540, %v9989_v9  }
 0x655   :  { %v10200_v28 = vpop.permute.xlu1 %4754 }
 0x656   :  { %v10202_v36 = vpop.permute.xlu0 %4855 }
 0x658   :  { %5071 = vperm.xlu1 %5540, %v10065_v61  }
 0x659   :  { %v4760_v29 = vpop.permute.xlu1 %4759 }
 0x65a   :  { %v10205_v41 = vpop.permute.xlu0 %4863  ;;  %v4813_v6 = vmul.f32 %v10226_v63, %v4760_v29  ;;  %v4817_v29 = vmul.f32 %v10226_v63, %v10165_v19 }
 0x65c   :  { %5075 = vperm.xlu1 %5540, %v10000_v38  }
 0x65d   :  { %v10208_v5 = vpop.permute.xlu1 %4764 }
 0x65e   :  { %v4872_v1 = vpop.permute.xlu0 %4871 }
 0x65f   :  { %v4902_v8 = vmul.f32 %v10221_v11, %v4872_v1 }
 0x660   :  { %5079 = vperm.xlu1 %5540, %v10072_v14  }
 0x661   :  { %v10216_v12 = vpop.permute.xlu1 %4774 }
 0x662   :  { %v4880_v27 = vpop.permute.xlu0 %4879 }
 0x663   :  { %v4904_v2 = vmul.f32 %v10221_v11, %v4880_v27 }
 0x664   :  { %5083 = vperm.xlu1 %5540, %v10012_v51  }
 0x665   :  { %v4785_v3 = vpop.permute.xlu1 %4784 }
 0x666   :  { %v4818_v49 = vmul.f32 %v10226_v63, %v4785_v3 }
 0x667   :  { %v10231_v40 = vpop.permute.xlu0 %4923 }
 0x668   :  { %v10234_v16 = vadd.f32 %v4902_v8, %v4818_v49  ;;  %5136 = vrot.lane.b32.xlu1 %v10052_v10, %s5698_s2 }
 0x669   :  { %v4795_v44 = vpop.permute.xlu1 %4794 }
 0x66a   :  { %v4820_v62 = vmul.f32 %v10226_v63, %v4795_v44 }
 0x66b   :  { %v10239_v15 = vpop.permute.xlu0 %4935 }
 0x66c   :  { %v10241_v1 = vadd.f32 %v4904_v2, %v4820_v62  ;;  %5140 = vrot.lane.b32.xlu1 %v9983_v7, %s5698_s2 }
 0x66d   :  { %v10245_v3 = vpop.permute.xlu1 %4823 }
 0x66f   :  { %v10247_v0 = vpop.permute.xlu0 %4943 }
 0x670   :  { %5144 = vrot.lane.b32.xlu1 %v9989_v9, %s5698_s2 }
 0x671   :  { %v10251_v27 = vpop.permute.xlu1 %4831 }
 0x673   :  { %v4952_v8 = vpop.permute.xlu0 %4951 }
 0x674   :  { %5148 = vrot.lane.b32.xlu1 %v10000_v38, %s5698_s2  ;;  %v4997_v30 = vmul.f32 %v10264_v60, %v4952_v8 }
 0x675   :  { %v10255_v49 = vpop.permute.xlu1 %4835 }
 0x677   :  { %v4960_v2 = vpop.permute.xlu0 %4959 }
 0x678   :  { %5152 = vrot.lane.b32.xlu1 %v10012_v51, %s5698_s2  ;;  %v4999_v14 = vmul.f32 %v10264_v60, %v4960_v2 }
 0x679   :  { %v10259_v44 = vpop.permute.xlu1 %4843 }
 0x67b   :  { %v4968_v62 = vpop.permute.xlu0 %4967 }
 0x67d   :  { %v4852_v47 = vpop.permute.xlu1 %4851 }
 0x67e   :  { %v4897_v34 = vmul.f32 %v10221_v11, %v4852_v47  ;;  %v5001_v47 = vmul.f32 %v10264_v60, %v4968_v62 }
 0x67f   :  { %v4976_v26 = vpop.permute.xlu0 %4975 }
 0x680   :  { %v4913_v54 = vadd.f32 %v4897_v34, %v4813_v6 }
 0x681   :  { %v4860_v45 = vpop.permute.xlu1 %4859 }
 0x682   :  { %v4899_v50 = vmul.f32 %v10221_v11, %v4860_v45  ;;  %v10273_v56 = vadd.f32 %v4997_v30, %v4913_v54  ;;  %v4819_v45 = vmul.f32 %v10226_v63, %v10172_v42  ;;  %v5003_v54 = vmul.f32 %v10264_v60, %v4976_v26 }
 0x683   :  { %v4984_v48 = vpop.permute.xlu0 %4983  ;;  %v4891_v26 = vmul.f32 %v10221_v11, %v10186_v32 }
 0x684   :  { %v4915_v10 = vadd.f32 %v4899_v50, %v4815_v43 }
 0x685   :  { %v4868_v18 = vpop.permute.xlu1 %4867 }
 0x686   :  { %v4901_v34 = vmul.f32 %v10221_v11, %v4868_v18  ;;  %v10279_v6 = vadd.f32 %v4999_v14, %v4915_v10  ;;  %v4821_v18 = vmul.f32 %v10226_v63, %v10179_v24  ;;  %v5005_v10 = vmul.f32 %v10264_v60, %v4984_v48 }
 0x688   :  { %v4917_v8 = vadd.f32 %v4901_v34, %v4817_v29  ;;  %v5028_v17 = vpop.permute.xlu0 %5027  ;;  %v4807_v34 = vmul.f32 %v10226_v63, %v10170_v23  ;;  %v4810_v23 = vmul.f32 %v10226_v63, %v10189_v37  ;;  %v4816_v37 = vmul.f32 %v10226_v63, %v10216_v12 }
 0x689   :  { %v4876_v51 = vpop.permute.xlu1 %4875 }
 0x68a   :  { %v4903_v50 = vmul.f32 %v10221_v11, %v4876_v51  ;;  %v10285_v43 = vadd.f32 %v5001_v47, %v4917_v8  ;;  %v11578_v8 = vsub.s32 3, %v11574_v33 }
 0x68c   :  { %v4919_v30 = vadd.f32 %v4903_v50, %v4819_v45  ;;  %v5040_v19 = vpop.permute.xlu0 %5039  ;;  %v10302_v24 = vrot.slane %v10214_v22, %v11578_v8  ;;  %v4894_v22 = vmul.f32 %v10221_v11, %v10191_v59 }
 0x68d   :  { %v4884_v2 = vpop.permute.xlu1 %4883 }
 0x68e   :  { %v4905_v14 = vmul.f32 %v10221_v11, %v4884_v2  ;;  %v10291_v62 = vadd.f32 %v5003_v54, %v4919_v30  ;;  %v4907_v54 = vadd.f32 %v4891_v26, %v4807_v34  ;;  %v5091_v30 = vmul.f32 %v10302_v24, %v5028_v17 }
 0x68f   :  { %v4910_v17 = vadd.f32 %v4894_v22, %v4810_v23 }
 0x690   :  { %v4921_v29 = vadd.f32 %v4905_v14, %v4821_v18  ;;  %v5048_v42 = vpop.permute.xlu0 %5047 }
 0x691   :  { %v5096_v33 = vmul.f32 %v10302_v24, %v5048_v42 }
 0x692   :  { %v4928_v51 = vpop.permute.xlu1 %4927  ;;  %v10295_v47 = vadd.f32 %v5005_v10, %v4921_v29 }
 0x693   :  { %v4991_v48 = vmul.f32 %v10264_v60, %v4928_v51 }
 0x694   :  { %v5056_v45 = vpop.permute.xlu0 %5055 }
 0x695   :  { %v5007_v32 = vadd.f32 %v4991_v48, %v4907_v54  ;;  %v4900_v54 = vmul.f32 %v10221_v11, %v10205_v41  ;;  %v5098_v42 = vmul.f32 %v10302_v24, %v5056_v45 }
 0x696   :  { %v10305_v50 = vpop.permute.xlu1 %4931 }
 0x697   :  { %v5107_v10 = vadd.f32 %v5091_v30, %v5007_v32  ;;  %v5094_v30 = vmul.f32 %v10302_v24, %v5040_v19  ;;  %v4896_v32 = vmul.f32 %v10221_v11, %v10197_v25  ;;  %v4916_v22 = vadd.f32 %v4900_v54, %v4816_v37 }
 0x698   :  { %v5064_v2 = vpop.permute.xlu0 %5063  ;;  %v4814_v25 = vmul.f32 %v10226_v63, %v10208_v5 }
 0x699   :  { %v5100_v41 = vmul.f32 %v10302_v24, %v5064_v2 }
 0x69a   :  { %v4940_v18 = vpop.permute.xlu1 %4939 }
 0x69b   :  { %v4994_v51 = vmul.f32 %v10264_v60, %v4940_v18  ;;  %v4812_v18 = vmul.f32 %v10226_v63, %v10200_v28 }
 0x69c   :  { %v5125_v14 = vpop.permute.xlu0 %5124 }
 0x69d   :  { %v5171_v29 = vmul.f32 %v5125_v14, %v5107_v10  ;;  %v5010_v59 = vadd.f32 %v4994_v51, %v4910_v17  ;;  %v4898_v51 = vmul.f32 %v10221_v11, %v10202_v36 }
 0x69e   :  { %v4948_v8 = vpop.permute.xlu1 %4947 }
 0x69f   :  { %v5189_v26 = vsel %vm3494_vm0, %v5171_v29, 0.0  ;;  %v4996_v14 = vmul.f32 %v10264_v60, %v4948_v8  ;;  %v5110_v12 = vadd.f32 %v5094_v30, %v5010_v59  ;;  %v4914_v36 = vadd.f32 %v4898_v51, %v4814_v25 }
 0x6a0   :  { %5190 = vadd.xlane.f32.xlu1 %v5189_v26  ;;  %v10314_v34 = vpop.permute.xlu0 %5126  ;;  %v4912_v26 = vadd.f32 %v4896_v32, %v4812_v18 }
 0x6a2   :  { %v4956_v48 = vpop.permute.xlu1 %4955  ;;  %v5012_v8 = vadd.f32 %v4996_v14, %v4912_v26 }
 0x6a3   :  { %v4998_v54 = vmul.f32 %v10264_v60, %v4956_v48 }
 0x6a4   :  { %v10325_v10 = vpop.permute.xlu0 %5128  ;;  %v5112_v48 = vadd.f32 %v5096_v33, %v5012_v8  ;;  %v4890_v33 = vmul.f32 %v10221_v11, %v10245_v3  ;;  %v4992_v3 = vmul.f32 %v10264_v60, %v10305_v50 }
 0x6a5   :  { %v5014_v18 = vadd.f32 %v4998_v54, %v4914_v36  ;;  %v4990_v54 = vmul.f32 %v10264_v60, %v10231_v40 }
 0x6a6   :  { %v4964_v23 = vpop.permute.xlu1 %4963 }
 0x6a7   :  { %v5000_v29 = vmul.f32 %v10264_v60, %v4964_v23 }
 0x6a8   :  { %v5131_v19 = vpop.permute.xlu0 %5130 }
 0x6a9   :  { %v5016_v28 = vadd.f32 %v5000_v29, %v4916_v22  ;;  %v5174_v17 = vmul.f32 %v5131_v19, %v5110_v12  ;;  %v5114_v12 = vadd.f32 %v5098_v42, %v5014_v18  ;;  %v4895_v18 = vmul.f32 %v10221_v11, %v10259_v44 }
 0x6aa   :  { %v4972_v38 = vpop.permute.xlu1 %4971 }
 0x6ab   :  { %v5002_v2 = vmul.f32 %v10264_v60, %v4972_v38  ;;  %v5198_v37 = vsel %vm3494_vm0, %v5174_v17, 0.0  ;;  %v10338_v30 = vadd.f32 %v5100_v41, %v5016_v28  ;;  %v4892_v28 = vmul.f32 %v10221_v11, %v10251_v27 }
 0x6ac   :  { %5199 = vadd.xlane.f32.xlu1 %v5198_v37  ;;  %v10340_v59 = vpop.permute.xlu0 %5132  ;;  %v4808_v17 = vmul.f32 %v10226_v63, %v10177_v53  ;;  %v4893_v37 = vmul.f32 %v10221_v11, %v10255_v49  ;;  %v4993_v53 = vmul.f32 %v10264_v60, %v10239_v15  ;;  %v4995_v15 = vmul.f32 %v10264_v60, %v10247_v0 }
 0x6ad   :  { %v10343_v5 = vadd.f32 %v5002_v2, %v10234_v16 }
 0x6ae   :  { %v4980_v32 = vpop.permute.xlu1 %4979  ;;  %v4908_v36 = vadd.f32 %v4892_v28, %v4808_v17 }
 0x6af   :  { %v5004_v14 = vmul.f32 %v10264_v60, %v4980_v32 }
 0x6b0   :  { %v5135_v23 = vpop.permute.xlu0 %5134  ;;  %v5008_v49 = vadd.f32 %v4992_v3, %v4908_v36 }
 0x6b1   :  { %v10348_v38 = vadd.f32 %v5004_v14, %v10241_v1  ;;  %v5176_v22 = vmul.f32 %v5135_v23, %v5112_v48  ;;  %v4806_v1 = vmul.f32 %v10226_v63, %v10150_v52  ;;  %v4809_v52 = vmul.f32 %v10226_v63, %v10184_v39 }
 0x6b2   :  { %v4811_v39 = vmul.f32 %v10226_v63, %v10195_v46 }
 0x6b3   :  { %v5024_v41 = vpop.permute.xlu1 %5023  ;;  %v5204_v29 = vsel %vm3494_vm0, %v5176_v22, 0.0  ;;  %v4906_v2 = vadd.f32 %v4890_v33, %v4806_v1  ;;  %v4909_v40 = vadd.f32 %v4893_v37, %v4809_v52 }
 0x6b4   :  { %5205 = vadd.xlane.f32.xlu1 %v5204_v29  ;;  %v5139_v26 = vpop.permute.xlu0 %5138  ;;  %v5090_v27 = vmul.f32 %v10302_v24, %v5024_v41  ;;  %v4911_v41 = vadd.f32 %v4895_v18, %v4811_v39 }
 0x6b5   :  { %v5178_v16 = vmul.f32 %v5139_v26, %v5114_v12  ;;  %v5006_v14 = vadd.f32 %v4990_v54, %v4906_v2  ;;  %v5009_v29 = vadd.f32 %v4993_v53, %v4909_v40 }
 0x6b6   :  { %v5011_v46 = vadd.f32 %v4995_v15, %v4911_v41  ;;  %v11579_v41 = vld [vmem:[#allocation93_spill] sm:$0xff] }
 0x6b7   :  { %v5032_v19 = vpop.permute.xlu1 %5031  ;;  %v5210_v51 = vsel %vm3494_vm0, %v5178_v16, 0.0  ;;  %v5106_v23 = vadd.f32 %v5090_v27, %v5006_v14 }
 0x6b8   :  { %5211 = vadd.xlane.f32.xlu1 %v5210_v51  ;;  %v5092_v32 = vmul.f32 %v10302_v24, %v5032_v19 }
 0x6ba   :  { %v5108_v50 = vadd.f32 %v5092_v32, %v5008_v49 }
 0x6bb   :  { %v5036_v45 = vpop.permute.xlu1 %5035 }
 0x6bc   :  { %v5093_v48 = vmul.f32 %v10302_v24, %v5036_v45  ;;  %v5172_v16 = vmul.f32 %v10314_v34, %v5108_v50 }
 0x6be   :  { %v5109_v44 = vadd.f32 %v5093_v48, %v5009_v29  ;;  %v5192_v45 = vsel %vm3494_vm0, %v5172_v16, 0.0  ;;  %v11580_v29 = vld [vmem:[#allocation94_spill] sm:$0xff] }
 0x6bf   :  { %v5044_v25 = vpop.permute.xlu1 %5043 }
 0x6c0   :  { %v5095_v12 = vmul.f32 %v10302_v24, %v5044_v25  ;;  %v5173_v60 = vmul.f32 %v10325_v10, %v5109_v44 }
 0x6c2   :  { %v5111_v51 = vadd.f32 %v5095_v12, %v5011_v46  ;;  %v5195_v1 = vsel %vm3494_vm0, %v5173_v60, 0.0 }
 0x6c3   :  { %v5052_v8 = vpop.permute.xlu1 %5051 }
 0x6c4   :  { %v5175_v28 = vmul.f32 %v10340_v59, %v5111_v51  ;;  %v5097_v3 = vmul.f32 %v10302_v24, %v5052_v8 }
 0x6c6   :  { %v5201_v2 = vsel %vm3494_vm0, %v5175_v28, 0.0  ;;  %v5113_v27 = vadd.f32 %v5097_v3, %v10273_v56  ;;  %v5700_v56 = vmov 8  }
 0x6c7   :  { %v5060_v42 = vpop.permute.xlu1 %5059  ;;  %5543 = vset.pattern.permute.xlu1 %v5700_v56  ;;  %5542 = vset.pattern.permute.xlu0 %v5700_v56 }
 0x6c8   :  { %v5099_v59 = vmul.f32 %v10302_v24, %v5060_v42 }
 0x6c9   :  { %5234 = vrot.lane.b32.xlu1 %v9977_v31, %s5699_s4 }
 0x6ca   :  { %v5115_v18 = vadd.f32 %v5099_v59, %v10279_v6 }
 0x6cb   :  { %v5123_v22 = vpop.permute.xlu1 %5122 }
 0x6cc   :  { %v5170_v11 = vmul.f32 %v5123_v22, %v5106_v23 }
 0x6ce   :  { %v5186_v26 = vsel %vm3494_vm0, %v5170_v11, 0.0 }
 0x6cf   :  { %v5068_v19 = vpop.permute.xlu1 %5067  ;;  %5187 = vadd.xlane.f32.xlu0 %v5186_v26 }
 0x6d0   :  { %v5101_v63 = vmul.f32 %v10302_v24, %v5068_v19 }
 0x6d2   :  { %v5117_v0 = vadd.f32 %v5101_v63, %v10285_v43 }
 0x6d3   :  { %v5072_v33 = vpop.permute.xlu1 %5071  ;;  %5193 = vadd.xlane.f32.xlu0 %v5192_v45 }
 0x6d4   :  { %v5102_v25 = vmul.f32 %v10302_v24, %v5072_v33 }
 0x6d6   :  { %v5118_v34 = vadd.f32 %v5102_v25, %v10343_v5 }
 0x6d7   :  { %v5076_v17 = vpop.permute.xlu1 %5075  ;;  %5196 = vadd.xlane.f32.xlu0 %v5195_v1 }
 0x6d8   :  { %v5103_v54 = vmul.f32 %v10302_v24, %v5076_v17 }
 0x6da   :  { %v5119_v10 = vadd.f32 %v5103_v54, %v10291_v62  ;;  %v5143_v62 = vpop.permute.xlu0 %5142 }
 0x6db   :  { %v5080_v37 = vpop.permute.xlu1 %5079  ;;  %5202 = vadd.xlane.f32.xlu0 %v5201_v2 }
 0x6dc   :  { %v5104_v43 = vmul.f32 %v10302_v24, %v5080_v37 }
 0x6de   :  { %v5120_v52 = vadd.f32 %v5104_v43, %v10348_v38  ;;  %v5180_v38 = vmul.f32 %v5143_v62, %v10338_v30  ;;  %v5147_v50 = vpop.permute.xlu0 %5146  ;;  %v11581_v43 = vld [vmem:[#allocation351_spill] sm:$0xff] }
 0x6df   :  { %v5084_v36 = vpop.permute.xlu1 %5083  ;;  %v5182_v23 = vmul.f32 %v5147_v50, %v5118_v34 }
 0x6e0   :  { %v5105_v5 = vmul.f32 %v10302_v24, %v5084_v36  ;;  %v5216_v24 = vsel %vm3494_vm0, %v5180_v38, 0.0 }
 0x6e1   :  { %v5222_v15 = vsel %vm3494_vm0, %v5182_v23, 0.0  ;;  %v11588_v23 = vld [vmem:[#allocation96_spill] sm:$0xff] }
 0x6e2   :  { %v5121_v32 = vadd.f32 %v5105_v5, %v10295_v47  ;;  %v5151_v11 = vpop.permute.xlu0 %5150 }
 0x6e3   :  { %v5137_v53 = vpop.permute.xlu1 %5136  ;;  %v5184_v26 = vmul.f32 %v5151_v11, %v5120_v52  ;;  %v11582_v52 = vld [vmem:[#allocation211_spill] sm:$0xff] }
 0x6e4   :  { %v5177_v40 = vmul.f32 %v5137_v53, %v5113_v27 }
 0x6e5   :  { %v5228_v63 = vsel %vm3494_vm0, %v5184_v26, 0.0  ;;  %v11589_v26 = vld [vmem:[#allocation352_spill] sm:$0xff] }
 0x6e6   :  { %v5207_v49 = vsel %vm3494_vm0, %v5177_v40, 0.0  ;;  %v11584_v40 = vld [vmem:[#allocation218_spill] sm:$0xff] }
 0x6e7   :  { %v5141_v14 = vpop.permute.xlu1 %5140  ;;  %5208 = vadd.xlane.f32.xlu0 %v5207_v49 }
 0x6e8   :  { %v5179_v8 = vmul.f32 %v5141_v14, %v5115_v18  ;;  %v11586_v18 = vld [vmem:[#allocation97_spill] sm:$0xff] }
 0x6ea   :  { %v5213_v39 = vsel %vm3494_vm0, %v5179_v8, 0.0 }
 0x6eb   :  { %5214 = vadd.xlane.f32.xlu0 %v5213_v39  ;;  %v5145_v6 = vpop.permute.xlu1 %5144 }
 0x6ec   :  { %v5181_v42 = vmul.f32 %v5145_v6, %v5117_v0 }
 0x6ed   :  { %5217 = vadd.xlane.f32.xlu1 %v5216_v24 }
 0x6ee   :  { %v5219_v22 = vsel %vm3494_vm0, %v5181_v42, 0.0  ;;  %v11587_v42 = vld [vmem:[#allocation95_spill] sm:$0xff] }
 0x6ef   :  { %v5149_v47 = vpop.permute.xlu1 %5148 }
 0x6f0   :  { %v5183_v30 = vmul.f32 %v5149_v47, %v5119_v10 }
 0x6f2   :  { %v5225_v48 = vsel %vm3494_vm0, %v5183_v30, 0.0 }
 0x6f3   :  { %v5153_v44 = vpop.permute.xlu1 %5152 }
 0x6f4   :  { %v5185_v19 = vmul.f32 %v5153_v44, %v5121_v32  ;;  %v11583_v32 = vld [vmem:[#allocation213_spill] sm:$0xff] }
 0x6f6   :  { %v5231_v45 = vsel %vm3494_vm0, %v5185_v19, 0.0  ;;  %vm5452_vm0 = vcmask 589312  }
 0x6fe   :  { %5240 = vrot.lane.b32.xlu1 %v10019_v4, %s5699_s4 }
 0x701   :  { %5236 = vrot.lane.b32.xlu0 %v9995_v13, %s5699_s4 }
 0x705   :  { %5238 = vrot.lane.b32.xlu0 %v10007_v57, %s5699_s4 }
 0x722   :  { %5226 = vadd.xlane.f32.xlu1 %v5225_v48 }
 0x724   :  { %5220 = vadd.xlane.f32.xlu0 %v5219_v22 }
 0x728   :  { %5223 = vadd.xlane.f32.xlu0 %v5222_v15 }
 0x729   :  { %v5191_v16 = vpop.xlane.xlu1 %5190 }
 0x733   :  { %5246 = vrot.lane.b32.xlu1 %v10039_v55, %s5699_s4 }
 0x735   :  { %v5200_v51 = vpop.xlane.xlu1 %5199 }
 0x737   :  { %5250 = vrot.lane.b32.xlu1 %v10046_v20, %s5699_s4 }
 0x73b   :  { %5252 = vrot.lane.b32.xlu1 %v9983_v7, %s5699_s4 }
 0x73d   :  { %v5206_v60 = vpop.xlane.xlu1 %5205 }
 0x73e   :  { %5242 = vrot.lane.b32.xlu0 %v10026_v21, %s5699_s4 }
 0x73f   :  { %5254 = vrot.lane.b32.xlu1 %v10058_v35, %s5699_s4 }
 0x741   :  { %v5212_v33 = vpop.xlane.xlu1 %5211 }
 0x742   :  { %5244 = vrot.lane.b32.xlu0 %v10033_v58, %s5699_s4 }
 0x743   :  { %5256 = vrot.lane.b32.xlu1 %v9989_v9, %s5699_s4 }
 0x745   :  { %v5235_v34 = vpop.permute.xlu1 %5234 }
 0x746   :  { %v5282_v37 = vmul.f32 %v5235_v34, %v9977_v31  ;;  %v11591_v34 = vld [vmem:[#allocation220_spill] sm:$0xff] }
 0x747   :  { %5258 = vrot.lane.b32.xlu1 %v10065_v61, %s5699_s4 }
 0x748   :  { %v5298_v53 = vmul.f32 %v5282_v37, %v11583_v32 }
 0x74b   :  { %5260 = vrot.lane.b32.xlu1 %v11579_v41, %s5699_s4 }
 0x74f   :  { %5264 = vrot.lane.b32.xlu1 %v11580_v29, %s5699_s4 }
 0x758   :  { %v5188_v12 = vpop.xlane.xlu0 %5187 }
 0x759   :  { %v5314_v31 = vadd.f32 %v5298_v53, %v5188_v12 }
 0x75c   :  { %v5194_v46 = vpop.xlane.xlu0 %5193 }
 0x760   :  { %v5197_v0 = vpop.xlane.xlu0 %5196 }
 0x761   :  { %5229 = vadd.xlane.f32.xlu0 %v5228_v63 }
 0x764   :  { %v5203_v25 = vpop.xlane.xlu0 %5202 }
 0x765   :  { %5232 = vadd.xlane.f32.xlu0 %v5231_v45 }
 0x770   :  { %v10438_v1 = vpop.xlane.xlu0 %5208 }
 0x774   :  { %v10440_v28 = vpop.xlane.xlu0 %5214 }
 0x776   :  { %v5218_v17 = vpop.xlane.xlu1 %5217 }
 0x778   :  { %v5237_v54 = vpop.permute.xlu0 %5236 }
 0x779   :  { %v5283_v2 = vmul.f32 %v5237_v54, %v9995_v13  ;;  %v11585_v13 = vld [vmem:[#allocation350_spill] sm:$0xff] }
 0x77a   :  { %v5241_v10 = vpop.permute.xlu1 %5240 }
 0x77b   :  { %v5299_v3 = vmul.f32 %v5283_v2, %v11581_v43  ;;  %5248 = vrot.lane.b32.xlu0 %v11582_v52, %s5699_s4  ;;  %v5285_v59 = vmul.f32 %v5241_v10, %v10019_v4  ;;  %v11592_v2 = vld [vmem:[#allocation353_spill] sm:$0xff] }
 0x77c   :  { %v5239_v36 = vpop.permute.xlu0 %5238 }
 0x77d   :  { %v5315_v5 = vadd.f32 %v5299_v3, %v5191_v16  ;;  %v5284_v27 = vmul.f32 %v5239_v36, %v10007_v57  ;;  %v5301_v49 = vmul.f32 %v5285_v59, %v11586_v18  ;;  %v11594_v59 = vld [vmem:[#allocation100_spill] sm:$0xff] }
 0x77f   :  { %v5300_v62 = vmul.f32 %v5284_v27, %v11584_v40  ;;  %5262 = vrot.lane.b32.xlu0 %v11585_v13, %s5699_s4  ;;  %5350 = vperm.xlu1 %5543, %v5315_v5   ;;  %v5317_v38 = vadd.f32 %v5301_v49, %v5197_v0  ;;  %v11595_v40 = vld [vmem:[#allocation101_spill] sm:$0xff] }
 0x781   :  { %v5316_v14 = vadd.f32 %v5300_v62, %v5194_v46  ;;  %v11590_v46 = vld [vmem:[#allocation98_spill] sm:$0xff] }
 0x783   :  { %5347 = vperm.xlu0 %5542, %v5314_v31   ;;  %5353 = vperm.xlu1 %5543, %v5316_v14  }
 0x787   :  { %5356 = vperm.xlu0 %5542, %v5317_v38  }
 0x7ab   :  { %v5227_v8 = vpop.xlane.xlu1 %5226 }
 0x7ad   :  { %v5221_v4 = vpop.xlane.xlu0 %5220 }
 0x7af   :  { %v5247_v39 = vpop.permute.xlu1 %5246 }
 0x7b0   :  { %v5288_v6 = vmul.f32 %v5247_v39, %v10039_v55 }
 0x7b1   :  { %v5224_v57 = vpop.xlane.xlu0 %5223 }
 0x7b2   :  { %v5304_v22 = vmul.f32 %v5288_v6, %v11588_v23 }
 0x7b3   :  { %v5251_v24 = vpop.permute.xlu1 %5250 }
 0x7b4   :  { %v5290_v15 = vmul.f32 %v5251_v24, %v10046_v20  ;;  %v5320_v19 = vadd.f32 %v5304_v22, %v5206_v60 }
 0x7b5   :  { %v5243_v56 = vpop.permute.xlu0 %5242 }
 0x7b6   :  { %v5286_v47 = vmul.f32 %v5243_v56, %v10026_v21  ;;  %v5306_v55 = vmul.f32 %v5290_v15, %v11590_v46 }
 0x7b7   :  { %v5253_v30 = vpop.permute.xlu1 %5252 }
 0x7b8   :  { %v5302_v50 = vmul.f32 %v5286_v47, %v11587_v42  ;;  %v5322_v0 = vadd.f32 %v5306_v55, %v5212_v33  ;;  %v11593_v33 = vld [vmem:[#allocation99_spill] sm:$0xff] }
 0x7b9   :  { %v5245_v48 = vpop.permute.xlu0 %5244 }
 0x7ba   :  { %v5318_v11 = vadd.f32 %v5302_v50, %v5200_v51  ;;  %v5287_v44 = vmul.f32 %v5245_v48, %v10033_v58 }
 0x7bb   :  { %v5255_v12 = vpop.permute.xlu1 %5254 }
 0x7bc   :  { %v5303_v16 = vmul.f32 %v5287_v44, %v11589_v26  ;;  %5359 = vperm.xlu1 %5543, %v5318_v11   ;;  %v5292_v21 = vmul.f32 %v5255_v12, %v10058_v35  ;;  %v5291_v35 = vmul.f32 %v5253_v30, %v9983_v7  ;;  %v11596_v7 = vld [vmem:[#allocation215_spill] sm:$0xff]  ;;  %v11601_v11 = vld [vmem:[#allocation72_spill] sm:$0xff] }
 0x7be   :  { %v5319_v63 = vadd.f32 %v5303_v16, %v5203_v25  ;;  %v5308_v54 = vmul.f32 %v5292_v21, %v11591_v34  ;;  %v5307_v27 = vmul.f32 %v5291_v35, %v11594_v59 }
 0x7bf   :  { %v5257_v45 = vpop.permute.xlu1 %5256 }
 0x7c0   :  { %5365 = vperm.xlu1 %5543, %v5320_v19   ;;  %5362 = vperm.xlu0 %5542, %v5319_v63   ;;  %v5324_v58 = vadd.f32 %v5308_v54, %v5218_v17  ;;  %v5323_v31 = vadd.f32 %v5307_v27, %v10440_v28 }
 0x7c3   :  { %v5259_v20 = vpop.permute.xlu1 %5258 }
 0x7c4   :  { %v5294_v51 = vmul.f32 %v5259_v20, %v10065_v61  ;;  %5371 = vperm.xlu1 %5543, %v5322_v0   ;;  %v5293_v61 = vmul.f32 %v5257_v45, %v9989_v9  ;;  %v11597_v9 = vld [vmem:[#allocation354_spill] sm:$0xff] }
 0x7c6   :  { %v5310_v10 = vmul.f32 %v5294_v51, %v11592_v2  ;;  %v5309_v18 = vmul.f32 %v5293_v61, %v11596_v7 }
 0x7c7   :  { %v5261_v53 = vpop.permute.xlu1 %5260 }
 0x7c8   :  { %5377 = vperm.xlu1 %5543, %v5324_v58   ;;  %v5326_v60 = vadd.f32 %v5310_v10, %v5224_v57  ;;  %v5325_v38 = vadd.f32 %v5309_v18, %v5221_v4  ;;  %v11598_v57 = vld [vmem:[#allocation222_spill] sm:$0xff] }
 0x7cb   :  { %v5265_v14 = vpop.permute.xlu1 %5264 }
 0x7cc   :  { %5383 = vperm.xlu1 %5543, %v5326_v60  }
 0x7ea   :  { %v5230_v37 = vpop.xlane.xlu0 %5229 }
 0x7ee   :  { %v5233_v25 = vpop.xlane.xlu0 %5232 }
 0x7f2   :  { %v5249_v43 = vpop.permute.xlu0 %5248 }
 0x7f3   :  { %v5289_v3 = vmul.f32 %v5249_v43, %v11582_v52  ;;  %v5295_v52 = vmul.f32 %v5261_v53, %v11579_v41  ;;  %v11599_v41 = vld [vmem:[#allocation348_spill] sm:$0xff] }
 0x7f4   :  { %v5398_v30 = vadd.s32 4294967288, %v11599_v41  ;;  %v5405_v42 = vadd.s32 4294967280, %v11599_v41  ;;  %v5412_v4 = vadd.s32 4294967272, %v11599_v41  ;;  %v5419_v48 = vadd.s32 4294967264, %v11599_v41 }
 0x7f5   :  { %v5305_v36 = vmul.f32 %v5289_v3, %v11593_v33  ;;  %v5311_v39 = vmul.f32 %v5295_v52, %v11597_v9  ;;  %v5433_v16 = vadd.s32 4294967248, %v11599_v41  ;;  %v5440_v34 = vadd.s32 4294967240, %v11599_v41 }
 0x7f6   :  { %v5263_v5 = vpop.permute.xlu0 %5262  ;;  %v5447_v2 = vadd.s32 4294967232, %v11599_v41  ;;  %v5468_v61 = vadd.s32 4294967208, %v11599_v41 }
 0x7f7   :  { %v5321_v17 = vadd.f32 %v5305_v36, %v10438_v1  ;;  %v5296_v32 = vmul.f32 %v5263_v5, %v11585_v13  ;;  %v5297_v1 = vmul.f32 %v5265_v14, %v11580_v29  ;;  %v5327_v13 = vadd.f32 %v5311_v39, %v5227_v8  ;;  %v11600_v29 = vld [vmem:[#allocation384_spill] sm:$0xff] }
 0x7f8   :  { %v5401_v23 = vsub.s32 %v5398_v30, %v11600_v29  ;;  %v5426_v8 = vadd.s32 4294967256, %v11599_v41  ;;  %v5408_v22 = vsub.s32 %v5405_v42, %v11600_v29  ;;  %v5415_v12 = vsub.s32 %v5412_v4, %v11600_v29 }
 0x7f9   :  { %v5312_v62 = vmul.f32 %v5296_v32, %v11595_v40  ;;  %5368 = vperm.xlu0 %5542, %v5321_v17   ;;  %v5313_v24 = vmul.f32 %v5297_v1, %v11598_v57  ;;  %v5422_v26 = vsub.s32 %v5419_v48, %v11600_v29  ;;  %v5436_v20 = vsub.s32 %v5433_v16, %v11600_v29 }
 0x7fa   :  { %v5351_v28 = vpop.permute.xlu1 %5350  ;;  %v5429_v55 = vsub.s32 %v5426_v8, %v11600_v29  ;;  %v5450_v33 = vsub.s32 %v5447_v2, %v11600_v29  ;;  %v5461_v36 = vadd.s32 4294967216, %v11599_v41  ;;  %v5471_v52 = vsub.s32 %v5468_v61, %v11600_v29 }
 0x7fb   :  { %v5328_v49 = vadd.f32 %v5312_v62, %v5230_v37  ;;  %v5329_v56 = vadd.f32 %v5313_v24, %v5233_v25  ;;  %v5402_v19 = vrot.slane %v5351_v28, %v5401_v23  ;;  %v5443_v37 = vsub.s32 %v5440_v34, %v11600_v29 }
 0x7fc   :  { %v5454_v25 = vadd.s32 4294967224, %v11599_v41  ;;  %v5464_v62 = vsub.s32 %v5461_v36, %v11600_v29  ;;  %v5489_v1 = vadd.s32 4294967184, %v11599_v41  ;;  %v5496_v28 = vadd.s32 4294967176, %v11599_v41 }
 0x7fd   :  { %5374 = vperm.xlu0 %5542, %v5323_v31   ;;  %5389 = vperm.xlu1 %5543, %v5328_v49   ;;  %v5475_v31 = vadd.s32 4294967200, %v11599_v41  ;;  %v5482_v49 = vadd.s32 4294967192, %v11599_v41 }
 0x7fe   :  { %v5354_v6 = vpop.permute.xlu1 %5353  ;;  %v5348_v47 = vpop.permute.xlu0 %5347  ;;  %v5457_v27 = vsub.s32 %v5454_v25, %v11600_v29  ;;  %v5492_v42 = vsub.s32 %v5489_v1, %v11600_v29  ;;  %v5499_v23 = vsub.s32 %v5496_v28, %v11600_v29 }
 0x7ff   :  { %v5397_v44 = vrot.slane %v5348_v47, %v11601_v11  ;;  %v5409_v63 = vrot.slane %v5354_v6, %v5408_v22  ;;  %v5478_v39 = vsub.s32 %v5475_v31, %v11600_v29 }
 0x801   :  { %5380 = vperm.xlu0 %5542, %v5325_v38   ;;  %v5404_v45 = vsel %vm5403_vm9, %v5402_v19, %v5397_v44 }
 0x802   :  { %v5357_v15 = vpop.permute.xlu0 %5356  ;;  %v5411_v58 = vsel %vm5410_vm10, %v5409_v63, %v5404_v45 }
 0x803   :  { %v5416_v0 = vrot.slane %v5357_v15, %v5415_v12 }
 0x805   :  { %5386 = vperm.xlu0 %5542, %v5327_v13   ;;  %v5418_v10 = vsel %vm5417_vm11, %v5416_v0, %v5411_v58 }
 0x809   :  { %5392 = vperm.xlu0 %5542, %v5329_v56   ;;  %v5485_v56 = vsub.s32 %v5482_v49, %v11600_v29 }
 0x837   :  { %v5360_v50 = vpop.permute.xlu1 %5359 }
 0x838   :  { %v5423_v54 = vrot.slane %v5360_v50, %v5422_v26 }
 0x83a   :  { %v5425_v43 = vsel %vm5424_vm12, %v5423_v54, %v5418_v10 }
 0x83b   :  { %v5366_v46 = vpop.permute.xlu1 %5365  ;;  %v5363_v21 = vpop.permute.xlu0 %5362 }
 0x83c   :  { %v5430_v51 = vrot.slane %v5363_v21, %v5429_v55  ;;  %v5437_v35 = vrot.slane %v5366_v46, %v5436_v20 }
 0x83e   :  { %v5432_v3 = vsel %vm5431_vm13, %v5430_v51, %v5425_v43 }
 0x83f   :  { %v5372_v60 = vpop.permute.xlu1 %5371  ;;  %v5439_v17 = vsel %vm5438_vm14, %v5437_v35, %v5432_v3 }
 0x840   :  { %v5451_v40 = vrot.slane %v5372_v60, %v5450_v33 }
 0x843   :  { %v5378_v32 = vpop.permute.xlu1 %5377 }
 0x844   :  { %v5465_v9 = vrot.slane %v5378_v32, %v5464_v62 }
 0x847   :  { %v5384_v57 = vpop.permute.xlu1 %5383 }
 0x848   :  { %v5479_v30 = vrot.slane %v5384_v57, %v5478_v39 }
 0x874   :  { %v5369_v5 = vpop.permute.xlu0 %5368 }
 0x875   :  { %v5444_v59 = vrot.slane %v5369_v5, %v5443_v37 }
 0x877   :  { %v5446_v53 = vsel %vm5445_vm15, %v5444_v59, %v5439_v17 }
 0x878   :  { %v5375_v7 = vpop.permute.xlu0 %5374  ;;  %v5453_v14 = vsel %vm5452_vm0, %v5451_v40, %v5446_v53  ;;  %v5390_v50 = vpop.permute.xlu1 %5389 }
 0x879   :  { %v5458_v18 = vrot.slane %v5375_v7, %v5457_v27  ;;  %v5493_v15 = vrot.slane %v5390_v50, %v5492_v42 }
 0x87b   :  { %v5460_v38 = vsel %vm5459_vm1, %v5458_v18, %v5453_v14 }
 0x87c   :  { %v5381_v13 = vpop.permute.xlu0 %5380  ;;  %v5467_v6 = vsel %vm5466_vm2, %v5465_v9, %v5460_v38 }
 0x87d   :  { %v5472_v24 = vrot.slane %v5381_v13, %v5471_v52 }
 0x87f   :  { %v5474_v47 = vsel %vm5473_vm3, %v5472_v24, %v5467_v6 }
 0x880   :  { %v5387_v4 = vpop.permute.xlu0 %5386  ;;  %v5481_v8 = vsel %vm5480_vm4, %v5479_v30, %v5474_v47 }
 0x881   :  { %v5486_v48 = vrot.slane %v5387_v4, %v5485_v56 }
 0x883   :  { %v5488_v22 = vsel %vm5487_vm5, %v5486_v48, %v5481_v8 }
 0x884   :  { %v5393_v11 = vpop.permute.xlu0 %5392  ;;  %v5495_v44 = vsel %vm5494_vm6, %v5493_v15, %v5488_v22 }
 0x885   :  { %v5500_v41 = vrot.slane %v5393_v11, %v5499_v23 }
 0x887   :  { %v5502_v12 = vsel %vm5501_vm7, %v5500_v41, %v5495_v44 }
 0x888   :  { %5504 = vst [vmem:[#allocation2] sm:$0x1] %v5502_v12 }
 0x889   :  { %5683 = shalt.err (!%p5680_p4)
}
 0x88a   :  { %5514 = dma.vmem_to_hbm [thread:$0]  %s5512_s23, 16, %s10519_s5, [#allocation3]  }
 0x88b   :  { %5692 = dma.done.wait [#allocation3], 16  }
 0x88c   :  { %5693 = vsyncadd [#allocation3], 4294967280 }
 0x88d   :  { %5518 = vsyncpa [#allocation3], 1 }

</bundles_post_ra>
